<compile_context>
chip_gen: v5e
topology: v5e:2x2
jax: 0.10.0
libtpu: 0.0.40
codegen_flags: <defaults>
</compile_context>

<pallas_src>
import functools

import jax
import jax.numpy as jnp
from jax.experimental import pallas as pl
from jax.experimental.pallas import tpu as pltpu

# Scoped-VMEM budget: v5e/v6e have 128 MiB physical VMEM, v7x only 64 MiB; stay <= 40 MiB
# so the same configuration is portable across generations (tiles here are tiny anyway).
_VMEM_LIMIT = 40 * 1024 * 1024


# ----------------------------- small helpers -------------------------------


def _tile(n, target, align):
    """Largest tile that divides n, is <= target and a multiple of `align`;
    falls back to the full dim (always a legal block shape)."""
    if n <= target:
        return n
    t = (target // align) * align
    while t >= align:
        if n % t == 0:
            return t
        t -= align
    return n


def _erf_approx(x):
    # Abramowitz & Stegun 7.1.26, |err| <= 1.5e-7 (far below bf16 operand noise).
    # Built only from ops guaranteed to lower in Mosaic (abs, exp, mul/add, where).
    a1, a2, a3, a4, a5 = (0.254829592, -0.284496736, 1.421413741,
                          -1.453152027, 1.061405429)
    p = 0.3275911
    sign = jnp.where(x < 0.0, -1.0, 1.0)
    ax = jnp.abs(x)
    t = 1.0 / (1.0 + p * ax)
    poly = ((((a5 * t + a4) * t + a3) * t + a2) * t + a1) * t
    return sign * (1.0 - poly * jnp.exp(-ax * ax))


def _gelu_exact(x):
    # matches torch.nn.GELU() (erf form) to ~1e-7
    return 0.5 * x * (1.0 + _erf_approx(x * 0.7071067811865476))


# ------------------------- fused linear (matmul) kernel ---------------------


def _make_linear_kernel(*, has_ln, has_bias, has_res, activation, ln_eps):
    def kernel(*refs):
        i = 0
        x_ref = refs[i]; i += 1
        w_ref = refs[i]; i += 1
        g_ref = be_ref = b_ref = r_ref = None
        if has_ln:
            g_ref = refs[i]; i += 1
            be_ref = refs[i]; i += 1
        if has_bias:
            b_ref = refs[i]; i += 1
        if has_res:
            r_ref = refs[i]; i += 1
        o_ref = refs[i]; i += 1
        acc_ref = refs[i]

        k = pl.program_id(2)
        n_k = pl.num_programs(2)

        @pl.when(k == 0)
        def _init():
            acc_ref[...] = jnp.zeros_like(acc_ref)

        x = x_ref[...]                       # bf16 in HBM/VMEM
        if has_ln:
            # LayerNorm fused into the matmul input path; stats computed in f32
            # in VMEM (x itself stays bf16 in HBM -> half the DMA of an f32 copy).
            xf = x.astype(jnp.float32)
            mu = jnp.mean(xf, axis=-1, keepdims=True)
            var = jnp.mean(jnp.square(xf - mu), axis=-1, keepdims=True)
            xn = (xf - mu) * jax.lax.rsqrt(var + ln_eps)
            xn = xn * g_ref[...] + be_ref[...]
            x = xn.astype(w_ref.dtype)       # back to bf16 for the MXU
        acc_ref[...] += jnp.dot(x, w_ref[...], preferred_element_type=jnp.float32)

        @pl.when(k == n_k - 1)
        def _finalize():
            y = acc_ref[...]
            if has_bias:
                y = y + b_ref[...]
            if activation == "gelu":
                y = _gelu_exact(y)
            elif activation == "l2norm":
                # F.normalize(p=2, dim=-1, eps=1e-12); accumulation in f32.
                nrm = jnp.sqrt(jnp.sum(y * y, axis=-1, keepdims=True))
                y = y / jnp.maximum(nrm, 1e-12)
            if has_res:
                y = y + r_ref[...].astype(jnp.float32)
            o_ref[...] = y.astype(o_ref.dtype)

    return kernel


def linear_pallas(x, w, b=None, *, ln=None, residual=None, activation=None,
                  out_dtype=jnp.float32, ln_eps=1e-6,
                  tm_target=256, tn_target=512, tk_target=512):
    """y = epilogue(LN?(x) @ w + b) [+ residual].  x:[M,K] w:[K,N] b:[N].
    Weights are expected to already be bf16 (prepared once at init)."""
    M, K = x.shape
    N = w.shape[1]
    has_ln = ln is not None
    has_bias = b is not None
    has_res = residual is not None

    if w.dtype != jnp.bfloat16:        # no-op with prepared params (no HBM copy)
        w = w.astype(jnp.bfloat16)
    if x.dtype != jnp.bfloat16:        # no-op for the bf16 residual stream
        x = x.astype(jnp.bfloat16)

    if has_ln:
        tk = K                          # LN needs the whole feature dim per tile
    else:
        tk = _tile(K, tk_target, 128)
    if activation == "l2norm":
        tn = N                          # row norm needs the full output dim per tile
    else:
        tn = _tile(N, tn_target, 128)
    tm = _tile(M, tm_target, 16)        # bf16 operand sublane pack

    # Fusion validity (do not rely on *_target defaults alone).
    assert not has_ln or tk == K, "LayerNorm fusion requires tk == K"
    assert activation != "l2norm" or tn == N, "l2norm fusion requires tn == N"
    assert M % tm == 0 and N % tn == 0 and K % tk == 0

    idx_x = lambda i, j, k: (i, k)
    idx_w = lambda i, j, k: (k, j)
    idx_o = lambda i, j, k: (i, j)
    idx_nvec = lambda i, j, k: (0, j)
    idx_full = lambda i, j, k: (0, 0)

    in_specs = [pl.BlockSpec((tm, tk), idx_x), pl.BlockSpec((tk, tn), idx_w)]
    args = [x, w]
    if has_ln:
        g, be = ln
        in_specs += [pl.BlockSpec((1, K), idx_full), pl.BlockSpec((1, K), idx_full)]
        args += [g.reshape(1, K).astype(jnp.float32),
                 be.reshape(1, K).astype(jnp.float32)]
    if has_bias:
        in_specs.append(pl.BlockSpec((1, tn), idx_nvec))
        args.append(b.reshape(1, N).astype(jnp.float32))
    if has_res:
        in_specs.append(pl.BlockSpec((tm, tn), idx_o))
        args.append(residual)           # residual stream stays bf16; f32 add in-kernel

    kernel = _make_linear_kernel(has_ln=has_ln, has_bias=has_bias, has_res=has_res,
                                 activation=activation, ln_eps=ln_eps)
    return pl.pallas_call(
        kernel,
        out_shape=jax.ShapeDtypeStruct((M, N), out_dtype),
        grid=(M // tm, N // tn, K // tk),
        in_specs=in_specs,
        out_specs=pl.BlockSpec((tm, tn), idx_o),
        scratch_shapes=[pltpu.VMEM((tm, tn), jnp.float32)],
        compiler_params=pltpu.CompilerParams(
            dimension_semantics=("parallel", "parallel", "arbitrary"),
            vmem_limit_bytes=_VMEM_LIMIT),
    )(*args)


# ----------------------- flash attention (multi-head) -----------------------


def _make_flash_attn_kernel(*, heads, dh, wp):
    def kernel(q_ref, k_ref, v_ref, rel_h_ref, rel_w_ref, o_ref, m_sc, l_sc, acc_sc):
        kv = pl.program_id(2)
        n_kv = pl.num_programs(2)
        tq = q_ref.shape[1]
        tk = k_ref.shape[1]

        @pl.when(kv == 0)
        def _init():
            m_sc[...] = jnp.full_like(m_sc, -jnp.inf)
            l_sc[...] = jnp.zeros_like(l_sc)
            acc_sc[...] = jnp.zeros_like(acc_sc)

        for h in range(heads):
            c0 = h * dh
            qh = q_ref[0, :, c0:c0 + dh]                 # (tq, dh) bf16 (scale pre-folded)
            kh = k_ref[0, :, c0:c0 + dh]                 # (tk, dh) bf16
            vh = v_ref[0, :, c0:c0 + dh]                 # (tk, dh) bf16
            s = jax.lax.dot_general(
                qh, kh, (((1,), (1,)), ((), ())),
                preferred_element_type=jnp.float32)      # (tq, tk) f32, already scaled
            # Decomposed rel-pos bias: the DMA (BlockSpec) already selected this KV
            # tile's key-grid rows of rel_h, so the kernel only broadcasts + adds.
            bias = (rel_h_ref[0, h][:, :, None] + rel_w_ref[0, h][:, None, :])
            s = s + bias.reshape(tq, tk)
            m_prev = m_sc[h]                                       # (tq, 1)
            m_new = jnp.maximum(m_prev, jnp.max(s, axis=-1, keepdims=True))
            alpha = jnp.exp(m_prev - m_new)
            p = jnp.exp(s - m_new)                                 # f32 exp (v5e-safe)
            l_sc[h] = alpha * l_sc[h] + jnp.sum(p, axis=-1, keepdims=True)
            acc_sc[h] = alpha * acc_sc[h] + jnp.dot(
                p.astype(v_ref.dtype), vh, preferred_element_type=jnp.float32)
            m_sc[h] = m_new

        @pl.when(kv == n_kv - 1)
        def _finalize():
            # TODO(synk): exact division fallback for validation against a torch ref.
            inv_l = pl.reciprocal(l_sc[...], approx=True)          # (heads, tq, 1)
            parts = [(acc_sc[h] * inv_l[h]).astype(o_ref.dtype) for h in range(heads)]
            o_ref[0] = jnp.concatenate(parts, axis=-1)             # lane-dense (tq, C)

    return kernel


def _choose_rows(hp, wp, tk_target):
    """Rows of the key grid covered by one KV tile.  tk = rows * wp; the rel_h BlockSpec
    blocks its last (Hp) dim by `rows`, which must be == Hp or a multiple of 128 to stay
    a legal lane width."""
    if hp * wp <= tk_target:
        return hp
    for r in range(hp - 1, 0, -1):
        if hp % r == 0 and r % 128 == 0 and r * wp <= tk_target:
            return r
    # TODO(synk): very large Hp (or window attention, wp=14) would want padding here;
    # fall back to the whole key grid in one KV tile.
    return hp


def flash_attention(qkv, rel_h, rel_w, *, heads, hp, wp,
                    out_dtype=jnp.bfloat16, tq_target=256, tk_target=512):
    """qkv: [B, L, 3C] channel-packed (heads packed inside each C chunk, q pre-scaled);
    rel_h: [B, heads, L, Hp], rel_w: [B, heads, L, Wp] decomposed rel-pos bias."""
    B, L, threeC = qkv.shape
    C = threeC // 3
    dh = C // heads
    assert L == hp * wp and rel_h.shape[-1] == hp and rel_w.shape[-1] == wp

    tq = _tile(L, tq_target, 16)
    rows = _choose_rows(hp, wp, tk_target)
    tk = rows * wp

    if qkv.dtype != jnp.bfloat16:
        qkv = qkv.astype(jnp.bfloat16)

    if C % 128 == 0:
        # Packed path: feed qkv three times with channel-offset blocks (no XLA slices,
        # no extra activation copies).
        q_arg, k_arg, v_arg = qkv, qkv, qkv
        q_spec = pl.BlockSpec((1, tq, C), lambda b, qi, ki: (b, qi, 0))
        k_spec = pl.BlockSpec((1, tk, C), lambda b, qi, ki: (b, ki, 1))
        v_spec = pl.BlockSpec((1, tk, C), lambda b, qi, ki: (b, ki, 2))
    else:
        # Small-C fallback (test config): a C-wide block over the 3C lane dim would be
        # an illegal (8,128) block, so slice once in XLA (cheap at these sizes).
        q_arg = qkv[:, :, :C]
        k_arg = qkv[:, :, C:2 * C]
        v_arg = qkv[:, :, 2 * C:]
        q_spec = pl.BlockSpec((1, tq, C), lambda b, qi, ki: (b, qi, 0))
        k_spec = pl.BlockSpec((1, tk, C), lambda b, qi, ki: (b, ki, 0))
        v_spec = pl.BlockSpec((1, tk, C), lambda b, qi, ki: (b, ki, 0))

    in_specs = [
        q_spec, k_spec, v_spec,
        # rel_h blocked along its Hp dim by `rows`: the DMA selects this KV tile's rows.
        pl.BlockSpec((1, heads, tq, rows), lambda b, qi, ki: (b, 0, qi, ki)),
        pl.BlockSpec((1, heads, tq, wp), lambda b, qi, ki: (b, 0, qi, 0)),
    ]
    args = [q_arg, k_arg, v_arg,
            rel_h.astype(jnp.float32), rel_w.astype(jnp.float32)]

    kernel = _make_flash_attn_kernel(heads=heads, dh=dh, wp=wp)
    return pl.pallas_call(
        kernel,
        out_shape=jax.ShapeDtypeStruct((B, L, C), out_dtype),
        grid=(B, L // tq, L // tk),
        in_specs=in_specs,
        out_specs=pl.BlockSpec((1, tq, C), lambda b, qi, ki: (b, qi, 0)),
        scratch_shapes=[
            pltpu.VMEM((heads, tq, 1), jnp.float32),   # m
            pltpu.VMEM((heads, tq, 1), jnp.float32),   # l
            pltpu.VMEM((heads, tq, dh), jnp.float32),  # acc
        ],
        compiler_params=pltpu.CompilerParams(
            dimension_semantics=("parallel", "parallel", "arbitrary"),
            vmem_limit_bytes=_VMEM_LIMIT),
    )(*args)


# ------------------------------- model glue --------------------------------


def _decomposed_rel_pos(q5, rel_pos_h, rel_pos_w):
    """q5: [B, Hp, Wp, heads, dh] -> rel_h [B,heads,L,Hp], rel_w [B,heads,L,Wp].
    (SAM add_decomposed_rel_pos with q_size == k_size; table gather + small einsum stays
    in XLA glue, the O(L*L) bias is never materialized.  The tables are stored divided by
    the attention scale because q itself carries the scale folded into its projection.)"""
    B, Hp, Wp, heads, dh = q5.shape
    idx_h = jnp.arange(Hp)[:, None] - jnp.arange(Hp)[None, :] + (Hp - 1)
    idx_w = jnp.arange(Wp)[:, None] - jnp.arange(Wp)[None, :] + (Wp - 1)
    Rh = rel_pos_h[idx_h]                       # [Hp, Hp, dh]
    Rw = rel_pos_w[idx_w]                       # [Wp, Wp, dh]
    qf = q5.astype(jnp.float32)
    rel_h = jnp.einsum("bijhd,ikd->bhijk", qf, Rh)
    rel_w = jnp.einsum("bijhd,jkd->bhijk", qf, Rw)
    return (rel_h.reshape(B, heads, Hp * Wp, Hp),
            rel_w.reshape(B, heads, Hp * Wp, Wp))


def vit_block(p, x, heads):
    # TODO(synk): MedSAM uses window attention (window_size=14) on most blocks;
    # this synthetic config runs global attention on every block.
    B, H, W, C = x.shape
    L = H * W
    dh = C // heads
    x2 = x.reshape(B * L, C)                                  # bf16 residual stream
    a = p["attn"]
    ln1 = (p["ln1_g"], p["ln1_b"])
    # ONE fused QKV projection: LayerNorm fused into the input path, q pre-scaled via
    # the weights (rel-pos tables compensated); output stays channel-packed [B*L, 3C].
    qkv = linear_pallas(x2, a["qkv_w"], a["qkv_b"], ln=ln1, out_dtype=jnp.bfloat16)
    q5 = qkv[:, :C].reshape(B, H, W, heads, dh)
    rel_h, rel_w = _decomposed_rel_pos(q5, a["rel_pos_h"], a["rel_pos_w"])
    o = flash_attention(qkv.reshape(B, L, 3 * C), rel_h, rel_w,
                        heads=heads, hp=H, wp=W, out_dtype=jnp.bfloat16)
    # output projection with the residual add fused into the epilogue
    x2 = linear_pallas(o.reshape(B * L, C), a["proj_w"], a["proj_b"],
                       residual=x2, out_dtype=jnp.bfloat16)
    # MLP: LN fused into w1 input path, exact GELU fused into w1 epilogue,
    # residual fused into w2 epilogue; hidden and residual stream in bf16.
    ln2 = (p["ln2_g"], p["ln2_b"])
    h = linear_pallas(x2, p["mlp_w1"], p["mlp_b1"], ln=ln2, activation="gelu",
                      out_dtype=jnp.bfloat16)
    x2 = linear_pallas(h, p["mlp_w2"], p["mlp_b2"], residual=x2, out_dtype=jnp.bfloat16)
    return x2.reshape(B, H, W, C)


def class_token_block(p, image, cls_token, heads):
    # nn.MultiheadAttention(batch_first=True): query = cls, key = value = image tokens.
    B, H, W, C = image.shape
    L = H * W
    dh = C // heads
    scale = dh ** -0.5
    shortcut = cls_token                                            # [B, 1, C] bf16
    # single fused in-proj over [cls ; image] (one launch instead of three tiny ones)
    tokens = jnp.concatenate([cls_token, image.reshape(B, L, C)], axis=1)
    qkv = linear_pallas(tokens.reshape(B * (1 + L), C), p["in_w"], p["in_b"],
                        out_dtype=jnp.bfloat16).reshape(B, 1 + L, 3 * C)
    q_cls = qkv[:, :1, :C]                                          # [B, 1, C]
    k_img = qkv[:, 1:, C:2 * C]                                     # [B, L, C]
    v_img = qkv[:, 1:, 2 * C:]                                      # [B, L, C]
    # Lq == 1: per the perf review this attention is done in plain XLA (a Pallas launch
    # would run 1-row MXU matmuls and be pure overhead); the projections stay in Pallas.
    q = q_cls.reshape(B, 1, heads, dh).transpose(0, 2, 1, 3)        # [B, h, 1, dh]
    k = k_img.reshape(B, L, heads, dh).transpose(0, 2, 1, 3)        # [B, h, L, dh]
    v = v_img.reshape(B, L, heads, dh).transpose(0, 2, 1, 3)        # [B, h, L, dh]
    s = jnp.einsum("bhqd,bhkd->bhqk", q, k,
                   preferred_element_type=jnp.float32) * scale
    probs = jax.nn.softmax(s, axis=-1)
    o = jnp.einsum("bhqk,bhkd->bhqd", probs.astype(v.dtype), v,
                   preferred_element_type=jnp.float32)
    o = o.transpose(0, 2, 1, 3).reshape(B, C).astype(jnp.bfloat16)
    cls1 = linear_pallas(o, p["out_w"], p["out_b"],
                         residual=shortcut.reshape(B, C),
                         out_dtype=jnp.bfloat16)                    # + shortcut
    h = linear_pallas(cls1, p["mlp_w1"], p["mlp_b1"], activation="gelu",
                      out_dtype=jnp.bfloat16)
    cls2 = linear_pallas(h, p["mlp_w2"], p["mlp_b2"], residual=cls1,
                         out_dtype=jnp.bfloat16)
    return cls2.reshape(B, 1, C)


def ibot_head(p, x):
    # DINOHead 3-layer MLP -> L2 normalize (fused into w3 epilogue) -> weight-normed
    # last layers (weight_g == 1 => unit-normalized prototype columns, no bias).
    B, T, C = x.shape
    h = x.reshape(B * T, C)
    h = linear_pallas(h, p["w1"], p["b1"], activation="gelu", out_dtype=jnp.bfloat16)
    h = linear_pallas(h, p["w2"], p["b2"], activation="gelu", out_dtype=jnp.bfloat16)
    h = linear_pallas(h, p["w3"], p["b3"], activation="l2norm",
                      out_dtype=jnp.bfloat16)                       # L2-normalized (f32 acc)
    bot = h.shape[-1]
    h = h.reshape(B, T, bot)
    cls_logits = linear_pallas(h[:, 0], p["last_w"], None)          # no-bias kernel, f32 out
    patch_logits = linear_pallas(h[:, 1:].reshape(B * (T - 1), bot), p["last2_w"], None)
    return cls_logits, patch_logits.reshape(B, T - 1, -1)


@functools.partial(jax.jit, static_argnames=("heads",))
def medsam_ibot_forward(params, image, mask, heads):
    """image: [B, 3, Himg, Wimg] (NCHW), mask: [B, Hp, Wp] bool."""
    B, Cin, Himg, _ = image.shape
    pos = params["pos_embed"]
    _, Hp, Wp, C = pos.shape
    pch = Himg // Hp
    # patch embed: Conv2d(k=stride=patch) as a tiled Pallas matmul
    x = image.reshape(B, Cin, Hp, pch, Wp, pch).transpose(0, 2, 4, 1, 3, 5)
    x = x.reshape(B * Hp * Wp, Cin * pch * pch)
    x = linear_pallas(x, params["patch_w"], params["patch_b"],
                      out_dtype=jnp.bfloat16).reshape(B, Hp, Wp, C)
    # masking: x[mask] = mask_token ; absolute pos embed (cheap XLA glue, bf16 stream)
    if mask is not None:
        x = jnp.where(mask[..., None], params["mask_token"], x)
    x = x + pos
    cls_token = jnp.broadcast_to(params["class_token"], (B, 1, C))
    for blk, blk2 in zip(params["blocks"], params["cls_blocks"]):
        x = vit_block(blk, x, heads)
        cls_token = class_token_block(blk2, x, cls_token, heads)
    x = x.reshape(B, Hp * Wp, C)
    x = jnp.concatenate([cls_token, x], axis=1)      # token 0 = cls
    return ibot_head(params["head"], x)


# ---------------------------- parameter init --------------------------------
# Weights are stored in bf16 ONCE here (no per-forward casts), the attention scale is
# folded into the q-projection weights/bias, and the rel-pos tables are divided by the
# same scale so the forward output is unchanged.


def _normal(key, shape, scale=0.02):
    return scale * jax.random.normal(key, shape, dtype=jnp.float32)


def _bf16(w):
    return w.astype(jnp.bfloat16)


def init_params(key, cfg):
    C = cfg["embed_dim"]
    heads = cfg["heads"]
    dh = C // heads
    attn_scale = dh ** -0.5
    Hp = cfg["img_size"] // cfg["patch_size"]
    Wp = Hp
    mlp = 4 * C
    keys = iter(jax.random.split(key, 512))
    nk = lambda: next(keys)

    params = {
        "patch_w": _bf16(_normal(nk(), (cfg["in_chans"] * cfg["patch_size"] ** 2, C))),
        "patch_b": _normal(nk(), (C,)),
        "pos_embed": _bf16(_normal(nk(), (1, Hp, Wp, C))),
        "class_token": _bf16(jax.random.normal(nk(), (1, 1, C), dtype=jnp.float32)),
        "mask_token": _bf16(jax.random.normal(nk(), (C,), dtype=jnp.float32)),
    }

    blocks, cls_blocks = [], []
    for _ in range(cfg["depth"]):
        qkv_w = _normal(nk(), (C, 3 * C))
        qkv_b = _normal(nk(), (3 * C,))
        # fold the attention scale into the q projection (free at init time)
        qkv_w = qkv_w.at[:, :C].multiply(attn_scale)
        qkv_b = qkv_b.at[:C].multiply(attn_scale)
        blocks.append({
            "ln1_g": jnp.ones((C,), jnp.float32), "ln1_b": jnp.zeros((C,), jnp.float32),
            "attn": {
                "qkv_w": _bf16(qkv_w), "qkv_b": qkv_b,
                "proj_w": _bf16(_normal(nk(), (C, C))), "proj_b": _normal(nk(), (C,)),
                # compensate the q pre-scale (q_scaled . (R/scale) == q . R)
                "rel_pos_h": _normal(nk(), (2 * Hp - 1, dh)) / attn_scale,
                "rel_pos_w": _normal(nk(), (2 * Wp - 1, dh)) / attn_scale,
            },
            "ln2_g": jnp.ones((C,), jnp.float32), "ln2_b": jnp.zeros((C,), jnp.float32),
            "mlp_w1": _bf16(_normal(nk(), (C, mlp))), "mlp_b1": _normal(nk(), (mlp,)),
            "mlp_w2": _bf16(_normal(nk(), (mlp, C))), "mlp_b2": _normal(nk(), (C,)),
        })
        cls_blocks.append({
            "in_w": _bf16(_normal(nk(), (C, 3 * C))), "in_b": _normal(nk(), (3 * C,)),
            "out_w": _bf16(_normal(nk(), (C, C))), "out_b": _normal(nk(), (C,)),
            "mlp_w1": _bf16(_normal(nk(), (C, mlp))), "mlp_b1": _normal(nk(), (mlp,)),
            "mlp_w2": _bf16(_normal(nk(), (mlp, C))), "mlp_b2": _normal(nk(), (C,)),
        })
    params["blocks"] = blocks
    params["cls_blocks"] = cls_blocks

    hid, bot = cfg["head_hidden"], cfg["bottleneck"]

    def col_unit_norm(key, in_dim, out_dim):
        # weight_norm with weight_g == 1 (row-normalized torch weight -> column-
        # normalized in our x @ W convention).
        v = _normal(key, (in_dim, out_dim), scale=1.0)
        return _bf16(v / jnp.sqrt(jnp.sum(v * v, axis=0, keepdims=True)))

    params["head"] = {
        "w1": _bf16(_normal(nk(), (C, hid))), "b1": _normal(nk(), (hid,)),
        "w2": _bf16(_normal(nk(), (hid, hid))), "b2": _normal(nk(), (hid,)),
        "w3": _bf16(_normal(nk(), (hid, bot))), "b3": _normal(nk(), (bot,)),
        "last_w": col_unit_norm(nk(), bot, cfg["out_dim"]),
        "last2_w": col_unit_norm(nk(), bot, cfg["patch_out_dim"]),
    }
    return params


# ----------------------------------- main -----------------------------------

if __name__ == "__main__":
    cfg = dict(img_size=16, patch_size=4, in_chans=3, embed_dim=32, depth=2,
               heads=8, head_hidden=64, bottleneck=32, out_dim=48, patch_out_dim=40)

    key = jax.random.PRNGKey(0)
    pkey, ikey, mkey = jax.random.split(key, 3)
    params = init_params(pkey, cfg)

    B = 2
    Hp = cfg["img_size"] // cfg["patch_size"]
    image = jax.random.normal(ikey, (B, cfg["in_chans"], cfg["img_size"], cfg["img_size"]),
                              dtype=jnp.float32)
    mask = jax.random.bernoulli(mkey, 0.25, (B, Hp, Hp))

    cls_logits, patch_logits = medsam_ibot_forward(params, image, mask, heads=cfg["heads"])
    jax.block_until_ready((cls_logits, patch_logits))

    assert cls_logits.shape == (B, cfg["out_dim"])
    assert patch_logits.shape == (B, Hp * Hp, cfg["patch_out_dim"])
    assert cls_logits.dtype == jnp.float32 and patch_logits.dtype == jnp.float32
    assert bool(jnp.all(jnp.isfinite(cls_logits)))
    assert bool(jnp.all(jnp.isfinite(patch_logits)))
    print("KERNEL_OK")
</pallas_src>

<mosaic_0001>
module attributes {stable_mosaic.version = 11 : i64} {
  func.func @kernel(%arg0: i32, %arg1: i32, %arg2: i32, %arg3: memref<32x32xbf16, #tpu.memory_space<vmem>>, %arg4: memref<32x96xbf16, #tpu.memory_space<vmem>>, %arg5: memref<1x32xf32, #tpu.memory_space<vmem>>, %arg6: memref<1x32xf32, #tpu.memory_space<vmem>>, %arg7: memref<1x96xf32, #tpu.memory_space<vmem>>, %arg8: memref<32x96xbf16, #tpu.memory_space<vmem>>, %arg9: memref<32x96xf32, #tpu.memory_space<vmem>>) attributes {dimension_semantics = [#tpu.dimension_semantics<parallel>, #tpu.dimension_semantics<parallel>, #tpu.dimension_semantics<arbitrary>], iteration_bounds = array<i64: 1, 1, 1>, scalar_prefetch = 0 : i64, scratch_operands = 1 : i64, tpu.core_type = #tpu.core_type<tc>, window_params = [{transform_indices = @transform_0, window_bounds = array<i64: 32, 32>}, {transform_indices = @transform_1, window_bounds = array<i64: 32, 96>}, {pipeline_mode = #tpu.pipeline_mode<synchronous>, transform_indices = @transform_2, window_bounds = array<i64: 1, 32>}, {pipeline_mode = #tpu.pipeline_mode<synchronous>, transform_indices = @transform_3, window_bounds = array<i64: 1, 32>}, {transform_indices = @transform_4, window_bounds = array<i64: 1, 96>}, {transform_indices = @transform_5, window_bounds = array<i64: 32, 96>}]} {
    %c0_i32 = arith.constant 0 : i32
    %0 = arith.cmpi eq, %arg2, %c0_i32 : i32
    %1 = arith.extui %0 : i1 to i32
    %c0_i32_0 = arith.constant 0 : i32
    %2 = arith.cmpi ne, %1, %c0_i32_0 : i32
    scf.if %2 {
      %cst_19 = arith.constant 0.000000e+00 : f32
      %38 = vector.broadcast %cst_19 : f32 to vector<32x96xf32>
      %c0_20 = arith.constant 0 : index
      %c0_21 = arith.constant 0 : index
      %39 = vector.load %arg9[%c0_20, %c0_21] : memref<32x96xf32, #tpu.memory_space<vmem>>, vector<32x96xf32>
      tpu.vector_store %arg9[%c0_20, %c0_21], %38 {strides = array<i32>} : memref<32x96xf32, #tpu.memory_space<vmem>>, vector<32x96xf32>,
    } else {
    }
    %c0 = arith.constant 0 : index
    %c0_1 = arith.constant 0 : index
    %3 = vector.load %arg3[%c0, %c0_1] : memref<32x32xbf16, #tpu.memory_space<vmem>>, vector<32x32xbf16>
    %4 = arith.extf %3 : vector<32x32xbf16> to vector<32x32xf32>
    %cst = arith.constant dense<0.000000e+00> : vector<32xf32>
    %5 = vector.multi_reduction <add>, %4, %cst [1] : vector<32x32xf32> to vector<32xf32>
    %6 = vector.shape_cast %5 : vector<32xf32> to vector<32x1xf32>
    %cst_2 = arith.constant 3.200000e+01 : f32
    %7 = vector.broadcast %cst_2 : f32 to vector<32x1xf32>
    %8 = arith.divf %6, %7 : vector<32x1xf32>
    %9 = vector.broadcast %8 : vector<32x1xf32> to vector<32x32xf32>
    %10 = arith.subf %4, %9 : vector<32x32xf32>
    %11 = arith.mulf %10, %10 : vector<32x32xf32>
    %cst_3 = arith.constant dense<0.000000e+00> : vector<32xf32>
    %12 = vector.multi_reduction <add>, %11, %cst_3 [1] : vector<32x32xf32> to vector<32xf32>
    %13 = vector.shape_cast %12 : vector<32xf32> to vector<32x1xf32>
    %cst_4 = arith.constant 3.200000e+01 : f32
    %14 = vector.broadcast %cst_4 : f32 to vector<32x1xf32>
    %15 = arith.divf %13, %14 : vector<32x1xf32>
    %16 = vector.broadcast %8 : vector<32x1xf32> to vector<32x32xf32>
    %17 = arith.subf %4, %16 : vector<32x32xf32>
    %cst_5 = arith.constant 9.99999997E-7 : f32
    %18 = vector.broadcast %cst_5 : f32 to vector<32x1xf32>
    %19 = arith.addf %15, %18 : vector<32x1xf32>
    %20 = math.rsqrt %19 : vector<32x1xf32>
    %21 = vector.broadcast %20 : vector<32x1xf32> to vector<32x32xf32>
    %22 = arith.mulf %17, %21 : vector<32x32xf32>
    %c0_6 = arith.constant 0 : index
    %c0_7 = arith.constant 0 : index
    %23 = vector.load %arg5[%c0_6, %c0_7] : memref<1x32xf32, #tpu.memory_space<vmem>>, vector<1x32xf32>
    %24 = vector.broadcast %23 : vector<1x32xf32> to vector<32x32xf32>
    %25 = arith.mulf %22, %24 : vector<32x32xf32>
    %c0_8 = arith.constant 0 : index
    %c0_9 = arith.constant 0 : index
    %26 = vector.load %arg6[%c0_8, %c0_9] : memref<1x32xf32, #tpu.memory_space<vmem>>, vector<1x32xf32>
    %27 = vector.broadcast %26 : vector<1x32xf32> to vector<32x32xf32>
    %28 = arith.addf %25, %27 : vector<32x32xf32>
    %29 = arith.truncf %28 : vector<32x32xf32> to vector<32x32xbf16>
    %c0_10 = arith.constant 0 : index
    %c0_11 = arith.constant 0 : index
    %30 = vector.load %arg9[%c0_10, %c0_11] : memref<32x96xf32, #tpu.memory_space<vmem>>, vector<32x96xf32>
    %c0_12 = arith.constant 0 : index
    %c0_13 = arith.constant 0 : index
    %31 = vector.load %arg4[%c0_12, %c0_13] : memref<32x96xbf16, #tpu.memory_space<vmem>>, vector<32x96xbf16>
    %cst_14 = arith.constant dense<0.000000e+00> : vector<32x96xf32>
    %32 = tpu.matmul %29, %31, %cst_14 {dimension_numbers = #tpu.dot_dimension_numbers<[1], [0], [0], [1], [0, 0, 1, 1], [], []>} : vector<32x32xbf16>, vector<32x96xbf16>, vector<32x96xf32> -> vector<32x96xf32>
    %33 = arith.addf %30, %32 : vector<32x96xf32>
    %c0_15 = arith.constant 0 : index
    %c0_16 = arith.constant 0 : index
    %34 = vector.load %arg9[%c0_15, %c0_16] : memref<32x96xf32, #tpu.memory_space<vmem>>, vector<32x96xf32>
    tpu.vector_store %arg9[%c0_15, %c0_16], %33 {strides = array<i32>} : memref<32x96xf32, #tpu.memory_space<vmem>>, vector<32x96xf32>,
    %c0_i32_17 = arith.constant 0 : i32
    %35 = arith.cmpi eq, %arg2, %c0_i32_17 : i32
    %36 = arith.extui %35 : i1 to i32
    %c0_i32_18 = arith.constant 0 : i32
    %37 = arith.cmpi ne, %36, %c0_i32_18 : i32
    scf.if %37 {
      %c0_19 = arith.constant 0 : index
      %c0_20 = arith.constant 0 : index
      %38 = vector.load %arg9[%c0_19, %c0_20] : memref<32x96xf32, #tpu.memory_space<vmem>>, vector<32x96xf32>
      %c0_21 = arith.constant 0 : index
      %c0_22 = arith.constant 0 : index
      %39 = vector.load %arg7[%c0_21, %c0_22] : memref<1x96xf32, #tpu.memory_space<vmem>>, vector<1x96xf32>
      %40 = vector.broadcast %39 : vector<1x96xf32> to vector<32x96xf32>
      %41 = arith.addf %38, %40 : vector<32x96xf32>
      %42 = arith.truncf %41 : vector<32x96xf32> to vector<32x96xbf16>
      %c0_23 = arith.constant 0 : index
      %c0_24 = arith.constant 0 : index
      %43 = vector.load %arg8[%c0_23, %c0_24] : memref<32x96xbf16, #tpu.memory_space<vmem>>, vector<32x96xbf16>
      tpu.vector_store %arg8[%c0_23, %c0_24], %42 {strides = array<i32>} : memref<32x96xbf16, #tpu.memory_space<vmem>>, vector<32x96xbf16>,
    } else {
    }
    return
  }
  func.func @transform_0(%arg0: i32, %arg1: i32, %arg2: i32) -> (i32, i32) {
    %c0_i32 = arith.constant 0 : i32
    return %arg0, %arg2 : i32, i32
  }
  func.func @transform_1(%arg0: i32, %arg1: i32, %arg2: i32) -> (i32, i32) {
    %c0_i32 = arith.constant 0 : i32
    return %arg2, %arg1 : i32, i32
  }
  func.func @transform_2(%arg0: i32, %arg1: i32, %arg2: i32) -> (i32, i32) {
    %c0_i32 = arith.constant 0 : i32
    %c0_i32_0 = arith.constant 0 : i32
    %c0_i32_1 = arith.constant 0 : i32
    return %c0_i32, %c0_i32_0 : i32, i32
  }
  func.func @transform_3(%arg0: i32, %arg1: i32, %arg2: i32) -> (i32, i32) {
    %c0_i32 = arith.constant 0 : i32
    %c0_i32_0 = arith.constant 0 : i32
    %c0_i32_1 = arith.constant 0 : i32
    return %c0_i32, %c0_i32_0 : i32, i32
  }
  func.func @transform_4(%arg0: i32, %arg1: i32, %arg2: i32) -> (i32, i32) {
    %c0_i32 = arith.constant 0 : i32
    %c0_i32_0 = arith.constant 0 : i32
    return %c0_i32, %arg1 : i32, i32
  }
  func.func @transform_5(%arg0: i32, %arg1: i32, %arg2: i32) -> (i32, i32) {
    %c0_i32 = arith.constant 0 : i32
    return %arg0, %arg1 : i32, i32
  }
}

module attributes {stable_mosaic.version = 11 : i64} {
  func.func @kernel(%arg0: i32, %arg1: i32, %arg2: i32, %arg3: memref<32x48xbf16, #tpu.memory_space<vmem>>, %arg4: memref<48x32xbf16, #tpu.memory_space<vmem>>, %arg5: memref<1x32xf32, #tpu.memory_space<vmem>>, %arg6: memref<32x32xbf16, #tpu.memory_space<vmem>>, %arg7: memref<32x32xf32, #tpu.memory_space<vmem>>) attributes {dimension_semantics = [#tpu.dimension_semantics<parallel>, #tpu.dimension_semantics<parallel>, #tpu.dimension_semantics<arbitrary>], iteration_bounds = array<i64: 1, 1, 1>, scalar_prefetch = 0 : i64, scratch_operands = 1 : i64, tpu.core_type = #tpu.core_type<tc>, window_params = [{transform_indices = @transform_0, window_bounds = array<i64: 32, 48>}, {transform_indices = @transform_1, window_bounds = array<i64: 48, 32>}, {transform_indices = @transform_2, window_bounds = array<i64: 1, 32>}, {transform_indices = @transform_3, window_bounds = array<i64: 32, 32>}]} {
    %c0_i32 = arith.constant 0 : i32
    %0 = arith.cmpi eq, %arg2, %c0_i32 : i32
    %1 = arith.extui %0 : i1 to i32
    %c0_i32_0 = arith.constant 0 : i32
    %2 = arith.cmpi ne, %1, %c0_i32_0 : i32
    scf.if %2 {
      %cst_10 = arith.constant 0.000000e+00 : f32
      %12 = vector.broadcast %cst_10 : f32 to vector<32x32xf32>
      %c0_11 = arith.constant 0 : index
      %c0_12 = arith.constant 0 : index
      %13 = vector.load %arg7[%c0_11, %c0_12] : memref<32x32xf32, #tpu.memory_space<vmem>>, vector<32x32xf32>
      tpu.vector_store %arg7[%c0_11, %c0_12], %12 {strides = array<i32>} : memref<32x32xf32, #tpu.memory_space<vmem>>, vector<32x32xf32>,
    } else {
    }
    %c0 = arith.constant 0 : index
    %c0_1 = arith.constant 0 : index
    %3 = vector.load %arg3[%c0, %c0_1] : memref<32x48xbf16, #tpu.memory_space<vmem>>, vector<32x48xbf16>
    %c0_2 = arith.constant 0 : index
    %c0_3 = arith.constant 0 : index
    %4 = vector.load %arg7[%c0_2, %c0_3] : memref<32x32xf32, #tpu.memory_space<vmem>>, vector<32x32xf32>
    %c0_4 = arith.constant 0 : index
    %c0_5 = arith.constant 0 : index
    %5 = vector.load %arg4[%c0_4, %c0_5] : memref<48x32xbf16, #tpu.memory_space<vmem>>, vector<48x32xbf16>
    %cst = arith.constant dense<0.000000e+00> : vector<32x32xf32>
    %6 = tpu.matmul %3, %5, %cst {dimension_numbers = #tpu.dot_dimension_numbers<[1], [0], [0], [1], [0, 0, 1, 1], [], []>} : vector<32x48xbf16>, vector<48x32xbf16>, vector<32x32xf32> -> vector<32x32xf32>
    %7 = arith.addf %4, %6 : vector<32x32xf32>
    %c0_6 = arith.constant 0 : index
    %c0_7 = arith.constant 0 : index
    %8 = vector.load %arg7[%c0_6, %c0_7] : memref<32x32xf32, #tpu.memory_space<vmem>>, vector<32x32xf32>
    tpu.vector_store %arg7[%c0_6, %c0_7], %7 {strides = array<i32>} : memref<32x32xf32, #tpu.memory_space<vmem>>, vector<32x32xf32>,
    %c0_i32_8 = arith.constant 0 : i32
    %9 = arith.cmpi eq, %arg2, %c0_i32_8 : i32
    %10 = arith.extui %9 : i1 to i32
    %c0_i32_9 = arith.constant 0 : i32
    %11 = arith.cmpi ne, %10, %c0_i32_9 : i32
    scf.if %11 {
      %c0_10 = arith.constant 0 : index
      %c0_11 = arith.constant 0 : index
      %12 = vector.load %arg7[%c0_10, %c0_11] : memref<32x32xf32, #tpu.memory_space<vmem>>, vector<32x32xf32>
      %c0_12 = arith.constant 0 : index
      %c0_13 = arith.constant 0 : index
      %13 = vector.load %arg5[%c0_12, %c0_13] : memref<1x32xf32, #tpu.memory_space<vmem>>, vector<1x32xf32>
      %14 = vector.broadcast %13 : vector<1x32xf32> to vector<32x32xf32>
      %15 = arith.addf %12, %14 : vector<32x32xf32>
      %16 = arith.truncf %15 : vector<32x32xf32> to vector<32x32xbf16>
      %c0_14 = arith.constant 0 : index
      %c0_15 = arith.constant 0 : index
      %17 = vector.load %arg6[%c0_14, %c0_15] : memref<32x32xbf16, #tpu.memory_space<vmem>>, vector<32x32xbf16>
      tpu.vector_store %arg6[%c0_14, %c0_15], %16 {strides = array<i32>} : memref<32x32xbf16, #tpu.memory_space<vmem>>, vector<32x32xbf16>,
    } else {
    }
    return
  }
  func.func @transform_0(%arg0: i32, %arg1: i32, %arg2: i32) -> (i32, i32) {
    %c0_i32 = arith.constant 0 : i32
    return %arg0, %arg2 : i32, i32
  }
  func.func @transform_1(%arg0: i32, %arg1: i32, %arg2: i32) -> (i32, i32) {
    %c0_i32 = arith.constant 0 : i32
    return %arg2, %arg1 : i32, i32
  }
  func.func @transform_2(%arg0: i32, %arg1: i32, %arg2: i32) -> (i32, i32) {
    %c0_i32 = arith.constant 0 : i32
    %c0_i32_0 = arith.constant 0 : i32
    return %c0_i32, %arg1 : i32, i32
  }
  func.func @transform_3(%arg0: i32, %arg1: i32, %arg2: i32) -> (i32, i32) {
    %c0_i32 = arith.constant 0 : i32
    return %arg0, %arg1 : i32, i32
  }
}

module attributes {stable_mosaic.version = 11 : i64} {
  func.func @kernel(%arg0: i32, %arg1: i32, %arg2: i32, %arg3: memref<32x32xbf16, #tpu.memory_space<vmem>>, %arg4: memref<32x32xbf16, #tpu.memory_space<vmem>>, %arg5: memref<1x32xf32, #tpu.memory_space<vmem>>, %arg6: memref<32x32xbf16, #tpu.memory_space<vmem>>, %arg7: memref<32x32xbf16, #tpu.memory_space<vmem>>, %arg8: memref<32x32xf32, #tpu.memory_space<vmem>>) attributes {dimension_semantics = [#tpu.dimension_semantics<parallel>, #tpu.dimension_semantics<parallel>, #tpu.dimension_semantics<arbitrary>], iteration_bounds = array<i64: 1, 1, 1>, scalar_prefetch = 0 : i64, scratch_operands = 1 : i64, tpu.core_type = #tpu.core_type<tc>, window_params = [{transform_indices = @transform_0, window_bounds = array<i64: 32, 32>}, {transform_indices = @transform_1, window_bounds = array<i64: 32, 32>}, {transform_indices = @transform_2, window_bounds = array<i64: 1, 32>}, {transform_indices = @transform_3, window_bounds = array<i64: 32, 32>}, {transform_indices = @transform_4, window_bounds = array<i64: 32, 32>}]} {
    %c0_i32 = arith.constant 0 : i32
    %0 = arith.cmpi eq, %arg2, %c0_i32 : i32
    %1 = arith.extui %0 : i1 to i32
    %c0_i32_0 = arith.constant 0 : i32
    %2 = arith.cmpi ne, %1, %c0_i32_0 : i32
    scf.if %2 {
      %cst_10 = arith.constant 0.000000e+00 : f32
      %12 = vector.broadcast %cst_10 : f32 to vector<32x32xf32>
      %c0_11 = arith.constant 0 : index
      %c0_12 = arith.constant 0 : index
      %13 = vector.load %arg8[%c0_11, %c0_12] : memref<32x32xf32, #tpu.memory_space<vmem>>, vector<32x32xf32>
      tpu.vector_store %arg8[%c0_11, %c0_12], %12 {strides = array<i32>} : memref<32x32xf32, #tpu.memory_space<vmem>>, vector<32x32xf32>,
    } else {
    }
    %c0 = arith.constant 0 : index
    %c0_1 = arith.constant 0 : index
    %3 = vector.load %arg3[%c0, %c0_1] : memref<32x32xbf16, #tpu.memory_space<vmem>>, vector<32x32xbf16>
    %c0_2 = arith.constant 0 : index
    %c0_3 = arith.constant 0 : index
    %4 = vector.load %arg8[%c0_2, %c0_3] : memref<32x32xf32, #tpu.memory_space<vmem>>, vector<32x32xf32>
    %c0_4 = arith.constant 0 : index
    %c0_5 = arith.constant 0 : index
    %5 = vector.load %arg4[%c0_4, %c0_5] : memref<32x32xbf16, #tpu.memory_space<vmem>>, vector<32x32xbf16>
    %cst = arith.constant dense<0.000000e+00> : vector<32x32xf32>
    %6 = tpu.matmul %3, %5, %cst {dimension_numbers = #tpu.dot_dimension_numbers<[1], [0], [0], [1], [0, 0, 1, 1], [], []>} : vector<32x32xbf16>, vector<32x32xbf16>, vector<32x32xf32> -> vector<32x32xf32>
    %7 = arith.addf %4, %6 : vector<32x32xf32>
    %c0_6 = arith.constant 0 : index
    %c0_7 = arith.constant 0 : index
    %8 = vector.load %arg8[%c0_6, %c0_7] : memref<32x32xf32, #tpu.memory_space<vmem>>, vector<32x32xf32>
    tpu.vector_store %arg8[%c0_6, %c0_7], %7 {strides = array<i32>} : memref<32x32xf32, #tpu.memory_space<vmem>>, vector<32x32xf32>,
    %c0_i32_8 = arith.constant 0 : i32
    %9 = arith.cmpi eq, %arg2, %c0_i32_8 : i32
    %10 = arith.extui %9 : i1 to i32
    %c0_i32_9 = arith.constant 0 : i32
    %11 = arith.cmpi ne, %10, %c0_i32_9 : i32
    scf.if %11 {
      %c0_10 = arith.constant 0 : index
      %c0_11 = arith.constant 0 : index
      %12 = vector.load %arg8[%c0_10, %c0_11] : memref<32x32xf32, #tpu.memory_space<vmem>>, vector<32x32xf32>
      %c0_12 = arith.constant 0 : index
      %c0_13 = arith.constant 0 : index
      %13 = vector.load %arg5[%c0_12, %c0_13] : memref<1x32xf32, #tpu.memory_space<vmem>>, vector<1x32xf32>
      %14 = vector.broadcast %13 : vector<1x32xf32> to vector<32x32xf32>
      %15 = arith.addf %12, %14 : vector<32x32xf32>
      %c0_14 = arith.constant 0 : index
      %c0_15 = arith.constant 0 : index
      %16 = vector.load %arg6[%c0_14, %c0_15] : memref<32x32xbf16, #tpu.memory_space<vmem>>, vector<32x32xbf16>
      %17 = arith.extf %16 : vector<32x32xbf16> to vector<32x32xf32>
      %18 = arith.addf %15, %17 : vector<32x32xf32>
      %19 = arith.truncf %18 : vector<32x32xf32> to vector<32x32xbf16>
      %c0_16 = arith.constant 0 : index
      %c0_17 = arith.constant 0 : index
      %20 = vector.load %arg7[%c0_16, %c0_17] : memref<32x32xbf16, #tpu.memory_space<vmem>>, vector<32x32xbf16>
      tpu.vector_store %arg7[%c0_16, %c0_17], %19 {strides = array<i32>} : memref<32x32xbf16, #tpu.memory_space<vmem>>, vector<32x32xbf16>,
    } else {
    }
    return
  }
  func.func @transform_0(%arg0: i32, %arg1: i32, %arg2: i32) -> (i32, i32) {
    %c0_i32 = arith.constant 0 : i32
    return %arg0, %arg2 : i32, i32
  }
  func.func @transform_1(%arg0: i32, %arg1: i32, %arg2: i32) -> (i32, i32) {
    %c0_i32 = arith.constant 0 : i32
    return %arg2, %arg1 : i32, i32
  }
  func.func @transform_2(%arg0: i32, %arg1: i32, %arg2: i32) -> (i32, i32) {
    %c0_i32 = arith.constant 0 : i32
    %c0_i32_0 = arith.constant 0 : i32
    return %c0_i32, %arg1 : i32, i32
  }
  func.func @transform_3(%arg0: i32, %arg1: i32, %arg2: i32) -> (i32, i32) {
    %c0_i32 = arith.constant 0 : i32
    return %arg0, %arg1 : i32, i32
  }
  func.func @transform_4(%arg0: i32, %arg1: i32, %arg2: i32) -> (i32, i32) {
    %c0_i32 = arith.constant 0 : i32
    return %arg0, %arg1 : i32, i32
  }
}

module attributes {stable_mosaic.version = 11 : i64} {
  func.func @kernel(%arg0: i32, %arg1: i32, %arg2: i32, %arg3: memref<1x16x32xbf16, #tpu.memory_space<vmem>>, %arg4: memref<1x16x32xbf16, #tpu.memory_space<vmem>>, %arg5: memref<1x16x32xbf16, #tpu.memory_space<vmem>>, %arg6: memref<1x8x16x4xf32, #tpu.memory_space<vmem>>, %arg7: memref<1x8x16x4xf32, #tpu.memory_space<vmem>>, %arg8: memref<1x16x32xbf16, #tpu.memory_space<vmem>>, %arg9: memref<8x16x1xf32, #tpu.memory_space<vmem>>, %arg10: memref<8x16x1xf32, #tpu.memory_space<vmem>>, %arg11: memref<8x16x4xf32, #tpu.memory_space<vmem>>) attributes {dimension_semantics = [#tpu.dimension_semantics<parallel>, #tpu.dimension_semantics<parallel>, #tpu.dimension_semantics<arbitrary>], iteration_bounds = array<i64: 2, 1, 1>, scalar_prefetch = 0 : i64, scratch_operands = 3 : i64, tpu.core_type = #tpu.core_type<tc>, window_params = [{transform_indices = @transform_0, window_bounds = array<i64: 1, 16, 32>}, {transform_indices = @transform_1, window_bounds = array<i64: 1, 16, 32>}, {transform_indices = @transform_2, window_bounds = array<i64: 1, 16, 32>}, {transform_indices = @transform_3, window_bounds = array<i64: 1, 8, 16, 4>}, {transform_indices = @transform_4, window_bounds = array<i64: 1, 8, 16, 4>}, {transform_indices = @transform_5, window_bounds = array<i64: 1, 16, 32>}]} {
    %c0_i32 = arith.constant 0 : i32
    %0 = arith.cmpi eq, %arg2, %c0_i32 : i32
    %1 = arith.extui %0 : i1 to i32
    %c0_i32_0 = arith.constant 0 : i32
    %2 = arith.cmpi ne, %1, %c0_i32_0 : i32
    scf.if %2 {
      %cst_300 = arith.constant 0xFF800000 : f32
      %406 = vector.broadcast %cst_300 : f32 to vector<8x16x1xf32>
      %c0_301 = arith.constant 0 : index
      %c0_302 = arith.constant 0 : index
      %c0_303 = arith.constant 0 : index
      %407 = vector.load %arg9[%c0_301, %c0_302, %c0_303] : memref<8x16x1xf32, #tpu.memory_space<vmem>>, vector<8x16x1xf32>
      tpu.vector_store %arg9[%c0_301, %c0_302, %c0_303], %406 {strides = array<i32>} : memref<8x16x1xf32, #tpu.memory_space<vmem>>, vector<8x16x1xf32>,
      %cst_304 = arith.constant 0.000000e+00 : f32
      %408 = vector.broadcast %cst_304 : f32 to vector<8x16x1xf32>
      %c0_305 = arith.constant 0 : index
      %c0_306 = arith.constant 0 : index
      %c0_307 = arith.constant 0 : index
      %409 = vector.load %arg10[%c0_305, %c0_306, %c0_307] : memref<8x16x1xf32, #tpu.memory_space<vmem>>, vector<8x16x1xf32>
      tpu.vector_store %arg10[%c0_305, %c0_306, %c0_307], %408 {strides = array<i32>} : memref<8x16x1xf32, #tpu.memory_space<vmem>>, vector<8x16x1xf32>,
      %cst_308 = arith.constant 0.000000e+00 : f32
      %410 = vector.broadcast %cst_308 : f32 to vector<8x16x4xf32>
      %c0_309 = arith.constant 0 : index
      %c0_310 = arith.constant 0 : index
      %c0_311 = arith.constant 0 : index
      %411 = vector.load %arg11[%c0_309, %c0_310, %c0_311] : memref<8x16x4xf32, #tpu.memory_space<vmem>>, vector<8x16x4xf32>
      tpu.vector_store %arg11[%c0_309, %c0_310, %c0_311], %410 {strides = array<i32>} : memref<8x16x4xf32, #tpu.memory_space<vmem>>, vector<8x16x4xf32>,
    } else {
    }
    %c0 = arith.constant 0 : index
    %c0_1 = arith.constant 0 : index
    %c0_2 = arith.constant 0 : index
    %3 = vector.load %arg3[%c0, %c0_1, %c0_2] : memref<1x16x32xbf16, #tpu.memory_space<vmem>>, vector<1x16x4xbf16>
    %4 = vector.shape_cast %3 : vector<1x16x4xbf16> to vector<16x4xbf16>
    %c0_3 = arith.constant 0 : index
    %c0_4 = arith.constant 0 : index
    %c0_5 = arith.constant 0 : index
    %5 = vector.load %arg4[%c0_3, %c0_4, %c0_5] : memref<1x16x32xbf16, #tpu.memory_space<vmem>>, vector<1x16x4xbf16>
    %6 = vector.shape_cast %5 : vector<1x16x4xbf16> to vector<16x4xbf16>
    %c0_6 = arith.constant 0 : index
    %c0_7 = arith.constant 0 : index
    %c0_8 = arith.constant 0 : index
    %7 = vector.load %arg5[%c0_6, %c0_7, %c0_8] : memref<1x16x32xbf16, #tpu.memory_space<vmem>>, vector<1x16x4xbf16>
    %8 = vector.shape_cast %7 : vector<1x16x4xbf16> to vector<16x4xbf16>
    %cst = arith.constant dense<0.000000e+00> : vector<16x16xf32>
    %9 = tpu.matmul %4, %6, %cst {dimension_numbers = #tpu.dot_dimension_numbers<[1], [1], [0], [0], [0, 0, 1, 0], [], []>} : vector<16x4xbf16>, vector<16x4xbf16>, vector<16x16xf32> -> vector<16x16xf32>
    %c0_9 = arith.constant 0 : index
    %c0_10 = arith.constant 0 : index
    %c0_11 = arith.constant 0 : index
    %c0_12 = arith.constant 0 : index
    %10 = vector.load %arg6[%c0_9, %c0_10, %c0_11, %c0_12] : memref<1x8x16x4xf32, #tpu.memory_space<vmem>>, vector<1x1x16x4xf32>
    %11 = vector.shape_cast %10 : vector<1x1x16x4xf32> to vector<16x4xf32>
    %12 = vector.shape_cast %11 : vector<16x4xf32> to vector<16x4x1xf32>
    %c0_13 = arith.constant 0 : index
    %c0_14 = arith.constant 0 : index
    %c0_15 = arith.constant 0 : index
    %c0_16 = arith.constant 0 : index
    %13 = vector.load %arg7[%c0_13, %c0_14, %c0_15, %c0_16] : memref<1x8x16x4xf32, #tpu.memory_space<vmem>>, vector<1x1x16x4xf32>
    %14 = vector.shape_cast %13 : vector<1x1x16x4xf32> to vector<16x4xf32>
    %15 = vector.shape_cast %14 : vector<16x4xf32> to vector<16x1x4xf32>
    %16 = vector.broadcast %12 : vector<16x4x1xf32> to vector<16x4x4xf32>
    %17 = vector.broadcast %15 : vector<16x1x4xf32> to vector<16x4x4xf32>
    %18 = arith.addf %16, %17 : vector<16x4x4xf32>
    %19 = vector.shape_cast %18 : vector<16x4x4xf32> to vector<16x16xf32>
    %20 = arith.addf %9, %19 : vector<16x16xf32>
    %c0_17 = arith.constant 0 : index
    %c0_18 = arith.constant 0 : index
    %c0_19 = arith.constant 0 : index
    %21 = vector.load %arg9[%c0_17, %c0_18, %c0_19] : memref<8x16x1xf32, #tpu.memory_space<vmem>>, vector<1x16x1xf32>
    %22 = vector.shape_cast %21 : vector<1x16x1xf32> to vector<16x1xf32>
    %cst_20 = arith.constant dense<0xFF800000> : vector<16xf32>
    %23 = vector.multi_reduction <maximumf>, %20, %cst_20 [1] : vector<16x16xf32> to vector<16xf32>
    %24 = vector.shape_cast %23 : vector<16xf32> to vector<16x1xf32>
    %25 = arith.maximumf %22, %24 : vector<16x1xf32>
    %26 = arith.subf %22, %25 : vector<16x1xf32>
    %27 = math.exp %26 : vector<16x1xf32>
    %28 = vector.broadcast %25 : vector<16x1xf32> to vector<16x16xf32>
    %29 = arith.subf %20, %28 : vector<16x16xf32>
    %30 = math.exp %29 : vector<16x16xf32>
    %c0_21 = arith.constant 0 : index
    %c0_22 = arith.constant 0 : index
    %c0_23 = arith.constant 0 : index
    %31 = vector.load %arg10[%c0_21, %c0_22, %c0_23] : memref<8x16x1xf32, #tpu.memory_space<vmem>>, vector<1x16x1xf32>
    %32 = vector.shape_cast %31 : vector<1x16x1xf32> to vector<16x1xf32>
    %33 = arith.mulf %27, %32 : vector<16x1xf32>
    %cst_24 = arith.constant dense<0.000000e+00> : vector<16xf32>
    %34 = vector.multi_reduction <add>, %30, %cst_24 [1] : vector<16x16xf32> to vector<16xf32>
    %35 = vector.shape_cast %34 : vector<16xf32> to vector<16x1xf32>
    %36 = arith.addf %33, %35 : vector<16x1xf32>
    %c0_25 = arith.constant 0 : index
    %c0_26 = arith.constant 0 : index
    %c0_27 = arith.constant 0 : index
    %37 = vector.load %arg10[%c0_25, %c0_26, %c0_27] : memref<8x16x1xf32, #tpu.memory_space<vmem>>, vector<1x16x1xf32>
    %38 = vector.shape_cast %37 : vector<1x16x1xf32> to vector<16x1xf32>
    %39 = vector.shape_cast %36 : vector<16x1xf32> to vector<1x16x1xf32>
    tpu.vector_store %arg10[%c0_25, %c0_26, %c0_27], %39 {strides = array<i32>} : memref<8x16x1xf32, #tpu.memory_space<vmem>>, vector<1x16x1xf32>,
    %c0_28 = arith.constant 0 : index
    %c0_29 = arith.constant 0 : index
    %c0_30 = arith.constant 0 : index
    %40 = vector.load %arg11[%c0_28, %c0_29, %c0_30] : memref<8x16x4xf32, #tpu.memory_space<vmem>>, vector<1x16x4xf32>
    %41 = vector.shape_cast %40 : vector<1x16x4xf32> to vector<16x4xf32>
    %42 = vector.broadcast %27 : vector<16x1xf32> to vector<16x4xf32>
    %43 = arith.mulf %42, %41 : vector<16x4xf32>
    %44 = arith.truncf %30 : vector<16x16xf32> to vector<16x16xbf16>
    %cst_31 = arith.constant dense<0.000000e+00> : vector<16x4xf32>
    %45 = tpu.matmul %44, %8, %cst_31 {dimension_numbers = #tpu.dot_dimension_numbers<[1], [0], [0], [1], [0, 0, 1, 1], [], []>} : vector<16x16xbf16>, vector<16x4xbf16>, vector<16x4xf32> -> vector<16x4xf32>
    %46 = arith.addf %43, %45 : vector<16x4xf32>
    %c0_32 = arith.constant 0 : index
    %c0_33 = arith.constant 0 : index
    %c0_34 = arith.constant 0 : index
    %47 = vector.load %arg11[%c0_32, %c0_33, %c0_34] : memref<8x16x4xf32, #tpu.memory_space<vmem>>, vector<1x16x4xf32>
    %48 = vector.shape_cast %47 : vector<1x16x4xf32> to vector<16x4xf32>
    %49 = vector.shape_cast %46 : vector<16x4xf32> to vector<1x16x4xf32>
    tpu.vector_store %arg11[%c0_32, %c0_33, %c0_34], %49 {strides = array<i32>} : memref<8x16x4xf32, #tpu.memory_space<vmem>>, vector<1x16x4xf32>,
    %c0_35 = arith.constant 0 : index
    %c0_36 = arith.constant 0 : index
    %c0_37 = arith.constant 0 : index
    %50 = vector.load %arg9[%c0_35, %c0_36, %c0_37] : memref<8x16x1xf32, #tpu.memory_space<vmem>>, vector<1x16x1xf32>
    %51 = vector.shape_cast %50 : vector<1x16x1xf32> to vector<16x1xf32>
    %52 = vector.shape_cast %25 : vector<16x1xf32> to vector<1x16x1xf32>
    tpu.vector_store %arg9[%c0_35, %c0_36, %c0_37], %52 {strides = array<i32>} : memref<8x16x1xf32, #tpu.memory_space<vmem>>, vector<1x16x1xf32>,
    %c0_38 = arith.constant 0 : index
    %c0_39 = arith.constant 0 : index
    %c4 = arith.constant 4 : index
    %53 = vector.load %arg3[%c0_38, %c0_39, %c4] : memref<1x16x32xbf16, #tpu.memory_space<vmem>>, vector<1x16x4xbf16>
    %54 = vector.shape_cast %53 : vector<1x16x4xbf16> to vector<16x4xbf16>
    %c0_40 = arith.constant 0 : index
    %c0_41 = arith.constant 0 : index
    %c4_42 = arith.constant 4 : index
    %55 = vector.load %arg4[%c0_40, %c0_41, %c4_42] : memref<1x16x32xbf16, #tpu.memory_space<vmem>>, vector<1x16x4xbf16>
    %56 = vector.shape_cast %55 : vector<1x16x4xbf16> to vector<16x4xbf16>
    %c0_43 = arith.constant 0 : index
    %c0_44 = arith.constant 0 : index
    %c4_45 = arith.constant 4 : index
    %57 = vector.load %arg5[%c0_43, %c0_44, %c4_45] : memref<1x16x32xbf16, #tpu.memory_space<vmem>>, vector<1x16x4xbf16>
    %58 = vector.shape_cast %57 : vector<1x16x4xbf16> to vector<16x4xbf16>
    %cst_46 = arith.constant dense<0.000000e+00> : vector<16x16xf32>
    %59 = tpu.matmul %54, %56, %cst_46 {dimension_numbers = #tpu.dot_dimension_numbers<[1], [1], [0], [0], [0, 0, 1, 0], [], []>} : vector<16x4xbf16>, vector<16x4xbf16>, vector<16x16xf32> -> vector<16x16xf32>
    %c0_47 = arith.constant 0 : index
    %c1 = arith.constant 1 : index
    %c0_48 = arith.constant 0 : index
    %c0_49 = arith.constant 0 : index
    %60 = vector.load %arg6[%c0_47, %c1, %c0_48, %c0_49] : memref<1x8x16x4xf32, #tpu.memory_space<vmem>>, vector<1x1x16x4xf32>
    %61 = vector.shape_cast %60 : vector<1x1x16x4xf32> to vector<16x4xf32>
    %62 = vector.shape_cast %61 : vector<16x4xf32> to vector<16x4x1xf32>
    %c0_50 = arith.constant 0 : index
    %c1_51 = arith.constant 1 : index
    %c0_52 = arith.constant 0 : index
    %c0_53 = arith.constant 0 : index
    %63 = vector.load %arg7[%c0_50, %c1_51, %c0_52, %c0_53] : memref<1x8x16x4xf32, #tpu.memory_space<vmem>>, vector<1x1x16x4xf32>
    %64 = vector.shape_cast %63 : vector<1x1x16x4xf32> to vector<16x4xf32>
    %65 = vector.shape_cast %64 : vector<16x4xf32> to vector<16x1x4xf32>
    %66 = vector.broadcast %62 : vector<16x4x1xf32> to vector<16x4x4xf32>
    %67 = vector.broadcast %65 : vector<16x1x4xf32> to vector<16x4x4xf32>
    %68 = arith.addf %66, %67 : vector<16x4x4xf32>
    %69 = vector.shape_cast %68 : vector<16x4x4xf32> to vector<16x16xf32>
    %70 = arith.addf %59, %69 : vector<16x16xf32>
    %c1_54 = arith.constant 1 : index
    %c0_55 = arith.constant 0 : index
    %c0_56 = arith.constant 0 : index
    %71 = vector.load %arg9[%c1_54, %c0_55, %c0_56] : memref<8x16x1xf32, #tpu.memory_space<vmem>>, vector<1x16x1xf32>
    %72 = vector.shape_cast %71 : vector<1x16x1xf32> to vector<16x1xf32>
    %cst_57 = arith.constant dense<0xFF800000> : vector<16xf32>
    %73 = vector.multi_reduction <maximumf>, %70, %cst_57 [1] : vector<16x16xf32> to vector<16xf32>
    %74 = vector.shape_cast %73 : vector<16xf32> to vector<16x1xf32>
    %75 = arith.maximumf %72, %74 : vector<16x1xf32>
    %76 = arith.subf %72, %75 : vector<16x1xf32>
    %77 = math.exp %76 : vector<16x1xf32>
    %78 = vector.broadcast %75 : vector<16x1xf32> to vector<16x16xf32>
    %79 = arith.subf %70, %78 : vector<16x16xf32>
    %80 = math.exp %79 : vector<16x16xf32>
    %c1_58 = arith.constant 1 : index
    %c0_59 = arith.constant 0 : index
    %c0_60 = arith.constant 0 : index
    %81 = vector.load %arg10[%c1_58, %c0_59, %c0_60] : memref<8x16x1xf32, #tpu.memory_space<vmem>>, vector<1x16x1xf32>
    %82 = vector.shape_cast %81 : vector<1x16x1xf32> to vector<16x1xf32>
    %83 = arith.mulf %77, %82 : vector<16x1xf32>
    %cst_61 = arith.constant dense<0.000000e+00> : vector<16xf32>
    %84 = vector.multi_reduction <add>, %80, %cst_61 [1] : vector<16x16xf32> to vector<16xf32>
    %85 = vector.shape_cast %84 : vector<16xf32> to vector<16x1xf32>
    %86 = arith.addf %83, %85 : vector<16x1xf32>
    %c1_62 = arith.constant 1 : index
    %c0_63 = arith.constant 0 : index
    %c0_64 = arith.constant 0 : index
    %87 = vector.load %arg10[%c1_62, %c0_63, %c0_64] : memref<8x16x1xf32, #tpu.memory_space<vmem>>, vector<1x16x1xf32>
    %88 = vector.shape_cast %87 : vector<1x16x1xf32> to vector<16x1xf32>
    %89 = vector.shape_cast %86 : vector<16x1xf32> to vector<1x16x1xf32>
    tpu.vector_store %arg10[%c1_62, %c0_63, %c0_64], %89 {strides = array<i32>} : memref<8x16x1xf32, #tpu.memory_space<vmem>>, vector<1x16x1xf32>,
    %c1_65 = arith.constant 1 : index
    %c0_66 = arith.constant 0 : index
    %c0_67 = arith.constant 0 : index
    %90 = vector.load %arg11[%c1_65, %c0_66, %c0_67] : memref<8x16x4xf32, #tpu.memory_space<vmem>>, vector<1x16x4xf32>
    %91 = vector.shape_cast %90 : vector<1x16x4xf32> to vector<16x4xf32>
    %92 = vector.broadcast %77 : vector<16x1xf32> to vector<16x4xf32>
    %93 = arith.mulf %92, %91 : vector<16x4xf32>
    %94 = arith.truncf %80 : vector<16x16xf32> to vector<16x16xbf16>
    %cst_68 = arith.constant dense<0.000000e+00> : vector<16x4xf32>
    %95 = tpu.matmul %94, %58, %cst_68 {dimension_numbers = #tpu.dot_dimension_numbers<[1], [0], [0], [1], [0, 0, 1, 1], [], []>} : vector<16x16xbf16>, vector<16x4xbf16>, vector<16x4xf32> -> vector<16x4xf32>
    %96 = arith.addf %93, %95 : vector<16x4xf32>
    %c1_69 = arith.constant 1 : index
    %c0_70 = arith.constant 0 : index
    %c0_71 = arith.constant 0 : index
    %97 = vector.load %arg11[%c1_69, %c0_70, %c0_71] : memref<8x16x4xf32, #tpu.memory_space<vmem>>, vector<1x16x4xf32>
    %98 = vector.shape_cast %97 : vector<1x16x4xf32> to vector<16x4xf32>
    %99 = vector.shape_cast %96 : vector<16x4xf32> to vector<1x16x4xf32>
    tpu.vector_store %arg11[%c1_69, %c0_70, %c0_71], %99 {strides = array<i32>} : memref<8x16x4xf32, #tpu.memory_space<vmem>>, vector<1x16x4xf32>,
    %c1_72 = arith.constant 1 : index
    %c0_73 = arith.constant 0 : index
    %c0_74 = arith.constant 0 : index
    %100 = vector.load %arg9[%c1_72, %c0_73, %c0_74] : memref<8x16x1xf32, #tpu.memory_space<vmem>>, vector<1x16x1xf32>
    %101 = vector.shape_cast %100 : vector<1x16x1xf32> to vector<16x1xf32>
    %102 = vector.shape_cast %75 : vector<16x1xf32> to vector<1x16x1xf32>
    tpu.vector_store %arg9[%c1_72, %c0_73, %c0_74], %102 {strides = array<i32>} : memref<8x16x1xf32, #tpu.memory_space<vmem>>, vector<1x16x1xf32>,
    %c0_75 = arith.constant 0 : index
    %c0_76 = arith.constant 0 : index
    %c8 = arith.constant 8 : index
    %103 = vector.load %arg3[%c0_75, %c0_76, %c8] : memref<1x16x32xbf16, #tpu.memory_space<vmem>>, vector<1x16x4xbf16>
    %104 = vector.shape_cast %103 : vector<1x16x4xbf16> to vector<16x4xbf16>
    %c0_77 = arith.constant 0 : index
    %c0_78 = arith.constant 0 : index
    %c8_79 = arith.constant 8 : index
    %105 = vector.load %arg4[%c0_77, %c0_78, %c8_79] : memref<1x16x32xbf16, #tpu.memory_space<vmem>>, vector<1x16x4xbf16>
    %106 = vector.shape_cast %105 : vector<1x16x4xbf16> to vector<16x4xbf16>
    %c0_80 = arith.constant 0 : index
    %c0_81 = arith.constant 0 : index
    %c8_82 = arith.constant 8 : index
    %107 = vector.load %arg5[%c0_80, %c0_81, %c8_82] : memref<1x16x32xbf16, #tpu.memory_space<vmem>>, vector<1x16x4xbf16>
    %108 = vector.shape_cast %107 : vector<1x16x4xbf16> to vector<16x4xbf16>
    %cst_83 = arith.constant dense<0.000000e+00> : vector<16x16xf32>
    %109 = tpu.matmul %104, %106, %cst_83 {dimension_numbers = #tpu.dot_dimension_numbers<[1], [1], [0], [0], [0, 0, 1, 0], [], []>} : vector<16x4xbf16>, vector<16x4xbf16>, vector<16x16xf32> -> vector<16x16xf32>
    %c0_84 = arith.constant 0 : index
    %c2 = arith.constant 2 : index
    %c0_85 = arith.constant 0 : index
    %c0_86 = arith.constant 0 : index
    %110 = vector.load %arg6[%c0_84, %c2, %c0_85, %c0_86] : memref<1x8x16x4xf32, #tpu.memory_space<vmem>>, vector<1x1x16x4xf32>
    %111 = vector.shape_cast %110 : vector<1x1x16x4xf32> to vector<16x4xf32>
    %112 = vector.shape_cast %111 : vector<16x4xf32> to vector<16x4x1xf32>
    %c0_87 = arith.constant 0 : index
    %c2_88 = arith.constant 2 : index
    %c0_89 = arith.constant 0 : index
    %c0_90 = arith.constant 0 : index
    %113 = vector.load %arg7[%c0_87, %c2_88, %c0_89, %c0_90] : memref<1x8x16x4xf32, #tpu.memory_space<vmem>>, vector<1x1x16x4xf32>
    %114 = vector.shape_cast %113 : vector<1x1x16x4xf32> to vector<16x4xf32>
    %115 = vector.shape_cast %114 : vector<16x4xf32> to vector<16x1x4xf32>
    %116 = vector.broadcast %112 : vector<16x4x1xf32> to vector<16x4x4xf32>
    %117 = vector.broadcast %115 : vector<16x1x4xf32> to vector<16x4x4xf32>
    %118 = arith.addf %116, %117 : vector<16x4x4xf32>
    %119 = vector.shape_cast %118 : vector<16x4x4xf32> to vector<16x16xf32>
    %120 = arith.addf %109, %119 : vector<16x16xf32>
    %c2_91 = arith.constant 2 : index
    %c0_92 = arith.constant 0 : index
    %c0_93 = arith.constant 0 : index
    %121 = vector.load %arg9[%c2_91, %c0_92, %c0_93] : memref<8x16x1xf32, #tpu.memory_space<vmem>>, vector<1x16x1xf32>
    %122 = vector.shape_cast %121 : vector<1x16x1xf32> to vector<16x1xf32>
    %cst_94 = arith.constant dense<0xFF800000> : vector<16xf32>
    %123 = vector.multi_reduction <maximumf>, %120, %cst_94 [1] : vector<16x16xf32> to vector<16xf32>
    %124 = vector.shape_cast %123 : vector<16xf32> to vector<16x1xf32>
    %125 = arith.maximumf %122, %124 : vector<16x1xf32>
    %126 = arith.subf %122, %125 : vector<16x1xf32>
    %127 = math.exp %126 : vector<16x1xf32>
    %128 = vector.broadcast %125 : vector<16x1xf32> to vector<16x16xf32>
    %129 = arith.subf %120, %128 : vector<16x16xf32>
    %130 = math.exp %129 : vector<16x16xf32>
    %c2_95 = arith.constant 2 : index
    %c0_96 = arith.constant 0 : index
    %c0_97 = arith.constant 0 : index
    %131 = vector.load %arg10[%c2_95, %c0_96, %c0_97] : memref<8x16x1xf32, #tpu.memory_space<vmem>>, vector<1x16x1xf32>
    %132 = vector.shape_cast %131 : vector<1x16x1xf32> to vector<16x1xf32>
    %133 = arith.mulf %127, %132 : vector<16x1xf32>
    %cst_98 = arith.constant dense<0.000000e+00> : vector<16xf32>
    %134 = vector.multi_reduction <add>, %130, %cst_98 [1] : vector<16x16xf32> to vector<16xf32>
    %135 = vector.shape_cast %134 : vector<16xf32> to vector<16x1xf32>
    %136 = arith.addf %133, %135 : vector<16x1xf32>
    %c2_99 = arith.constant 2 : index
    %c0_100 = arith.constant 0 : index
    %c0_101 = arith.constant 0 : index
    %137 = vector.load %arg10[%c2_99, %c0_100, %c0_101] : memref<8x16x1xf32, #tpu.memory_space<vmem>>, vector<1x16x1xf32>
    %138 = vector.shape_cast %137 : vector<1x16x1xf32> to vector<16x1xf32>
    %139 = vector.shape_cast %136 : vector<16x1xf32> to vector<1x16x1xf32>
    tpu.vector_store %arg10[%c2_99, %c0_100, %c0_101], %139 {strides = array<i32>} : memref<8x16x1xf32, #tpu.memory_space<vmem>>, vector<1x16x1xf32>,
    %c2_102 = arith.constant 2 : index
    %c0_103 = arith.constant 0 : index
    %c0_104 = arith.constant 0 : index
    %140 = vector.load %arg11[%c2_102, %c0_103, %c0_104] : memref<8x16x4xf32, #tpu.memory_space<vmem>>, vector<1x16x4xf32>
    %141 = vector.shape_cast %140 : vector<1x16x4xf32> to vector<16x4xf32>
    %142 = vector.broadcast %127 : vector<16x1xf32> to vector<16x4xf32>
    %143 = arith.mulf %142, %141 : vector<16x4xf32>
    %144 = arith.truncf %130 : vector<16x16xf32> to vector<16x16xbf16>
    %cst_105 = arith.constant dense<0.000000e+00> : vector<16x4xf32>
    %145 = tpu.matmul %144, %108, %cst_105 {dimension_numbers = #tpu.dot_dimension_numbers<[1], [0], [0], [1], [0, 0, 1, 1], [], []>} : vector<16x16xbf16>, vector<16x4xbf16>, vector<16x4xf32> -> vector<16x4xf32>
    %146 = arith.addf %143, %145 : vector<16x4xf32>
    %c2_106 = arith.constant 2 : index
    %c0_107 = arith.constant 0 : index
    %c0_108 = arith.constant 0 : index
    %147 = vector.load %arg11[%c2_106, %c0_107, %c0_108] : memref<8x16x4xf32, #tpu.memory_space<vmem>>, vector<1x16x4xf32>
    %148 = vector.shape_cast %147 : vector<1x16x4xf32> to vector<16x4xf32>
    %149 = vector.shape_cast %146 : vector<16x4xf32> to vector<1x16x4xf32>
    tpu.vector_store %arg11[%c2_106, %c0_107, %c0_108], %149 {strides = array<i32>} : memref<8x16x4xf32, #tpu.memory_space<vmem>>, vector<1x16x4xf32>,
    %c2_109 = arith.constant 2 : index
    %c0_110 = arith.constant 0 : index
    %c0_111 = arith.constant 0 : index
    %150 = vector.load %arg9[%c2_109, %c0_110, %c0_111] : memref<8x16x1xf32, #tpu.memory_space<vmem>>, vector<1x16x1xf32>
    %151 = vector.shape_cast %150 : vector<1x16x1xf32> to vector<16x1xf32>
    %152 = vector.shape_cast %125 : vector<16x1xf32> to vector<1x16x1xf32>
    tpu.vector_store %arg9[%c2_109, %c0_110, %c0_111], %152 {strides = array<i32>} : memref<8x16x1xf32, #tpu.memory_space<vmem>>, vector<1x16x1xf32>,
    %c0_112 = arith.constant 0 : index
    %c0_113 = arith.constant 0 : index
    %c12 = arith.constant 12 : index
    %153 = vector.load %arg3[%c0_112, %c0_113, %c12] : memref<1x16x32xbf16, #tpu.memory_space<vmem>>, vector<1x16x4xbf16>
    %154 = vector.shape_cast %153 : vector<1x16x4xbf16> to vector<16x4xbf16>
    %c0_114 = arith.constant 0 : index
    %c0_115 = arith.constant 0 : index
    %c12_116 = arith.constant 12 : index
    %155 = vector.load %arg4[%c0_114, %c0_115, %c12_116] : memref<1x16x32xbf16, #tpu.memory_space<vmem>>, vector<1x16x4xbf16>
    %156 = vector.shape_cast %155 : vector<1x16x4xbf16> to vector<16x4xbf16>
    %c0_117 = arith.constant 0 : index
    %c0_118 = arith.constant 0 : index
    %c12_119 = arith.constant 12 : index
    %157 = vector.load %arg5[%c0_117, %c0_118, %c12_119] : memref<1x16x32xbf16, #tpu.memory_space<vmem>>, vector<1x16x4xbf16>
    %158 = vector.shape_cast %157 : vector<1x16x4xbf16> to vector<16x4xbf16>
    %cst_120 = arith.constant dense<0.000000e+00> : vector<16x16xf32>
    %159 = tpu.matmul %154, %156, %cst_120 {dimension_numbers = #tpu.dot_dimension_numbers<[1], [1], [0], [0], [0, 0, 1, 0], [], []>} : vector<16x4xbf16>, vector<16x4xbf16>, vector<16x16xf32> -> vector<16x16xf32>
    %c0_121 = arith.constant 0 : index
    %c3 = arith.constant 3 : index
    %c0_122 = arith.constant 0 : index
    %c0_123 = arith.constant 0 : index
    %160 = vector.load %arg6[%c0_121, %c3, %c0_122, %c0_123] : memref<1x8x16x4xf32, #tpu.memory_space<vmem>>, vector<1x1x16x4xf32>
    %161 = vector.shape_cast %160 : vector<1x1x16x4xf32> to vector<16x4xf32>
    %162 = vector.shape_cast %161 : vector<16x4xf32> to vector<16x4x1xf32>
    %c0_124 = arith.constant 0 : index
    %c3_125 = arith.constant 3 : index
    %c0_126 = arith.constant 0 : index
    %c0_127 = arith.constant 0 : index
    %163 = vector.load %arg7[%c0_124, %c3_125, %c0_126, %c0_127] : memref<1x8x16x4xf32, #tpu.memory_space<vmem>>, vector<1x1x16x4xf32>
    %164 = vector.shape_cast %163 : vector<1x1x16x4xf32> to vector<16x4xf32>
    %165 = vector.shape_cast %164 : vector<16x4xf32> to vector<16x1x4xf32>
    %166 = vector.broadcast %162 : vector<16x4x1xf32> to vector<16x4x4xf32>
    %167 = vector.broadcast %165 : vector<16x1x4xf32> to vector<16x4x4xf32>
    %168 = arith.addf %166, %167 : vector<16x4x4xf32>
    %169 = vector.shape_cast %168 : vector<16x4x4xf32> to vector<16x16xf32>
    %170 = arith.addf %159, %169 : vector<16x16xf32>
    %c3_128 = arith.constant 3 : index
    %c0_129 = arith.constant 0 : index
    %c0_130 = arith.constant 0 : index
    %171 = vector.load %arg9[%c3_128, %c0_129, %c0_130] : memref<8x16x1xf32, #tpu.memory_space<vmem>>, vector<1x16x1xf32>
    %172 = vector.shape_cast %171 : vector<1x16x1xf32> to vector<16x1xf32>
    %cst_131 = arith.constant dense<0xFF800000> : vector<16xf32>
    %173 = vector.multi_reduction <maximumf>, %170, %cst_131 [1] : vector<16x16xf32> to vector<16xf32>
    %174 = vector.shape_cast %173 : vector<16xf32> to vector<16x1xf32>
    %175 = arith.maximumf %172, %174 : vector<16x1xf32>
    %176 = arith.subf %172, %175 : vector<16x1xf32>
    %177 = math.exp %176 : vector<16x1xf32>
    %178 = vector.broadcast %175 : vector<16x1xf32> to vector<16x16xf32>
    %179 = arith.subf %170, %178 : vector<16x16xf32>
    %180 = math.exp %179 : vector<16x16xf32>
    %c3_132 = arith.constant 3 : index
    %c0_133 = arith.constant 0 : index
    %c0_134 = arith.constant 0 : index
    %181 = vector.load %arg10[%c3_132, %c0_133, %c0_134] : memref<8x16x1xf32, #tpu.memory_space<vmem>>, vector<1x16x1xf32>
    %182 = vector.shape_cast %181 : vector<1x16x1xf32> to vector<16x1xf32>
    %183 = arith.mulf %177, %182 : vector<16x1xf32>
    %cst_135 = arith.constant dense<0.000000e+00> : vector<16xf32>
    %184 = vector.multi_reduction <add>, %180, %cst_135 [1] : vector<16x16xf32> to vector<16xf32>
    %185 = vector.shape_cast %184 : vector<16xf32> to vector<16x1xf32>
    %186 = arith.addf %183, %185 : vector<16x1xf32>
    %c3_136 = arith.constant 3 : index
    %c0_137 = arith.constant 0 : index
    %c0_138 = arith.constant 0 : index
    %187 = vector.load %arg10[%c3_136, %c0_137, %c0_138] : memref<8x16x1xf32, #tpu.memory_space<vmem>>, vector<1x16x1xf32>
    %188 = vector.shape_cast %187 : vector<1x16x1xf32> to vector<16x1xf32>
    %189 = vector.shape_cast %186 : vector<16x1xf32> to vector<1x16x1xf32>
    tpu.vector_store %arg10[%c3_136, %c0_137, %c0_138], %189 {strides = array<i32>} : memref<8x16x1xf32, #tpu.memory_space<vmem>>, vector<1x16x1xf32>,
    %c3_139 = arith.constant 3 : index
    %c0_140 = arith.constant 0 : index
    %c0_141 = arith.constant 0 : index
    %190 = vector.load %arg11[%c3_139, %c0_140, %c0_141] : memref<8x16x4xf32, #tpu.memory_space<vmem>>, vector<1x16x4xf32>
    %191 = vector.shape_cast %190 : vector<1x16x4xf32> to vector<16x4xf32>
    %192 = vector.broadcast %177 : vector<16x1xf32> to vector<16x4xf32>
    %193 = arith.mulf %192, %191 : vector<16x4xf32>
    %194 = arith.truncf %180 : vector<16x16xf32> to vector<16x16xbf16>
    %cst_142 = arith.constant dense<0.000000e+00> : vector<16x4xf32>
    %195 = tpu.matmul %194, %158, %cst_142 {dimension_numbers = #tpu.dot_dimension_numbers<[1], [0], [0], [1], [0, 0, 1, 1], [], []>} : vector<16x16xbf16>, vector<16x4xbf16>, vector<16x4xf32> -> vector<16x4xf32>
    %196 = arith.addf %193, %195 : vector<16x4xf32>
    %c3_143 = arith.constant 3 : index
    %c0_144 = arith.constant 0 : index
    %c0_145 = arith.constant 0 : index
    %197 = vector.load %arg11[%c3_143, %c0_144, %c0_145] : memref<8x16x4xf32, #tpu.memory_space<vmem>>, vector<1x16x4xf32>
    %198 = vector.shape_cast %197 : vector<1x16x4xf32> to vector<16x4xf32>
    %199 = vector.shape_cast %196 : vector<16x4xf32> to vector<1x16x4xf32>
    tpu.vector_store %arg11[%c3_143, %c0_144, %c0_145], %199 {strides = array<i32>} : memref<8x16x4xf32, #tpu.memory_space<vmem>>, vector<1x16x4xf32>,
    %c3_146 = arith.constant 3 : index
    %c0_147 = arith.constant 0 : index
    %c0_148 = arith.constant 0 : index
    %200 = vector.load %arg9[%c3_146, %c0_147, %c0_148] : memref<8x16x1xf32, #tpu.memory_space<vmem>>, vector<1x16x1xf32>
    %201 = vector.shape_cast %200 : vector<1x16x1xf32> to vector<16x1xf32>
    %202 = vector.shape_cast %175 : vector<16x1xf32> to vector<1x16x1xf32>
    tpu.vector_store %arg9[%c3_146, %c0_147, %c0_148], %202 {strides = array<i32>} : memref<8x16x1xf32, #tpu.memory_space<vmem>>, vector<1x16x1xf32>,
    %c0_149 = arith.constant 0 : index
    %c0_150 = arith.constant 0 : index
    %c16 = arith.constant 16 : index
    %203 = vector.load %arg3[%c0_149, %c0_150, %c16] : memref<1x16x32xbf16, #tpu.memory_space<vmem>>, vector<1x16x4xbf16>
    %204 = vector.shape_cast %203 : vector<1x16x4xbf16> to vector<16x4xbf16>
    %c0_151 = arith.constant 0 : index
    %c0_152 = arith.constant 0 : index
    %c16_153 = arith.constant 16 : index
    %205 = vector.load %arg4[%c0_151, %c0_152, %c16_153] : memref<1x16x32xbf16, #tpu.memory_space<vmem>>, vector<1x16x4xbf16>
    %206 = vector.shape_cast %205 : vector<1x16x4xbf16> to vector<16x4xbf16>
    %c0_154 = arith.constant 0 : index
    %c0_155 = arith.constant 0 : index
    %c16_156 = arith.constant 16 : index
    %207 = vector.load %arg5[%c0_154, %c0_155, %c16_156] : memref<1x16x32xbf16, #tpu.memory_space<vmem>>, vector<1x16x4xbf16>
    %208 = vector.shape_cast %207 : vector<1x16x4xbf16> to vector<16x4xbf16>
    %cst_157 = arith.constant dense<0.000000e+00> : vector<16x16xf32>
    %209 = tpu.matmul %204, %206, %cst_157 {dimension_numbers = #tpu.dot_dimension_numbers<[1], [1], [0], [0], [0, 0, 1, 0], [], []>} : vector<16x4xbf16>, vector<16x4xbf16>, vector<16x16xf32> -> vector<16x16xf32>
    %c0_158 = arith.constant 0 : index
    %c4_159 = arith.constant 4 : index
    %c0_160 = arith.constant 0 : index
    %c0_161 = arith.constant 0 : index
    %210 = vector.load %arg6[%c0_158, %c4_159, %c0_160, %c0_161] : memref<1x8x16x4xf32, #tpu.memory_space<vmem>>, vector<1x1x16x4xf32>
    %211 = vector.shape_cast %210 : vector<1x1x16x4xf32> to vector<16x4xf32>
    %212 = vector.shape_cast %211 : vector<16x4xf32> to vector<16x4x1xf32>
    %c0_162 = arith.constant 0 : index
    %c4_163 = arith.constant 4 : index
    %c0_164 = arith.constant 0 : index
    %c0_165 = arith.constant 0 : index
    %213 = vector.load %arg7[%c0_162, %c4_163, %c0_164, %c0_165] : memref<1x8x16x4xf32, #tpu.memory_space<vmem>>, vector<1x1x16x4xf32>
    %214 = vector.shape_cast %213 : vector<1x1x16x4xf32> to vector<16x4xf32>
    %215 = vector.shape_cast %214 : vector<16x4xf32> to vector<16x1x4xf32>
    %216 = vector.broadcast %212 : vector<16x4x1xf32> to vector<16x4x4xf32>
    %217 = vector.broadcast %215 : vector<16x1x4xf32> to vector<16x4x4xf32>
    %218 = arith.addf %216, %217 : vector<16x4x4xf32>
    %219 = vector.shape_cast %218 : vector<16x4x4xf32> to vector<16x16xf32>
    %220 = arith.addf %209, %219 : vector<16x16xf32>
    %c4_166 = arith.constant 4 : index
    %c0_167 = arith.constant 0 : index
    %c0_168 = arith.constant 0 : index
    %221 = vector.load %arg9[%c4_166, %c0_167, %c0_168] : memref<8x16x1xf32, #tpu.memory_space<vmem>>, vector<1x16x1xf32>
    %222 = vector.shape_cast %221 : vector<1x16x1xf32> to vector<16x1xf32>
    %cst_169 = arith.constant dense<0xFF800000> : vector<16xf32>
    %223 = vector.multi_reduction <maximumf>, %220, %cst_169 [1] : vector<16x16xf32> to vector<16xf32>
    %224 = vector.shape_cast %223 : vector<16xf32> to vector<16x1xf32>
    %225 = arith.maximumf %222, %224 : vector<16x1xf32>
    %226 = arith.subf %222, %225 : vector<16x1xf32>
    %227 = math.exp %226 : vector<16x1xf32>
    %228 = vector.broadcast %225 : vector<16x1xf32> to vector<16x16xf32>
    %229 = arith.subf %220, %228 : vector<16x16xf32>
    %230 = math.exp %229 : vector<16x16xf32>
    %c4_170 = arith.constant 4 : index
    %c0_171 = arith.constant 0 : index
    %c0_172 = arith.constant 0 : index
    %231 = vector.load %arg10[%c4_170, %c0_171, %c0_172] : memref<8x16x1xf32, #tpu.memory_space<vmem>>, vector<1x16x1xf32>
    %232 = vector.shape_cast %231 : vector<1x16x1xf32> to vector<16x1xf32>
    %233 = arith.mulf %227, %232 : vector<16x1xf32>
    %cst_173 = arith.constant dense<0.000000e+00> : vector<16xf32>
    %234 = vector.multi_reduction <add>, %230, %cst_173 [1] : vector<16x16xf32> to vector<16xf32>
    %235 = vector.shape_cast %234 : vector<16xf32> to vector<16x1xf32>
    %236 = arith.addf %233, %235 : vector<16x1xf32>
    %c4_174 = arith.constant 4 : index
    %c0_175 = arith.constant 0 : index
    %c0_176 = arith.constant 0 : index
    %237 = vector.load %arg10[%c4_174, %c0_175, %c0_176] : memref<8x16x1xf32, #tpu.memory_space<vmem>>, vector<1x16x1xf32>
    %238 = vector.shape_cast %237 : vector<1x16x1xf32> to vector<16x1xf32>
    %239 = vector.shape_cast %236 : vector<16x1xf32> to vector<1x16x1xf32>
    tpu.vector_store %arg10[%c4_174, %c0_175, %c0_176], %239 {strides = array<i32>} : memref<8x16x1xf32, #tpu.memory_space<vmem>>, vector<1x16x1xf32>,
    %c4_177 = arith.constant 4 : index
    %c0_178 = arith.constant 0 : index
    %c0_179 = arith.constant 0 : index
    %240 = vector.load %arg11[%c4_177, %c0_178, %c0_179] : memref<8x16x4xf32, #tpu.memory_space<vmem>>, vector<1x16x4xf32>
    %241 = vector.shape_cast %240 : vector<1x16x4xf32> to vector<16x4xf32>
    %242 = vector.broadcast %227 : vector<16x1xf32> to vector<16x4xf32>
    %243 = arith.mulf %242, %241 : vector<16x4xf32>
    %244 = arith.truncf %230 : vector<16x16xf32> to vector<16x16xbf16>
    %cst_180 = arith.constant dense<0.000000e+00> : vector<16x4xf32>
    %245 = tpu.matmul %244, %208, %cst_180 {dimension_numbers = #tpu.dot_dimension_numbers<[1], [0], [0], [1], [0, 0, 1, 1], [], []>} : vector<16x16xbf16>, vector<16x4xbf16>, vector<16x4xf32> -> vector<16x4xf32>
    %246 = arith.addf %243, %245 : vector<16x4xf32>
    %c4_181 = arith.constant 4 : index
    %c0_182 = arith.constant 0 : index
    %c0_183 = arith.constant 0 : index
    %247 = vector.load %arg11[%c4_181, %c0_182, %c0_183] : memref<8x16x4xf32, #tpu.memory_space<vmem>>, vector<1x16x4xf32>
    %248 = vector.shape_cast %247 : vector<1x16x4xf32> to vector<16x4xf32>
    %249 = vector.shape_cast %246 : vector<16x4xf32> to vector<1x16x4xf32>
    tpu.vector_store %arg11[%c4_181, %c0_182, %c0_183], %249 {strides = array<i32>} : memref<8x16x4xf32, #tpu.memory_space<vmem>>, vector<1x16x4xf32>,
    %c4_184 = arith.constant 4 : index
    %c0_185 = arith.constant 0 : index
    %c0_186 = arith.constant 0 : index
    %250 = vector.load %arg9[%c4_184, %c0_185, %c0_186] : memref<8x16x1xf32, #tpu.memory_space<vmem>>, vector<1x16x1xf32>
    %251 = vector.shape_cast %250 : vector<1x16x1xf32> to vector<16x1xf32>
    %252 = vector.shape_cast %225 : vector<16x1xf32> to vector<1x16x1xf32>
    tpu.vector_store %arg9[%c4_184, %c0_185, %c0_186], %252 {strides = array<i32>} : memref<8x16x1xf32, #tpu.memory_space<vmem>>, vector<1x16x1xf32>,
    %c0_187 = arith.constant 0 : index
    %c0_188 = arith.constant 0 : index
    %c20 = arith.constant 20 : index
    %253 = vector.load %arg3[%c0_187, %c0_188, %c20] : memref<1x16x32xbf16, #tpu.memory_space<vmem>>, vector<1x16x4xbf16>
    %254 = vector.shape_cast %253 : vector<1x16x4xbf16> to vector<16x4xbf16>
    %c0_189 = arith.constant 0 : index
    %c0_190 = arith.constant 0 : index
    %c20_191 = arith.constant 20 : index
    %255 = vector.load %arg4[%c0_189, %c0_190, %c20_191] : memref<1x16x32xbf16, #tpu.memory_space<vmem>>, vector<1x16x4xbf16>
    %256 = vector.shape_cast %255 : vector<1x16x4xbf16> to vector<16x4xbf16>
    %c0_192 = arith.constant 0 : index
    %c0_193 = arith.constant 0 : index
    %c20_194 = arith.constant 20 : index
    %257 = vector.load %arg5[%c0_192, %c0_193, %c20_194] : memref<1x16x32xbf16, #tpu.memory_space<vmem>>, vector<1x16x4xbf16>
    %258 = vector.shape_cast %257 : vector<1x16x4xbf16> to vector<16x4xbf16>
    %cst_195 = arith.constant dense<0.000000e+00> : vector<16x16xf32>
    %259 = tpu.matmul %254, %256, %cst_195 {dimension_numbers = #tpu.dot_dimension_numbers<[1], [1], [0], [0], [0, 0, 1, 0], [], []>} : vector<16x4xbf16>, vector<16x4xbf16>, vector<16x16xf32> -> vector<16x16xf32>
    %c0_196 = arith.constant 0 : index
    %c5 = arith.constant 5 : index
    %c0_197 = arith.constant 0 : index
    %c0_198 = arith.constant 0 : index
    %260 = vector.load %arg6[%c0_196, %c5, %c0_197, %c0_198] : memref<1x8x16x4xf32, #tpu.memory_space<vmem>>, vector<1x1x16x4xf32>
    %261 = vector.shape_cast %260 : vector<1x1x16x4xf32> to vector<16x4xf32>
    %262 = vector.shape_cast %261 : vector<16x4xf32> to vector<16x4x1xf32>
    %c0_199 = arith.constant 0 : index
    %c5_200 = arith.constant 5 : index
    %c0_201 = arith.constant 0 : index
    %c0_202 = arith.constant 0 : index
    %263 = vector.load %arg7[%c0_199, %c5_200, %c0_201, %c0_202] : memref<1x8x16x4xf32, #tpu.memory_space<vmem>>, vector<1x1x16x4xf32>
    %264 = vector.shape_cast %263 : vector<1x1x16x4xf32> to vector<16x4xf32>
    %265 = vector.shape_cast %264 : vector<16x4xf32> to vector<16x1x4xf32>
    %266 = vector.broadcast %262 : vector<16x4x1xf32> to vector<16x4x4xf32>
    %267 = vector.broadcast %265 : vector<16x1x4xf32> to vector<16x4x4xf32>
    %268 = arith.addf %266, %267 : vector<16x4x4xf32>
    %269 = vector.shape_cast %268 : vector<16x4x4xf32> to vector<16x16xf32>
    %270 = arith.addf %259, %269 : vector<16x16xf32>
    %c5_203 = arith.constant 5 : index
    %c0_204 = arith.constant 0 : index
    %c0_205 = arith.constant 0 : index
    %271 = vector.load %arg9[%c5_203, %c0_204, %c0_205] : memref<8x16x1xf32, #tpu.memory_space<vmem>>, vector<1x16x1xf32>
    %272 = vector.shape_cast %271 : vector<1x16x1xf32> to vector<16x1xf32>
    %cst_206 = arith.constant dense<0xFF800000> : vector<16xf32>
    %273 = vector.multi_reduction <maximumf>, %270, %cst_206 [1] : vector<16x16xf32> to vector<16xf32>
    %274 = vector.shape_cast %273 : vector<16xf32> to vector<16x1xf32>
    %275 = arith.maximumf %272, %274 : vector<16x1xf32>
    %276 = arith.subf %272, %275 : vector<16x1xf32>
    %277 = math.exp %276 : vector<16x1xf32>
    %278 = vector.broadcast %275 : vector<16x1xf32> to vector<16x16xf32>
    %279 = arith.subf %270, %278 : vector<16x16xf32>
    %280 = math.exp %279 : vector<16x16xf32>
    %c5_207 = arith.constant 5 : index
    %c0_208 = arith.constant 0 : index
    %c0_209 = arith.constant 0 : index
    %281 = vector.load %arg10[%c5_207, %c0_208, %c0_209] : memref<8x16x1xf32, #tpu.memory_space<vmem>>, vector<1x16x1xf32>
    %282 = vector.shape_cast %281 : vector<1x16x1xf32> to vector<16x1xf32>
    %283 = arith.mulf %277, %282 : vector<16x1xf32>
    %cst_210 = arith.constant dense<0.000000e+00> : vector<16xf32>
    %284 = vector.multi_reduction <add>, %280, %cst_210 [1] : vector<16x16xf32> to vector<16xf32>
    %285 = vector.shape_cast %284 : vector<16xf32> to vector<16x1xf32>
    %286 = arith.addf %283, %285 : vector<16x1xf32>
    %c5_211 = arith.constant 5 : index
    %c0_212 = arith.constant 0 : index
    %c0_213 = arith.constant 0 : index
    %287 = vector.load %arg10[%c5_211, %c0_212, %c0_213] : memref<8x16x1xf32, #tpu.memory_space<vmem>>, vector<1x16x1xf32>
    %288 = vector.shape_cast %287 : vector<1x16x1xf32> to vector<16x1xf32>
    %289 = vector.shape_cast %286 : vector<16x1xf32> to vector<1x16x1xf32>
    tpu.vector_store %arg10[%c5_211, %c0_212, %c0_213], %289 {strides = array<i32>} : memref<8x16x1xf32, #tpu.memory_space<vmem>>, vector<1x16x1xf32>,
    %c5_214 = arith.constant 5 : index
    %c0_215 = arith.constant 0 : index
    %c0_216 = arith.constant 0 : index
    %290 = vector.load %arg11[%c5_214, %c0_215, %c0_216] : memref<8x16x4xf32, #tpu.memory_space<vmem>>, vector<1x16x4xf32>
    %291 = vector.shape_cast %290 : vector<1x16x4xf32> to vector<16x4xf32>
    %292 = vector.broadcast %277 : vector<16x1xf32> to vector<16x4xf32>
    %293 = arith.mulf %292, %291 : vector<16x4xf32>
    %294 = arith.truncf %280 : vector<16x16xf32> to vector<16x16xbf16>
    %cst_217 = arith.constant dense<0.000000e+00> : vector<16x4xf32>
    %295 = tpu.matmul %294, %258, %cst_217 {dimension_numbers = #tpu.dot_dimension_numbers<[1], [0], [0], [1], [0, 0, 1, 1], [], []>} : vector<16x16xbf16>, vector<16x4xbf16>, vector<16x4xf32> -> vector<16x4xf32>
    %296 = arith.addf %293, %295 : vector<16x4xf32>
    %c5_218 = arith.constant 5 : index
    %c0_219 = arith.constant 0 : index
    %c0_220 = arith.constant 0 : index
    %297 = vector.load %arg11[%c5_218, %c0_219, %c0_220] : memref<8x16x4xf32, #tpu.memory_space<vmem>>, vector<1x16x4xf32>
    %298 = vector.shape_cast %297 : vector<1x16x4xf32> to vector<16x4xf32>
    %299 = vector.shape_cast %296 : vector<16x4xf32> to vector<1x16x4xf32>
    tpu.vector_store %arg11[%c5_218, %c0_219, %c0_220], %299 {strides = array<i32>} : memref<8x16x4xf32, #tpu.memory_space<vmem>>, vector<1x16x4xf32>,
    %c5_221 = arith.constant 5 : index
    %c0_222 = arith.constant 0 : index
    %c0_223 = arith.constant 0 : index
    %300 = vector.load %arg9[%c5_221, %c0_222, %c0_223] : memref<8x16x1xf32, #tpu.memory_space<vmem>>, vector<1x16x1xf32>
    %301 = vector.shape_cast %300 : vector<1x16x1xf32> to vector<16x1xf32>
    %302 = vector.shape_cast %275 : vector<16x1xf32> to vector<1x16x1xf32>
    tpu.vector_store %arg9[%c5_221, %c0_222, %c0_223], %302 {strides = array<i32>} : memref<8x16x1xf32, #tpu.memory_space<vmem>>, vector<1x16x1xf32>,
    %c0_224 = arith.constant 0 : index
    %c0_225 = arith.constant 0 : index
    %c24 = arith.constant 24 : index
    %303 = vector.load %arg3[%c0_224, %c0_225, %c24] : memref<1x16x32xbf16, #tpu.memory_space<vmem>>, vector<1x16x4xbf16>
    %304 = vector.shape_cast %303 : vector<1x16x4xbf16> to vector<16x4xbf16>
    %c0_226 = arith.constant 0 : index
    %c0_227 = arith.constant 0 : index
    %c24_228 = arith.constant 24 : index
    %305 = vector.load %arg4[%c0_226, %c0_227, %c24_228] : memref<1x16x32xbf16, #tpu.memory_space<vmem>>, vector<1x16x4xbf16>
    %306 = vector.shape_cast %305 : vector<1x16x4xbf16> to vector<16x4xbf16>
    %c0_229 = arith.constant 0 : index
    %c0_230 = arith.constant 0 : index
    %c24_231 = arith.constant 24 : index
    %307 = vector.load %arg5[%c0_229, %c0_230, %c24_231] : memref<1x16x32xbf16, #tpu.memory_space<vmem>>, vector<1x16x4xbf16>
    %308 = vector.shape_cast %307 : vector<1x16x4xbf16> to vector<16x4xbf16>
    %cst_232 = arith.constant dense<0.000000e+00> : vector<16x16xf32>
    %309 = tpu.matmul %304, %306, %cst_232 {dimension_numbers = #tpu.dot_dimension_numbers<[1], [1], [0], [0], [0, 0, 1, 0], [], []>} : vector<16x4xbf16>, vector<16x4xbf16>, vector<16x16xf32> -> vector<16x16xf32>
    %c0_233 = arith.constant 0 : index
    %c6 = arith.constant 6 : index
    %c0_234 = arith.constant 0 : index
    %c0_235 = arith.constant 0 : index
    %310 = vector.load %arg6[%c0_233, %c6, %c0_234, %c0_235] : memref<1x8x16x4xf32, #tpu.memory_space<vmem>>, vector<1x1x16x4xf32>
    %311 = vector.shape_cast %310 : vector<1x1x16x4xf32> to vector<16x4xf32>
    %312 = vector.shape_cast %311 : vector<16x4xf32> to vector<16x4x1xf32>
    %c0_236 = arith.constant 0 : index
    %c6_237 = arith.constant 6 : index
    %c0_238 = arith.constant 0 : index
    %c0_239 = arith.constant 0 : index
    %313 = vector.load %arg7[%c0_236, %c6_237, %c0_238, %c0_239] : memref<1x8x16x4xf32, #tpu.memory_space<vmem>>, vector<1x1x16x4xf32>
    %314 = vector.shape_cast %313 : vector<1x1x16x4xf32> to vector<16x4xf32>
    %315 = vector.shape_cast %314 : vector<16x4xf32> to vector<16x1x4xf32>
    %316 = vector.broadcast %312 : vector<16x4x1xf32> to vector<16x4x4xf32>
    %317 = vector.broadcast %315 : vector<16x1x4xf32> to vector<16x4x4xf32>
    %318 = arith.addf %316, %317 : vector<16x4x4xf32>
    %319 = vector.shape_cast %318 : vector<16x4x4xf32> to vector<16x16xf32>
    %320 = arith.addf %309, %319 : vector<16x16xf32>
    %c6_240 = arith.constant 6 : index
    %c0_241 = arith.constant 0 : index
    %c0_242 = arith.constant 0 : index
    %321 = vector.load %arg9[%c6_240, %c0_241, %c0_242] : memref<8x16x1xf32, #tpu.memory_space<vmem>>, vector<1x16x1xf32>
    %322 = vector.shape_cast %321 : vector<1x16x1xf32> to vector<16x1xf32>
    %cst_243 = arith.constant dense<0xFF800000> : vector<16xf32>
    %323 = vector.multi_reduction <maximumf>, %320, %cst_243 [1] : vector<16x16xf32> to vector<16xf32>
    %324 = vector.shape_cast %323 : vector<16xf32> to vector<16x1xf32>
    %325 = arith.maximumf %322, %324 : vector<16x1xf32>
    %326 = arith.subf %322, %325 : vector<16x1xf32>
    %327 = math.exp %326 : vector<16x1xf32>
    %328 = vector.broadcast %325 : vector<16x1xf32> to vector<16x16xf32>
    %329 = arith.subf %320, %328 : vector<16x16xf32>
    %330 = math.exp %329 : vector<16x16xf32>
    %c6_244 = arith.constant 6 : index
    %c0_245 = arith.constant 0 : index
    %c0_246 = arith.constant 0 : index
    %331 = vector.load %arg10[%c6_244, %c0_245, %c0_246] : memref<8x16x1xf32, #tpu.memory_space<vmem>>, vector<1x16x1xf32>
    %332 = vector.shape_cast %331 : vector<1x16x1xf32> to vector<16x1xf32>
    %333 = arith.mulf %327, %332 : vector<16x1xf32>
    %cst_247 = arith.constant dense<0.000000e+00> : vector<16xf32>
    %334 = vector.multi_reduction <add>, %330, %cst_247 [1] : vector<16x16xf32> to vector<16xf32>
    %335 = vector.shape_cast %334 : vector<16xf32> to vector<16x1xf32>
    %336 = arith.addf %333, %335 : vector<16x1xf32>
    %c6_248 = arith.constant 6 : index
    %c0_249 = arith.constant 0 : index
    %c0_250 = arith.constant 0 : index
    %337 = vector.load %arg10[%c6_248, %c0_249, %c0_250] : memref<8x16x1xf32, #tpu.memory_space<vmem>>, vector<1x16x1xf32>
    %338 = vector.shape_cast %337 : vector<1x16x1xf32> to vector<16x1xf32>
    %339 = vector.shape_cast %336 : vector<16x1xf32> to vector<1x16x1xf32>
    tpu.vector_store %arg10[%c6_248, %c0_249, %c0_250], %339 {strides = array<i32>} : memref<8x16x1xf32, #tpu.memory_space<vmem>>, vector<1x16x1xf32>,
    %c6_251 = arith.constant 6 : index
    %c0_252 = arith.constant 0 : index
    %c0_253 = arith.constant 0 : index
    %340 = vector.load %arg11[%c6_251, %c0_252, %c0_253] : memref<8x16x4xf32, #tpu.memory_space<vmem>>, vector<1x16x4xf32>
    %341 = vector.shape_cast %340 : vector<1x16x4xf32> to vector<16x4xf32>
    %342 = vector.broadcast %327 : vector<16x1xf32> to vector<16x4xf32>
    %343 = arith.mulf %342, %341 : vector<16x4xf32>
    %344 = arith.truncf %330 : vector<16x16xf32> to vector<16x16xbf16>
    %cst_254 = arith.constant dense<0.000000e+00> : vector<16x4xf32>
    %345 = tpu.matmul %344, %308, %cst_254 {dimension_numbers = #tpu.dot_dimension_numbers<[1], [0], [0], [1], [0, 0, 1, 1], [], []>} : vector<16x16xbf16>, vector<16x4xbf16>, vector<16x4xf32> -> vector<16x4xf32>
    %346 = arith.addf %343, %345 : vector<16x4xf32>
    %c6_255 = arith.constant 6 : index
    %c0_256 = arith.constant 0 : index
    %c0_257 = arith.constant 0 : index
    %347 = vector.load %arg11[%c6_255, %c0_256, %c0_257] : memref<8x16x4xf32, #tpu.memory_space<vmem>>, vector<1x16x4xf32>
    %348 = vector.shape_cast %347 : vector<1x16x4xf32> to vector<16x4xf32>
    %349 = vector.shape_cast %346 : vector<16x4xf32> to vector<1x16x4xf32>
    tpu.vector_store %arg11[%c6_255, %c0_256, %c0_257], %349 {strides = array<i32>} : memref<8x16x4xf32, #tpu.memory_space<vmem>>, vector<1x16x4xf32>,
    %c6_258 = arith.constant 6 : index
    %c0_259 = arith.constant 0 : index
    %c0_260 = arith.constant 0 : index
    %350 = vector.load %arg9[%c6_258, %c0_259, %c0_260] : memref<8x16x1xf32, #tpu.memory_space<vmem>>, vector<1x16x1xf32>
    %351 = vector.shape_cast %350 : vector<1x16x1xf32> to vector<16x1xf32>
    %352 = vector.shape_cast %325 : vector<16x1xf32> to vector<1x16x1xf32>
    tpu.vector_store %arg9[%c6_258, %c0_259, %c0_260], %352 {strides = array<i32>} : memref<8x16x1xf32, #tpu.memory_space<vmem>>, vector<1x16x1xf32>,
    %c0_261 = arith.constant 0 : index
    %c0_262 = arith.constant 0 : index
    %c28 = arith.constant 28 : index
    %353 = vector.load %arg3[%c0_261, %c0_262, %c28] : memref<1x16x32xbf16, #tpu.memory_space<vmem>>, vector<1x16x4xbf16>
    %354 = vector.shape_cast %353 : vector<1x16x4xbf16> to vector<16x4xbf16>
    %c0_263 = arith.constant 0 : index
    %c0_264 = arith.constant 0 : index
    %c28_265 = arith.constant 28 : index
    %355 = vector.load %arg4[%c0_263, %c0_264, %c28_265] : memref<1x16x32xbf16, #tpu.memory_space<vmem>>, vector<1x16x4xbf16>
    %356 = vector.shape_cast %355 : vector<1x16x4xbf16> to vector<16x4xbf16>
    %c0_266 = arith.constant 0 : index
    %c0_267 = arith.constant 0 : index
    %c28_268 = arith.constant 28 : index
    %357 = vector.load %arg5[%c0_266, %c0_267, %c28_268] : memref<1x16x32xbf16, #tpu.memory_space<vmem>>, vector<1x16x4xbf16>
    %358 = vector.shape_cast %357 : vector<1x16x4xbf16> to vector<16x4xbf16>
    %cst_269 = arith.constant dense<0.000000e+00> : vector<16x16xf32>
    %359 = tpu.matmul %354, %356, %cst_269 {dimension_numbers = #tpu.dot_dimension_numbers<[1], [1], [0], [0], [0, 0, 1, 0], [], []>} : vector<16x4xbf16>, vector<16x4xbf16>, vector<16x16xf32> -> vector<16x16xf32>
    %c0_270 = arith.constant 0 : index
    %c7 = arith.constant 7 : index
    %c0_271 = arith.constant 0 : index
    %c0_272 = arith.constant 0 : index
    %360 = vector.load %arg6[%c0_270, %c7, %c0_271, %c0_272] : memref<1x8x16x4xf32, #tpu.memory_space<vmem>>, vector<1x1x16x4xf32>
    %361 = vector.shape_cast %360 : vector<1x1x16x4xf32> to vector<16x4xf32>
    %362 = vector.shape_cast %361 : vector<16x4xf32> to vector<16x4x1xf32>
    %c0_273 = arith.constant 0 : index
    %c7_274 = arith.constant 7 : index
    %c0_275 = arith.constant 0 : index
    %c0_276 = arith.constant 0 : index
    %363 = vector.load %arg7[%c0_273, %c7_274, %c0_275, %c0_276] : memref<1x8x16x4xf32, #tpu.memory_space<vmem>>, vector<1x1x16x4xf32>
    %364 = vector.shape_cast %363 : vector<1x1x16x4xf32> to vector<16x4xf32>
    %365 = vector.shape_cast %364 : vector<16x4xf32> to vector<16x1x4xf32>
    %366 = vector.broadcast %362 : vector<16x4x1xf32> to vector<16x4x4xf32>
    %367 = vector.broadcast %365 : vector<16x1x4xf32> to vector<16x4x4xf32>
    %368 = arith.addf %366, %367 : vector<16x4x4xf32>
    %369 = vector.shape_cast %368 : vector<16x4x4xf32> to vector<16x16xf32>
    %370 = arith.addf %359, %369 : vector<16x16xf32>
    %c7_277 = arith.constant 7 : index
    %c0_278 = arith.constant 0 : index
    %c0_279 = arith.constant 0 : index
    %371 = vector.load %arg9[%c7_277, %c0_278, %c0_279] : memref<8x16x1xf32, #tpu.memory_space<vmem>>, vector<1x16x1xf32>
    %372 = vector.shape_cast %371 : vector<1x16x1xf32> to vector<16x1xf32>
    %cst_280 = arith.constant dense<0xFF800000> : vector<16xf32>
    %373 = vector.multi_reduction <maximumf>, %370, %cst_280 [1] : vector<16x16xf32> to vector<16xf32>
    %374 = vector.shape_cast %373 : vector<16xf32> to vector<16x1xf32>
    %375 = arith.maximumf %372, %374 : vector<16x1xf32>
    %376 = arith.subf %372, %375 : vector<16x1xf32>
    %377 = math.exp %376 : vector<16x1xf32>
    %378 = vector.broadcast %375 : vector<16x1xf32> to vector<16x16xf32>
    %379 = arith.subf %370, %378 : vector<16x16xf32>
    %380 = math.exp %379 : vector<16x16xf32>
    %c7_281 = arith.constant 7 : index
    %c0_282 = arith.constant 0 : index
    %c0_283 = arith.constant 0 : index
    %381 = vector.load %arg10[%c7_281, %c0_282, %c0_283] : memref<8x16x1xf32, #tpu.memory_space<vmem>>, vector<1x16x1xf32>
    %382 = vector.shape_cast %381 : vector<1x16x1xf32> to vector<16x1xf32>
    %383 = arith.mulf %377, %382 : vector<16x1xf32>
    %cst_284 = arith.constant dense<0.000000e+00> : vector<16xf32>
    %384 = vector.multi_reduction <add>, %380, %cst_284 [1] : vector<16x16xf32> to vector<16xf32>
    %385 = vector.shape_cast %384 : vector<16xf32> to vector<16x1xf32>
    %386 = arith.addf %383, %385 : vector<16x1xf32>
    %c7_285 = arith.constant 7 : index
    %c0_286 = arith.constant 0 : index
    %c0_287 = arith.constant 0 : index
    %387 = vector.load %arg10[%c7_285, %c0_286, %c0_287] : memref<8x16x1xf32, #tpu.memory_space<vmem>>, vector<1x16x1xf32>
    %388 = vector.shape_cast %387 : vector<1x16x1xf32> to vector<16x1xf32>
    %389 = vector.shape_cast %386 : vector<16x1xf32> to vector<1x16x1xf32>
    tpu.vector_store %arg10[%c7_285, %c0_286, %c0_287], %389 {strides = array<i32>} : memref<8x16x1xf32, #tpu.memory_space<vmem>>, vector<1x16x1xf32>,
    %c7_288 = arith.constant 7 : index
    %c0_289 = arith.constant 0 : index
    %c0_290 = arith.constant 0 : index
    %390 = vector.load %arg11[%c7_288, %c0_289, %c0_290] : memref<8x16x4xf32, #tpu.memory_space<vmem>>, vector<1x16x4xf32>
    %391 = vector.shape_cast %390 : vector<1x16x4xf32> to vector<16x4xf32>
    %392 = vector.broadcast %377 : vector<16x1xf32> to vector<16x4xf32>
    %393 = arith.mulf %392, %391 : vector<16x4xf32>
    %394 = arith.truncf %380 : vector<16x16xf32> to vector<16x16xbf16>
    %cst_291 = arith.constant dense<0.000000e+00> : vector<16x4xf32>
    %395 = tpu.matmul %394, %358, %cst_291 {dimension_numbers = #tpu.dot_dimension_numbers<[1], [0], [0], [1], [0, 0, 1, 1], [], []>} : vector<16x16xbf16>, vector<16x4xbf16>, vector<16x4xf32> -> vector<16x4xf32>
    %396 = arith.addf %393, %395 : vector<16x4xf32>
    %c7_292 = arith.constant 7 : index
    %c0_293 = arith.constant 0 : index
    %c0_294 = arith.constant 0 : index
    %397 = vector.load %arg11[%c7_292, %c0_293, %c0_294] : memref<8x16x4xf32, #tpu.memory_space<vmem>>, vector<1x16x4xf32>
    %398 = vector.shape_cast %397 : vector<1x16x4xf32> to vector<16x4xf32>
    %399 = vector.shape_cast %396 : vector<16x4xf32> to vector<1x16x4xf32>
    tpu.vector_store %arg11[%c7_292, %c0_293, %c0_294], %399 {strides = array<i32>} : memref<8x16x4xf32, #tpu.memory_space<vmem>>, vector<1x16x4xf32>,
    %c7_295 = arith.constant 7 : index
    %c0_296 = arith.constant 0 : index
    %c0_297 = arith.constant 0 : index
    %400 = vector.load %arg9[%c7_295, %c0_296, %c0_297] : memref<8x16x1xf32, #tpu.memory_space<vmem>>, vector<1x16x1xf32>
    %401 = vector.shape_cast %400 : vector<1x16x1xf32> to vector<16x1xf32>
    %402 = vector.shape_cast %375 : vector<16x1xf32> to vector<1x16x1xf32>
    tpu.vector_store %arg9[%c7_295, %c0_296, %c0_297], %402 {strides = array<i32>} : memref<8x16x1xf32, #tpu.memory_space<vmem>>, vector<1x16x1xf32>,
    %c0_i32_298 = arith.constant 0 : i32
    %403 = arith.cmpi eq, %arg2, %c0_i32_298 : i32
    %404 = arith.extui %403 : i1 to i32
    %c0_i32_299 = arith.constant 0 : i32
    %405 = arith.cmpi ne, %404, %c0_i32_299 : i32
    scf.if %405 {
      %c0_300 = arith.constant 0 : index
      %c0_301 = arith.constant 0 : index
      %c0_302 = arith.constant 0 : index
      %406 = vector.load %arg10[%c0_300, %c0_301, %c0_302] : memref<8x16x1xf32, #tpu.memory_space<vmem>>, vector<8x16x1xf32>
      %407 = tpu.reciprocal %406 {approx = true} : vector<8x16x1xf32> -> vector<8x16x1xf32>
      %c0_303 = arith.constant 0 : index
      %c0_304 = arith.constant 0 : index
      %c0_305 = arith.constant 0 : index
      %408 = vector.load %arg11[%c0_303, %c0_304, %c0_305] : memref<8x16x4xf32, #tpu.memory_space<vmem>>, vector<1x16x4xf32>
      %409 = vector.shape_cast %408 : vector<1x16x4xf32> to vector<16x4xf32>
      %410 = vector.extract_strided_slice %407 {offsets = [0, 0, 0], sizes = [1, 16, 1], strides = [1, 1, 1]} : vector<8x16x1xf32> to vector<1x16x1xf32>
      %411 = vector.shape_cast %410 : vector<1x16x1xf32> to vector<16x1xf32>
      %412 = vector.broadcast %411 : vector<16x1xf32> to vector<16x4xf32>
      %413 = arith.mulf %409, %412 : vector<16x4xf32>
      %414 = arith.truncf %413 : vector<16x4xf32> to vector<16x4xbf16>
      %c1_306 = arith.constant 1 : index
      %c0_307 = arith.constant 0 : index
      %c0_308 = arith.constant 0 : index
      %415 = vector.load %arg11[%c1_306, %c0_307, %c0_308] : memref<8x16x4xf32, #tpu.memory_space<vmem>>, vector<1x16x4xf32>
      %416 = vector.shape_cast %415 : vector<1x16x4xf32> to vector<16x4xf32>
      %417 = vector.extract_strided_slice %407 {offsets = [1, 0, 0], sizes = [1, 16, 1], strides = [1, 1, 1]} : vector<8x16x1xf32> to vector<1x16x1xf32>
      %418 = vector.shape_cast %417 : vector<1x16x1xf32> to vector<16x1xf32>
      %419 = vector.broadcast %418 : vector<16x1xf32> to vector<16x4xf32>
      %420 = arith.mulf %416, %419 : vector<16x4xf32>
      %421 = arith.truncf %420 : vector<16x4xf32> to vector<16x4xbf16>
      %c2_309 = arith.constant 2 : index
      %c0_310 = arith.constant 0 : index
      %c0_311 = arith.constant 0 : index
      %422 = vector.load %arg11[%c2_309, %c0_310, %c0_311] : memref<8x16x4xf32, #tpu.memory_space<vmem>>, vector<1x16x4xf32>
      %423 = vector.shape_cast %422 : vector<1x16x4xf32> to vector<16x4xf32>
      %424 = vector.extract_strided_slice %407 {offsets = [2, 0, 0], sizes = [1, 16, 1], strides = [1, 1, 1]} : vector<8x16x1xf32> to vector<1x16x1xf32>
      %425 = vector.shape_cast %424 : vector<1x16x1xf32> to vector<16x1xf32>
      %426 = vector.broadcast %425 : vector<16x1xf32> to vector<16x4xf32>
      %427 = arith.mulf %423, %426 : vector<16x4xf32>
      %428 = arith.truncf %427 : vector<16x4xf32> to vector<16x4xbf16>
      %c3_312 = arith.constant 3 : index
      %c0_313 = arith.constant 0 : index
      %c0_314 = arith.constant 0 : index
      %429 = vector.load %arg11[%c3_312, %c0_313, %c0_314] : memref<8x16x4xf32, #tpu.memory_space<vmem>>, vector<1x16x4xf32>
      %430 = vector.shape_cast %429 : vector<1x16x4xf32> to vector<16x4xf32>
      %431 = vector.extract_strided_slice %407 {offsets = [3, 0, 0], sizes = [1, 16, 1], strides = [1, 1, 1]} : vector<8x16x1xf32> to vector<1x16x1xf32>
      %432 = vector.shape_cast %431 : vector<1x16x1xf32> to vector<16x1xf32>
      %433 = vector.broadcast %432 : vector<16x1xf32> to vector<16x4xf32>
      %434 = arith.mulf %430, %433 : vector<16x4xf32>
      %435 = arith.truncf %434 : vector<16x4xf32> to vector<16x4xbf16>
      %c4_315 = arith.constant 4 : index
      %c0_316 = arith.constant 0 : index
      %c0_317 = arith.constant 0 : index
      %436 = vector.load %arg11[%c4_315, %c0_316, %c0_317] : memref<8x16x4xf32, #tpu.memory_space<vmem>>, vector<1x16x4xf32>
      %437 = vector.shape_cast %436 : vector<1x16x4xf32> to vector<16x4xf32>
      %438 = vector.extract_strided_slice %407 {offsets = [4, 0, 0], sizes = [1, 16, 1], strides = [1, 1, 1]} : vector<8x16x1xf32> to vector<1x16x1xf32>
      %439 = vector.shape_cast %438 : vector<1x16x1xf32> to vector<16x1xf32>
      %440 = vector.broadcast %439 : vector<16x1xf32> to vector<16x4xf32>
      %441 = arith.mulf %437, %440 : vector<16x4xf32>
      %442 = arith.truncf %441 : vector<16x4xf32> to vector<16x4xbf16>
      %c5_318 = arith.constant 5 : index
      %c0_319 = arith.constant 0 : index
      %c0_320 = arith.constant 0 : index
      %443 = vector.load %arg11[%c5_318, %c0_319, %c0_320] : memref<8x16x4xf32, #tpu.memory_space<vmem>>, vector<1x16x4xf32>
      %444 = vector.shape_cast %443 : vector<1x16x4xf32> to vector<16x4xf32>
      %445 = vector.extract_strided_slice %407 {offsets = [5, 0, 0], sizes = [1, 16, 1], strides = [1, 1, 1]} : vector<8x16x1xf32> to vector<1x16x1xf32>
      %446 = vector.shape_cast %445 : vector<1x16x1xf32> to vector<16x1xf32>
      %447 = vector.broadcast %446 : vector<16x1xf32> to vector<16x4xf32>
      %448 = arith.mulf %444, %447 : vector<16x4xf32>
      %449 = arith.truncf %448 : vector<16x4xf32> to vector<16x4xbf16>
      %c6_321 = arith.constant 6 : index
      %c0_322 = arith.constant 0 : index
      %c0_323 = arith.constant 0 : index
      %450 = vector.load %arg11[%c6_321, %c0_322, %c0_323] : memref<8x16x4xf32, #tpu.memory_space<vmem>>, vector<1x16x4xf32>
      %451 = vector.shape_cast %450 : vector<1x16x4xf32> to vector<16x4xf32>
      %452 = vector.extract_strided_slice %407 {offsets = [6, 0, 0], sizes = [1, 16, 1], strides = [1, 1, 1]} : vector<8x16x1xf32> to vector<1x16x1xf32>
      %453 = vector.shape_cast %452 : vector<1x16x1xf32> to vector<16x1xf32>
      %454 = vector.broadcast %453 : vector<16x1xf32> to vector<16x4xf32>
      %455 = arith.mulf %451, %454 : vector<16x4xf32>
      %456 = arith.truncf %455 : vector<16x4xf32> to vector<16x4xbf16>
      %c7_324 = arith.constant 7 : index
      %c0_325 = arith.constant 0 : index
      %c0_326 = arith.constant 0 : index
      %457 = vector.load %arg11[%c7_324, %c0_325, %c0_326] : memref<8x16x4xf32, #tpu.memory_space<vmem>>, vector<1x16x4xf32>
      %458 = vector.shape_cast %457 : vector<1x16x4xf32> to vector<16x4xf32>
      %459 = vector.extract_strided_slice %407 {offsets = [7, 0, 0], sizes = [1, 16, 1], strides = [1, 1, 1]} : vector<8x16x1xf32> to vector<1x16x1xf32>
      %460 = vector.shape_cast %459 : vector<1x16x1xf32> to vector<16x1xf32>
      %461 = vector.broadcast %460 : vector<16x1xf32> to vector<16x4xf32>
      %462 = arith.mulf %458, %461 : vector<16x4xf32>
      %463 = arith.truncf %462 : vector<16x4xf32> to vector<16x4xbf16>
      %464 = tpu.concatenate %414, %421, %428, %435, %442, %449, %456, %463 in 1 : vector<16x4xbf16>, vector<16x4xbf16>, vector<16x4xbf16>, vector<16x4xbf16>, vector<16x4xbf16>, vector<16x4xbf16>, vector<16x4xbf16>, vector<16x4xbf16> -> vector<16x32xbf16>
      %c0_327 = arith.constant 0 : index
      %c0_328 = arith.constant 0 : index
      %c0_329 = arith.constant 0 : index
      %465 = vector.load %arg8[%c0_327, %c0_328, %c0_329] : memref<1x16x32xbf16, #tpu.memory_space<vmem>>, vector<1x16x32xbf16>
      %466 = vector.shape_cast %465 : vector<1x16x32xbf16> to vector<16x32xbf16>
      %467 = vector.shape_cast %464 : vector<16x32xbf16> to vector<1x16x32xbf16>
      tpu.vector_store %arg8[%c0_327, %c0_328, %c0_329], %467 {strides = array<i32>} : memref<1x16x32xbf16, #tpu.memory_space<vmem>>, vector<1x16x32xbf16>,
    } else {
    }
    return
  }
  func.func @transform_0(%arg0: i32, %arg1: i32, %arg2: i32) -> (i32, i32, i32) {
    %c0_i32 = arith.constant 0 : i32
    %c0_i32_0 = arith.constant 0 : i32
    return %arg0, %arg1, %c0_i32 : i32, i32, i32
  }
  func.func @transform_1(%arg0: i32, %arg1: i32, %arg2: i32) -> (i32, i32, i32) {
    %c0_i32 = arith.constant 0 : i32
    %c0_i32_0 = arith.constant 0 : i32
    return %arg0, %arg2, %c0_i32 : i32, i32, i32
  }
  func.func @transform_2(%arg0: i32, %arg1: i32, %arg2: i32) -> (i32, i32, i32) {
    %c0_i32 = arith.constant 0 : i32
    %c0_i32_0 = arith.constant 0 : i32
    return %arg0, %arg2, %c0_i32 : i32, i32, i32
  }
  func.func @transform_3(%arg0: i32, %arg1: i32, %arg2: i32) -> (i32, i32, i32, i32) {
    %c0_i32 = arith.constant 0 : i32
    %c0_i32_0 = arith.constant 0 : i32
    return %arg0, %c0_i32, %arg1, %arg2 : i32, i32, i32, i32
  }
  func.func @transform_4(%arg0: i32, %arg1: i32, %arg2: i32) -> (i32, i32, i32, i32) {
    %c0_i32 = arith.constant 0 : i32
    %c0_i32_0 = arith.constant 0 : i32
    %c0_i32_1 = arith.constant 0 : i32
    return %arg0, %c0_i32, %arg1, %c0_i32_0 : i32, i32, i32, i32
  }
  func.func @transform_5(%arg0: i32, %arg1: i32, %arg2: i32) -> (i32, i32, i32) {
    %c0_i32 = arith.constant 0 : i32
    %c0_i32_0 = arith.constant 0 : i32
    return %arg0, %arg1, %c0_i32 : i32, i32, i32
  }
}

module attributes {stable_mosaic.version = 11 : i64} {
  func.func @kernel(%arg0: i32, %arg1: i32, %arg2: i32, %arg3: memref<32x32xbf16, #tpu.memory_space<vmem>>, %arg4: memref<32x128xbf16, #tpu.memory_space<vmem>>, %arg5: memref<1x32xf32, #tpu.memory_space<vmem>>, %arg6: memref<1x32xf32, #tpu.memory_space<vmem>>, %arg7: memref<1x128xf32, #tpu.memory_space<vmem>>, %arg8: memref<32x128xbf16, #tpu.memory_space<vmem>>, %arg9: memref<32x128xf32, #tpu.memory_space<vmem>>) attributes {dimension_semantics = [#tpu.dimension_semantics<parallel>, #tpu.dimension_semantics<parallel>, #tpu.dimension_semantics<arbitrary>], iteration_bounds = array<i64: 1, 1, 1>, scalar_prefetch = 0 : i64, scratch_operands = 1 : i64, tpu.core_type = #tpu.core_type<tc>, window_params = [{transform_indices = @transform_0, window_bounds = array<i64: 32, 32>}, {transform_indices = @transform_1, window_bounds = array<i64: 32, 128>}, {pipeline_mode = #tpu.pipeline_mode<synchronous>, transform_indices = @transform_2, window_bounds = array<i64: 1, 32>}, {pipeline_mode = #tpu.pipeline_mode<synchronous>, transform_indices = @transform_3, window_bounds = array<i64: 1, 32>}, {transform_indices = @transform_4, window_bounds = array<i64: 1, 128>}, {transform_indices = @transform_5, window_bounds = array<i64: 32, 128>}]} {
    %c0_i32 = arith.constant 0 : i32
    %0 = arith.cmpi eq, %arg2, %c0_i32 : i32
    %1 = arith.extui %0 : i1 to i32
    %c0_i32_0 = arith.constant 0 : i32
    %2 = arith.cmpi ne, %1, %c0_i32_0 : i32
    scf.if %2 {
      %cst_19 = arith.constant 0.000000e+00 : f32
      %38 = vector.broadcast %cst_19 : f32 to vector<32x128xf32>
      %c0_20 = arith.constant 0 : index
      %c0_21 = arith.constant 0 : index
      %39 = vector.load %arg9[%c0_20, %c0_21] : memref<32x128xf32, #tpu.memory_space<vmem>>, vector<32x128xf32>
      tpu.vector_store %arg9[%c0_20, %c0_21], %38 {strides = array<i32>} : memref<32x128xf32, #tpu.memory_space<vmem>>, vector<32x128xf32>,
    } else {
    }
    %c0 = arith.constant 0 : index
    %c0_1 = arith.constant 0 : index
    %3 = vector.load %arg3[%c0, %c0_1] : memref<32x32xbf16, #tpu.memory_space<vmem>>, vector<32x32xbf16>
    %4 = arith.extf %3 : vector<32x32xbf16> to vector<32x32xf32>
    %cst = arith.constant dense<0.000000e+00> : vector<32xf32>
    %5 = vector.multi_reduction <add>, %4, %cst [1] : vector<32x32xf32> to vector<32xf32>
    %6 = vector.shape_cast %5 : vector<32xf32> to vector<32x1xf32>
    %cst_2 = arith.constant 3.200000e+01 : f32
    %7 = vector.broadcast %cst_2 : f32 to vector<32x1xf32>
    %8 = arith.divf %6, %7 : vector<32x1xf32>
    %9 = vector.broadcast %8 : vector<32x1xf32> to vector<32x32xf32>
    %10 = arith.subf %4, %9 : vector<32x32xf32>
    %11 = arith.mulf %10, %10 : vector<32x32xf32>
    %cst_3 = arith.constant dense<0.000000e+00> : vector<32xf32>
    %12 = vector.multi_reduction <add>, %11, %cst_3 [1] : vector<32x32xf32> to vector<32xf32>
    %13 = vector.shape_cast %12 : vector<32xf32> to vector<32x1xf32>
    %cst_4 = arith.constant 3.200000e+01 : f32
    %14 = vector.broadcast %cst_4 : f32 to vector<32x1xf32>
    %15 = arith.divf %13, %14 : vector<32x1xf32>
    %16 = vector.broadcast %8 : vector<32x1xf32> to vector<32x32xf32>
    %17 = arith.subf %4, %16 : vector<32x32xf32>
    %cst_5 = arith.constant 9.99999997E-7 : f32
    %18 = vector.broadcast %cst_5 : f32 to vector<32x1xf32>
    %19 = arith.addf %15, %18 : vector<32x1xf32>
    %20 = math.rsqrt %19 : vector<32x1xf32>
    %21 = vector.broadcast %20 : vector<32x1xf32> to vector<32x32xf32>
    %22 = arith.mulf %17, %21 : vector<32x32xf32>
    %c0_6 = arith.constant 0 : index
    %c0_7 = arith.constant 0 : index
    %23 = vector.load %arg5[%c0_6, %c0_7] : memref<1x32xf32, #tpu.memory_space<vmem>>, vector<1x32xf32>
    %24 = vector.broadcast %23 : vector<1x32xf32> to vector<32x32xf32>
    %25 = arith.mulf %22, %24 : vector<32x32xf32>
    %c0_8 = arith.constant 0 : index
    %c0_9 = arith.constant 0 : index
    %26 = vector.load %arg6[%c0_8, %c0_9] : memref<1x32xf32, #tpu.memory_space<vmem>>, vector<1x32xf32>
    %27 = vector.broadcast %26 : vector<1x32xf32> to vector<32x32xf32>
    %28 = arith.addf %25, %27 : vector<32x32xf32>
    %29 = arith.truncf %28 : vector<32x32xf32> to vector<32x32xbf16>
    %c0_10 = arith.constant 0 : index
    %c0_11 = arith.constant 0 : index
    %30 = vector.load %arg9[%c0_10, %c0_11] : memref<32x128xf32, #tpu.memory_space<vmem>>, vector<32x128xf32>
    %c0_12 = arith.constant 0 : index
    %c0_13 = arith.constant 0 : index
    %31 = vector.load %arg4[%c0_12, %c0_13] : memref<32x128xbf16, #tpu.memory_space<vmem>>, vector<32x128xbf16>
    %cst_14 = arith.constant dense<0.000000e+00> : vector<32x128xf32>
    %32 = tpu.matmul %29, %31, %cst_14 {dimension_numbers = #tpu.dot_dimension_numbers<[1], [0], [0], [1], [0, 0, 1, 1], [], []>} : vector<32x32xbf16>, vector<32x128xbf16>, vector<32x128xf32> -> vector<32x128xf32>
    %33 = arith.addf %30, %32 : vector<32x128xf32>
    %c0_15 = arith.constant 0 : index
    %c0_16 = arith.constant 0 : index
    %34 = vector.load %arg9[%c0_15, %c0_16] : memref<32x128xf32, #tpu.memory_space<vmem>>, vector<32x128xf32>
    tpu.vector_store %arg9[%c0_15, %c0_16], %33 {strides = array<i32>} : memref<32x128xf32, #tpu.memory_space<vmem>>, vector<32x128xf32>,
    %c0_i32_17 = arith.constant 0 : i32
    %35 = arith.cmpi eq, %arg2, %c0_i32_17 : i32
    %36 = arith.extui %35 : i1 to i32
    %c0_i32_18 = arith.constant 0 : i32
    %37 = arith.cmpi ne, %36, %c0_i32_18 : i32
    scf.if %37 {
      %c0_19 = arith.constant 0 : index
      %c0_20 = arith.constant 0 : index
      %38 = vector.load %arg9[%c0_19, %c0_20] : memref<32x128xf32, #tpu.memory_space<vmem>>, vector<32x128xf32>
      %c0_21 = arith.constant 0 : index
      %c0_22 = arith.constant 0 : index
      %39 = vector.load %arg7[%c0_21, %c0_22] : memref<1x128xf32, #tpu.memory_space<vmem>>, vector<1x128xf32>
      %40 = vector.broadcast %39 : vector<1x128xf32> to vector<32x128xf32>
      %41 = arith.addf %38, %40 : vector<32x128xf32>
      %cst_23 = arith.constant 5.000000e-01 : f32
      %42 = vector.broadcast %cst_23 : f32 to vector<32x128xf32>
      %43 = arith.mulf %42, %41 : vector<32x128xf32>
      %cst_24 = arith.constant 0.707106769 : f32
      %44 = vector.broadcast %cst_24 : f32 to vector<32x128xf32>
      %45 = arith.mulf %41, %44 : vector<32x128xf32>
      %cst_25 = arith.constant 0.000000e+00 : f32
      %46 = vector.broadcast %cst_25 : f32 to vector<32x128xf32>
      %47 = arith.cmpf olt, %45, %46 : vector<32x128xf32>
      %cst_26 = arith.constant -1.000000e+00 : f32
      %cst_27 = arith.constant 1.000000e+00 : f32
      %48 = vector.broadcast %cst_26 : f32 to vector<32x128xf32>
      %49 = vector.broadcast %cst_27 : f32 to vector<32x128xf32>
      %50 = arith.select %47, %48, %49 : vector<32x128xi1>, vector<32x128xf32>
      %51 = math.absf %45 : vector<32x128xf32>
      %cst_28 = arith.constant 0.327591091 : f32
      %52 = vector.broadcast %cst_28 : f32 to vector<32x128xf32>
      %53 = arith.mulf %52, %51 : vector<32x128xf32>
      %cst_29 = arith.constant 1.000000e+00 : f32
      %54 = vector.broadcast %cst_29 : f32 to vector<32x128xf32>
      %55 = arith.addf %54, %53 : vector<32x128xf32>
      %cst_30 = arith.constant 1.000000e+00 : f32
      %56 = vector.broadcast %cst_30 : f32 to vector<32x128xf32>
      %57 = arith.divf %56, %55 : vector<32x128xf32>
      %cst_31 = arith.constant 1.06140542 : f32
      %58 = vector.broadcast %cst_31 : f32 to vector<32x128xf32>
      %59 = arith.mulf %58, %57 : vector<32x128xf32>
      %cst_32 = arith.constant -1.45315206 : f32
      %60 = vector.broadcast %cst_32 : f32 to vector<32x128xf32>
      %61 = arith.addf %59, %60 : vector<32x128xf32>
      %62 = arith.mulf %61, %57 : vector<32x128xf32>
      %cst_33 = arith.constant 1.42141378 : f32
      %63 = vector.broadcast %cst_33 : f32 to vector<32x128xf32>
      %64 = arith.addf %62, %63 : vector<32x128xf32>
      %65 = arith.mulf %64, %57 : vector<32x128xf32>
      %cst_34 = arith.constant -0.284496725 : f32
      %66 = vector.broadcast %cst_34 : f32 to vector<32x128xf32>
      %67 = arith.addf %65, %66 : vector<32x128xf32>
      %68 = arith.mulf %67, %57 : vector<32x128xf32>
      %cst_35 = arith.constant 0.254829586 : f32
      %69 = vector.broadcast %cst_35 : f32 to vector<32x128xf32>
      %70 = arith.addf %68, %69 : vector<32x128xf32>
      %71 = arith.mulf %70, %57 : vector<32x128xf32>
      %cst_36 = arith.constant 0.000000e+00 : f32
      %72 = vector.broadcast %cst_36 : f32 to vector<32x128xf32>
      %73 = arith.subf %72, %51 : vector<32x128xf32>
      %74 = arith.mulf %73, %51 : vector<32x128xf32>
      %75 = math.exp %74 : vector<32x128xf32>
      %76 = arith.mulf %71, %75 : vector<32x128xf32>
      %cst_37 = arith.constant 1.000000e+00 : f32
      %77 = vector.broadcast %cst_37 : f32 to vector<32x128xf32>
      %78 = arith.subf %77, %76 : vector<32x128xf32>
      %79 = arith.mulf %50, %78 : vector<32x128xf32>
      %cst_38 = arith.constant 1.000000e+00 : f32
      %80 = vector.broadcast %cst_38 : f32 to vector<32x128xf32>
      %81 = arith.addf %80, %79 : vector<32x128xf32>
      %82 = arith.mulf %43, %81 : vector<32x128xf32>
      %83 = arith.truncf %82 : vector<32x128xf32> to vector<32x128xbf16>
      %c0_39 = arith.constant 0 : index
      %c0_40 = arith.constant 0 : index
      %84 = vector.load %arg8[%c0_39, %c0_40] : memref<32x128xbf16, #tpu.memory_space<vmem>>, vector<32x128xbf16>
      tpu.vector_store %arg8[%c0_39, %c0_40], %83 {strides = array<i32>} : memref<32x128xbf16, #tpu.memory_space<vmem>>, vector<32x128xbf16>,
    } else {
    }
    return
  }
  func.func @transform_0(%arg0: i32, %arg1: i32, %arg2: i32) -> (i32, i32) {
    %c0_i32 = arith.constant 0 : i32
    return %arg0, %arg2 : i32, i32
  }
  func.func @transform_1(%arg0: i32, %arg1: i32, %arg2: i32) -> (i32, i32) {
    %c0_i32 = arith.constant 0 : i32
    return %arg2, %arg1 : i32, i32
  }
  func.func @transform_2(%arg0: i32, %arg1: i32, %arg2: i32) -> (i32, i32) {
    %c0_i32 = arith.constant 0 : i32
    %c0_i32_0 = arith.constant 0 : i32
    %c0_i32_1 = arith.constant 0 : i32
    return %c0_i32, %c0_i32_0 : i32, i32
  }
  func.func @transform_3(%arg0: i32, %arg1: i32, %arg2: i32) -> (i32, i32) {
    %c0_i32 = arith.constant 0 : i32
    %c0_i32_0 = arith.constant 0 : i32
    %c0_i32_1 = arith.constant 0 : i32
    return %c0_i32, %c0_i32_0 : i32, i32
  }
  func.func @transform_4(%arg0: i32, %arg1: i32, %arg2: i32) -> (i32, i32) {
    %c0_i32 = arith.constant 0 : i32
    %c0_i32_0 = arith.constant 0 : i32
    return %c0_i32, %arg1 : i32, i32
  }
  func.func @transform_5(%arg0: i32, %arg1: i32, %arg2: i32) -> (i32, i32) {
    %c0_i32 = arith.constant 0 : i32
    return %arg0, %arg1 : i32, i32
  }
}

module attributes {stable_mosaic.version = 11 : i64} {
  func.func @kernel(%arg0: i32, %arg1: i32, %arg2: i32, %arg3: memref<32x128xbf16, #tpu.memory_space<vmem>>, %arg4: memref<128x32xbf16, #tpu.memory_space<vmem>>, %arg5: memref<1x32xf32, #tpu.memory_space<vmem>>, %arg6: memref<32x32xbf16, #tpu.memory_space<vmem>>, %arg7: memref<32x32xbf16, #tpu.memory_space<vmem>>, %arg8: memref<32x32xf32, #tpu.memory_space<vmem>>) attributes {dimension_semantics = [#tpu.dimension_semantics<parallel>, #tpu.dimension_semantics<parallel>, #tpu.dimension_semantics<arbitrary>], iteration_bounds = array<i64: 1, 1, 1>, scalar_prefetch = 0 : i64, scratch_operands = 1 : i64, tpu.core_type = #tpu.core_type<tc>, window_params = [{transform_indices = @transform_0, window_bounds = array<i64: 32, 128>}, {transform_indices = @transform_1, window_bounds = array<i64: 128, 32>}, {transform_indices = @transform_2, window_bounds = array<i64: 1, 32>}, {transform_indices = @transform_3, window_bounds = array<i64: 32, 32>}, {transform_indices = @transform_4, window_bounds = array<i64: 32, 32>}]} {
    %c0_i32 = arith.constant 0 : i32
    %0 = arith.cmpi eq, %arg2, %c0_i32 : i32
    %1 = arith.extui %0 : i1 to i32
    %c0_i32_0 = arith.constant 0 : i32
    %2 = arith.cmpi ne, %1, %c0_i32_0 : i32
    scf.if %2 {
      %cst_10 = arith.constant 0.000000e+00 : f32
      %12 = vector.broadcast %cst_10 : f32 to vector<32x32xf32>
      %c0_11 = arith.constant 0 : index
      %c0_12 = arith.constant 0 : index
      %13 = vector.load %arg8[%c0_11, %c0_12] : memref<32x32xf32, #tpu.memory_space<vmem>>, vector<32x32xf32>
      tpu.vector_store %arg8[%c0_11, %c0_12], %12 {strides = array<i32>} : memref<32x32xf32, #tpu.memory_space<vmem>>, vector<32x32xf32>,
    } else {
    }
    %c0 = arith.constant 0 : index
    %c0_1 = arith.constant 0 : index
    %3 = vector.load %arg3[%c0, %c0_1] : memref<32x128xbf16, #tpu.memory_space<vmem>>, vector<32x128xbf16>
    %c0_2 = arith.constant 0 : index
    %c0_3 = arith.constant 0 : index
    %4 = vector.load %arg8[%c0_2, %c0_3] : memref<32x32xf32, #tpu.memory_space<vmem>>, vector<32x32xf32>
    %c0_4 = arith.constant 0 : index
    %c0_5 = arith.constant 0 : index
    %5 = vector.load %arg4[%c0_4, %c0_5] : memref<128x32xbf16, #tpu.memory_space<vmem>>, vector<128x32xbf16>
    %cst = arith.constant dense<0.000000e+00> : vector<32x32xf32>
    %6 = tpu.matmul %3, %5, %cst {dimension_numbers = #tpu.dot_dimension_numbers<[1], [0], [0], [1], [0, 0, 1, 1], [], []>} : vector<32x128xbf16>, vector<128x32xbf16>, vector<32x32xf32> -> vector<32x32xf32>
    %7 = arith.addf %4, %6 : vector<32x32xf32>
    %c0_6 = arith.constant 0 : index
    %c0_7 = arith.constant 0 : index
    %8 = vector.load %arg8[%c0_6, %c0_7] : memref<32x32xf32, #tpu.memory_space<vmem>>, vector<32x32xf32>
    tpu.vector_store %arg8[%c0_6, %c0_7], %7 {strides = array<i32>} : memref<32x32xf32, #tpu.memory_space<vmem>>, vector<32x32xf32>,
    %c0_i32_8 = arith.constant 0 : i32
    %9 = arith.cmpi eq, %arg2, %c0_i32_8 : i32
    %10 = arith.extui %9 : i1 to i32
    %c0_i32_9 = arith.constant 0 : i32
    %11 = arith.cmpi ne, %10, %c0_i32_9 : i32
    scf.if %11 {
      %c0_10 = arith.constant 0 : index
      %c0_11 = arith.constant 0 : index
      %12 = vector.load %arg8[%c0_10, %c0_11] : memref<32x32xf32, #tpu.memory_space<vmem>>, vector<32x32xf32>
      %c0_12 = arith.constant 0 : index
      %c0_13 = arith.constant 0 : index
      %13 = vector.load %arg5[%c0_12, %c0_13] : memref<1x32xf32, #tpu.memory_space<vmem>>, vector<1x32xf32>
      %14 = vector.broadcast %13 : vector<1x32xf32> to vector<32x32xf32>
      %15 = arith.addf %12, %14 : vector<32x32xf32>
      %c0_14 = arith.constant 0 : index
      %c0_15 = arith.constant 0 : index
      %16 = vector.load %arg6[%c0_14, %c0_15] : memref<32x32xbf16, #tpu.memory_space<vmem>>, vector<32x32xbf16>
      %17 = arith.extf %16 : vector<32x32xbf16> to vector<32x32xf32>
      %18 = arith.addf %15, %17 : vector<32x32xf32>
      %19 = arith.truncf %18 : vector<32x32xf32> to vector<32x32xbf16>
      %c0_16 = arith.constant 0 : index
      %c0_17 = arith.constant 0 : index
      %20 = vector.load %arg7[%c0_16, %c0_17] : memref<32x32xbf16, #tpu.memory_space<vmem>>, vector<32x32xbf16>
      tpu.vector_store %arg7[%c0_16, %c0_17], %19 {strides = array<i32>} : memref<32x32xbf16, #tpu.memory_space<vmem>>, vector<32x32xbf16>,
    } else {
    }
    return
  }
  func.func @transform_0(%arg0: i32, %arg1: i32, %arg2: i32) -> (i32, i32) {
    %c0_i32 = arith.constant 0 : i32
    return %arg0, %arg2 : i32, i32
  }
  func.func @transform_1(%arg0: i32, %arg1: i32, %arg2: i32) -> (i32, i32) {
    %c0_i32 = arith.constant 0 : i32
    return %arg2, %arg1 : i32, i32
  }
  func.func @transform_2(%arg0: i32, %arg1: i32, %arg2: i32) -> (i32, i32) {
    %c0_i32 = arith.constant 0 : i32
    %c0_i32_0 = arith.constant 0 : i32
    return %c0_i32, %arg1 : i32, i32
  }
  func.func @transform_3(%arg0: i32, %arg1: i32, %arg2: i32) -> (i32, i32) {
    %c0_i32 = arith.constant 0 : i32
    return %arg0, %arg1 : i32, i32
  }
  func.func @transform_4(%arg0: i32, %arg1: i32, %arg2: i32) -> (i32, i32) {
    %c0_i32 = arith.constant 0 : i32
    return %arg0, %arg1 : i32, i32
  }
}

module attributes {stable_mosaic.version = 11 : i64} {
  func.func @kernel(%arg0: i32, %arg1: i32, %arg2: i32, %arg3: memref<34x32xbf16, #tpu.memory_space<vmem>>, %arg4: memref<32x96xbf16, #tpu.memory_space<vmem>>, %arg5: memref<1x96xf32, #tpu.memory_space<vmem>>, %arg6: memref<34x96xbf16, #tpu.memory_space<vmem>>, %arg7: memref<34x96xf32, #tpu.memory_space<vmem>>) attributes {dimension_semantics = [#tpu.dimension_semantics<parallel>, #tpu.dimension_semantics<parallel>, #tpu.dimension_semantics<arbitrary>], iteration_bounds = array<i64: 1, 1, 1>, scalar_prefetch = 0 : i64, scratch_operands = 1 : i64, tpu.core_type = #tpu.core_type<tc>, window_params = [{transform_indices = @transform_0, window_bounds = array<i64: 34, 32>}, {transform_indices = @transform_1, window_bounds = array<i64: 32, 96>}, {transform_indices = @transform_2, window_bounds = array<i64: 1, 96>}, {transform_indices = @transform_3, window_bounds = array<i64: 34, 96>}]} {
    %c0_i32 = arith.constant 0 : i32
    %0 = arith.cmpi eq, %arg2, %c0_i32 : i32
    %1 = arith.extui %0 : i1 to i32
    %c0_i32_0 = arith.constant 0 : i32
    %2 = arith.cmpi ne, %1, %c0_i32_0 : i32
    scf.if %2 {
      %cst_10 = arith.constant 0.000000e+00 : f32
      %12 = vector.broadcast %cst_10 : f32 to vector<34x96xf32>
      %c0_11 = arith.constant 0 : index
      %c0_12 = arith.constant 0 : index
      %13 = vector.load %arg7[%c0_11, %c0_12] : memref<34x96xf32, #tpu.memory_space<vmem>>, vector<34x96xf32>
      tpu.vector_store %arg7[%c0_11, %c0_12], %12 {strides = array<i32>} : memref<34x96xf32, #tpu.memory_space<vmem>>, vector<34x96xf32>,
    } else {
    }
    %c0 = arith.constant 0 : index
    %c0_1 = arith.constant 0 : index
    %3 = vector.load %arg3[%c0, %c0_1] : memref<34x32xbf16, #tpu.memory_space<vmem>>, vector<34x32xbf16>
    %c0_2 = arith.constant 0 : index
    %c0_3 = arith.constant 0 : index
    %4 = vector.load %arg7[%c0_2, %c0_3] : memref<34x96xf32, #tpu.memory_space<vmem>>, vector<34x96xf32>
    %c0_4 = arith.constant 0 : index
    %c0_5 = arith.constant 0 : index
    %5 = vector.load %arg4[%c0_4, %c0_5] : memref<32x96xbf16, #tpu.memory_space<vmem>>, vector<32x96xbf16>
    %cst = arith.constant dense<0.000000e+00> : vector<34x96xf32>
    %6 = tpu.matmul %3, %5, %cst {dimension_numbers = #tpu.dot_dimension_numbers<[1], [0], [0], [1], [0, 0, 1, 1], [], []>} : vector<34x32xbf16>, vector<32x96xbf16>, vector<34x96xf32> -> vector<34x96xf32>
    %7 = arith.addf %4, %6 : vector<34x96xf32>
    %c0_6 = arith.constant 0 : index
    %c0_7 = arith.constant 0 : index
    %8 = vector.load %arg7[%c0_6, %c0_7] : memref<34x96xf32, #tpu.memory_space<vmem>>, vector<34x96xf32>
    tpu.vector_store %arg7[%c0_6, %c0_7], %7 {strides = array<i32>} : memref<34x96xf32, #tpu.memory_space<vmem>>, vector<34x96xf32>,
    %c0_i32_8 = arith.constant 0 : i32
    %9 = arith.cmpi eq, %arg2, %c0_i32_8 : i32
    %10 = arith.extui %9 : i1 to i32
    %c0_i32_9 = arith.constant 0 : i32
    %11 = arith.cmpi ne, %10, %c0_i32_9 : i32
    scf.if %11 {
      %c0_10 = arith.constant 0 : index
      %c0_11 = arith.constant 0 : index
      %12 = vector.load %arg7[%c0_10, %c0_11] : memref<34x96xf32, #tpu.memory_space<vmem>>, vector<34x96xf32>
      %c0_12 = arith.constant 0 : index
      %c0_13 = arith.constant 0 : index
      %13 = vector.load %arg5[%c0_12, %c0_13] : memref<1x96xf32, #tpu.memory_space<vmem>>, vector<1x96xf32>
      %14 = vector.broadcast %13 : vector<1x96xf32> to vector<34x96xf32>
      %15 = arith.addf %12, %14 : vector<34x96xf32>
      %16 = arith.truncf %15 : vector<34x96xf32> to vector<34x96xbf16>
      %c0_14 = arith.constant 0 : index
      %c0_15 = arith.constant 0 : index
      %17 = vector.load %arg6[%c0_14, %c0_15] : memref<34x96xbf16, #tpu.memory_space<vmem>>, vector<34x96xbf16>
      tpu.vector_store %arg6[%c0_14, %c0_15], %16 {strides = array<i32>} : memref<34x96xbf16, #tpu.memory_space<vmem>>, vector<34x96xbf16>,
    } else {
    }
    return
  }
  func.func @transform_0(%arg0: i32, %arg1: i32, %arg2: i32) -> (i32, i32) {
    %c0_i32 = arith.constant 0 : i32
    return %arg0, %arg2 : i32, i32
  }
  func.func @transform_1(%arg0: i32, %arg1: i32, %arg2: i32) -> (i32, i32) {
    %c0_i32 = arith.constant 0 : i32
    return %arg2, %arg1 : i32, i32
  }
  func.func @transform_2(%arg0: i32, %arg1: i32, %arg2: i32) -> (i32, i32) {
    %c0_i32 = arith.constant 0 : i32
    %c0_i32_0 = arith.constant 0 : i32
    return %c0_i32, %arg1 : i32, i32
  }
  func.func @transform_3(%arg0: i32, %arg1: i32, %arg2: i32) -> (i32, i32) {
    %c0_i32 = arith.constant 0 : i32
    return %arg0, %arg1 : i32, i32
  }
}

module attributes {stable_mosaic.version = 11 : i64} {
  func.func @kernel(%arg0: i32, %arg1: i32, %arg2: i32, %arg3: memref<2x32xbf16, #tpu.memory_space<vmem>>, %arg4: memref<32x128xbf16, #tpu.memory_space<vmem>>, %arg5: memref<1x128xf32, #tpu.memory_space<vmem>>, %arg6: memref<2x128xbf16, #tpu.memory_space<vmem>>, %arg7: memref<2x128xf32, #tpu.memory_space<vmem>>) attributes {dimension_semantics = [#tpu.dimension_semantics<parallel>, #tpu.dimension_semantics<parallel>, #tpu.dimension_semantics<arbitrary>], iteration_bounds = array<i64: 1, 1, 1>, scalar_prefetch = 0 : i64, scratch_operands = 1 : i64, tpu.core_type = #tpu.core_type<tc>, window_params = [{transform_indices = @transform_0, window_bounds = array<i64: 2, 32>}, {transform_indices = @transform_1, window_bounds = array<i64: 32, 128>}, {transform_indices = @transform_2, window_bounds = array<i64: 1, 128>}, {transform_indices = @transform_3, window_bounds = array<i64: 2, 128>}]} {
    %c0_i32 = arith.constant 0 : i32
    %0 = arith.cmpi eq, %arg2, %c0_i32 : i32
    %1 = arith.extui %0 : i1 to i32
    %c0_i32_0 = arith.constant 0 : i32
    %2 = arith.cmpi ne, %1, %c0_i32_0 : i32
    scf.if %2 {
      %cst_10 = arith.constant 0.000000e+00 : f32
      %12 = vector.broadcast %cst_10 : f32 to vector<2x128xf32>
      %c0_11 = arith.constant 0 : index
      %c0_12 = arith.constant 0 : index
      %13 = vector.load %arg7[%c0_11, %c0_12] : memref<2x128xf32, #tpu.memory_space<vmem>>, vector<2x128xf32>
      tpu.vector_store %arg7[%c0_11, %c0_12], %12 {strides = array<i32>} : memref<2x128xf32, #tpu.memory_space<vmem>>, vector<2x128xf32>,
    } else {
    }
    %c0 = arith.constant 0 : index
    %c0_1 = arith.constant 0 : index
    %3 = vector.load %arg3[%c0, %c0_1] : memref<2x32xbf16, #tpu.memory_space<vmem>>, vector<2x32xbf16>
    %c0_2 = arith.constant 0 : index
    %c0_3 = arith.constant 0 : index
    %4 = vector.load %arg7[%c0_2, %c0_3] : memref<2x128xf32, #tpu.memory_space<vmem>>, vector<2x128xf32>
    %c0_4 = arith.constant 0 : index
    %c0_5 = arith.constant 0 : index
    %5 = vector.load %arg4[%c0_4, %c0_5] : memref<32x128xbf16, #tpu.memory_space<vmem>>, vector<32x128xbf16>
    %cst = arith.constant dense<0.000000e+00> : vector<2x128xf32>
    %6 = tpu.matmul %3, %5, %cst {dimension_numbers = #tpu.dot_dimension_numbers<[1], [0], [0], [1], [0, 0, 1, 1], [], []>} : vector<2x32xbf16>, vector<32x128xbf16>, vector<2x128xf32> -> vector<2x128xf32>
    %7 = arith.addf %4, %6 : vector<2x128xf32>
    %c0_6 = arith.constant 0 : index
    %c0_7 = arith.constant 0 : index
    %8 = vector.load %arg7[%c0_6, %c0_7] : memref<2x128xf32, #tpu.memory_space<vmem>>, vector<2x128xf32>
    tpu.vector_store %arg7[%c0_6, %c0_7], %7 {strides = array<i32>} : memref<2x128xf32, #tpu.memory_space<vmem>>, vector<2x128xf32>,
    %c0_i32_8 = arith.constant 0 : i32
    %9 = arith.cmpi eq, %arg2, %c0_i32_8 : i32
    %10 = arith.extui %9 : i1 to i32
    %c0_i32_9 = arith.constant 0 : i32
    %11 = arith.cmpi ne, %10, %c0_i32_9 : i32
    scf.if %11 {
      %c0_10 = arith.constant 0 : index
      %c0_11 = arith.constant 0 : index
      %12 = vector.load %arg7[%c0_10, %c0_11] : memref<2x128xf32, #tpu.memory_space<vmem>>, vector<2x128xf32>
      %c0_12 = arith.constant 0 : index
      %c0_13 = arith.constant 0 : index
      %13 = vector.load %arg5[%c0_12, %c0_13] : memref<1x128xf32, #tpu.memory_space<vmem>>, vector<1x128xf32>
      %14 = vector.broadcast %13 : vector<1x128xf32> to vector<2x128xf32>
      %15 = arith.addf %12, %14 : vector<2x128xf32>
      %cst_14 = arith.constant 5.000000e-01 : f32
      %16 = vector.broadcast %cst_14 : f32 to vector<2x128xf32>
      %17 = arith.mulf %16, %15 : vector<2x128xf32>
      %cst_15 = arith.constant 0.707106769 : f32
      %18 = vector.broadcast %cst_15 : f32 to vector<2x128xf32>
      %19 = arith.mulf %15, %18 : vector<2x128xf32>
      %cst_16 = arith.constant 0.000000e+00 : f32
      %20 = vector.broadcast %cst_16 : f32 to vector<2x128xf32>
      %21 = arith.cmpf olt, %19, %20 : vector<2x128xf32>
      %cst_17 = arith.constant -1.000000e+00 : f32
      %cst_18 = arith.constant 1.000000e+00 : f32
      %22 = vector.broadcast %cst_17 : f32 to vector<2x128xf32>
      %23 = vector.broadcast %cst_18 : f32 to vector<2x128xf32>
      %24 = arith.select %21, %22, %23 : vector<2x128xi1>, vector<2x128xf32>
      %25 = math.absf %19 : vector<2x128xf32>
      %cst_19 = arith.constant 0.327591091 : f32
      %26 = vector.broadcast %cst_19 : f32 to vector<2x128xf32>
      %27 = arith.mulf %26, %25 : vector<2x128xf32>
      %cst_20 = arith.constant 1.000000e+00 : f32
      %28 = vector.broadcast %cst_20 : f32 to vector<2x128xf32>
      %29 = arith.addf %28, %27 : vector<2x128xf32>
      %cst_21 = arith.constant 1.000000e+00 : f32
      %30 = vector.broadcast %cst_21 : f32 to vector<2x128xf32>
      %31 = arith.divf %30, %29 : vector<2x128xf32>
      %cst_22 = arith.constant 1.06140542 : f32
      %32 = vector.broadcast %cst_22 : f32 to vector<2x128xf32>
      %33 = arith.mulf %32, %31 : vector<2x128xf32>
      %cst_23 = arith.constant -1.45315206 : f32
      %34 = vector.broadcast %cst_23 : f32 to vector<2x128xf32>
      %35 = arith.addf %33, %34 : vector<2x128xf32>
      %36 = arith.mulf %35, %31 : vector<2x128xf32>
      %cst_24 = arith.constant 1.42141378 : f32
      %37 = vector.broadcast %cst_24 : f32 to vector<2x128xf32>
      %38 = arith.addf %36, %37 : vector<2x128xf32>
      %39 = arith.mulf %38, %31 : vector<2x128xf32>
      %cst_25 = arith.constant -0.284496725 : f32
      %40 = vector.broadcast %cst_25 : f32 to vector<2x128xf32>
      %41 = arith.addf %39, %40 : vector<2x128xf32>
      %42 = arith.mulf %41, %31 : vector<2x128xf32>
      %cst_26 = arith.constant 0.254829586 : f32
      %43 = vector.broadcast %cst_26 : f32 to vector<2x128xf32>
      %44 = arith.addf %42, %43 : vector<2x128xf32>
      %45 = arith.mulf %44, %31 : vector<2x128xf32>
      %cst_27 = arith.constant 0.000000e+00 : f32
      %46 = vector.broadcast %cst_27 : f32 to vector<2x128xf32>
      %47 = arith.subf %46, %25 : vector<2x128xf32>
      %48 = arith.mulf %47, %25 : vector<2x128xf32>
      %49 = math.exp %48 : vector<2x128xf32>
      %50 = arith.mulf %45, %49 : vector<2x128xf32>
      %cst_28 = arith.constant 1.000000e+00 : f32
      %51 = vector.broadcast %cst_28 : f32 to vector<2x128xf32>
      %52 = arith.subf %51, %50 : vector<2x128xf32>
      %53 = arith.mulf %24, %52 : vector<2x128xf32>
      %cst_29 = arith.constant 1.000000e+00 : f32
      %54 = vector.broadcast %cst_29 : f32 to vector<2x128xf32>
      %55 = arith.addf %54, %53 : vector<2x128xf32>
      %56 = arith.mulf %17, %55 : vector<2x128xf32>
      %57 = arith.truncf %56 : vector<2x128xf32> to vector<2x128xbf16>
      %c0_30 = arith.constant 0 : index
      %c0_31 = arith.constant 0 : index
      %58 = vector.load %arg6[%c0_30, %c0_31] : memref<2x128xbf16, #tpu.memory_space<vmem>>, vector<2x128xbf16>
      tpu.vector_store %arg6[%c0_30, %c0_31], %57 {strides = array<i32>} : memref<2x128xbf16, #tpu.memory_space<vmem>>, vector<2x128xbf16>,
    } else {
    }
    return
  }
  func.func @transform_0(%arg0: i32, %arg1: i32, %arg2: i32) -> (i32, i32) {
    %c0_i32 = arith.constant 0 : i32
    return %arg0, %arg2 : i32, i32
  }
  func.func @transform_1(%arg0: i32, %arg1: i32, %arg2: i32) -> (i32, i32) {
    %c0_i32 = arith.constant 0 : i32
    return %arg2, %arg1 : i32, i32
  }
  func.func @transform_2(%arg0: i32, %arg1: i32, %arg2: i32) -> (i32, i32) {
    %c0_i32 = arith.constant 0 : i32
    %c0_i32_0 = arith.constant 0 : i32
    return %c0_i32, %arg1 : i32, i32
  }
  func.func @transform_3(%arg0: i32, %arg1: i32, %arg2: i32) -> (i32, i32) {
    %c0_i32 = arith.constant 0 : i32
    return %arg0, %arg1 : i32, i32
  }
}

module attributes {stable_mosaic.version = 11 : i64} {
  func.func @kernel(%arg0: i32, %arg1: i32, %arg2: i32, %arg3: memref<2x32xbf16, #tpu.memory_space<vmem>>, %arg4: memref<32x32xbf16, #tpu.memory_space<vmem>>, %arg5: memref<1x32xf32, #tpu.memory_space<vmem>>, %arg6: memref<2x32xbf16, #tpu.memory_space<vmem>>, %arg7: memref<2x32xbf16, #tpu.memory_space<vmem>>, %arg8: memref<2x32xf32, #tpu.memory_space<vmem>>) attributes {dimension_semantics = [#tpu.dimension_semantics<parallel>, #tpu.dimension_semantics<parallel>, #tpu.dimension_semantics<arbitrary>], iteration_bounds = array<i64: 1, 1, 1>, scalar_prefetch = 0 : i64, scratch_operands = 1 : i64, tpu.core_type = #tpu.core_type<tc>, window_params = [{transform_indices = @transform_0, window_bounds = array<i64: 2, 32>}, {transform_indices = @transform_1, window_bounds = array<i64: 32, 32>}, {transform_indices = @transform_2, window_bounds = array<i64: 1, 32>}, {transform_indices = @transform_3, window_bounds = array<i64: 2, 32>}, {transform_indices = @transform_4, window_bounds = array<i64: 2, 32>}]} {
    %c0_i32 = arith.constant 0 : i32
    %0 = arith.cmpi eq, %arg2, %c0_i32 : i32
    %1 = arith.extui %0 : i1 to i32
    %c0_i32_0 = arith.constant 0 : i32
    %2 = arith.cmpi ne, %1, %c0_i32_0 : i32
    scf.if %2 {
      %cst_10 = arith.constant 0.000000e+00 : f32
      %12 = vector.broadcast %cst_10 : f32 to vector<2x32xf32>
      %c0_11 = arith.constant 0 : index
      %c0_12 = arith.constant 0 : index
      %13 = vector.load %arg8[%c0_11, %c0_12] : memref<2x32xf32, #tpu.memory_space<vmem>>, vector<2x32xf32>
      tpu.vector_store %arg8[%c0_11, %c0_12], %12 {strides = array<i32>} : memref<2x32xf32, #tpu.memory_space<vmem>>, vector<2x32xf32>,
    } else {
    }
    %c0 = arith.constant 0 : index
    %c0_1 = arith.constant 0 : index
    %3 = vector.load %arg3[%c0, %c0_1] : memref<2x32xbf16, #tpu.memory_space<vmem>>, vector<2x32xbf16>
    %c0_2 = arith.constant 0 : index
    %c0_3 = arith.constant 0 : index
    %4 = vector.load %arg8[%c0_2, %c0_3] : memref<2x32xf32, #tpu.memory_space<vmem>>, vector<2x32xf32>
    %c0_4 = arith.constant 0 : index
    %c0_5 = arith.constant 0 : index
    %5 = vector.load %arg4[%c0_4, %c0_5] : memref<32x32xbf16, #tpu.memory_space<vmem>>, vector<32x32xbf16>
    %cst = arith.constant dense<0.000000e+00> : vector<2x32xf32>
    %6 = tpu.matmul %3, %5, %cst {dimension_numbers = #tpu.dot_dimension_numbers<[1], [0], [0], [1], [0, 0, 1, 1], [], []>} : vector<2x32xbf16>, vector<32x32xbf16>, vector<2x32xf32> -> vector<2x32xf32>
    %7 = arith.addf %4, %6 : vector<2x32xf32>
    %c0_6 = arith.constant 0 : index
    %c0_7 = arith.constant 0 : index
    %8 = vector.load %arg8[%c0_6, %c0_7] : memref<2x32xf32, #tpu.memory_space<vmem>>, vector<2x32xf32>
    tpu.vector_store %arg8[%c0_6, %c0_7], %7 {strides = array<i32>} : memref<2x32xf32, #tpu.memory_space<vmem>>, vector<2x32xf32>,
    %c0_i32_8 = arith.constant 0 : i32
    %9 = arith.cmpi eq, %arg2, %c0_i32_8 : i32
    %10 = arith.extui %9 : i1 to i32
    %c0_i32_9 = arith.constant 0 : i32
    %11 = arith.cmpi ne, %10, %c0_i32_9 : i32
    scf.if %11 {
      %c0_10 = arith.constant 0 : index
      %c0_11 = arith.constant 0 : index
      %12 = vector.load %arg8[%c0_10, %c0_11] : memref<2x32xf32, #tpu.memory_space<vmem>>, vector<2x32xf32>
      %c0_12 = arith.constant 0 : index
      %c0_13 = arith.constant 0 : index
      %13 = vector.load %arg5[%c0_12, %c0_13] : memref<1x32xf32, #tpu.memory_space<vmem>>, vector<1x32xf32>
      %14 = vector.broadcast %13 : vector<1x32xf32> to vector<2x32xf32>
      %15 = arith.addf %12, %14 : vector<2x32xf32>
      %c0_14 = arith.constant 0 : index
      %c0_15 = arith.constant 0 : index
      %16 = vector.load %arg6[%c0_14, %c0_15] : memref<2x32xbf16, #tpu.memory_space<vmem>>, vector<2x32xbf16>
      %17 = arith.extf %16 : vector<2x32xbf16> to vector<2x32xf32>
      %18 = arith.addf %15, %17 : vector<2x32xf32>
      %19 = arith.truncf %18 : vector<2x32xf32> to vector<2x32xbf16>
      %c0_16 = arith.constant 0 : index
      %c0_17 = arith.constant 0 : index
      %20 = vector.load %arg7[%c0_16, %c0_17] : memref<2x32xbf16, #tpu.memory_space<vmem>>, vector<2x32xbf16>
      tpu.vector_store %arg7[%c0_16, %c0_17], %19 {strides = array<i32>} : memref<2x32xbf16, #tpu.memory_space<vmem>>, vector<2x32xbf16>,
    } else {
    }
    return
  }
  func.func @transform_0(%arg0: i32, %arg1: i32, %arg2: i32) -> (i32, i32) {
    %c0_i32 = arith.constant 0 : i32
    return %arg0, %arg2 : i32, i32
  }
  func.func @transform_1(%arg0: i32, %arg1: i32, %arg2: i32) -> (i32, i32) {
    %c0_i32 = arith.constant 0 : i32
    return %arg2, %arg1 : i32, i32
  }
  func.func @transform_2(%arg0: i32, %arg1: i32, %arg2: i32) -> (i32, i32) {
    %c0_i32 = arith.constant 0 : i32
    %c0_i32_0 = arith.constant 0 : i32
    return %c0_i32, %arg1 : i32, i32
  }
  func.func @transform_3(%arg0: i32, %arg1: i32, %arg2: i32) -> (i32, i32) {
    %c0_i32 = arith.constant 0 : i32
    return %arg0, %arg1 : i32, i32
  }
  func.func @transform_4(%arg0: i32, %arg1: i32, %arg2: i32) -> (i32, i32) {
    %c0_i32 = arith.constant 0 : i32
    return %arg0, %arg1 : i32, i32
  }
}

module attributes {stable_mosaic.version = 11 : i64} {
  func.func @kernel(%arg0: i32, %arg1: i32, %arg2: i32, %arg3: memref<2x128xbf16, #tpu.memory_space<vmem>>, %arg4: memref<128x32xbf16, #tpu.memory_space<vmem>>, %arg5: memref<1x32xf32, #tpu.memory_space<vmem>>, %arg6: memref<2x32xbf16, #tpu.memory_space<vmem>>, %arg7: memref<2x32xbf16, #tpu.memory_space<vmem>>, %arg8: memref<2x32xf32, #tpu.memory_space<vmem>>) attributes {dimension_semantics = [#tpu.dimension_semantics<parallel>, #tpu.dimension_semantics<parallel>, #tpu.dimension_semantics<arbitrary>], iteration_bounds = array<i64: 1, 1, 1>, scalar_prefetch = 0 : i64, scratch_operands = 1 : i64, tpu.core_type = #tpu.core_type<tc>, window_params = [{transform_indices = @transform_0, window_bounds = array<i64: 2, 128>}, {transform_indices = @transform_1, window_bounds = array<i64: 128, 32>}, {transform_indices = @transform_2, window_bounds = array<i64: 1, 32>}, {transform_indices = @transform_3, window_bounds = array<i64: 2, 32>}, {transform_indices = @transform_4, window_bounds = array<i64: 2, 32>}]} {
    %c0_i32 = arith.constant 0 : i32
    %0 = arith.cmpi eq, %arg2, %c0_i32 : i32
    %1 = arith.extui %0 : i1 to i32
    %c0_i32_0 = arith.constant 0 : i32
    %2 = arith.cmpi ne, %1, %c0_i32_0 : i32
    scf.if %2 {
      %cst_10 = arith.constant 0.000000e+00 : f32
      %12 = vector.broadcast %cst_10 : f32 to vector<2x32xf32>
      %c0_11 = arith.constant 0 : index
      %c0_12 = arith.constant 0 : index
      %13 = vector.load %arg8[%c0_11, %c0_12] : memref<2x32xf32, #tpu.memory_space<vmem>>, vector<2x32xf32>
      tpu.vector_store %arg8[%c0_11, %c0_12], %12 {strides = array<i32>} : memref<2x32xf32, #tpu.memory_space<vmem>>, vector<2x32xf32>,
    } else {
    }
    %c0 = arith.constant 0 : index
    %c0_1 = arith.constant 0 : index
    %3 = vector.load %arg3[%c0, %c0_1] : memref<2x128xbf16, #tpu.memory_space<vmem>>, vector<2x128xbf16>
    %c0_2 = arith.constant 0 : index
    %c0_3 = arith.constant 0 : index
    %4 = vector.load %arg8[%c0_2, %c0_3] : memref<2x32xf32, #tpu.memory_space<vmem>>, vector<2x32xf32>
    %c0_4 = arith.constant 0 : index
    %c0_5 = arith.constant 0 : index
    %5 = vector.load %arg4[%c0_4, %c0_5] : memref<128x32xbf16, #tpu.memory_space<vmem>>, vector<128x32xbf16>
    %cst = arith.constant dense<0.000000e+00> : vector<2x32xf32>
    %6 = tpu.matmul %3, %5, %cst {dimension_numbers = #tpu.dot_dimension_numbers<[1], [0], [0], [1], [0, 0, 1, 1], [], []>} : vector<2x128xbf16>, vector<128x32xbf16>, vector<2x32xf32> -> vector<2x32xf32>
    %7 = arith.addf %4, %6 : vector<2x32xf32>
    %c0_6 = arith.constant 0 : index
    %c0_7 = arith.constant 0 : index
    %8 = vector.load %arg8[%c0_6, %c0_7] : memref<2x32xf32, #tpu.memory_space<vmem>>, vector<2x32xf32>
    tpu.vector_store %arg8[%c0_6, %c0_7], %7 {strides = array<i32>} : memref<2x32xf32, #tpu.memory_space<vmem>>, vector<2x32xf32>,
    %c0_i32_8 = arith.constant 0 : i32
    %9 = arith.cmpi eq, %arg2, %c0_i32_8 : i32
    %10 = arith.extui %9 : i1 to i32
    %c0_i32_9 = arith.constant 0 : i32
    %11 = arith.cmpi ne, %10, %c0_i32_9 : i32
    scf.if %11 {
      %c0_10 = arith.constant 0 : index
      %c0_11 = arith.constant 0 : index
      %12 = vector.load %arg8[%c0_10, %c0_11] : memref<2x32xf32, #tpu.memory_space<vmem>>, vector<2x32xf32>
      %c0_12 = arith.constant 0 : index
      %c0_13 = arith.constant 0 : index
      %13 = vector.load %arg5[%c0_12, %c0_13] : memref<1x32xf32, #tpu.memory_space<vmem>>, vector<1x32xf32>
      %14 = vector.broadcast %13 : vector<1x32xf32> to vector<2x32xf32>
      %15 = arith.addf %12, %14 : vector<2x32xf32>
      %c0_14 = arith.constant 0 : index
      %c0_15 = arith.constant 0 : index
      %16 = vector.load %arg6[%c0_14, %c0_15] : memref<2x32xbf16, #tpu.memory_space<vmem>>, vector<2x32xbf16>
      %17 = arith.extf %16 : vector<2x32xbf16> to vector<2x32xf32>
      %18 = arith.addf %15, %17 : vector<2x32xf32>
      %19 = arith.truncf %18 : vector<2x32xf32> to vector<2x32xbf16>
      %c0_16 = arith.constant 0 : index
      %c0_17 = arith.constant 0 : index
      %20 = vector.load %arg7[%c0_16, %c0_17] : memref<2x32xbf16, #tpu.memory_space<vmem>>, vector<2x32xbf16>
      tpu.vector_store %arg7[%c0_16, %c0_17], %19 {strides = array<i32>} : memref<2x32xbf16, #tpu.memory_space<vmem>>, vector<2x32xbf16>,
    } else {
    }
    return
  }
  func.func @transform_0(%arg0: i32, %arg1: i32, %arg2: i32) -> (i32, i32) {
    %c0_i32 = arith.constant 0 : i32
    return %arg0, %arg2 : i32, i32
  }
  func.func @transform_1(%arg0: i32, %arg1: i32, %arg2: i32) -> (i32, i32) {
    %c0_i32 = arith.constant 0 : i32
    return %arg2, %arg1 : i32, i32
  }
  func.func @transform_2(%arg0: i32, %arg1: i32, %arg2: i32) -> (i32, i32) {
    %c0_i32 = arith.constant 0 : i32
    %c0_i32_0 = arith.constant 0 : i32
    return %c0_i32, %arg1 : i32, i32
  }
  func.func @transform_3(%arg0: i32, %arg1: i32, %arg2: i32) -> (i32, i32) {
    %c0_i32 = arith.constant 0 : i32
    return %arg0, %arg1 : i32, i32
  }
  func.func @transform_4(%arg0: i32, %arg1: i32, %arg2: i32) -> (i32, i32) {
    %c0_i32 = arith.constant 0 : i32
    return %arg0, %arg1 : i32, i32
  }
}

module attributes {stable_mosaic.version = 11 : i64} {
  func.func @kernel(%arg0: i32, %arg1: i32, %arg2: i32, %arg3: memref<34x64xbf16, #tpu.memory_space<vmem>>, %arg4: memref<64x64xbf16, #tpu.memory_space<vmem>>, %arg5: memref<1x64xf32, #tpu.memory_space<vmem>>, %arg6: memref<34x64xbf16, #tpu.memory_space<vmem>>, %arg7: memref<34x64xf32, #tpu.memory_space<vmem>>) attributes {dimension_semantics = [#tpu.dimension_semantics<parallel>, #tpu.dimension_semantics<parallel>, #tpu.dimension_semantics<arbitrary>], iteration_bounds = array<i64: 1, 1, 1>, scalar_prefetch = 0 : i64, scratch_operands = 1 : i64, tpu.core_type = #tpu.core_type<tc>, window_params = [{transform_indices = @transform_0, window_bounds = array<i64: 34, 64>}, {transform_indices = @transform_1, window_bounds = array<i64: 64, 64>}, {transform_indices = @transform_2, window_bounds = array<i64: 1, 64>}, {transform_indices = @transform_3, window_bounds = array<i64: 34, 64>}]} {
    %c0_i32 = arith.constant 0 : i32
    %0 = arith.cmpi eq, %arg2, %c0_i32 : i32
    %1 = arith.extui %0 : i1 to i32
    %c0_i32_0 = arith.constant 0 : i32
    %2 = arith.cmpi ne, %1, %c0_i32_0 : i32
    scf.if %2 {
      %cst_10 = arith.constant 0.000000e+00 : f32
      %12 = vector.broadcast %cst_10 : f32 to vector<34x64xf32>
      %c0_11 = arith.constant 0 : index
      %c0_12 = arith.constant 0 : index
      %13 = vector.load %arg7[%c0_11, %c0_12] : memref<34x64xf32, #tpu.memory_space<vmem>>, vector<34x64xf32>
      tpu.vector_store %arg7[%c0_11, %c0_12], %12 {strides = array<i32>} : memref<34x64xf32, #tpu.memory_space<vmem>>, vector<34x64xf32>,
    } else {
    }
    %c0 = arith.constant 0 : index
    %c0_1 = arith.constant 0 : index
    %3 = vector.load %arg3[%c0, %c0_1] : memref<34x64xbf16, #tpu.memory_space<vmem>>, vector<34x64xbf16>
    %c0_2 = arith.constant 0 : index
    %c0_3 = arith.constant 0 : index
    %4 = vector.load %arg7[%c0_2, %c0_3] : memref<34x64xf32, #tpu.memory_space<vmem>>, vector<34x64xf32>
    %c0_4 = arith.constant 0 : index
    %c0_5 = arith.constant 0 : index
    %5 = vector.load %arg4[%c0_4, %c0_5] : memref<64x64xbf16, #tpu.memory_space<vmem>>, vector<64x64xbf16>
    %cst = arith.constant dense<0.000000e+00> : vector<34x64xf32>
    %6 = tpu.matmul %3, %5, %cst {dimension_numbers = #tpu.dot_dimension_numbers<[1], [0], [0], [1], [0, 0, 1, 1], [], []>} : vector<34x64xbf16>, vector<64x64xbf16>, vector<34x64xf32> -> vector<34x64xf32>
    %7 = arith.addf %4, %6 : vector<34x64xf32>
    %c0_6 = arith.constant 0 : index
    %c0_7 = arith.constant 0 : index
    %8 = vector.load %arg7[%c0_6, %c0_7] : memref<34x64xf32, #tpu.memory_space<vmem>>, vector<34x64xf32>
    tpu.vector_store %arg7[%c0_6, %c0_7], %7 {strides = array<i32>} : memref<34x64xf32, #tpu.memory_space<vmem>>, vector<34x64xf32>,
    %c0_i32_8 = arith.constant 0 : i32
    %9 = arith.cmpi eq, %arg2, %c0_i32_8 : i32
    %10 = arith.extui %9 : i1 to i32
    %c0_i32_9 = arith.constant 0 : i32
    %11 = arith.cmpi ne, %10, %c0_i32_9 : i32
    scf.if %11 {
      %c0_10 = arith.constant 0 : index
      %c0_11 = arith.constant 0 : index
      %12 = vector.load %arg7[%c0_10, %c0_11] : memref<34x64xf32, #tpu.memory_space<vmem>>, vector<34x64xf32>
      %c0_12 = arith.constant 0 : index
      %c0_13 = arith.constant 0 : index
      %13 = vector.load %arg5[%c0_12, %c0_13] : memref<1x64xf32, #tpu.memory_space<vmem>>, vector<1x64xf32>
      %14 = vector.broadcast %13 : vector<1x64xf32> to vector<34x64xf32>
      %15 = arith.addf %12, %14 : vector<34x64xf32>
      %cst_14 = arith.constant 5.000000e-01 : f32
      %16 = vector.broadcast %cst_14 : f32 to vector<34x64xf32>
      %17 = arith.mulf %16, %15 : vector<34x64xf32>
      %cst_15 = arith.constant 0.707106769 : f32
      %18 = vector.broadcast %cst_15 : f32 to vector<34x64xf32>
      %19 = arith.mulf %15, %18 : vector<34x64xf32>
      %cst_16 = arith.constant 0.000000e+00 : f32
      %20 = vector.broadcast %cst_16 : f32 to vector<34x64xf32>
      %21 = arith.cmpf olt, %19, %20 : vector<34x64xf32>
      %cst_17 = arith.constant -1.000000e+00 : f32
      %cst_18 = arith.constant 1.000000e+00 : f32
      %22 = vector.broadcast %cst_17 : f32 to vector<34x64xf32>
      %23 = vector.broadcast %cst_18 : f32 to vector<34x64xf32>
      %24 = arith.select %21, %22, %23 : vector<34x64xi1>, vector<34x64xf32>
      %25 = math.absf %19 : vector<34x64xf32>
      %cst_19 = arith.constant 0.327591091 : f32
      %26 = vector.broadcast %cst_19 : f32 to vector<34x64xf32>
      %27 = arith.mulf %26, %25 : vector<34x64xf32>
      %cst_20 = arith.constant 1.000000e+00 : f32
      %28 = vector.broadcast %cst_20 : f32 to vector<34x64xf32>
      %29 = arith.addf %28, %27 : vector<34x64xf32>
      %cst_21 = arith.constant 1.000000e+00 : f32
      %30 = vector.broadcast %cst_21 : f32 to vector<34x64xf32>
      %31 = arith.divf %30, %29 : vector<34x64xf32>
      %cst_22 = arith.constant 1.06140542 : f32
      %32 = vector.broadcast %cst_22 : f32 to vector<34x64xf32>
      %33 = arith.mulf %32, %31 : vector<34x64xf32>
      %cst_23 = arith.constant -1.45315206 : f32
      %34 = vector.broadcast %cst_23 : f32 to vector<34x64xf32>
      %35 = arith.addf %33, %34 : vector<34x64xf32>
      %36 = arith.mulf %35, %31 : vector<34x64xf32>
      %cst_24 = arith.constant 1.42141378 : f32
      %37 = vector.broadcast %cst_24 : f32 to vector<34x64xf32>
      %38 = arith.addf %36, %37 : vector<34x64xf32>
      %39 = arith.mulf %38, %31 : vector<34x64xf32>
      %cst_25 = arith.constant -0.284496725 : f32
      %40 = vector.broadcast %cst_25 : f32 to vector<34x64xf32>
      %41 = arith.addf %39, %40 : vector<34x64xf32>
      %42 = arith.mulf %41, %31 : vector<34x64xf32>
      %cst_26 = arith.constant 0.254829586 : f32
      %43 = vector.broadcast %cst_26 : f32 to vector<34x64xf32>
      %44 = arith.addf %42, %43 : vector<34x64xf32>
      %45 = arith.mulf %44, %31 : vector<34x64xf32>
      %cst_27 = arith.constant 0.000000e+00 : f32
      %46 = vector.broadcast %cst_27 : f32 to vector<34x64xf32>
      %47 = arith.subf %46, %25 : vector<34x64xf32>
      %48 = arith.mulf %47, %25 : vector<34x64xf32>
      %49 = math.exp %48 : vector<34x64xf32>
      %50 = arith.mulf %45, %49 : vector<34x64xf32>
      %cst_28 = arith.constant 1.000000e+00 : f32
      %51 = vector.broadcast %cst_28 : f32 to vector<34x64xf32>
      %52 = arith.subf %51, %50 : vector<34x64xf32>
      %53 = arith.mulf %24, %52 : vector<34x64xf32>
      %cst_29 = arith.constant 1.000000e+00 : f32
      %54 = vector.broadcast %cst_29 : f32 to vector<34x64xf32>
      %55 = arith.addf %54, %53 : vector<34x64xf32>
      %56 = arith.mulf %17, %55 : vector<34x64xf32>
      %57 = arith.truncf %56 : vector<34x64xf32> to vector<34x64xbf16>
      %c0_30 = arith.constant 0 : index
      %c0_31 = arith.constant 0 : index
      %58 = vector.load %arg6[%c0_30, %c0_31] : memref<34x64xbf16, #tpu.memory_space<vmem>>, vector<34x64xbf16>
      tpu.vector_store %arg6[%c0_30, %c0_31], %57 {strides = array<i32>} : memref<34x64xbf16, #tpu.memory_space<vmem>>, vector<34x64xbf16>,
    } else {
    }
    return
  }
  func.func @transform_0(%arg0: i32, %arg1: i32, %arg2: i32) -> (i32, i32) {
    %c0_i32 = arith.constant 0 : i32
    return %arg0, %arg2 : i32, i32
  }
  func.func @transform_1(%arg0: i32, %arg1: i32, %arg2: i32) -> (i32, i32) {
    %c0_i32 = arith.constant 0 : i32
    return %arg2, %arg1 : i32, i32
  }
  func.func @transform_2(%arg0: i32, %arg1: i32, %arg2: i32) -> (i32, i32) {
    %c0_i32 = arith.constant 0 : i32
    %c0_i32_0 = arith.constant 0 : i32
    return %c0_i32, %arg1 : i32, i32
  }
  func.func @transform_3(%arg0: i32, %arg1: i32, %arg2: i32) -> (i32, i32) {
    %c0_i32 = arith.constant 0 : i32
    return %arg0, %arg1 : i32, i32
  }
}

module attributes {stable_mosaic.version = 11 : i64} {
  func.func @kernel(%arg0: i32, %arg1: i32, %arg2: i32, %arg3: memref<34x32xbf16, #tpu.memory_space<vmem>>, %arg4: memref<32x64xbf16, #tpu.memory_space<vmem>>, %arg5: memref<1x64xf32, #tpu.memory_space<vmem>>, %arg6: memref<34x64xbf16, #tpu.memory_space<vmem>>, %arg7: memref<34x64xf32, #tpu.memory_space<vmem>>) attributes {dimension_semantics = [#tpu.dimension_semantics<parallel>, #tpu.dimension_semantics<parallel>, #tpu.dimension_semantics<arbitrary>], iteration_bounds = array<i64: 1, 1, 1>, scalar_prefetch = 0 : i64, scratch_operands = 1 : i64, tpu.core_type = #tpu.core_type<tc>, window_params = [{transform_indices = @transform_0, window_bounds = array<i64: 34, 32>}, {transform_indices = @transform_1, window_bounds = array<i64: 32, 64>}, {transform_indices = @transform_2, window_bounds = array<i64: 1, 64>}, {transform_indices = @transform_3, window_bounds = array<i64: 34, 64>}]} {
    %c0_i32 = arith.constant 0 : i32
    %0 = arith.cmpi eq, %arg2, %c0_i32 : i32
    %1 = arith.extui %0 : i1 to i32
    %c0_i32_0 = arith.constant 0 : i32
    %2 = arith.cmpi ne, %1, %c0_i32_0 : i32
    scf.if %2 {
      %cst_10 = arith.constant 0.000000e+00 : f32
      %12 = vector.broadcast %cst_10 : f32 to vector<34x64xf32>
      %c0_11 = arith.constant 0 : index
      %c0_12 = arith.constant 0 : index
      %13 = vector.load %arg7[%c0_11, %c0_12] : memref<34x64xf32, #tpu.memory_space<vmem>>, vector<34x64xf32>
      tpu.vector_store %arg7[%c0_11, %c0_12], %12 {strides = array<i32>} : memref<34x64xf32, #tpu.memory_space<vmem>>, vector<34x64xf32>,
    } else {
    }
    %c0 = arith.constant 0 : index
    %c0_1 = arith.constant 0 : index
    %3 = vector.load %arg3[%c0, %c0_1] : memref<34x32xbf16, #tpu.memory_space<vmem>>, vector<34x32xbf16>
    %c0_2 = arith.constant 0 : index
    %c0_3 = arith.constant 0 : index
    %4 = vector.load %arg7[%c0_2, %c0_3] : memref<34x64xf32, #tpu.memory_space<vmem>>, vector<34x64xf32>
    %c0_4 = arith.constant 0 : index
    %c0_5 = arith.constant 0 : index
    %5 = vector.load %arg4[%c0_4, %c0_5] : memref<32x64xbf16, #tpu.memory_space<vmem>>, vector<32x64xbf16>
    %cst = arith.constant dense<0.000000e+00> : vector<34x64xf32>
    %6 = tpu.matmul %3, %5, %cst {dimension_numbers = #tpu.dot_dimension_numbers<[1], [0], [0], [1], [0, 0, 1, 1], [], []>} : vector<34x32xbf16>, vector<32x64xbf16>, vector<34x64xf32> -> vector<34x64xf32>
    %7 = arith.addf %4, %6 : vector<34x64xf32>
    %c0_6 = arith.constant 0 : index
    %c0_7 = arith.constant 0 : index
    %8 = vector.load %arg7[%c0_6, %c0_7] : memref<34x64xf32, #tpu.memory_space<vmem>>, vector<34x64xf32>
    tpu.vector_store %arg7[%c0_6, %c0_7], %7 {strides = array<i32>} : memref<34x64xf32, #tpu.memory_space<vmem>>, vector<34x64xf32>,
    %c0_i32_8 = arith.constant 0 : i32
    %9 = arith.cmpi eq, %arg2, %c0_i32_8 : i32
    %10 = arith.extui %9 : i1 to i32
    %c0_i32_9 = arith.constant 0 : i32
    %11 = arith.cmpi ne, %10, %c0_i32_9 : i32
    scf.if %11 {
      %c0_10 = arith.constant 0 : index
      %c0_11 = arith.constant 0 : index
      %12 = vector.load %arg7[%c0_10, %c0_11] : memref<34x64xf32, #tpu.memory_space<vmem>>, vector<34x64xf32>
      %c0_12 = arith.constant 0 : index
      %c0_13 = arith.constant 0 : index
      %13 = vector.load %arg5[%c0_12, %c0_13] : memref<1x64xf32, #tpu.memory_space<vmem>>, vector<1x64xf32>
      %14 = vector.broadcast %13 : vector<1x64xf32> to vector<34x64xf32>
      %15 = arith.addf %12, %14 : vector<34x64xf32>
      %cst_14 = arith.constant 5.000000e-01 : f32
      %16 = vector.broadcast %cst_14 : f32 to vector<34x64xf32>
      %17 = arith.mulf %16, %15 : vector<34x64xf32>
      %cst_15 = arith.constant 0.707106769 : f32
      %18 = vector.broadcast %cst_15 : f32 to vector<34x64xf32>
      %19 = arith.mulf %15, %18 : vector<34x64xf32>
      %cst_16 = arith.constant 0.000000e+00 : f32
      %20 = vector.broadcast %cst_16 : f32 to vector<34x64xf32>
      %21 = arith.cmpf olt, %19, %20 : vector<34x64xf32>
      %cst_17 = arith.constant -1.000000e+00 : f32
      %cst_18 = arith.constant 1.000000e+00 : f32
      %22 = vector.broadcast %cst_17 : f32 to vector<34x64xf32>
      %23 = vector.broadcast %cst_18 : f32 to vector<34x64xf32>
      %24 = arith.select %21, %22, %23 : vector<34x64xi1>, vector<34x64xf32>
      %25 = math.absf %19 : vector<34x64xf32>
      %cst_19 = arith.constant 0.327591091 : f32
      %26 = vector.broadcast %cst_19 : f32 to vector<34x64xf32>
      %27 = arith.mulf %26, %25 : vector<34x64xf32>
      %cst_20 = arith.constant 1.000000e+00 : f32
      %28 = vector.broadcast %cst_20 : f32 to vector<34x64xf32>
      %29 = arith.addf %28, %27 : vector<34x64xf32>
      %cst_21 = arith.constant 1.000000e+00 : f32
      %30 = vector.broadcast %cst_21 : f32 to vector<34x64xf32>
      %31 = arith.divf %30, %29 : vector<34x64xf32>
      %cst_22 = arith.constant 1.06140542 : f32
      %32 = vector.broadcast %cst_22 : f32 to vector<34x64xf32>
      %33 = arith.mulf %32, %31 : vector<34x64xf32>
      %cst_23 = arith.constant -1.45315206 : f32
      %34 = vector.broadcast %cst_23 : f32 to vector<34x64xf32>
      %35 = arith.addf %33, %34 : vector<34x64xf32>
      %36 = arith.mulf %35, %31 : vector<34x64xf32>
      %cst_24 = arith.constant 1.42141378 : f32
      %37 = vector.broadcast %cst_24 : f32 to vector<34x64xf32>
      %38 = arith.addf %36, %37 : vector<34x64xf32>
      %39 = arith.mulf %38, %31 : vector<34x64xf32>
      %cst_25 = arith.constant -0.284496725 : f32
      %40 = vector.broadcast %cst_25 : f32 to vector<34x64xf32>
      %41 = arith.addf %39, %40 : vector<34x64xf32>
      %42 = arith.mulf %41, %31 : vector<34x64xf32>
      %cst_26 = arith.constant 0.254829586 : f32
      %43 = vector.broadcast %cst_26 : f32 to vector<34x64xf32>
      %44 = arith.addf %42, %43 : vector<34x64xf32>
      %45 = arith.mulf %44, %31 : vector<34x64xf32>
      %cst_27 = arith.constant 0.000000e+00 : f32
      %46 = vector.broadcast %cst_27 : f32 to vector<34x64xf32>
      %47 = arith.subf %46, %25 : vector<34x64xf32>
      %48 = arith.mulf %47, %25 : vector<34x64xf32>
      %49 = math.exp %48 : vector<34x64xf32>
      %50 = arith.mulf %45, %49 : vector<34x64xf32>
      %cst_28 = arith.constant 1.000000e+00 : f32
      %51 = vector.broadcast %cst_28 : f32 to vector<34x64xf32>
      %52 = arith.subf %51, %50 : vector<34x64xf32>
      %53 = arith.mulf %24, %52 : vector<34x64xf32>
      %cst_29 = arith.constant 1.000000e+00 : f32
      %54 = vector.broadcast %cst_29 : f32 to vector<34x64xf32>
      %55 = arith.addf %54, %53 : vector<34x64xf32>
      %56 = arith.mulf %17, %55 : vector<34x64xf32>
      %57 = arith.truncf %56 : vector<34x64xf32> to vector<34x64xbf16>
      %c0_30 = arith.constant 0 : index
      %c0_31 = arith.constant 0 : index
      %58 = vector.load %arg6[%c0_30, %c0_31] : memref<34x64xbf16, #tpu.memory_space<vmem>>, vector<34x64xbf16>
      tpu.vector_store %arg6[%c0_30, %c0_31], %57 {strides = array<i32>} : memref<34x64xbf16, #tpu.memory_space<vmem>>, vector<34x64xbf16>,
    } else {
    }
    return
  }
  func.func @transform_0(%arg0: i32, %arg1: i32, %arg2: i32) -> (i32, i32) {
    %c0_i32 = arith.constant 0 : i32
    return %arg0, %arg2 : i32, i32
  }
  func.func @transform_1(%arg0: i32, %arg1: i32, %arg2: i32) -> (i32, i32) {
    %c0_i32 = arith.constant 0 : i32
    return %arg2, %arg1 : i32, i32
  }
  func.func @transform_2(%arg0: i32, %arg1: i32, %arg2: i32) -> (i32, i32) {
    %c0_i32 = arith.constant 0 : i32
    %c0_i32_0 = arith.constant 0 : i32
    return %c0_i32, %arg1 : i32, i32
  }
  func.func @transform_3(%arg0: i32, %arg1: i32, %arg2: i32) -> (i32, i32) {
    %c0_i32 = arith.constant 0 : i32
    return %arg0, %arg1 : i32, i32
  }
}

module attributes {stable_mosaic.version = 11 : i64} {
  func.func @kernel(%arg0: i32, %arg1: i32, %arg2: i32, %arg3: memref<34x64xbf16, #tpu.memory_space<vmem>>, %arg4: memref<64x32xbf16, #tpu.memory_space<vmem>>, %arg5: memref<1x32xf32, #tpu.memory_space<vmem>>, %arg6: memref<34x32xbf16, #tpu.memory_space<vmem>>, %arg7: memref<34x32xf32, #tpu.memory_space<vmem>>) attributes {dimension_semantics = [#tpu.dimension_semantics<parallel>, #tpu.dimension_semantics<parallel>, #tpu.dimension_semantics<arbitrary>], iteration_bounds = array<i64: 1, 1, 1>, scalar_prefetch = 0 : i64, scratch_operands = 1 : i64, tpu.core_type = #tpu.core_type<tc>, window_params = [{transform_indices = @transform_0, window_bounds = array<i64: 34, 64>}, {transform_indices = @transform_1, window_bounds = array<i64: 64, 32>}, {transform_indices = @transform_2, window_bounds = array<i64: 1, 32>}, {transform_indices = @transform_3, window_bounds = array<i64: 34, 32>}]} {
    %c0_i32 = arith.constant 0 : i32
    %0 = arith.cmpi eq, %arg2, %c0_i32 : i32
    %1 = arith.extui %0 : i1 to i32
    %c0_i32_0 = arith.constant 0 : i32
    %2 = arith.cmpi ne, %1, %c0_i32_0 : i32
    scf.if %2 {
      %cst_10 = arith.constant 0.000000e+00 : f32
      %12 = vector.broadcast %cst_10 : f32 to vector<34x32xf32>
      %c0_11 = arith.constant 0 : index
      %c0_12 = arith.constant 0 : index
      %13 = vector.load %arg7[%c0_11, %c0_12] : memref<34x32xf32, #tpu.memory_space<vmem>>, vector<34x32xf32>
      tpu.vector_store %arg7[%c0_11, %c0_12], %12 {strides = array<i32>} : memref<34x32xf32, #tpu.memory_space<vmem>>, vector<34x32xf32>,
    } else {
    }
    %c0 = arith.constant 0 : index
    %c0_1 = arith.constant 0 : index
    %3 = vector.load %arg3[%c0, %c0_1] : memref<34x64xbf16, #tpu.memory_space<vmem>>, vector<34x64xbf16>
    %c0_2 = arith.constant 0 : index
    %c0_3 = arith.constant 0 : index
    %4 = vector.load %arg7[%c0_2, %c0_3] : memref<34x32xf32, #tpu.memory_space<vmem>>, vector<34x32xf32>
    %c0_4 = arith.constant 0 : index
    %c0_5 = arith.constant 0 : index
    %5 = vector.load %arg4[%c0_4, %c0_5] : memref<64x32xbf16, #tpu.memory_space<vmem>>, vector<64x32xbf16>
    %cst = arith.constant dense<0.000000e+00> : vector<34x32xf32>
    %6 = tpu.matmul %3, %5, %cst {dimension_numbers = #tpu.dot_dimension_numbers<[1], [0], [0], [1], [0, 0, 1, 1], [], []>} : vector<34x64xbf16>, vector<64x32xbf16>, vector<34x32xf32> -> vector<34x32xf32>
    %7 = arith.addf %4, %6 : vector<34x32xf32>
    %c0_6 = arith.constant 0 : index
    %c0_7 = arith.constant 0 : index
    %8 = vector.load %arg7[%c0_6, %c0_7] : memref<34x32xf32, #tpu.memory_space<vmem>>, vector<34x32xf32>
    tpu.vector_store %arg7[%c0_6, %c0_7], %7 {strides = array<i32>} : memref<34x32xf32, #tpu.memory_space<vmem>>, vector<34x32xf32>,
    %c0_i32_8 = arith.constant 0 : i32
    %9 = arith.cmpi eq, %arg2, %c0_i32_8 : i32
    %10 = arith.extui %9 : i1 to i32
    %c0_i32_9 = arith.constant 0 : i32
    %11 = arith.cmpi ne, %10, %c0_i32_9 : i32
    scf.if %11 {
      %c0_10 = arith.constant 0 : index
      %c0_11 = arith.constant 0 : index
      %12 = vector.load %arg7[%c0_10, %c0_11] : memref<34x32xf32, #tpu.memory_space<vmem>>, vector<34x32xf32>
      %c0_12 = arith.constant 0 : index
      %c0_13 = arith.constant 0 : index
      %13 = vector.load %arg5[%c0_12, %c0_13] : memref<1x32xf32, #tpu.memory_space<vmem>>, vector<1x32xf32>
      %14 = vector.broadcast %13 : vector<1x32xf32> to vector<34x32xf32>
      %15 = arith.addf %12, %14 : vector<34x32xf32>
      %16 = arith.mulf %15, %15 : vector<34x32xf32>
      %cst_14 = arith.constant dense<0.000000e+00> : vector<34xf32>
      %17 = vector.multi_reduction <add>, %16, %cst_14 [1] : vector<34x32xf32> to vector<34xf32>
      %18 = vector.shape_cast %17 : vector<34xf32> to vector<34x1xf32>
      %19 = math.sqrt %18 : vector<34x1xf32>
      %cst_15 = arith.constant 9.99999996E-13 : f32
      %20 = vector.broadcast %cst_15 : f32 to vector<34x1xf32>
      %21 = arith.maximumf %19, %20 : vector<34x1xf32>
      %22 = vector.broadcast %21 : vector<34x1xf32> to vector<34x32xf32>
      %23 = arith.divf %15, %22 : vector<34x32xf32>
      %24 = arith.truncf %23 : vector<34x32xf32> to vector<34x32xbf16>
      %c0_16 = arith.constant 0 : index
      %c0_17 = arith.constant 0 : index
      %25 = vector.load %arg6[%c0_16, %c0_17] : memref<34x32xbf16, #tpu.memory_space<vmem>>, vector<34x32xbf16>
      tpu.vector_store %arg6[%c0_16, %c0_17], %24 {strides = array<i32>} : memref<34x32xbf16, #tpu.memory_space<vmem>>, vector<34x32xbf16>,
    } else {
    }
    return
  }
  func.func @transform_0(%arg0: i32, %arg1: i32, %arg2: i32) -> (i32, i32) {
    %c0_i32 = arith.constant 0 : i32
    return %arg0, %arg2 : i32, i32
  }
  func.func @transform_1(%arg0: i32, %arg1: i32, %arg2: i32) -> (i32, i32) {
    %c0_i32 = arith.constant 0 : i32
    return %arg2, %arg1 : i32, i32
  }
  func.func @transform_2(%arg0: i32, %arg1: i32, %arg2: i32) -> (i32, i32) {
    %c0_i32 = arith.constant 0 : i32
    %c0_i32_0 = arith.constant 0 : i32
    return %c0_i32, %arg1 : i32, i32
  }
  func.func @transform_3(%arg0: i32, %arg1: i32, %arg2: i32) -> (i32, i32) {
    %c0_i32 = arith.constant 0 : i32
    return %arg0, %arg1 : i32, i32
  }
}

module attributes {stable_mosaic.version = 11 : i64} {
  func.func @kernel(%arg0: i32, %arg1: i32, %arg2: i32, %arg3: memref<32x32xbf16, #tpu.memory_space<vmem>>, %arg4: memref<32x40xbf16, #tpu.memory_space<vmem>>, %arg5: memref<32x40xf32, #tpu.memory_space<vmem>>, %arg6: memref<32x40xf32, #tpu.memory_space<vmem>>) attributes {dimension_semantics = [#tpu.dimension_semantics<parallel>, #tpu.dimension_semantics<parallel>, #tpu.dimension_semantics<arbitrary>], iteration_bounds = array<i64: 1, 1, 1>, scalar_prefetch = 0 : i64, scratch_operands = 1 : i64, tpu.core_type = #tpu.core_type<tc>, window_params = [{transform_indices = @transform_0, window_bounds = array<i64: 32, 32>}, {transform_indices = @transform_1, window_bounds = array<i64: 32, 40>}, {transform_indices = @transform_2, window_bounds = array<i64: 32, 40>}]} {
    %c0_i32 = arith.constant 0 : i32
    %0 = arith.cmpi eq, %arg2, %c0_i32 : i32
    %1 = arith.extui %0 : i1 to i32
    %c0_i32_0 = arith.constant 0 : i32
    %2 = arith.cmpi ne, %1, %c0_i32_0 : i32
    scf.if %2 {
      %cst_10 = arith.constant 0.000000e+00 : f32
      %12 = vector.broadcast %cst_10 : f32 to vector<32x40xf32>
      %c0_11 = arith.constant 0 : index
      %c0_12 = arith.constant 0 : index
      %13 = vector.load %arg6[%c0_11, %c0_12] : memref<32x40xf32, #tpu.memory_space<vmem>>, vector<32x40xf32>
      tpu.vector_store %arg6[%c0_11, %c0_12], %12 {strides = array<i32>} : memref<32x40xf32, #tpu.memory_space<vmem>>, vector<32x40xf32>,
    } else {
    }
    %c0 = arith.constant 0 : index
    %c0_1 = arith.constant 0 : index
    %3 = vector.load %arg3[%c0, %c0_1] : memref<32x32xbf16, #tpu.memory_space<vmem>>, vector<32x32xbf16>
    %c0_2 = arith.constant 0 : index
    %c0_3 = arith.constant 0 : index
    %4 = vector.load %arg6[%c0_2, %c0_3] : memref<32x40xf32, #tpu.memory_space<vmem>>, vector<32x40xf32>
    %c0_4 = arith.constant 0 : index
    %c0_5 = arith.constant 0 : index
    %5 = vector.load %arg4[%c0_4, %c0_5] : memref<32x40xbf16, #tpu.memory_space<vmem>>, vector<32x40xbf16>
    %cst = arith.constant dense<0.000000e+00> : vector<32x40xf32>
    %6 = tpu.matmul %3, %5, %cst {dimension_numbers = #tpu.dot_dimension_numbers<[1], [0], [0], [1], [0, 0, 1, 1], [], []>} : vector<32x32xbf16>, vector<32x40xbf16>, vector<32x40xf32> -> vector<32x40xf32>
    %7 = arith.addf %4, %6 : vector<32x40xf32>
    %c0_6 = arith.constant 0 : index
    %c0_7 = arith.constant 0 : index
    %8 = vector.load %arg6[%c0_6, %c0_7] : memref<32x40xf32, #tpu.memory_space<vmem>>, vector<32x40xf32>
    tpu.vector_store %arg6[%c0_6, %c0_7], %7 {strides = array<i32>} : memref<32x40xf32, #tpu.memory_space<vmem>>, vector<32x40xf32>,
    %c0_i32_8 = arith.constant 0 : i32
    %9 = arith.cmpi eq, %arg2, %c0_i32_8 : i32
    %10 = arith.extui %9 : i1 to i32
    %c0_i32_9 = arith.constant 0 : i32
    %11 = arith.cmpi ne, %10, %c0_i32_9 : i32
    scf.if %11 {
      %c0_10 = arith.constant 0 : index
      %c0_11 = arith.constant 0 : index
      %12 = vector.load %arg6[%c0_10, %c0_11] : memref<32x40xf32, #tpu.memory_space<vmem>>, vector<32x40xf32>
      %c0_12 = arith.constant 0 : index
      %c0_13 = arith.constant 0 : index
      %13 = vector.load %arg5[%c0_12, %c0_13] : memref<32x40xf32, #tpu.memory_space<vmem>>, vector<32x40xf32>
      tpu.vector_store %arg5[%c0_12, %c0_13], %12 {strides = array<i32>} : memref<32x40xf32, #tpu.memory_space<vmem>>, vector<32x40xf32>,
    } else {
    }
    return
  }
  func.func @transform_0(%arg0: i32, %arg1: i32, %arg2: i32) -> (i32, i32) {
    %c0_i32 = arith.constant 0 : i32
    return %arg0, %arg2 : i32, i32
  }
  func.func @transform_1(%arg0: i32, %arg1: i32, %arg2: i32) -> (i32, i32) {
    %c0_i32 = arith.constant 0 : i32
    return %arg2, %arg1 : i32, i32
  }
  func.func @transform_2(%arg0: i32, %arg1: i32, %arg2: i32) -> (i32, i32) {
    %c0_i32 = arith.constant 0 : i32
    return %arg0, %arg1 : i32, i32
  }
}

module attributes {stable_mosaic.version = 11 : i64} {
  func.func @kernel(%arg0: i32, %arg1: i32, %arg2: i32, %arg3: memref<2x32xbf16, #tpu.memory_space<vmem>>, %arg4: memref<32x48xbf16, #tpu.memory_space<vmem>>, %arg5: memref<2x48xf32, #tpu.memory_space<vmem>>, %arg6: memref<2x48xf32, #tpu.memory_space<vmem>>) attributes {dimension_semantics = [#tpu.dimension_semantics<parallel>, #tpu.dimension_semantics<parallel>, #tpu.dimension_semantics<arbitrary>], iteration_bounds = array<i64: 1, 1, 1>, scalar_prefetch = 0 : i64, scratch_operands = 1 : i64, tpu.core_type = #tpu.core_type<tc>, window_params = [{transform_indices = @transform_0, window_bounds = array<i64: 2, 32>}, {transform_indices = @transform_1, window_bounds = array<i64: 32, 48>}, {transform_indices = @transform_2, window_bounds = array<i64: 2, 48>}]} {
    %c0_i32 = arith.constant 0 : i32
    %0 = arith.cmpi eq, %arg2, %c0_i32 : i32
    %1 = arith.extui %0 : i1 to i32
    %c0_i32_0 = arith.constant 0 : i32
    %2 = arith.cmpi ne, %1, %c0_i32_0 : i32
    scf.if %2 {
      %cst_10 = arith.constant 0.000000e+00 : f32
      %12 = vector.broadcast %cst_10 : f32 to vector<2x48xf32>
      %c0_11 = arith.constant 0 : index
      %c0_12 = arith.constant 0 : index
      %13 = vector.load %arg6[%c0_11, %c0_12] : memref<2x48xf32, #tpu.memory_space<vmem>>, vector<2x48xf32>
      tpu.vector_store %arg6[%c0_11, %c0_12], %12 {strides = array<i32>} : memref<2x48xf32, #tpu.memory_space<vmem>>, vector<2x48xf32>,
    } else {
    }
    %c0 = arith.constant 0 : index
    %c0_1 = arith.constant 0 : index
    %3 = vector.load %arg3[%c0, %c0_1] : memref<2x32xbf16, #tpu.memory_space<vmem>>, vector<2x32xbf16>
    %c0_2 = arith.constant 0 : index
    %c0_3 = arith.constant 0 : index
    %4 = vector.load %arg6[%c0_2, %c0_3] : memref<2x48xf32, #tpu.memory_space<vmem>>, vector<2x48xf32>
    %c0_4 = arith.constant 0 : index
    %c0_5 = arith.constant 0 : index
    %5 = vector.load %arg4[%c0_4, %c0_5] : memref<32x48xbf16, #tpu.memory_space<vmem>>, vector<32x48xbf16>
    %cst = arith.constant dense<0.000000e+00> : vector<2x48xf32>
    %6 = tpu.matmul %3, %5, %cst {dimension_numbers = #tpu.dot_dimension_numbers<[1], [0], [0], [1], [0, 0, 1, 1], [], []>} : vector<2x32xbf16>, vector<32x48xbf16>, vector<2x48xf32> -> vector<2x48xf32>
    %7 = arith.addf %4, %6 : vector<2x48xf32>
    %c0_6 = arith.constant 0 : index
    %c0_7 = arith.constant 0 : index
    %8 = vector.load %arg6[%c0_6, %c0_7] : memref<2x48xf32, #tpu.memory_space<vmem>>, vector<2x48xf32>
    tpu.vector_store %arg6[%c0_6, %c0_7], %7 {strides = array<i32>} : memref<2x48xf32, #tpu.memory_space<vmem>>, vector<2x48xf32>,
    %c0_i32_8 = arith.constant 0 : i32
    %9 = arith.cmpi eq, %arg2, %c0_i32_8 : i32
    %10 = arith.extui %9 : i1 to i32
    %c0_i32_9 = arith.constant 0 : i32
    %11 = arith.cmpi ne, %10, %c0_i32_9 : i32
    scf.if %11 {
      %c0_10 = arith.constant 0 : index
      %c0_11 = arith.constant 0 : index
      %12 = vector.load %arg6[%c0_10, %c0_11] : memref<2x48xf32, #tpu.memory_space<vmem>>, vector<2x48xf32>
      %c0_12 = arith.constant 0 : index
      %c0_13 = arith.constant 0 : index
      %13 = vector.load %arg5[%c0_12, %c0_13] : memref<2x48xf32, #tpu.memory_space<vmem>>, vector<2x48xf32>
      tpu.vector_store %arg5[%c0_12, %c0_13], %12 {strides = array<i32>} : memref<2x48xf32, #tpu.memory_space<vmem>>, vector<2x48xf32>,
    } else {
    }
    return
  }
  func.func @transform_0(%arg0: i32, %arg1: i32, %arg2: i32) -> (i32, i32) {
    %c0_i32 = arith.constant 0 : i32
    return %arg0, %arg2 : i32, i32
  }
  func.func @transform_1(%arg0: i32, %arg1: i32, %arg2: i32) -> (i32, i32) {
    %c0_i32 = arith.constant 0 : i32
    return %arg2, %arg1 : i32, i32
  }
  func.func @transform_2(%arg0: i32, %arg1: i32, %arg2: i32) -> (i32, i32) {
    %c0_i32 = arith.constant 0 : i32
    return %arg0, %arg1 : i32, i32
  }
}

</mosaic_0001>

<bundles_post_ra>
// kernel: medsam_ibot_forward.24
= control target key start
LH: loop header
LB: loop body
LE: loop exit
PB: predicated region body
PF: predicated region fallthrough
CT: control target
= control target key end

     0   :  { %vm19_vm0 = vcmask 261120   ;;  %v161_v1 = vmov 0.0   ;;  %vm66_vm1 = vcmask 392192   ;;  %vm120_vm2 = vcmask 257024   ;;  %s220_s1 = inlined_call_operand.vmem [shape: bf16[48,32], index: 1, kind: input, shape index: {}]   ;;  %s221_s2 = inlined_call_operand.vmem [shape: f32[1,32], index: 2, kind: input, shape index: {}]   ;;  %s222_s0 = inlined_call_operand.vmem [shape: bf16[32,48], index: 0, kind: input, shape index: {}]   ;;  %s223_s3 = inlined_call_operand.vmem [shape: bf16[32,32], index: 3, kind: output, shape index: {}]  }
   0x1   :  { %v155_v0 = vld [vmem:[%s220_s1 + $0x10] sm:$0xff]  ;;  %20 = vst.msk [vmem:[#allocation2] sm:$0xff] %vm19_vm0, %v161_v1  ;;  %v154_v2 = vld [vmem:[%s220_s1 + $0x8] sm:$0xff]  ;;  %v153_v3 = vld [vmem:[%s220_s1] sm:$0xff] }
   0x2   :  { %21 = vst.msk [vmem:[#allocation2 + $0x8] sm:$0xff] %vm19_vm0, %v161_v1  ;;  %78 = vmatpush.bf16.msra.mxu0 %v155_v0  ;;  %156 = vmatpush.bf16.msra.mxu1 %v155_v0  ;;  %v151_v4 = vld [vmem:[%s222_s0] sm:$0xff]  ;;  %v152_v5 = vld [vmem:[%s222_s0 + $0x8] sm:$0xff] }
   0x3   :  { %22 = vst.msk [vmem:[#allocation2 + $0x10] sm:$0xff] %vm19_vm0, %v161_v1  ;;  %v160_v14 = vld [vmem:[%s221_s2] ss:$0 sm:$0xff] }
   0x4   :  { %23 = vst.msk [vmem:[#allocation2 + $0x18] sm:$0xff] %vm19_vm0, %v161_v1 }
   0x6   :  { %79 = vmatpush.bf16.msra.mxu0 %v154_v2  ;;  %157 = vmatpush.bf16.msra.mxu1 %v154_v2 }
   0x8   :  { %v28_v6 = vld [vmem:[#allocation2] sm:$0xff] }
   0x9   :  { %v29_v12 = vld [vmem:[#allocation2 + $0x8] sm:$0xff] }
   0xa   :  { %80 = vmatpush.bf16.msra.mxu0 %v153_v3  ;;  %158 = vmatpush.bf16.msra.mxu1 %v153_v3  ;;  %v30_v7 = vld [vmem:[#allocation2 + $0x10] sm:$0xff] }
   0xb   :  { %v31_v13 = vld [vmem:[#allocation2 + $0x18] sm:$0xff] }
   0xd   :  { %149 = vmatmul.msk.bf16.vlgmr.msra.gmra.mxu0 %vm66_vm1, %v151_v4  ;;  %150 = vmatmul.msk.bf16.vlgmr.msra.gmra.mxu1 %vm66_vm1, %v152_v5 }
  0x8a   :  { %v82_v8 = vpop.f32.mrf.mxu0  ;;  %v87_v9 = vpop.f32.mrf.mxu1 }
  0x8b   :  { %v92_v10 = vadd.f32 %v82_v8, %v28_v6  ;;  %v94_v11 = vadd.f32 %v87_v9, %v30_v7 }
  0x8d   :  { %97 = vst.msk [vmem:[#allocation2] sm:$0xff] %vm19_vm0, %v92_v10 }
  0x8e   :  { %99 = vst.msk [vmem:[#allocation2 + $0x10] sm:$0xff] %vm19_vm0, %v94_v11 }
  0x92   :  { %v84_v15 = vpop.f32.mrf.mxu0  ;;  %v89_v16 = vpop.f32.mrf.mxu1 }
  0x93   :  { %v93_v17 = vadd.f32 %v84_v15, %v29_v12  ;;  %v95_v18 = vadd.f32 %v89_v16, %v31_v13 }
  0x94   :  { %v104_v19 = vld [vmem:[#allocation2] sm:$0xff] }
  0x95   :  { %v112_v20 = vadd.f32 %v160_v14, %v104_v19  ;;  %v106_v21 = vld [vmem:[#allocation2 + $0x10] sm:$0xff]  ;;  %98 = vst.msk [vmem:[#allocation2 + $0x8] sm:$0xff] %vm19_vm0, %v93_v17 }
  0x96   :  { %v114_v22 = vadd.f32 %v160_v14, %v106_v21  ;;  %100 = vst.msk [vmem:[#allocation2 + $0x18] sm:$0xff] %vm19_vm0, %v95_v18 }
  0x97   :  { %v116_v23 = vpack.c.bf16 %v112_v20, %v112_v20 }
  0x98   :  { %v118_v24 = vpack.c.bf16 %v114_v22, %v114_v22 }
  0x99   :  { %121 = vst.msk [vmem:[%s223_s3] sm:$0xf] %vm120_vm2, %v116_v23 }
  0x9a   :  { %123 = vst.msk [vmem:[%s223_s3 + $0x8] sm:$0xf] %vm120_vm2, %v118_v24 }
  0x9c   :  { %v105_v25 = vld [vmem:[#allocation2 + $0x8] sm:$0xff] }
  0x9d   :  { %v113_v26 = vadd.f32 %v160_v14, %v105_v25  ;;  %v107_v27 = vld [vmem:[#allocation2 + $0x18] sm:$0xff] }
  0x9e   :  { %v115_v28 = vadd.f32 %v160_v14, %v107_v27 }
  0x9f   :  { %v117_v29 = vpack.c.bf16 %v113_v26, %v113_v26 }
  0xa0   :  { %v119_v30 = vpack.c.bf16 %v115_v28, %v115_v28 }
  0xa1   :  { %122 = vst.msk [vmem:[%s223_s3 + $0x4] sm:$0xf] %vm120_vm2, %v117_v29 }
  0xa2   :  { %124 = vst.msk [vmem:[%s223_s3 + $0xc] sm:$0xf] %vm120_vm2, %v119_v30 }

// kernel: medsam_ibot_forward.25
= control target key start
LH: loop header
LB: loop body
LE: loop exit
PB: predicated region body
PF: predicated region fallthrough
CT: control target
= control target key end

     0   :  { %vm38_vm0 = vcmask 261120   ;;  %v272_v10 = vmov 32.0   ;;  %vm25_vm2 = vcmask 785408   ;;  %v273_v49 = vmov 0.0   ;;  %s375_s0 = inlined_call_operand.vmem [shape: bf16[32,32], index: 0, kind: input, shape index: {}]   ;;  %s376_s2 = inlined_call_operand.vmem [shape: f32[1,32], index: 2, kind: input, shape index: {}]   ;;  %s377_s3 = inlined_call_operand.vmem [shape: f32[1,32], index: 3, kind: input, shape index: {}]   ;;  %s378_s4 = inlined_call_operand.vmem [shape: f32[1,96], index: 4, kind: input, shape index: {}]   ;;  %s379_s1 = inlined_call_operand.vmem [shape: bf16[32,96], index: 1, kind: input, shape index: {}]   ;;  %s380_s5 = inlined_call_operand.vmem [shape: bf16[32,96], index: 5, kind: output, shape index: {}]  }
   0x1   :  { %v254_v0 = vld [vmem:[%s375_s0 + $0x8] sm:$0xff]   ;;  %v247_v1 = vld [vmem:[%s375_s0] sm:$0xff]   ;;  %262 = vrcp.f32 %v272_v10  ;;  %26 = vst.msk [vmem:[#allocation2] sm:$0xff] %vm25_vm2, %v273_v49  ;;  %vm225_vm15 = vcmask 781312  }
   0x2   :  { %v252_v2 = vunpack.c.l.bf16 %v254_v0  ;;  %v248_v3 = vunpack.c.l.bf16 %v247_v1  ;;  %v253_v6 = vunpack.c.h.bf16 %v254_v0  ;;  %v249_v7 = vunpack.c.h.bf16 %v247_v1  ;;  %v245_v37 = vld [vmem:[%s379_s1 + $0x8] sm:$0xff]  ;;  %v244_v42 = vld [vmem:[%s379_s1] sm:$0xff]  ;;  %27 = vst.msk [vmem:[#allocation2 + $0x8] sm:$0xff] %vm25_vm2, %v273_v49 }
   0x3   :  { %184 = vmatpush.bf16.msra.mxu0 %v245_v37  ;;  %255 = vmatpush.bf16.msra.mxu1 %v245_v37  ;;  %28 = vst.msk [vmem:[#allocation2 + $0x10] sm:$0xff] %vm25_vm2, %v273_v49 }
   0x4   :  { %v45_v4 = vsel %vm38_vm0, %v252_v2, 0.0  ;;  %v39_v5 = vsel %vm38_vm0, %v248_v3, 0.0  ;;  %v48_v8 = vsel %vm38_vm0, %v253_v6, 0.0  ;;  %v42_v9 = vsel %vm38_vm0, %v249_v7, 0.0  ;;  %29 = vst.msk [vmem:[#allocation2 + $0x18] sm:$0xff] %vm25_vm2, %v273_v49 }
   0x5   :  { %46 = vadd.xlane.f32.xlu1 %v45_v4  ;;  %40 = vadd.xlane.f32.xlu0 %v39_v5 }
   0x7   :  { %v263_v11 = vpop.eup %262  ;;  %185 = vmatpush.bf16.msra.mxu0 %v244_v42  ;;  %256 = vmatpush.bf16.msra.mxu1 %v244_v42 }
   0x8   :  { %v52_v12 = vmul.f32 32.0, %v263_v11  ;;  %vm56_vm1 = vweird.f32 %v263_v11 }
   0xa   :  { %v53_v13 = vsub.f32 1.0, %v52_v12 }
   0xc   :  { %v54_v14 = vmul.f32 %v263_v11, %v53_v13  ;;  %v259_v13 = vld [vmem:[%s376_s2] ss:$0 sm:$0xff] }
   0xd   :  { %49 = vadd.xlane.f32.xlu1 %v48_v8  ;;  %43 = vadd.xlane.f32.xlu0 %v42_v9 }
   0xe   :  { %v55_v15 = vadd.f32 %v263_v11, %v54_v14 }
  0x10   :  { %v57_v16 = vsel %vm56_vm1, %v263_v11, %v55_v15 }
  0x78   :  { %v47_v17 = vpop.xlane.xlu1 %46  ;;  %v41_v18 = vpop.xlane.xlu0 %40 }
  0x79   :  { %v60_v19 = vmul.f32 %v57_v16, %v47_v17  ;;  %v58_v20 = vmul.f32 %v57_v16, %v41_v18 }
  0x7b   :  { %v314_v21 = vsub.f32 %v252_v2, %v60_v19  ;;  %v316_v22 = vsub.f32 %v248_v3, %v58_v20  ;;  %v260_v20 = vld [vmem:[%s377_s3] ss:$0 sm:$0xff] }
  0x7d   :  { %v68_v23 = vmul.f32 %v314_v21, %v314_v21  ;;  %v66_v24 = vmul.f32 %v316_v22, %v316_v22 }
  0x7f   :  { %v76_v25 = vsel %vm38_vm0, %v68_v23, 0.0  ;;  %v70_v26 = vsel %vm38_vm0, %v66_v24, 0.0 }
  0x80   :  { %v50_v27 = vpop.xlane.xlu1 %49  ;;  %77 = vadd.xlane.f32.xlu0 %v76_v25  ;;  %71 = vadd.xlane.f32.xlu2 %v70_v26  ;;  %v44_v28 = vpop.xlane.xlu0 %43 }
  0x81   :  { %v61_v29 = vmul.f32 %v57_v16, %v50_v27  ;;  %v59_v30 = vmul.f32 %v57_v16, %v44_v28 }
  0x83   :  { %v324_v31 = vsub.f32 %v253_v6, %v61_v29  ;;  %v326_v32 = vsub.f32 %v249_v7, %v59_v30 }
  0x85   :  { %v69_v33 = vmul.f32 %v324_v31, %v324_v31  ;;  %v67_v34 = vmul.f32 %v326_v32, %v326_v32 }
  0x87   :  { %v79_v35 = vsel %vm38_vm0, %v69_v33, 0.0  ;;  %v73_v36 = vsel %vm38_vm0, %v67_v34, 0.0  ;;  %v152_v34 = vld [vmem:[#allocation2] sm:$0xff] }
  0x88   :  { %80 = vadd.xlane.f32.xlu1 %v79_v35  ;;  %74 = vadd.xlane.f32.xlu2 %v73_v36 }
  0xf3   :  { %v72_v38 = vpop.xlane.xlu2 %71  ;;  %v78_v39 = vpop.xlane.xlu0 %77 }
  0xf4   :  { %v82_v40 = vmul.f32 %v72_v38, %v57_v16  ;;  %v84_v41 = vmul.f32 %v78_v39, %v57_v16  ;;  %v261_v39 = vld [vmem:[%s378_s4] ss:$0 sm:$0xff] }
  0xf6   :  { %v86_v43 = vadd.f32 1e-06, %v82_v40  ;;  %v88_v44 = vadd.f32 1e-06, %v84_v41  ;;  %v153_v40 = vld [vmem:[#allocation2 + $0x8] sm:$0xff] }
  0xf8   :  { %264 = vrsqrt.f32 %v86_v43  ;;  %vm116_vm5 = vweird.f32 %v88_v44  ;;  %vm96_vm6 = vweird.f32 %v86_v43 }
  0xf9   :  { %266 = vrsqrt.f32 %v88_v44 }
  0xfb   :  { %v81_v45 = vpop.xlane.xlu1 %80  ;;  %v75_v46 = vpop.xlane.xlu2 %74 }
  0xfc   :  { %v85_v47 = vmul.f32 %v81_v45, %v57_v16  ;;  %v83_v48 = vmul.f32 %v75_v46, %v57_v16 }
  0xfe   :  { %v265_v50 = vpop.eup %264  ;;  %v89_v51 = vadd.f32 1e-06, %v85_v47  ;;  %v87_v52 = vadd.f32 1e-06, %v83_v48 }
  0xff   :  { %v267_v53 = vpop.eup %266  ;;  %v91_v54 = vmul.f32 %v265_v50, %v86_v43  ;;  %vm97_vm4 = vweird.f32 %v265_v50 }
 0x100   :  { %v111_v55 = vmul.f32 %v267_v53, %v88_v44  ;;  %268 = vrsqrt.f32 %v89_v51  ;;  %vm117_vm3 = vweird.f32 %v267_v53  ;;  %vm98_vm8 = vmor %vm96_vm6, %vm97_vm4  ;;  %vm126_vm11 = vweird.f32 %v89_v51 }
 0x101   :  { %v92_v56 = vmul.f32 %v265_v50, %v91_v54  ;;  %270 = vrsqrt.f32 %v87_v52  ;;  %vm118_vm7 = vmor %vm116_vm5, %vm117_vm3  ;;  %vm106_vm13 = vweird.f32 %v87_v52 }
 0x102   :  { %v112_v57 = vmul.f32 %v267_v53, %v111_v55 }
 0x103   :  { %v93_v58 = vmul.f32 0.5, %v92_v56 }
 0x104   :  { %v113_v59 = vmul.f32 0.5, %v112_v57 }
 0x105   :  { %v94_v60 = vsub.f32 1.5, %v93_v58 }
 0x106   :  { %v269_v61 = vpop.eup %268  ;;  %v114_v62 = vsub.f32 1.5, %v113_v59 }
 0x107   :  { %v271_v63 = vpop.eup %270  ;;  %v121_v0 = vmul.f32 %v269_v61, %v89_v51  ;;  %v95_v1 = vmul.f32 %v265_v50, %v94_v60  ;;  %vm127_vm9 = vweird.f32 %v269_v61 }
 0x108   :  { %v115_v2 = vmul.f32 %v267_v53, %v114_v62  ;;  %v101_v3 = vmul.f32 %v271_v63, %v87_v52  ;;  %vm107_vm10 = vweird.f32 %v271_v63  ;;  %vm128_vm12 = vmor %vm126_vm11, %vm127_vm9 }
 0x109   :  { %v122_v4 = vmul.f32 %v269_v61, %v121_v0  ;;  %v99_v8 = vsel %vm98_vm8, %v265_v50, %v95_v1  ;;  %vm108_vm14 = vmor %vm106_vm13, %vm107_vm10 }
 0x10a   :  { %v102_v5 = vmul.f32 %v271_v63, %v101_v3  ;;  %v119_v6 = vsel %vm118_vm7, %v267_v53, %v115_v2  ;;  %v130_v14 = vmul.f32 %v99_v8, %v316_v22 }
 0x10b   :  { %v123_v7 = vmul.f32 0.5, %v122_v4  ;;  %v132_v11 = vmul.f32 %v119_v6, %v314_v21 }
 0x10c   :  { %v103_v9 = vmul.f32 0.5, %v102_v5  ;;  %v138_v24 = vmul.f32 %v259_v13, %v130_v14 }
 0x10d   :  { %v124_v10 = vsub.f32 1.5, %v123_v7  ;;  %v140_v21 = vmul.f32 %v259_v13, %v132_v11 }
 0x10e   :  { %v104_v12 = vsub.f32 1.5, %v103_v9  ;;  %v146_v28 = vadd.f32 %v260_v20, %v138_v24 }
 0x10f   :  { %v125_v15 = vmul.f32 %v269_v61, %v124_v10  ;;  %v148_v26 = vadd.f32 %v260_v20, %v140_v21 }
 0x110   :  { %v105_v16 = vmul.f32 %v271_v63, %v104_v12 }
 0x111   :  { %v129_v17 = vsel %vm128_vm12, %v269_v61, %v125_v15 }
 0x112   :  { %v133_v18 = vmul.f32 %v129_v17, %v324_v31  ;;  %v109_v19 = vsel %vm108_vm14, %v271_v63, %v105_v16  ;;  %v154_v31 = vld [vmem:[#allocation2 + $0x10] sm:$0xff] }
 0x113   :  { %v131_v23 = vmul.f32 %v109_v19, %v326_v32  ;;  %v155_v32 = vld [vmem:[#allocation2 + $0x18] sm:$0xff] }
 0x114   :  { %v141_v25 = vmul.f32 %v259_v13, %v133_v18 }
 0x115   :  { %v139_v22 = vmul.f32 %v259_v13, %v131_v23 }
 0x116   :  { %v149_v27 = vadd.f32 %v260_v20, %v141_v25 }
 0x117   :  { %v147_v29 = vadd.f32 %v260_v20, %v139_v22 }
 0x118   :  { %v151_v30 = vpack.c.bf16 %v149_v27, %v148_v26 }
 0x119   :  { %v150_v33 = vpack.c.bf16 %v147_v29, %v146_v28 }
 0x11a   :  { %243 = vmatmul.msk.bf16.vlgmr.msra.gmra.mxu1 %vm38_vm0, %v151_v30 }
 0x11b   :  { %242 = vmatmul.msk.bf16.vlgmr.msra.gmra.mxu0 %vm38_vm0, %v150_v33 }
 0x197   :  { %v192_v35 = vpop.f32.mrf.mxu1 }
 0x198   :  { %v187_v36 = vpop.f32.mrf.mxu0  ;;  %v199_v37 = vadd.f32 %v192_v35, %v154_v31 }
 0x199   :  { %v197_v38 = vadd.f32 %v187_v36, %v152_v34 }
 0x19a   :  { %204 = vst.msk [vmem:[#allocation2 + $0x10] sm:$0xff] %vm25_vm2, %v199_v37 }
 0x19b   :  { %202 = vst.msk [vmem:[#allocation2] sm:$0xff] %vm25_vm2, %v197_v38 }
 0x19f   :  { %v194_v41 = vpop.f32.mrf.mxu1 }
 0x1a0   :  { %v189_v42 = vpop.f32.mrf.mxu0  ;;  %v200_v43 = vadd.f32 %v194_v41, %v155_v32 }
 0x1a1   :  { %v211_v44 = vld [vmem:[#allocation2 + $0x10] sm:$0xff]  ;;  %v198_v45 = vadd.f32 %v189_v42, %v153_v40 }
 0x1a2   :  { %v209_v46 = vld [vmem:[#allocation2] sm:$0xff]  ;;  %v219_v47 = vadd.f32 %v261_v39, %v211_v44  ;;  %205 = vst.msk [vmem:[#allocation2 + $0x18] sm:$0xff] %vm25_vm2, %v200_v43 }
 0x1a3   :  { %v217_v48 = vadd.f32 %v261_v39, %v209_v46  ;;  %203 = vst.msk [vmem:[#allocation2 + $0x8] sm:$0xff] %vm25_vm2, %v198_v45 }
 0x1a4   :  { %v223_v49 = vpack.c.bf16 %v219_v47, %v219_v47 }
 0x1a5   :  { %v221_v50 = vpack.c.bf16 %v217_v48, %v217_v48 }
 0x1a6   :  { %228 = vst.msk [vmem:[%s380_s5 + $0x8] sm:$0xf] %vm225_vm15, %v223_v49 }
 0x1a7   :  { %226 = vst.msk [vmem:[%s380_s5] sm:$0xf] %vm225_vm15, %v221_v50 }
 0x1a9   :  { %v212_v51 = vld [vmem:[#allocation2 + $0x18] sm:$0xff] }
 0x1aa   :  { %v210_v52 = vld [vmem:[#allocation2 + $0x8] sm:$0xff]  ;;  %v220_v53 = vadd.f32 %v261_v39, %v212_v51 }
 0x1ab   :  { %v218_v54 = vadd.f32 %v261_v39, %v210_v52 }
 0x1ac   :  { %v224_v55 = vpack.c.bf16 %v220_v53, %v220_v53 }
 0x1ad   :  { %v222_v56 = vpack.c.bf16 %v218_v54, %v218_v54 }
 0x1ae   :  { %229 = vst.msk [vmem:[%s380_s5 + $0xc] sm:$0xf] %vm225_vm15, %v224_v55 }
 0x1af   :  { %227 = vst.msk [vmem:[%s380_s5 + $0x4] sm:$0xf] %vm225_vm15, %v222_v56 }

// kernel: medsam_ibot_forward.27
= control target key start
LH: loop header
LB: loop body
LE: loop exit
PB: predicated region body
PF: predicated region fallthrough
CT: control target
= control target key end

     0   :  { %vm22_vm0 = vcmask 261120   ;;  %v170_v1 = vmov 0.0   ;;  %vm126_vm1 = vcmask 257024   ;;  %s243_s1 = inlined_call_operand.vmem [shape: bf16[32,32], index: 1, kind: input, shape index: {}]   ;;  %s244_s2 = inlined_call_operand.vmem [shape: f32[1,32], index: 2, kind: input, shape index: {}]   ;;  %s245_s0 = inlined_call_operand.vmem [shape: bf16[32,32], index: 0, kind: input, shape index: {}]   ;;  %s246_s3 = inlined_call_operand.vmem [shape: bf16[32,32], index: 3, kind: input, shape index: {}]   ;;  %s247_s4 = inlined_call_operand.vmem [shape: bf16[32,32], index: 4, kind: output, shape index: {}]  }
   0x1   :  { %v156_v0 = vld [vmem:[%s243_s1 + $0x8] sm:$0xff]  ;;  %23 = vst.msk [vmem:[#allocation2] sm:$0xff] %vm22_vm0, %v170_v1  ;;  %v155_v2 = vld [vmem:[%s243_s1] sm:$0xff] }
   0x2   :  { %24 = vst.msk [vmem:[#allocation2 + $0x8] sm:$0xff] %vm22_vm0, %v170_v1  ;;  %74 = vmatpush.bf16.msra.mxu0 %v156_v0  ;;  %166 = vmatpush.bf16.msra.mxu1 %v156_v0  ;;  %v153_v3 = vld [vmem:[%s245_s0] sm:$0xff]  ;;  %v154_v4 = vld [vmem:[%s245_s0 + $0x8] sm:$0xff] }
   0x3   :  { %25 = vst.msk [vmem:[#allocation2 + $0x10] sm:$0xff] %vm22_vm0, %v170_v1  ;;  %v158_v11 = vld [vmem:[%s246_s3] sm:$0xff]   ;;  %v165_v15 = vld [vmem:[%s246_s3 + $0x8] sm:$0xff]  }
   0x4   :  { %26 = vst.msk [vmem:[#allocation2 + $0x18] sm:$0xff] %vm22_vm0, %v170_v1  ;;  %v169_v14 = vld [vmem:[%s244_s2] ss:$0 sm:$0xff]  ;;  %v159_v18 = vunpack.c.l.bf16 %v158_v11  ;;  %v163_v22 = vunpack.c.l.bf16 %v165_v15  ;;  %v160_v30 = vunpack.c.h.bf16 %v158_v11  ;;  %v164_v32 = vunpack.c.h.bf16 %v165_v15 }
   0x6   :  { %75 = vmatpush.bf16.msra.mxu0 %v155_v2  ;;  %167 = vmatpush.bf16.msra.mxu1 %v155_v2 }
   0x8   :  { %v31_v5 = vld [vmem:[#allocation2] sm:$0xff] }
   0x9   :  { %151 = vmatmul.msk.bf16.vlgmr.msra.gmra.mxu0 %vm22_vm0, %v153_v3  ;;  %152 = vmatmul.msk.bf16.vlgmr.msra.gmra.mxu1 %vm22_vm0, %v154_v4  ;;  %v32_v12 = vld [vmem:[#allocation2 + $0x8] sm:$0xff] }
   0xa   :  { %v33_v6 = vld [vmem:[#allocation2 + $0x10] sm:$0xff] }
   0xb   :  { %v34_v13 = vld [vmem:[#allocation2 + $0x18] sm:$0xff] }
  0x86   :  { %v77_v7 = vpop.f32.mrf.mxu0  ;;  %v82_v8 = vpop.f32.mrf.mxu1 }
  0x87   :  { %v87_v9 = vadd.f32 %v77_v7, %v31_v5  ;;  %v89_v10 = vadd.f32 %v82_v8, %v33_v6 }
  0x89   :  { %91 = vst.msk [vmem:[#allocation2] sm:$0xff] %vm22_vm0, %v87_v9 }
  0x8a   :  { %93 = vst.msk [vmem:[#allocation2 + $0x10] sm:$0xff] %vm22_vm0, %v89_v10 }
  0x8e   :  { %v79_v16 = vpop.f32.mrf.mxu0  ;;  %v84_v17 = vpop.f32.mrf.mxu1 }
  0x8f   :  { %v88_v19 = vadd.f32 %v79_v16, %v32_v12  ;;  %v90_v20 = vadd.f32 %v84_v17, %v34_v13 }
  0x90   :  { %v98_v21 = vld [vmem:[#allocation2] sm:$0xff] }
  0x91   :  { %v106_v23 = vadd.f32 %v169_v14, %v98_v21  ;;  %v100_v24 = vld [vmem:[#allocation2 + $0x10] sm:$0xff]  ;;  %92 = vst.msk [vmem:[#allocation2 + $0x8] sm:$0xff] %vm22_vm0, %v88_v19 }
  0x92   :  { %v108_v25 = vadd.f32 %v169_v14, %v100_v24  ;;  %94 = vst.msk [vmem:[#allocation2 + $0x18] sm:$0xff] %vm22_vm0, %v90_v20 }
  0x93   :  { %v118_v26 = vadd.f32 %v159_v18, %v106_v23 }
  0x94   :  { %v120_v27 = vadd.f32 %v163_v22, %v108_v25 }
  0x95   :  { %v122_v28 = vpack.c.bf16 %v118_v26, %v118_v26 }
  0x96   :  { %v124_v29 = vpack.c.bf16 %v120_v27, %v120_v27 }
  0x97   :  { %127 = vst.msk [vmem:[%s247_s4] sm:$0xf] %vm126_vm1, %v122_v28 }
  0x98   :  { %129 = vst.msk [vmem:[%s247_s4 + $0x8] sm:$0xf] %vm126_vm1, %v124_v29  ;;  %v99_v31 = vld [vmem:[#allocation2 + $0x8] sm:$0xff] }
  0x99   :  { %v107_v33 = vadd.f32 %v169_v14, %v99_v31  ;;  %v101_v34 = vld [vmem:[#allocation2 + $0x18] sm:$0xff] }
  0x9a   :  { %v109_v35 = vadd.f32 %v169_v14, %v101_v34 }
  0x9b   :  { %v119_v36 = vadd.f32 %v160_v30, %v107_v33 }
  0x9c   :  { %v121_v37 = vadd.f32 %v164_v32, %v109_v35 }
  0x9d   :  { %v123_v38 = vpack.c.bf16 %v119_v36, %v119_v36 }
  0x9e   :  { %v125_v39 = vpack.c.bf16 %v121_v37, %v121_v37 }
  0x9f   :  { %128 = vst.msk [vmem:[%s247_s4 + $0x4] sm:$0xf] %vm126_vm1, %v123_v38 }
  0xa0   :  { %130 = vst.msk [vmem:[%s247_s4 + $0xc] sm:$0xf] %vm126_vm1, %v125_v39 }

// kernel: medsam_ibot_forward.28
= control target key start
LH: loop header
LB: loop body
LE: loop exit
PB: predicated region body
PF: predicated region fallthrough
CT: control target
= control target key end

     0   :  { %vm37_vm0 = vcmask 261120   ;;  %v456_v10 = vmov 32.0   ;;  %s608_s0 = inlined_call_operand.vmem [shape: bf16[32,32], index: 0, kind: input, shape index: {}]   ;;  %s609_s2 = inlined_call_operand.vmem [shape: f32[1,32], index: 2, kind: input, shape index: {}]   ;;  %s610_s3 = inlined_call_operand.vmem [shape: f32[1,32], index: 3, kind: input, shape index: {}]   ;;  %s611_s4 = inlined_call_operand.vmem [shape: f32[1,128], index: 4, kind: input, shape index: {}]   ;;  %s612_s1 = inlined_call_operand.vmem [shape: bf16[32,128], index: 1, kind: input, shape index: {}]   ;;  %s613_s5 = inlined_call_operand.vmem [shape: bf16[32,128], index: 5, kind: output, shape index: {}]  }
   0x1   :  { %v421_v0 = vld [vmem:[%s608_s0 + $0x8] sm:$0xff]   ;;  %v404_v1 = vld [vmem:[%s608_s0] sm:$0xff]   ;;  %430 = vrcp.f32 %v456_v10 }
   0x2   :  { %v409_v2 = vunpack.c.l.bf16 %v421_v0  ;;  %v405_v3 = vunpack.c.l.bf16 %v404_v1  ;;  %v410_v6 = vunpack.c.h.bf16 %v421_v0  ;;  %v406_v7 = vunpack.c.h.bf16 %v404_v1  ;;  %v402_v37 = vld [vmem:[%s612_s1 + $0x8] sm:$0xff]  ;;  %v401_v42 = vld [vmem:[%s612_s1] sm:$0xff] }
   0x3   :  { %183 = vmatpush.bf16.msra.mxu0 %v402_v37  ;;  %423 = vmatpush.bf16.msra.mxu1 %v402_v37 }
   0x4   :  { %v44_v4 = vsel %vm37_vm0, %v409_v2, 0.0  ;;  %v38_v5 = vsel %vm37_vm0, %v405_v3, 0.0  ;;  %v47_v8 = vsel %vm37_vm0, %v410_v6, 0.0  ;;  %v41_v9 = vsel %vm37_vm0, %v406_v7, 0.0 }
   0x5   :  { %45 = vadd.xlane.f32.xlu1 %v44_v4  ;;  %39 = vadd.xlane.f32.xlu0 %v38_v5 }
   0x7   :  { %v431_v11 = vpop.eup %430  ;;  %184 = vmatpush.bf16.msra.mxu0 %v401_v42  ;;  %424 = vmatpush.bf16.msra.mxu1 %v401_v42 }
   0x8   :  { %v51_v12 = vmul.f32 32.0, %v431_v11  ;;  %vm55_vm1 = vweird.f32 %v431_v11 }
   0xa   :  { %v52_v13 = vsub.f32 1.0, %v51_v12  ;;  %v427_v12 = vld [vmem:[%s609_s2] ss:$0 sm:$0xff] }
   0xc   :  { %v53_v14 = vmul.f32 %v431_v11, %v52_v13 }
   0xd   :  { %48 = vadd.xlane.f32.xlu1 %v47_v8  ;;  %42 = vadd.xlane.f32.xlu0 %v41_v9 }
   0xe   :  { %v54_v15 = vadd.f32 %v431_v11, %v53_v14 }
  0x10   :  { %v56_v16 = vsel %vm55_vm1, %v431_v11, %v54_v15 }
  0x78   :  { %v46_v17 = vpop.xlane.xlu1 %45  ;;  %v40_v18 = vpop.xlane.xlu0 %39 }
  0x79   :  { %v59_v19 = vmul.f32 %v56_v16, %v46_v17  ;;  %v57_v20 = vmul.f32 %v56_v16, %v40_v18 }
  0x7b   :  { %v498_v21 = vsub.f32 %v409_v2, %v59_v19  ;;  %v500_v22 = vsub.f32 %v405_v3, %v57_v20  ;;  %v428_v19 = vld [vmem:[%s610_s3] ss:$0 sm:$0xff] }
  0x7d   :  { %v67_v23 = vmul.f32 %v498_v21, %v498_v21  ;;  %v65_v24 = vmul.f32 %v500_v22, %v500_v22 }
  0x7f   :  { %v75_v25 = vsel %vm37_vm0, %v67_v23, 0.0  ;;  %v69_v26 = vsel %vm37_vm0, %v65_v24, 0.0 }
  0x80   :  { %v49_v27 = vpop.xlane.xlu1 %48  ;;  %76 = vadd.xlane.f32.xlu0 %v75_v25  ;;  %70 = vadd.xlane.f32.xlu2 %v69_v26  ;;  %v43_v28 = vpop.xlane.xlu0 %42 }
  0x81   :  { %v60_v29 = vmul.f32 %v56_v16, %v49_v27  ;;  %v58_v30 = vmul.f32 %v56_v16, %v43_v28 }
  0x83   :  { %v508_v31 = vsub.f32 %v410_v6, %v60_v29  ;;  %v510_v32 = vsub.f32 %v406_v7, %v58_v30 }
  0x85   :  { %v68_v33 = vmul.f32 %v508_v31, %v508_v31  ;;  %v66_v34 = vmul.f32 %v510_v32, %v510_v32 }
  0x87   :  { %v78_v35 = vsel %vm37_vm0, %v68_v33, 0.0  ;;  %v72_v36 = vsel %vm37_vm0, %v66_v34, 0.0 }
  0x88   :  { %79 = vadd.xlane.f32.xlu1 %v78_v35  ;;  %73 = vadd.xlane.f32.xlu2 %v72_v36 }
  0xf3   :  { %v71_v38 = vpop.xlane.xlu2 %70  ;;  %v77_v39 = vpop.xlane.xlu0 %76 }
  0xf4   :  { %v81_v40 = vmul.f32 %v71_v38, %v56_v16  ;;  %v83_v41 = vmul.f32 %v77_v39, %v56_v16 }
  0xf6   :  { %v85_v43 = vadd.f32 1e-06, %v81_v40  ;;  %v87_v44 = vadd.f32 1e-06, %v83_v41 }
  0xf8   :  { %432 = vrsqrt.f32 %v85_v43  ;;  %vm115_vm4 = vweird.f32 %v87_v44  ;;  %vm95_vm5 = vweird.f32 %v85_v43 }
  0xf9   :  { %434 = vrsqrt.f32 %v87_v44 }
  0xfb   :  { %v80_v45 = vpop.xlane.xlu1 %79  ;;  %v74_v46 = vpop.xlane.xlu2 %73 }
  0xfc   :  { %v84_v47 = vmul.f32 %v80_v45, %v56_v16  ;;  %v82_v48 = vmul.f32 %v74_v46, %v56_v16 }
  0xfe   :  { %v433_v49 = vpop.eup %432  ;;  %v88_v50 = vadd.f32 1e-06, %v84_v47  ;;  %v86_v51 = vadd.f32 1e-06, %v82_v48 }
  0xff   :  { %v435_v52 = vpop.eup %434  ;;  %v90_v53 = vmul.f32 %v433_v49, %v85_v43  ;;  %vm96_vm3 = vweird.f32 %v433_v49 }
 0x100   :  { %v110_v54 = vmul.f32 %v435_v52, %v87_v44  ;;  %436 = vrsqrt.f32 %v88_v50  ;;  %vm116_vm2 = vweird.f32 %v435_v52  ;;  %vm97_vm7 = vmor %vm95_vm5, %vm96_vm3  ;;  %vm125_vm10 = vweird.f32 %v88_v50 }
 0x101   :  { %v91_v55 = vmul.f32 %v433_v49, %v90_v53  ;;  %438 = vrsqrt.f32 %v86_v51  ;;  %vm117_vm6 = vmor %vm115_vm4, %vm116_vm2  ;;  %vm105_vm12 = vweird.f32 %v86_v51 }
 0x102   :  { %v111_v56 = vmul.f32 %v435_v52, %v110_v54 }
 0x103   :  { %v92_v57 = vmul.f32 0.5, %v91_v55 }
 0x104   :  { %v112_v58 = vmul.f32 0.5, %v111_v56 }
 0x105   :  { %v93_v59 = vsub.f32 1.5, %v92_v57 }
 0x106   :  { %v437_v60 = vpop.eup %436  ;;  %v113_v61 = vsub.f32 1.5, %v112_v58 }
 0x107   :  { %v439_v62 = vpop.eup %438  ;;  %v120_v63 = vmul.f32 %v437_v60, %v88_v50  ;;  %v94_v0 = vmul.f32 %v433_v49, %v93_v59  ;;  %vm126_vm8 = vweird.f32 %v437_v60 }
 0x108   :  { %v114_v1 = vmul.f32 %v435_v52, %v113_v61  ;;  %v100_v2 = vmul.f32 %v439_v62, %v86_v51  ;;  %vm106_vm9 = vweird.f32 %v439_v62  ;;  %vm127_vm11 = vmor %vm125_vm10, %vm126_vm8 }
 0x109   :  { %v121_v3 = vmul.f32 %v437_v60, %v120_v63  ;;  %v98_v7 = vsel %vm97_vm7, %v433_v49, %v94_v0  ;;  %vm107_vm13 = vmor %vm105_vm12, %vm106_vm9 }
 0x10a   :  { %v101_v4 = vmul.f32 %v439_v62, %v100_v2  ;;  %v118_v5 = vsel %vm117_vm6, %v435_v52, %v114_v1  ;;  %v129_v13 = vmul.f32 %v98_v7, %v500_v22 }
 0x10b   :  { %v122_v6 = vmul.f32 0.5, %v121_v3  ;;  %v131_v10 = vmul.f32 %v118_v5, %v498_v21 }
 0x10c   :  { %v102_v8 = vmul.f32 0.5, %v101_v4  ;;  %v137_v23 = vmul.f32 %v427_v12, %v129_v13 }
 0x10d   :  { %v123_v9 = vsub.f32 1.5, %v122_v6  ;;  %v139_v20 = vmul.f32 %v427_v12, %v131_v10 }
 0x10e   :  { %v103_v11 = vsub.f32 1.5, %v102_v8  ;;  %v145_v27 = vadd.f32 %v428_v19, %v137_v23 }
 0x10f   :  { %v124_v14 = vmul.f32 %v437_v60, %v123_v9  ;;  %v147_v25 = vadd.f32 %v428_v19, %v139_v20 }
 0x110   :  { %v104_v15 = vmul.f32 %v439_v62, %v103_v11 }
 0x111   :  { %v128_v16 = vsel %vm127_vm11, %v437_v60, %v124_v14 }
 0x112   :  { %v132_v17 = vmul.f32 %v128_v16, %v508_v31  ;;  %v108_v18 = vsel %vm107_vm13, %v439_v62, %v104_v15  ;;  %v429_v31 = vld [vmem:[%s611_s4] ss:$0 sm:$0xff] }
 0x113   :  { %v130_v21 = vmul.f32 %v108_v18, %v510_v32 }
 0x114   :  { %v140_v24 = vmul.f32 %v427_v12, %v132_v17 }
 0x115   :  { %v138_v22 = vmul.f32 %v427_v12, %v130_v21 }
 0x116   :  { %v148_v26 = vadd.f32 %v428_v19, %v140_v24 }
 0x117   :  { %v146_v28 = vadd.f32 %v428_v19, %v138_v22 }
 0x118   :  { %v150_v29 = vpack.c.bf16 %v148_v26, %v147_v25 }
 0x119   :  { %v149_v30 = vpack.c.bf16 %v146_v28, %v145_v27 }
 0x11a   :  { %400 = vmatmul.msk.bf16.vlgmr.msra.gmra.mxu1 %vm37_vm0, %v150_v29 }
 0x11b   :  { %399 = vmatmul.msk.bf16.vlgmr.msra.gmra.mxu0 %vm37_vm0, %v149_v30 }
 0x197   :  { %v191_v33 = vpop.f32.mrf.mxu1 }
 0x198   :  { %v186_v34 = vpop.f32.mrf.mxu0  ;;  %v539_v32 = vadd.f32 %v429_v31, %v191_v33 }
 0x199   :  { %v541_v35 = vadd.f32 %v429_v31, %v186_v34 }
 0x19a   :  { %v544_v36 = vmul.f32 0.70710677, %v539_v32 }
 0x19b   :  { %v547_v37 = vmul.f32 0.70710677, %v541_v35 }
 0x19c   :  { %v237_v38 = vand.u32 2147483647, %v544_v36 }
 0x19d   :  { %v235_v39 = vand.u32 2147483647, %v547_v37 }
 0x19e   :  { %v241_v40 = vmul.f32 0.3275911, %v237_v38  ;;  %v345_v60 = vsub.f32 0.0, %v237_v38 }
 0x19f   :  { %v239_v41 = vmul.f32 0.3275911, %v235_v39  ;;  %v193_v42 = vpop.f32.mrf.mxu1  ;;  %v343_v58 = vsub.f32 0.0, %v235_v39 }
 0x1a0   :  { %v245_v43 = vadd.f32 1.0, %v241_v40  ;;  %v188_v44 = vpop.f32.mrf.mxu0  ;;  %v553_v47 = vadd.f32 %v429_v31, %v193_v42  ;;  %v349_v14 = vmul.f32 %v345_v60, %v237_v38 }
 0x1a1   :  { %v243_v45 = vadd.f32 1.0, %v239_v41  ;;  %v551_v46 = vadd.f32 %v429_v31, %v188_v44  ;;  %v347_v10 = vmul.f32 %v343_v58, %v235_v39 }
 0x1a2   :  { %440 = vrcp.f32 %v245_v43  ;;  %v559_v49 = vmul.f32 0.70710677, %v553_v47  ;;  %v286_v63 = vand.u32 2147483647, %v245_v43  ;;  %v288_v0 = vand.u32 2147483648, %v245_v43 }
 0x1a3   :  { %442 = vrcp.f32 %v243_v45  ;;  %v556_v48 = vmul.f32 0.70710677, %v551_v46  ;;  %v258_v2 = vand.u32 2147483648, %v243_v45  ;;  %v256_v5 = vand.u32 2147483647, %v243_v45 }
 0x1a4   :  { %v565_v52 = vand.u32 2147483647, %v559_v49  ;;  %vm282_vm0 = vweird.f32 %v245_v43  ;;  %vm252_vm1 = vweird.f32 %v243_v45  ;;  %v289_v8 = vor.u32 1.1754944e-38, %v288_v0 }
 0x1a5   :  { %v562_v50 = vand.u32 2147483647, %v556_v48  ;;  %v259_v9 = vor.u32 1.1754944e-38, %v258_v2  ;;  %vm287_vm4 = vcmp.eq.f32.partialorder %v286_v63, 8.507059e+37  ;;  %vm257_vm5 = vcmp.eq.f32.partialorder %v256_v5, 8.507059e+37 }
 0x1a6   :  { %v242_v57 = vmul.f32 0.3275911, %v565_v52  ;;  %v351_v21 = vmul.f32 1.442695, %v347_v10  ;;  %v355_v25 = vmul.f32 1.442695, %v349_v14 }
 0x1a7   :  { %v240_v55 = vmul.f32 0.3275911, %v562_v50 }
 0x1a8   :  { %v441_v51 = vpop.eup %440  ;;  %v571_v1 = vadd.f32 1.0, %v242_v57 }
 0x1a9   :  { %v443_v53 = vpop.eup %442  ;;  %v278_v54 = vmul.f32 %v441_v51, %v245_v43  ;;  %v569_v61 = vadd.f32 1.0, %v240_v55  ;;  %vm283_vm14 = vweird.f32 %v441_v51  ;;  %v344_v43 = vsub.f32 0.0, %v562_v50 }
 0x1aa   :  { %v248_v56 = vmul.f32 %v443_v53, %v243_v45  ;;  %vm253_vm15 = vweird.f32 %v443_v53  ;;  %vm284_vm2 = vmor %vm282_vm0, %vm283_vm14  ;;  %v303_v34 = vand.u32 2147483648, %v571_v1  ;;  %v301_v40 = vand.u32 2147483647, %v571_v1 }
 0x1ab   :  { %v279_v59 = vsub.f32 1.0, %v278_v54  ;;  %444 = vrcp.f32 %v569_v61  ;;  %vm254_vm3 = vmor %vm252_vm1, %vm253_vm15  ;;  %v271_v28 = vand.u32 2147483647, %v569_v61  ;;  %v273_v29 = vand.u32 2147483648, %v569_v61 }
 0x1ac   :  { %v249_v62 = vsub.f32 1.0, %v248_v56  ;;  %446 = vrcp.f32 %v571_v1  ;;  %vm267_vm8 = vweird.f32 %v569_v61  ;;  %vm297_vm10 = vweird.f32 %v571_v1 }
 0x1ad   :  { %v280_v3 = vmul.f32 %v441_v51, %v279_v59  ;;  %v274_v45 = vor.u32 1.1754944e-38, %v273_v29  ;;  %vm272_vm11 = vcmp.eq.f32.partialorder %v271_v28, 8.507059e+37  ;;  %v304_v55 = vor.u32 1.1754944e-38, %v303_v34 }
 0x1ae   :  { %v250_v4 = vmul.f32 %v443_v53, %v249_v62  ;;  %vm302_vm13 = vcmp.eq.f32.partialorder %v301_v40, 8.507059e+37  ;;  %v346_v62 = vsub.f32 0.0, %v565_v52  ;;  %448 = vpow2.f32 %v351_v21 }
 0x1af   :  { %v281_v6 = vadd.f32 %v441_v51, %v280_v3  ;;  %450 = vpow2.f32 %v355_v25  ;;  %vm227_vm14 = vcmp.lt.f32.partialorder %v547_v37, 0.0  ;;  %vm229_vm15 = vcmp.lt.f32.partialorder %v544_v36, 0.0 }
 0x1b0   :  { %v251_v7 = vadd.f32 %v443_v53, %v250_v4  ;;  %v348_v4 = vmul.f32 %v344_v43, %v562_v50  ;;  %vm228_vm0 = vcmp.lt.f32.partialorder %v556_v48, 0.0  ;;  %vm230_vm1 = vcmp.lt.f32.partialorder %v559_v49, 0.0 }
 0x1b1   :  { %v285_v11 = vsel %vm284_vm2, %v441_v51, %v281_v6  ;;  %v445_v15 = vpop.eup %444  ;;  %v221_v48 = vmul.f32 0.5, %v539_v32 }
 0x1b2   :  { %v255_v12 = vsel %vm254_vm3, %v443_v53, %v251_v7  ;;  %v575_v13 = vsel %vm287_vm4, %v289_v8, %v285_v11  ;;  %v447_v18 = vpop.eup %446  ;;  %v263_v20 = vmul.f32 %v445_v15, %v569_v61  ;;  %vm268_vm6 = vweird.f32 %v445_v15 }
 0x1b3   :  { %v260_v16 = vsel %vm257_vm5, %v259_v9, %v255_v12  ;;  %v309_v17 = vmul.f32 1.0614054, %v575_v13  ;;  %v293_v24 = vmul.f32 %v447_v18, %v571_v1  ;;  %vm298_vm7 = vweird.f32 %v447_v18  ;;  %vm269_vm9 = vmor %vm267_vm8, %vm268_vm6 }
 0x1b4   :  { %v307_v19 = vmul.f32 1.0614054, %v260_v16  ;;  %v264_v26 = vsub.f32 1.0, %v263_v20  ;;  %vm299_vm12 = vmor %vm297_vm10, %vm298_vm7  ;;  %v350_v8 = vmul.f32 %v346_v62, %v565_v52  ;;  %v353_v14 = vmul.f32 1.442695, %v348_v4 }
 0x1b5   :  { %v313_v23 = vadd.f32 -1.4531521, %v309_v17  ;;  %v294_v30 = vsub.f32 1.0, %v293_v24 }
 0x1b6   :  { %v311_v22 = vadd.f32 -1.4531521, %v307_v19  ;;  %v265_v33 = vmul.f32 %v445_v15, %v264_v26  ;;  %v449_v19 = vpop.eup %448  ;;  %452 = vpow2.f32 %v353_v14 }
 0x1b7   :  { %v317_v27 = vmul.f32 %v313_v23, %v575_v13  ;;  %v295_v39 = vmul.f32 %v447_v18, %v294_v30  ;;  %v451_v21 = vpop.eup %450  ;;  %v457_v30 = vmov 1.0  }
 0x1b8   :  { %v315_v31 = vmul.f32 %v311_v22, %v260_v16  ;;  %v266_v42 = vadd.f32 %v445_v15, %v265_v33  ;;  %v232_v43 = vsel %vm228_vm0, -1.0, %v457_v30 }
 0x1b9   :  { %v321_v38 = vadd.f32 1.4214138, %v317_v27  ;;  %v296_v51 = vadd.f32 %v447_v18, %v295_v39  ;;  %v233_v39 = vsel %vm229_vm15, -1.0, %v457_v30 }
 0x1ba   :  { %v319_v41 = vadd.f32 1.4214138, %v315_v31  ;;  %v270_v54 = vsel %vm269_vm9, %v445_v15, %v266_v42  ;;  %v231_v31 = vsel %vm227_vm14, -1.0, %v457_v30 }
 0x1bb   :  { %v325_v44 = vmul.f32 %v321_v38, %v575_v13  ;;  %v275_v57 = vsel %vm272_vm11, %v274_v45, %v270_v54  ;;  %v300_v58 = vsel %vm299_vm12, %v447_v18, %v296_v51  ;;  %v357_v18 = vmul.f32 1.442695, %v350_v8 }
 0x1bc   :  { %v323_v53 = vmul.f32 %v319_v41, %v260_v16  ;;  %v308_v60 = vmul.f32 1.0614054, %v275_v57  ;;  %v305_v61 = vsel %vm302_vm13, %v304_v55, %v300_v58  ;;  %v453_v29 = vpop.eup %452  ;;  %v234_v51 = vsel %vm230_vm1, -1.0, %v457_v30 }
 0x1bd   :  { %v329_v56 = vadd.f32 -0.28449672, %v325_v44  ;;  %v310_v0 = vmul.f32 1.0614054, %v305_v61  ;;  %454 = vpow2.f32 %v357_v18  ;;  %v219_v55 = vmul.f32 0.5, %v541_v35 }
 0x1be   :  { %v327_v59 = vadd.f32 -0.28449672, %v323_v53  ;;  %v312_v3 = vadd.f32 -1.4531521, %v308_v60  ;;  %v222_v58 = vmul.f32 0.5, %v553_v47 }
 0x1bf   :  { %v333_v63 = vmul.f32 %v329_v56, %v575_v13  ;;  %v314_v5 = vadd.f32 -1.4531521, %v310_v0  ;;  %v220_v56 = vmul.f32 0.5, %v551_v46 }
 0x1c0   :  { %v331_v2 = vmul.f32 %v327_v59, %v260_v16  ;;  %v316_v7 = vmul.f32 %v312_v3, %v275_v57 }
 0x1c1   :  { %v337_v1 = vadd.f32 0.2548296, %v333_v63  ;;  %v318_v9 = vmul.f32 %v314_v5, %v305_v61 }
 0x1c2   :  { %v335_v6 = vadd.f32 0.2548296, %v331_v2  ;;  %v320_v11 = vadd.f32 1.4214138, %v316_v7 }
 0x1c3   :  { %v341_v12 = vmul.f32 %v337_v1, %v575_v13  ;;  %v322_v15 = vadd.f32 1.4214138, %v318_v9  ;;  %v455_v34 = vpop.eup %454 }
 0x1c4   :  { %v339_v10 = vmul.f32 %v335_v6, %v260_v16  ;;  %v324_v17 = vmul.f32 %v320_v11, %v275_v57 }
 0x1c5   :  { %v326_v20 = vmul.f32 %v322_v15, %v305_v61  ;;  %v361_v24 = vmul.f32 %v451_v21, %v341_v12 }
 0x1c6   :  { %v359_v23 = vmul.f32 %v449_v19, %v339_v10  ;;  %v328_v50 = vadd.f32 -0.28449672, %v324_v17 }
 0x1c7   :  { %v330_v22 = vadd.f32 -0.28449672, %v326_v20  ;;  %v365_v13 = vsub.f32 1.0, %v361_v24 }
 0x1c8   :  { %v332_v25 = vmul.f32 %v328_v50, %v275_v57  ;;  %v363_v16 = vsub.f32 1.0, %v359_v23 }
 0x1c9   :  { %v334_v52 = vmul.f32 %v330_v22, %v305_v61  ;;  %v369_v41 = vmul.f32 %v365_v13, %v233_v39 }
 0x1ca   :  { %v336_v26 = vadd.f32 0.2548296, %v332_v25  ;;  %v367_v38 = vmul.f32 %v363_v16, %v231_v31 }
 0x1cb   :  { %v338_v27 = vadd.f32 0.2548296, %v334_v52  ;;  %v373_v53 = vadd.f32 1.0, %v369_v41 }
 0x1cc   :  { %v340_v28 = vmul.f32 %v336_v26, %v275_v57  ;;  %v371_v44 = vadd.f32 1.0, %v367_v38 }
 0x1cd   :  { %v342_v33 = vmul.f32 %v338_v27, %v305_v61  ;;  %v377_v61 = vmul.f32 %v373_v53, %v221_v48 }
 0x1ce   :  { %v360_v40 = vmul.f32 %v453_v29, %v340_v28  ;;  %v375_v49 = vmul.f32 %v371_v44, %v219_v55 }
 0x1cf   :  { %v362_v37 = vmul.f32 %v455_v34, %v342_v33 }
 0x1d0   :  { %v364_v42 = vsub.f32 1.0, %v360_v40 }
 0x1d1   :  { %v366_v36 = vsub.f32 1.0, %v362_v37 }
 0x1d2   :  { %v368_v45 = vmul.f32 %v364_v42, %v232_v43 }
 0x1d3   :  { %v370_v54 = vmul.f32 %v366_v36, %v234_v51 }
 0x1d4   :  { %v372_v57 = vadd.f32 1.0, %v368_v45 }
 0x1d5   :  { %v374_v59 = vadd.f32 1.0, %v370_v54 }
 0x1d6   :  { %v376_v60 = vmul.f32 %v372_v57, %v220_v56 }
 0x1d7   :  { %v378_v62 = vmul.f32 %v374_v59, %v222_v58 }
 0x1d8   :  { %v414_v63 = vpack.c.bf16 %v376_v60, %v375_v49 }
 0x1d9   :  { %v419_v0 = vpack.c.bf16 %v378_v62, %v377_v61 }
 0x1da   :  { %415 = vst [vmem:[%s613_s5] sm:$0xff] %v414_v63  }
 0x1db   :  { %422 = vst [vmem:[%s613_s5 + $0x8] sm:$0xff] %v419_v0  }

// kernel: medsam_ibot_forward.29
= control target key start
LH: loop header
LB: loop body
LE: loop exit
PB: predicated region body
PF: predicated region fallthrough
CT: control target
= control target key end

     0   :  { %vm21_vm0 = vcmask 261120   ;;  %v247_v2 = vmov 0.0   ;;  %vm169_vm1 = vcmask 257024   ;;  %s336_s1 = inlined_call_operand.vmem [shape: bf16[128,32], index: 1, kind: input, shape index: {}]   ;;  %s337_s2 = inlined_call_operand.vmem [shape: f32[1,32], index: 2, kind: input, shape index: {}]   ;;  %s338_s0 = inlined_call_operand.vmem [shape: bf16[32,128], index: 0, kind: input, shape index: {}]   ;;  %s339_s3 = inlined_call_operand.vmem [shape: bf16[32,32], index: 3, kind: input, shape index: {}]   ;;  %s340_s4 = inlined_call_operand.vmem [shape: bf16[32,32], index: 4, kind: output, shape index: {}]  }
   0x1   :  { %v227_v0 = vld [vmem:[%s336_s1 + $0x38] sm:$0xff]  ;;  %v226_v1 = vld [vmem:[%s336_s1 + $0x30] sm:$0xff]  ;;  %22 = vst.msk [vmem:[#allocation2] sm:$0xff] %vm21_vm0, %v247_v2  ;;  %v225_v3 = vld [vmem:[%s336_s1 + $0x28] sm:$0xff] }
   0x2   :  { %110 = vmatpush.bf16.msra.mxu0 %v227_v0  ;;  %237 = vmatpush.bf16.msra.mxu1 %v227_v0  ;;  %23 = vst.msk [vmem:[#allocation2 + $0x8] sm:$0xff] %vm21_vm0, %v247_v2  ;;  %v224_v4 = vld [vmem:[%s336_s1 + $0x20] sm:$0xff]  ;;  %v223_v5 = vld [vmem:[%s336_s1 + $0x18] sm:$0xff]  ;;  %v222_v6 = vld [vmem:[%s336_s1 + $0x10] sm:$0xff] }
   0x3   :  { %24 = vst.msk [vmem:[#allocation2 + $0x10] sm:$0xff] %vm21_vm0, %v247_v2  ;;  %v221_v7 = vld [vmem:[%s336_s1 + $0x8] sm:$0xff]  ;;  %v220_v8 = vld [vmem:[%s336_s1] sm:$0xff] }
   0x4   :  { %25 = vst.msk [vmem:[#allocation2 + $0x18] sm:$0xff] %vm21_vm0, %v247_v2  ;;  %v218_v9 = vld [vmem:[%s338_s0] sm:$0xff]  ;;  %v219_v10 = vld [vmem:[%s338_s0 + $0x8] sm:$0xff] }
   0x5   :  { %v229_v17 = vld [vmem:[%s339_s3] sm:$0xff]   ;;  %v236_v21 = vld [vmem:[%s339_s3 + $0x8] sm:$0xff]  }
   0x6   :  { %111 = vmatpush.bf16.msra.mxu0 %v226_v1  ;;  %238 = vmatpush.bf16.msra.mxu1 %v226_v1  ;;  %v246_v20 = vld [vmem:[%s337_s2] ss:$0 sm:$0xff]  ;;  %v230_v24 = vunpack.c.l.bf16 %v229_v17  ;;  %v234_v28 = vunpack.c.l.bf16 %v236_v21  ;;  %v231_v36 = vunpack.c.h.bf16 %v229_v17  ;;  %v235_v38 = vunpack.c.h.bf16 %v236_v21 }
   0x8   :  { %v30_v11 = vld [vmem:[#allocation2] sm:$0xff] }
   0x9   :  { %v31_v18 = vld [vmem:[#allocation2 + $0x8] sm:$0xff] }
   0xa   :  { %112 = vmatpush.bf16.msra.mxu0 %v225_v3  ;;  %239 = vmatpush.bf16.msra.mxu1 %v225_v3  ;;  %v32_v12 = vld [vmem:[#allocation2 + $0x10] sm:$0xff] }
   0xb   :  { %v33_v19 = vld [vmem:[#allocation2 + $0x18] sm:$0xff] }
   0xe   :  { %113 = vmatpush.bf16.msra.mxu0 %v224_v4  ;;  %240 = vmatpush.bf16.msra.mxu1 %v224_v4 }
  0x12   :  { %114 = vmatpush.bf16.msra.mxu0 %v223_v5  ;;  %241 = vmatpush.bf16.msra.mxu1 %v223_v5 }
  0x16   :  { %115 = vmatpush.bf16.msra.mxu0 %v222_v6  ;;  %242 = vmatpush.bf16.msra.mxu1 %v222_v6 }
  0x1a   :  { %116 = vmatpush.bf16.msra.mxu0 %v221_v7  ;;  %243 = vmatpush.bf16.msra.mxu1 %v221_v7 }
  0x1e   :  { %117 = vmatpush.bf16.msra.mxu0 %v220_v8  ;;  %244 = vmatpush.bf16.msra.mxu1 %v220_v8 }
  0x21   :  { %118 = vmatmul.bf16.vlgmr.msra.gmra.mxu0 %v218_v9  ;;  %123 = vmatmul.bf16.vlgmr.msra.gmra.mxu1 %v219_v10 }
  0x9e   :  { %v119_v13 = vpop.f32.mrf.mxu0  ;;  %v124_v14 = vpop.f32.mrf.mxu1 }
  0x9f   :  { %v129_v15 = vadd.f32 %v119_v13, %v30_v11  ;;  %v131_v16 = vadd.f32 %v124_v14, %v32_v12 }
  0xa1   :  { %134 = vst.msk [vmem:[#allocation2] sm:$0xff] %vm21_vm0, %v129_v15 }
  0xa2   :  { %136 = vst.msk [vmem:[#allocation2 + $0x10] sm:$0xff] %vm21_vm0, %v131_v16 }
  0xa6   :  { %v121_v22 = vpop.f32.mrf.mxu0  ;;  %v126_v23 = vpop.f32.mrf.mxu1 }
  0xa7   :  { %v130_v25 = vadd.f32 %v121_v22, %v31_v18  ;;  %v132_v26 = vadd.f32 %v126_v23, %v33_v19 }
  0xa8   :  { %v141_v27 = vld [vmem:[#allocation2] sm:$0xff] }
  0xa9   :  { %v149_v29 = vadd.f32 %v246_v20, %v141_v27  ;;  %v143_v30 = vld [vmem:[#allocation2 + $0x10] sm:$0xff]  ;;  %135 = vst.msk [vmem:[#allocation2 + $0x8] sm:$0xff] %vm21_vm0, %v130_v25 }
  0xaa   :  { %v151_v31 = vadd.f32 %v246_v20, %v143_v30  ;;  %137 = vst.msk [vmem:[#allocation2 + $0x18] sm:$0xff] %vm21_vm0, %v132_v26 }
  0xab   :  { %v161_v32 = vadd.f32 %v230_v24, %v149_v29 }
  0xac   :  { %v163_v33 = vadd.f32 %v234_v28, %v151_v31 }
  0xad   :  { %v165_v34 = vpack.c.bf16 %v161_v32, %v161_v32 }
  0xae   :  { %v167_v35 = vpack.c.bf16 %v163_v33, %v163_v33 }
  0xaf   :  { %170 = vst.msk [vmem:[%s340_s4] sm:$0xf] %vm169_vm1, %v165_v34 }
  0xb0   :  { %172 = vst.msk [vmem:[%s340_s4 + $0x8] sm:$0xf] %vm169_vm1, %v167_v35  ;;  %v142_v37 = vld [vmem:[#allocation2 + $0x8] sm:$0xff] }
  0xb1   :  { %v150_v39 = vadd.f32 %v246_v20, %v142_v37  ;;  %v144_v40 = vld [vmem:[#allocation2 + $0x18] sm:$0xff] }
  0xb2   :  { %v152_v41 = vadd.f32 %v246_v20, %v144_v40 }
  0xb3   :  { %v162_v42 = vadd.f32 %v231_v36, %v150_v39 }
  0xb4   :  { %v164_v43 = vadd.f32 %v235_v38, %v152_v41 }
  0xb5   :  { %v166_v44 = vpack.c.bf16 %v162_v42, %v162_v42 }
  0xb6   :  { %v168_v45 = vpack.c.bf16 %v164_v43, %v164_v43 }
  0xb7   :  { %171 = vst.msk [vmem:[%s340_s4 + $0x4] sm:$0xf] %vm169_vm1, %v166_v44 }
  0xb8   :  { %173 = vst.msk [vmem:[%s340_s4 + $0xc] sm:$0xf] %vm169_vm1, %v168_v45 }

// kernel: medsam_ibot_forward.30
= control target key start
LH: loop header
LB: loop body
LE: loop exit
PB: predicated region body
PF: predicated region fallthrough
CT: control target
= control target key end

     0   :  { %vm19_vm0 = vcmask 785408   ;;  %v172_v1 = vmov 0.0   ;;  %vm65_vm1 = vcmask 261120   ;;  %vm24_vm2 = vcmask 779264   ;;  %s240_s1 = inlined_call_operand.vmem [shape: bf16[32,96], index: 1, kind: input, shape index: {}]   ;;  %s241_s0 = inlined_call_operand.vmem [shape: bf16[34,32], index: 0, kind: input, shape index: {}]   ;;  %s242_s2 = inlined_call_operand.vmem [shape: f32[1,96], index: 2, kind: input, shape index: {}]   ;;  %s243_s3 = inlined_call_operand.vmem [shape: bf16[34,96], index: 3, kind: output, shape index: {}]  }
   0x1   :  { %v165_v0 = vld [vmem:[%s240_s1 + $0x8] sm:$0xff]  ;;  %20 = vst.msk [vmem:[#allocation2] sm:$0xff] %vm19_vm0, %v172_v1  ;;  %v30_v2 = vld [vmem:[%s241_s0 + $0x10] sm:$0x1]  ;;  %v164_v3 = vld [vmem:[%s240_s1] sm:$0xff]  ;;  %vm132_vm3 = vcmask 781312  }
   0x2   :  { %21 = vst.msk [vmem:[#allocation2 + $0x8] sm:$0xff] %vm19_vm0, %v172_v1  ;;  %81 = vmatpush.bf16.msra.mxu0 %v165_v0  ;;  %166 = vmatpush.bf16.msra.mxu1 %v165_v0  ;;  %v49_v4 = vunpack.c.l.b16 %v30_v2  ;;  %v162_v5 = vld [vmem:[%s241_s0] sm:$0xff]  ;;  %v163_v6 = vld [vmem:[%s241_s0 + $0x8] sm:$0xff]  ;;  %vm137_vm4 = vcmask 778240  }
   0x3   :  { %22 = vst.msk [vmem:[#allocation2 + $0x10] sm:$0xff] %vm19_vm0, %v172_v1  ;;  %167 = vmatpush.bf16.msra.mxu2 %v165_v0  ;;  %v171_v17 = vld [vmem:[%s242_s2] ss:$0 sm:$0xff] }
   0x4   :  { %23 = vst.msk [vmem:[#allocation2 + $0x18] sm:$0xff] %vm19_vm0, %v172_v1  ;;  %v52_v7 = vpack.c.b16 %v49_v4, %v49_v4 }
   0x5   :  { %25 = vst.msk [vmem:[#allocation2 + $0x20] sm:$0x3] %vm24_vm2, %v172_v1 }
   0x6   :  { %82 = vmatpush.bf16.msra.mxu0 %v164_v3  ;;  %168 = vmatpush.bf16.msra.mxu1 %v164_v3 }
   0x7   :  { %169 = vmatpush.bf16.msra.mxu2 %v164_v3 }
   0x8   :  { %v31_v8 = vld [vmem:[#allocation2] sm:$0xff] }
   0x9   :  { %159 = vmatmul.msk.bf16.vlgmr.msra.gmra.mxu0 %vm65_vm1, %v162_v5  ;;  %160 = vmatmul.msk.bf16.vlgmr.msra.gmra.mxu1 %vm65_vm1, %v163_v6  ;;  %v32_v15 = vld [vmem:[#allocation2 + $0x8] sm:$0xff] }
   0xa   :  { %161 = vmatmul.msk.bf16.vlgmr.msra.gmra.mxu2 %vm65_vm1, %v52_v7  ;;  %v33_v9 = vld [vmem:[#allocation2 + $0x10] sm:$0xff] }
   0xb   :  { %v34_v16 = vld [vmem:[#allocation2 + $0x18] sm:$0xff] }
   0xc   :  { %v35_v14 = vld [vmem:[#allocation2 + $0x20] sm:$0x3] }
  0x86   :  { %v84_v10 = vpop.f32.mrf.mxu0  ;;  %v89_v11 = vpop.f32.mrf.mxu1 }
  0x87   :  { %v98_v12 = vadd.f32 %v84_v10, %v31_v8  ;;  %v100_v13 = vadd.f32 %v89_v11, %v33_v9 }
  0x89   :  { %104 = vst.msk [vmem:[#allocation2] sm:$0xff] %vm19_vm0, %v98_v12 }
  0x8a   :  { %106 = vst.msk [vmem:[#allocation2 + $0x10] sm:$0xff] %vm19_vm0, %v100_v13 }
  0x8d   :  { %v94_v18 = vpop.f32.mrf.mxu2 }
  0x8e   :  { %v102_v19 = vadd.f32 %v94_v18, %v35_v14  ;;  %v86_v20 = vpop.f32.mrf.mxu0  ;;  %v91_v21 = vpop.f32.mrf.mxu1 }
  0x8f   :  { %v99_v22 = vadd.f32 %v86_v20, %v32_v15  ;;  %v101_v23 = vadd.f32 %v91_v21, %v34_v16 }
  0x90   :  { %v113_v24 = vld [vmem:[#allocation2] sm:$0xff]  ;;  %109 = vst.msk [vmem:[#allocation2 + $0x20] sm:$0x3] %vm24_vm2, %v102_v19 }
  0x91   :  { %v122_v25 = vadd.f32 %v171_v17, %v113_v24  ;;  %v115_v26 = vld [vmem:[#allocation2 + $0x10] sm:$0xff]  ;;  %105 = vst.msk [vmem:[#allocation2 + $0x8] sm:$0xff] %vm19_vm0, %v99_v22 }
  0x92   :  { %v124_v27 = vadd.f32 %v171_v17, %v115_v26  ;;  %107 = vst.msk [vmem:[#allocation2 + $0x18] sm:$0xff] %vm19_vm0, %v101_v23 }
  0x93   :  { %v127_v28 = vpack.c.bf16 %v122_v25, %v122_v25 }
  0x94   :  { %v129_v29 = vpack.c.bf16 %v124_v27, %v124_v27 }
  0x95   :  { %133 = vst.msk [vmem:[%s243_s3] sm:$0xf] %vm132_vm3, %v127_v28  ;;  %v96_v30 = vpop.f32.mrf.mxu2 }
  0x96   :  { %135 = vst.msk [vmem:[%s243_s3 + $0x8] sm:$0xf] %vm132_vm3, %v129_v29 }
  0x97   :  { %v117_v31 = vld [vmem:[#allocation2 + $0x20] sm:$0x3] }
  0x98   :  { %v126_v32 = vadd.f32 %v171_v17, %v117_v31  ;;  %v114_v33 = vld [vmem:[#allocation2 + $0x8] sm:$0xff] }
  0x99   :  { %v123_v34 = vadd.f32 %v171_v17, %v114_v33  ;;  %v116_v35 = vld [vmem:[#allocation2 + $0x18] sm:$0xff] }
  0x9a   :  { %v131_v36 = vpack.c.bf16 %v126_v32, %v126_v32  ;;  %v125_v37 = vadd.f32 %v171_v17, %v116_v35 }
  0x9b   :  { %v128_v38 = vpack.c.bf16 %v123_v34, %v123_v34 }
  0x9c   :  { %138 = vst.msk [vmem:[%s243_s3 + $0x10] sm:$0x1] %vm137_vm4, %v131_v36  ;;  %v130_v39 = vpack.c.bf16 %v125_v37, %v125_v37 }
  0x9d   :  { %134 = vst.msk [vmem:[%s243_s3 + $0x4] sm:$0xf] %vm132_vm3, %v128_v38 }
  0x9e   :  { %136 = vst.msk [vmem:[%s243_s3 + $0xc] sm:$0xf] %vm132_vm3, %v130_v39 }

// kernel: medsam_ibot_forward.32
= control target key start
LH: loop header
LB: loop body
LE: loop exit
PB: predicated region body
PF: predicated region fallthrough
CT: control target
= control target key end

     0   :  { %v130_v1 = vmov 0.0   ;;  %vm38_vm0 = vcmask 261120   ;;  %v131_v40 = vmov 1.0   ;;  %s167_s1 = inlined_call_operand.vmem [shape: bf16[32,128], index: 1, kind: input, shape index: {}]   ;;  %s168_s2 = inlined_call_operand.vmem [shape: f32[1,128], index: 2, kind: input, shape index: {}]   ;;  %s169_s0 = inlined_call_operand.vmem [shape: bf16[2,32], index: 0, kind: input, shape index: {}]   ;;  %s170_s3 = inlined_call_operand.vmem [shape: bf16[2,128], index: 3, kind: output, shape index: {}]  }
   0x1   :  { %v122_v0 = vld [vmem:[%s167_s1 + $0x8] sm:$0xff]  ;;  %19 = vst [vmem:[#allocation2] sm:$0x3] %v130_v1  ;;  %v121_v2 = vld [vmem:[%s167_s1] sm:$0xff] }
   0x2   :  { %48 = vmatpush.bf16.msra.mxu0 %v122_v0  ;;  %v20_v3 = vld [vmem:[%s169_s0] sm:$0x1] }
   0x3   :  { %v125_v7 = vld [vmem:[%s168_s2] ss:$0 sm:$0xff] }
   0x6   :  { %49 = vmatpush.bf16.msra.mxu0 %v121_v2 }
   0x8   :  { %v21_v4 = vld [vmem:[#allocation2] sm:$0x3] }
   0x9   :  { %120 = vmatmul.msk.bf16.vlgmr.msra.gmra.mxu0 %vm38_vm0, %v20_v3 }
  0x86   :  { %v51_v5 = vpop.f32.mrf.mxu0 }
  0x87   :  { %v55_v6 = vadd.f32 %v51_v5, %v21_v4 }
  0x89   :  { %56 = vst [vmem:[#allocation2] sm:$0x3] %v55_v6 }
  0x8e   :  { %v53_v8 = vpop.f32.mrf.mxu0 }
  0x90   :  { %v60_v9 = vld [vmem:[#allocation2] sm:$0x3] }
  0x91   :  { %v65_v10 = vadd.f32 %v125_v7, %v60_v9 }
  0x93   :  { %v67_v11 = vmul.f32 0.70710677, %v65_v10  ;;  %v66_v43 = vmul.f32 0.5, %v65_v10 }
  0x95   :  { %v70_v12 = vand.u32 2147483647, %v67_v11  ;;  %vm68_vm5 = vcmp.lt.f32.partialorder %v67_v11, 0.0 }
  0x96   :  { %v69_v41 = vsel %vm68_vm5, -1.0, %v131_v40 }
  0x97   :  { %v71_v13 = vmul.f32 0.3275911, %v70_v12  ;;  %v97_v25 = vsub.f32 0.0, %v70_v12 }
  0x99   :  { %v72_v14 = vadd.f32 1.0, %v71_v13  ;;  %v98_v28 = vmul.f32 %v97_v25, %v70_v12 }
  0x9b   :  { %126 = vrcp.f32 %v72_v14  ;;  %v84_v18 = vand.u32 2147483648, %v72_v14  ;;  %v82_v20 = vand.u32 2147483647, %v72_v14  ;;  %vm78_vm2 = vweird.f32 %v72_v14 }
  0x9c   :  { %v99_v31 = vmul.f32 1.442695, %v98_v28 }
  0x9d   :  { %v85_v22 = vor.u32 1.1754944e-38, %v84_v18  ;;  %vm83_vm4 = vcmp.eq.f32.partialorder %v82_v20, 8.507059e+37 }
  0x9e   :  { %128 = vpow2.f32 %v99_v31 }
  0xa1   :  { %v127_v15 = vpop.eup %126 }
  0xa2   :  { %v74_v16 = vmul.f32 %v127_v15, %v72_v14  ;;  %vm79_vm1 = vweird.f32 %v127_v15 }
  0xa3   :  { %vm80_vm3 = vmor %vm78_vm2, %vm79_vm1 }
  0xa4   :  { %v75_v17 = vsub.f32 1.0, %v74_v16  ;;  %v129_v37 = vpop.eup %128 }
  0xa6   :  { %v76_v19 = vmul.f32 %v127_v15, %v75_v17 }
  0xa8   :  { %v77_v21 = vadd.f32 %v127_v15, %v76_v19 }
  0xaa   :  { %v81_v23 = vsel %vm80_vm3, %v127_v15, %v77_v21 }
  0xab   :  { %v86_v24 = vsel %vm83_vm4, %v85_v22, %v81_v23 }
  0xac   :  { %v88_v26 = vmul.f32 1.0614054, %v86_v24 }
  0xae   :  { %v89_v27 = vadd.f32 -1.4531521, %v88_v26 }
  0xb0   :  { %v90_v29 = vmul.f32 %v89_v27, %v86_v24 }
  0xb2   :  { %v91_v30 = vadd.f32 1.4214138, %v90_v29 }
  0xb4   :  { %v92_v32 = vmul.f32 %v91_v30, %v86_v24 }
  0xb6   :  { %v93_v33 = vadd.f32 -0.28449672, %v92_v32 }
  0xb8   :  { %v94_v34 = vmul.f32 %v93_v33, %v86_v24 }
  0xba   :  { %v95_v35 = vadd.f32 0.2548296, %v94_v34 }
  0xbc   :  { %v96_v36 = vmul.f32 %v95_v35, %v86_v24 }
  0xbe   :  { %v101_v38 = vmul.f32 %v129_v37, %v96_v36 }
  0xc0   :  { %v102_v39 = vsub.f32 1.0, %v101_v38 }
  0xc2   :  { %v103_v42 = vmul.f32 %v102_v39, %v69_v41 }
  0xc4   :  { %v104_v44 = vadd.f32 1.0, %v103_v42 }
  0xc6   :  { %v105_v45 = vmul.f32 %v104_v44, %v66_v43 }
  0xc8   :  { %v106_v46 = vpack.c.bf16 %v105_v45, %v105_v45 }
  0xca   :  { %107 = vst [vmem:[%s170_s3] sm:$0x1] %v106_v46 }

// kernel: medsam_ibot_forward.31
= control target key start
LH: loop header
LB: loop body
LE: loop exit
PB: predicated region body
PF: predicated region fallthrough
CT: control target
= control target key end

     0   :  { %vm22_vm0 = vcmask 254976   ;;  %v94_v1 = vmov 0.0   ;;  %vm42_vm1 = vcmask 261120   ;;  %vm75_vm2 = vcmask 253952   ;;  %s140_s1 = inlined_call_operand.vmem [shape: bf16[32,32], index: 1, kind: input, shape index: {}]   ;;  %s141_s2 = inlined_call_operand.vmem [shape: f32[1,32], index: 2, kind: input, shape index: {}]   ;;  %s142_s0 = inlined_call_operand.vmem [shape: bf16[2,32], index: 0, kind: input, shape index: {}]   ;;  %s143_s3 = inlined_call_operand.vmem [shape: bf16[2,32], index: 3, kind: input, shape index: {}]   ;;  %s144_s4 = inlined_call_operand.vmem [shape: bf16[2,32], index: 4, kind: output, shape index: {}]  }
   0x1   :  { %v91_v0 = vld [vmem:[%s140_s1 + $0x8] sm:$0xff]  ;;  %23 = vst.msk [vmem:[#allocation2] sm:$0x3] %vm22_vm0, %v94_v1  ;;  %v90_v2 = vld [vmem:[%s140_s1] sm:$0xff] }
   0x2   :  { %52 = vmatpush.bf16.msra.mxu0 %v91_v0  ;;  %v24_v3 = vld [vmem:[%s142_s0] sm:$0x1] }
   0x3   :  { %v71_v7 = vld [vmem:[%s143_s3] sm:$0x1] }
   0x4   :  { %v93_v8 = vld [vmem:[%s141_s2] ss:$0 sm:$0xff]  ;;  %v72_v10 = vunpack.c.l.bf16 %v71_v7 }
   0x6   :  { %53 = vmatpush.bf16.msra.mxu0 %v90_v2 }
   0x8   :  { %v25_v4 = vld [vmem:[#allocation2] sm:$0x3] }
   0x9   :  { %89 = vmatmul.msk.bf16.vlgmr.msra.gmra.mxu0 %vm42_vm1, %v24_v3 }
  0x86   :  { %v55_v5 = vpop.f32.mrf.mxu0 }
  0x87   :  { %v59_v6 = vadd.f32 %v55_v5, %v25_v4 }
  0x89   :  { %61 = vst.msk [vmem:[#allocation2] sm:$0x3] %vm22_vm0, %v59_v6 }
  0x8e   :  { %v57_v9 = vpop.f32.mrf.mxu0 }
  0x90   :  { %v65_v11 = vld [vmem:[#allocation2] sm:$0x3] }
  0x91   :  { %v70_v12 = vadd.f32 %v93_v8, %v65_v11 }
  0x93   :  { %v73_v13 = vadd.f32 %v72_v10, %v70_v12 }
  0x95   :  { %v74_v14 = vpack.c.bf16 %v73_v13, %v73_v13 }
  0x97   :  { %76 = vst.msk [vmem:[%s144_s4] sm:$0x1] %vm75_vm2, %v74_v14 }

// kernel: medsam_ibot_forward.33
= control target key start
LH: loop header
LB: loop body
LE: loop exit
PB: predicated region body
PF: predicated region fallthrough
CT: control target
= control target key end

     0   :  { %vm21_vm0 = vcmask 254976   ;;  %v166_v2 = vmov 0.0   ;;  %vm118_vm1 = vcmask 253952   ;;  %s230_s1 = inlined_call_operand.vmem [shape: bf16[128,32], index: 1, kind: input, shape index: {}]   ;;  %s231_s2 = inlined_call_operand.vmem [shape: f32[1,32], index: 2, kind: input, shape index: {}]   ;;  %s232_s0 = inlined_call_operand.vmem [shape: bf16[2,128], index: 0, kind: input, shape index: {}]   ;;  %s233_s3 = inlined_call_operand.vmem [shape: bf16[2,32], index: 3, kind: input, shape index: {}]   ;;  %s234_s4 = inlined_call_operand.vmem [shape: bf16[2,32], index: 4, kind: output, shape index: {}]  }
   0x1   :  { %v163_v0 = vld [vmem:[%s230_s1 + $0x38] sm:$0xff]  ;;  %v162_v1 = vld [vmem:[%s230_s1 + $0x30] sm:$0xff]  ;;  %22 = vst.msk [vmem:[#allocation2] sm:$0x3] %vm21_vm0, %v166_v2  ;;  %v161_v3 = vld [vmem:[%s230_s1 + $0x28] sm:$0xff] }
   0x2   :  { %89 = vmatpush.bf16.msra.mxu0 %v163_v0  ;;  %v160_v4 = vld [vmem:[%s230_s1 + $0x20] sm:$0xff]  ;;  %v159_v5 = vld [vmem:[%s230_s1 + $0x18] sm:$0xff]  ;;  %v158_v6 = vld [vmem:[%s230_s1 + $0x10] sm:$0xff] }
   0x3   :  { %v157_v7 = vld [vmem:[%s230_s1 + $0x8] sm:$0xff]  ;;  %v156_v8 = vld [vmem:[%s230_s1] sm:$0xff] }
   0x4   :  { %v23_v9 = vld [vmem:[%s232_s0] sm:$0x1] }
   0x5   :  { %v114_v13 = vld [vmem:[%s233_s3] sm:$0x1] }
   0x6   :  { %90 = vmatpush.bf16.msra.mxu0 %v162_v1  ;;  %v165_v14 = vld [vmem:[%s231_s2] ss:$0 sm:$0xff]  ;;  %v115_v16 = vunpack.c.l.bf16 %v114_v13 }
   0x8   :  { %v24_v10 = vld [vmem:[#allocation2] sm:$0x3] }
   0xa   :  { %91 = vmatpush.bf16.msra.mxu0 %v161_v3 }
   0xe   :  { %92 = vmatpush.bf16.msra.mxu0 %v160_v4 }
  0x12   :  { %93 = vmatpush.bf16.msra.mxu0 %v159_v5 }
  0x16   :  { %94 = vmatpush.bf16.msra.mxu0 %v158_v6 }
  0x1a   :  { %95 = vmatpush.bf16.msra.mxu0 %v157_v7 }
  0x1e   :  { %96 = vmatpush.bf16.msra.mxu0 %v156_v8 }
  0x21   :  { %97 = vmatmul.bf16.vlgmr.msra.gmra.mxu0 %v23_v9 }
  0x9e   :  { %v98_v11 = vpop.f32.mrf.mxu0 }
  0x9f   :  { %v102_v12 = vadd.f32 %v98_v11, %v24_v10 }
  0xa1   :  { %104 = vst.msk [vmem:[#allocation2] sm:$0x3] %vm21_vm0, %v102_v12 }
  0xa6   :  { %v100_v15 = vpop.f32.mrf.mxu0 }
  0xa8   :  { %v108_v17 = vld [vmem:[#allocation2] sm:$0x3] }
  0xa9   :  { %v113_v18 = vadd.f32 %v165_v14, %v108_v17 }
  0xab   :  { %v116_v19 = vadd.f32 %v115_v16, %v113_v18 }
  0xad   :  { %v117_v20 = vpack.c.bf16 %v116_v19, %v116_v19 }
  0xaf   :  { %119 = vst.msk [vmem:[%s234_s4] sm:$0x1] %vm118_vm1, %v117_v20 }

// kernel: medsam_ibot_forward.26
= control target key start
LH: loop header
LB: loop body
LE: loop exit
PB: predicated region body
PF: predicated region fallthrough
CT: control target
= control target key end

     0   :  { %s4975_s18 = smov 0   ;;  %s4977_s19 = smov 0   ;;  %s6365_s0 = inlined_call_operand.vmem [shape: bf16[2,16,32], index: 0, kind: input, shape index: {}]   ;;  %s6366_s1 = inlined_call_operand.vmem [shape: bf16[2,16,32], index: 1, kind: input, shape index: {}]   ;;  %s6367_s2 = inlined_call_operand.vmem [shape: bf16[2,16,32], index: 2, kind: input, shape index: {}]   ;;  %s6368_s3 = inlined_call_operand.vmem [shape: f32[2,8,16,4], index: 3, kind: input, shape index: {}]   ;;  %s6369_s4 = inlined_call_operand.vmem [shape: f32[2,8,16,4], index: 4, kind: input, shape index: {}]   ;;  %s6370_s5 = inlined_call_operand.vmem [shape: bf16[2,16,32], index: 5, kind: output, shape index: {}]  }
   0x1   :  { %s4979_s20 = smov 0  }
   0x2 LB: > { %s34_s21 = sadd.s32 1, %s4920_s19  ;;  %p4562_p0 = scmp.ge.s32.totalorder %s4924_s20, 1  ;;  %s4924_s20 = sphi %s4979_s20, %s15_s20   ;;  %s4920_s19 = sphi %s4977_s19, %s6372_s19   ;;  %s4916_s18 = sphi %s4975_s18, %s6371_s18  }
   0x3   : > { %p36_p1 = scmp.ge.s32.totalorder %s34_s21, 2  ;;  %p288_p2 = scmp.lt.s32.totalorder %s4924_s20, 3 }
   0x5   : > { %s6374_s21 = smov (%p36_p1, %s34_s21), 0  ;;  %p289_p3 = pnand %p4562_p0, %p288_p2 }
   0x6   : > { %p364_p4 = scmp.lt.s32.totalorder (!%p289_p3), %s4916_s18, 1  ;;  %s4926_s30 = smov (!%p289_p3), 124  }
   0x7   : > { %292 = sbr.rel (%p289_p3) target bundleno = 3475 (0xd93), region = 40  ;;  %s4929_s12 = smov (!%p289_p3), 4  }
   0x8   : > { %s4930_s13 = smov (!%p289_p3), 8   ;;  %s4931_s14 = smov (!%p289_p3), 12  }
   0x9   : > { %s4937_s23 = smov (!%p289_p3), 112   ;;  %s4938_s24 = smov (!%p289_p3), 108  }
   0xa   : > { %s4939_s27 = smov (!%p289_p3), 104   ;;  %s4940_s28 = smov (!%p289_p3), 100  }
   0xb   : > { %s4944_s6 = smov (!%p289_p3), 28  }
   0xc   : > { %v490_v0 = vlaneseq  ;;  %s6376_s18 = smov (!%p364_p4, %s4916_s18), 1  ;;  %vm464_vm0 = vcmask 31744   ;;  %v4927_v58 = vmov 1983009808   ;;  %vm668_vm1 = vcmask 1047556  }
   0xd   : > { %s4720_s22 = sshll.u32 %s6376_s18, 7  ;;  %s5013_s26 = sshll.u32 %s6376_s18, 3  ;;  %v671_v59 = vunpack.c.l.s4 %v4927_v58  ;;  %vm807_vm2 = vcmask 64512   ;;  %vm810_vm3 = vcmask 97280   ;;  %vm845_vm4 = vcmask 130048  }
   0xe   : > { %v4993_v1 = vshrl.u32 %v490_v0, 7  ;;  %s5006_s25 = scalar_lea.vmem %s6368_s3, %s4720_s22  ;;  %s5019_s29 = scalar_lea.vmem %s6365_s0, %s5013_s26  ;;  %vm431_vm5 = vcmask 7168   ;;  %vm4374_vm6 = vcmask 162816   ;;  %vm4377_vm7 = vcmask 195584  }
   0xf   : > { %v487_v2 = vld [vmem:[%s5006_s25] sm:$0xff]  ;;  %v488_v9 = vld [vmem:[%s5006_s25 + $0x8] sm:$0xff]  ;;  %v4589_v19 = vld [vmem:[%s5006_s25 + $0x10] sm:$0xff]  ;;  %s5027_s8 = scalar_lea.vmem %s6366_s1, %s5013_s26  ;;  %s5040_s11 = scalar_lea.vmem %s6369_s4, %s4720_s22  ;;  %vm4380_vm8 = vcmask 228352   ;;  %vm4390_vm9 = vcmask 257024  }
  0x10   : > { %4792 = vset.pattern.permute.xlu2 %v4993_v1  ;;  %4791 = vset.pattern.permute.xlu1 %v4993_v1  ;;  %v517_v3 = vperm.slane %v487_v2, 4  ;;  %v503_v4 = vperm.slane %v487_v2, 2  ;;  %v489_v5 = vperm.slane %v487_v2, 0  ;;  %v524_v6 = vperm.slane %v487_v2, 5  ;;  %v4590_v26 = vld [vmem:[%s5006_s25 + $0x18] sm:$0xff]  ;;  %v4726_v32 = vld [vmem:[%s5019_s29] sm:$0xff]  ;;  %s5220_s17 = scalar_lea.vmem %s6367_s2, %s5013_s26  ;;  %s424_s9 = scalar_lea.vmem %s6370_s5, %s5013_s26 }
  0x11   : > { %4790 = vset.pattern.permute.xlu0 %v4993_v1  ;;  %v510_v7 = vperm.slane %v487_v2, 3  ;;  %v496_v8 = vperm.slane %v487_v2, 1  ;;  %v545_v10 = vperm.slane %v488_v9, 0  ;;  %v538_v11 = vperm.slane %v487_v2, 7  ;;  %v4727_v40 = vld [vmem:[%s5027_s8] sm:$0xff]  ;;  %s4932_s18 = smov 120  }
  0x12   : > { %v531_v12 = vperm.slane %v487_v2, 6  ;;  %v566_v13 = vperm.slane %v488_v9, 3  ;;  %v559_v14 = vperm.slane %v488_v9, 2  ;;  %v552_v15 = vperm.slane %v488_v9, 1  ;;  %v4724_v42 = vld [vmem:[%s5027_s8] sm:$0xff]  ;;  %s4936_s22 = smov 116  }
  0x13   : > { %v587_v16 = vperm.slane %v488_v9, 6  ;;  %v580_v17 = vperm.slane %v488_v9, 5  ;;  %v573_v18 = vperm.slane %v488_v9, 4  ;;  %v951_v20 = vperm.slane %v4589_v19, 1  ;;  %v4723_v45 = vld [vmem:[%s5019_s29] sm:$0xff] }
  0x14   : > { %v944_v21 = vperm.slane %v4589_v19, 0  ;;  %v594_v22 = vperm.slane %v488_v9, 7  ;;  %v972_v23 = vperm.slane %v4589_v19, 4  ;;  %v965_v24 = vperm.slane %v4589_v19, 3  ;;  %v601_v46 = vld [vmem:[%s5040_s11] sm:$0xff] }
  0x15   : > { %v958_v25 = vperm.slane %v4589_v19, 2  ;;  %v986_v27 = vperm.slane %v4589_v19, 6  ;;  %v979_v28 = vperm.slane %v4589_v19, 5  ;;  %v1035_v29 = vperm.slane %v4590_v26, 5 }
  0x16   : > { %v1000_v30 = vperm.slane %v4590_v26, 0  ;;  %v993_v31 = vperm.slane %v4589_v19, 7  ;;  %v1014_v33 = vperm.slane %v4590_v26, 2  ;;  %v1007_v34 = vperm.slane %v4590_v26, 1 }
  0x17   : > { %v1028_v35 = vperm.slane %v4590_v26, 4  ;;  %v1021_v36 = vperm.slane %v4590_v26, 3  ;;  %v1049_v37 = vperm.slane %v4590_v26, 7  ;;  %v1042_v38 = vperm.slane %v4590_v26, 6 }
  0x18   : > { %522 = vperm.xlu2 %4792, %v517_v3   ;;  %508 = vperm.xlu1 %4791, %v503_v4   ;;  %v827_v43 = vsel %vm464_vm0, %v4724_v42, 0  ;;  %v606_v47 = vrot.slane %v601_v46, 2  ;;  %v607_v51 = vrot.slane %v601_v46, 3  ;;  %v605_v52 = vrot.slane %v601_v46, 1 }
  0x19   : > { %494 = vperm.xlu0 %4790, %v489_v5   ;;  %836 = vmatpush.bf16.xpose.msra.mxu0 %v827_v43  ;;  %v619_v57 = vperm.slane %v601_v46, 0  ;;  %v611_v0 = vrot.slane %v601_v46, 7  ;;  %v610_v3 = vrot.slane %v601_v46, 6  ;;  %v609_v4 = vrot.slane %v601_v46, 5 }
  0x1a   : > { %v621_v53 = vperm.slane %v606_v47, 0  ;;  %v622_v54 = vperm.slane %v607_v51, 0  ;;  %v620_v55 = vperm.slane %v605_v52, 0  ;;  %v5049_v9 = vunpack.c.0.s8 %v671_v59 }
  0x20   : > { %529 = vperm.xlu2 %4792, %v524_v6   ;;  %515 = vperm.xlu1 %4791, %v510_v7  }
  0x21   : > { %501 = vperm.xlu0 %4790, %v496_v8   ;;  %4583 = vmatmul.msk.bf16.vlgmr.msra.gmra.mxu0 %vm464_vm0, %v4723_v45  ;;  %v608_v8 = vrot.slane %v601_v46, 4 }
  0x28   : > { %550 = vperm.xlu2 %4792, %v545_v10   ;;  %543 = vperm.xlu1 %4791, %v538_v11   ;;  %v626_v11 = vperm.slane %v611_v0, 0 }
  0x29   : > { %536 = vperm.xlu0 %4790, %v531_v12  }
  0x30   : > { %571 = vperm.xlu2 %4792, %v566_v13   ;;  %564 = vperm.xlu1 %4791, %v559_v14   ;;  %v625_v13 = vperm.slane %v610_v3, 0  ;;  %v624_v14 = vperm.slane %v609_v4, 0 }
  0x31   : > { %557 = vperm.xlu0 %4790, %v552_v15  }
  0x38   : > { %592 = vperm.xlu2 %4792, %v587_v16   ;;  %585 = vperm.xlu1 %4791, %v580_v17   ;;  %v623_v16 = vperm.slane %v608_v8, 0  ;;  %v5055_v17 = vld [vmem:[%s5040_s11 + $0x8] sm:$0xff] }
  0x39   : > { %578 = vperm.xlu0 %4790, %v573_v18   ;;  %v617_v47 = vrot.slane %v5055_v17, 6  ;;  %v627_v52 = vperm.slane %v5055_v17, 0 }
  0x40   : > { %956 = vperm.xlu2 %4792, %v951_v20   ;;  %949 = vperm.xlu1 %4791, %v944_v21  }
  0x41   : > { %599 = vperm.xlu0 %4790, %v594_v22  }
  0x48   : > { %977 = vperm.xlu2 %4792, %v972_v23   ;;  %970 = vperm.xlu1 %4791, %v965_v24   ;;  %v613_v23 = vrot.slane %v5055_v17, 2  ;;  %v4928_v24 = vmov 1934713408  }
  0x49   : > { %963 = vperm.xlu0 %4790, %v958_v25   ;;  %v697_v25 = vunpack.c.l.s4 %v4928_v24 }
  0x50   : > { %991 = vperm.xlu2 %4792, %v986_v27   ;;  %984 = vperm.xlu1 %4791, %v979_v28  }
  0x51   : > { %1040 = vperm.xlu0 %4790, %v1035_v29  }
  0x58   : > { %1005 = vperm.xlu2 %4792, %v1000_v30   ;;  %998 = vperm.xlu1 %4791, %v993_v31   ;;  %v614_v31 = vrot.slane %v5055_v17, 3 }
  0x59   : > { %1270 = vrot.lane.b32.xlu0 %v4726_v32, %s4926_s30 }
  0x5a   : > { %v630_v42 = vperm.slane %v614_v31, 0 }
  0x60   : > { %1019 = vperm.xlu2 %4792, %v1014_v33   ;;  %1012 = vperm.xlu1 %4791, %v1007_v34  }
  0x68   : > { %1033 = vperm.xlu2 %4792, %v1028_v35   ;;  %1026 = vperm.xlu1 %4791, %v1021_v36   ;;  %v629_v35 = vperm.slane %v613_v23, 0  ;;  %v5064_v36 = vunpack.c.0.s8 %v697_v25 }
  0x70   : > { %1054 = vperm.xlu2 %4792, %v1049_v37   ;;  %1047 = vperm.xlu1 %4791, %v1042_v38  }
  0x72   : > { %v523_v39 = vpop.permute.xlu2 %522 }
  0x73   : > { %v655_v30 = vadd.f32 %v623_v16, %v523_v39 }
  0x78   : > { %1277 = vrot.lane.b32.xlu1 %v4727_v40, %s4926_s30  ;;  %v612_v40 = vrot.slane %v5055_v17, 1 }
  0x7a   : > { %v530_v41 = vpop.permute.xlu2 %529 }
  0x7b   : > { %v656_v28 = vadd.f32 %v624_v14, %v530_v41 }
  0x82   : > { %v5033_v44 = vpop.permute.xlu2 %550 }
  0x8a   : > { %v5045_v48 = vpop.permute.xlu2 %571  ;;  %v509_v49 = vpop.permute.xlu1 %508 }
  0x8b   : > { %v495_v50 = vpop.permute.xlu0 %494  ;;  %v653_v56 = vadd.f32 %v621_v53, %v509_v49 }
  0x8c   : > { %v651_v6 = vadd.f32 %v619_v57, %v495_v50 }
  0x8d   : > { %v667_v5 = vrot.slane %v653_v56, 4 }
  0x8f   : > { %v669_v15 = vsel %vm668_vm1, %v667_v5, %v651_v6  ;;  %v659_v5 = vadd.f32 %v627_v52, %v5033_v44 }
  0x90   : > { %v673_v26 = vperm.slane %v669_v15, %v5049_v9 }
  0x92   : > { %v5047_v60 = vpop.permute.xlu2 %592  ;;  %v516_v61 = vpop.permute.xlu1 %515  ;;  %v694_v46 = vrot.slane %v673_v26, 4 }
  0x93   : > { %v654_v62 = vadd.f32 %v622_v54, %v516_v61  ;;  %v502_v63 = vpop.permute.xlu0 %501  ;;  %v628_v54 = vperm.slane %v612_v40, 0  ;;  %v662_v61 = vadd.f32 %v630_v42, %v5045_v48 }
  0x94   : > { %v652_v2 = vadd.f32 %v620_v55, %v502_v63  ;;  %v615_v63 = vrot.slane %v5055_v17, 4 }
  0x95   : > { %v674_v7 = vrot.slane %v654_v62, 4 }
  0x97   : > { %v675_v10 = vsel %vm668_vm1, %v674_v7, %v652_v2  ;;  %v633_v2 = vperm.slane %v617_v47, 0 }
  0x98   : > { %v679_v12 = vperm.slane %v675_v10, %v5049_v9  ;;  %v730_v10 = vrot.slane %v662_v61, 4 }
  0x99   : > { %v665_v15 = vadd.f32 %v633_v2, %v5047_v60 }
  0x9a   : > { %v692_v18 = vrot.slane %v679_v12, 4  ;;  %v5057_v19 = vpop.permute.xlu2 %956  ;;  %v544_v20 = vpop.permute.xlu1 %543  ;;  %v695_v58 = vsel %vm668_vm1, %v679_v12, %v694_v46 }
  0x9b   : > { %v658_v21 = vadd.f32 %v626_v11, %v544_v20  ;;  %v537_v22 = vpop.permute.xlu0 %536  ;;  %v5088_v7 = vperm.slane %v695_v58, %v5064_v36  ;;  %v736_v25 = vrot.slane %v665_v15, 4 }
  0x9c   : > { %v657_v27 = vadd.f32 %v625_v13, %v537_v22  ;;  %v693_v33 = vsel %vm668_vm1, %v692_v18, %v673_v26  ;;  %v631_v13 = vperm.slane %v615_v63, 0  ;;  %v618_v18 = vrot.slane %v5055_v17, 7 }
  0x9d   : > { %v686_v29 = vrot.slane %v658_v21, 4  ;;  %v699_v39 = vperm.slane %v693_v33, %v5064_v36  ;;  %v616_v22 = vrot.slane %v5055_v17, 5 }
  0x9e   : > { %v680_v32 = vrot.slane %v657_v27, 4  ;;  %v634_v26 = vperm.slane %v618_v18, 0 }
  0x9f   : > { %v687_v34 = vsel %vm668_vm1, %v686_v29, %v656_v28  ;;  %v718_v57 = vrot.slane %v699_v39, 4  ;;  %v5105_v28 = vld [vmem:[%s5040_s11 + $0x10] sm:$0xff]  ;;  %v632_v29 = vperm.slane %v616_v22, 0 }
  0xa0   : > { %v691_v37 = vperm.slane %v687_v34, %v5049_v9  ;;  %v681_v38 = vsel %vm668_vm1, %v680_v32, %v655_v30  ;;  %v1063_v33 = vrot.slane %v5105_v28, 3  ;;  %v1061_v46 = vrot.slane %v5105_v28, 1 }
  0xa1   : > { %v685_v41 = vperm.slane %v681_v38, %v5049_v9  ;;  %v1066_v47 = vrot.slane %v5105_v28, 6  ;;  %v1064_v63 = vrot.slane %v5105_v28, 4 }
  0xa2   : > { %v704_v43 = vrot.slane %v691_v37, 4  ;;  %v565_v45 = vpop.permute.xlu1 %564  ;;  %v5073_v53 = vpop.permute.xlu2 %977  ;;  %v1078_v40 = vperm.slane %v1063_v33, 0 }
  0xa3   : > { %v706_v49 = vrot.slane %v685_v41, 4  ;;  %v661_v50 = vadd.f32 %v629_v35, %v565_v45  ;;  %v558_v51 = vpop.permute.xlu0 %557  ;;  %v1081_v2 = vperm.slane %v1066_v47, 0  ;;  %v1079_v18 = vperm.slane %v1064_v63, 0 }
  0xa4   : > { %v705_v55 = vsel %vm668_vm1, %v704_v43, %v685_v41  ;;  %v660_v6 = vadd.f32 %v628_v54, %v558_v51  ;;  %v1062_v41 = vrot.slane %v5105_v28, 2 }
  0xa5   : > { %v711_v56 = vperm.slane %v705_v55, %v5064_v36  ;;  %v707_v59 = vsel %vm668_vm1, %v691_v37, %v706_v49  ;;  %v724_v62 = vrot.slane %v661_v50, 4 }
  0xa6   : > { %v5082_v0 = vperm.slane %v707_v59, %v5064_v36  ;;  %v731_v16 = vsel %vm668_vm1, %v730_v10, %v660_v6 }
  0xa7   : > { %v716_v3 = vrot.slane %v711_v56, 4  ;;  %v719_v4 = vsel %vm668_vm1, %v711_v56, %v718_v57  ;;  %v725_v11 = vsel %vm668_vm1, %v724_v62, %v659_v5  ;;  %v735_v24 = vperm.slane %v731_v16, %v5049_v9 }
  0xa8   : > { %782 = vrot.lane.b32.xlu1 %v719_v4, %s4929_s12  ;;  %v720_v48 = vrot.slane %v5082_v0, 4  ;;  %v729_v20 = vperm.slane %v725_v11, %v5049_v9  ;;  %v1077_v56 = vperm.slane %v1062_v41, 0  ;;  %v1076_v62 = vperm.slane %v1061_v46, 0 }
  0xa9   : > { %v5092_v8 = vsel %vm668_vm1, %v716_v3, %v699_v39  ;;  %v748_v31 = vrot.slane %v735_v24, 4 }
  0xaa   : > { %v586_v12 = vpop.permute.xlu1 %585  ;;  %v721_v44 = vsel %vm668_vm1, %v720_v48, %v5088_v7  ;;  %v992_v21 = vpop.permute.xlu2 %991  ;;  %v750_v27 = vrot.slane %v729_v20, 4 }
  0xab   : > { %v579_v14 = vpop.permute.xlu0 %578  ;;  %790 = vrot.lane.b32.xlu0 %v721_v44, %s4930_s13  ;;  %v664_v37 = vadd.f32 %v632_v29, %v586_v12  ;;  %v749_v39 = vsel %vm668_vm1, %v748_v31, %v729_v20  ;;  %v1075_v12 = vperm.slane %v5105_v28, 0  ;;  %v1108_v44 = vadd.f32 %v1076_v62, %v5057_v19 }
  0xac   : > { %v663_v23 = vadd.f32 %v631_v13, %v579_v14  ;;  %v751_v17 = vsel %vm668_vm1, %v735_v24, %v750_v27  ;;  %v755_v52 = vperm.slane %v749_v39, %v5064_v36  ;;  %v1113_v14 = vadd.f32 %v1081_v2, %v992_v21 }
  0xad   : > { %v759_v45 = vperm.slane %v751_v17, %v5064_v36  ;;  %v1065_v27 = vrot.slane %v5105_v28, 5  ;;  %v1111_v31 = vadd.f32 %v1079_v18, %v5073_v53 }
  0xae   : > { %v737_v60 = vsel %vm668_vm1, %v736_v25, %v663_v23  ;;  %v774_v6 = vrot.slane %v755_v52, 4  ;;  %v1067_v25 = vrot.slane %v5105_v28, 7  ;;  %v1135_v19 = vrot.slane %v1113_v14, 4 }
  0xaf   : > { %v741_v35 = vperm.slane %v737_v60, %v5049_v9  ;;  %v778_v61 = vrot.slane %v759_v45, 4  ;;  %v722_v60 = vrot.slane %v5088_v7, 4  ;;  %v1080_v17 = vperm.slane %v1065_v27, 0 }
  0xb0   : > { %v1082_v33 = vperm.slane %v1067_v25, 0 }
  0xb1   : > { %v762_v49 = vrot.slane %v741_v35, 4 }
  0xb2   : > { %v950_v30 = vpop.permute.xlu1 %949  ;;  %v5113_v42 = vpop.permute.xlu2 %1005 }
  0xb3   : > { %v600_v32 = vpop.permute.xlu0 %599  ;;  %v1107_v21 = vadd.f32 %v1075_v12, %v950_v30 }
  0xb4   : > { %v666_v34 = vadd.f32 %v634_v26, %v600_v32 }
  0xb6   : > { %v742_v38 = vrot.slane %v666_v34, 4  ;;  %v723_v34 = vsel %vm668_vm1, %v5082_v0, %v722_v60 }
  0xb8   : > { %v743_v43 = vsel %vm668_vm1, %v742_v38, %v664_v37  ;;  %v4592_v38 = vld [vmem:[%s5040_s11 + $0x18] sm:$0xff] }
  0xb9   : > { %v747_v50 = vperm.slane %v743_v43, %v5049_v9  ;;  %v1069_v53 = vrot.slane %v4592_v38, 2  ;;  %v1068_v63 = vrot.slane %v4592_v38, 1  ;;  %v1071_v27 = vrot.slane %v4592_v38, 4 }
  0xba   : > { %v971_v51 = vpop.permute.xlu1 %970  ;;  %v1020_v20 = vpop.permute.xlu2 %1019 }
  0xbb   : > { %v760_v54 = vrot.slane %v747_v50, 4  ;;  %v1110_v55 = vadd.f32 %v1078_v40, %v971_v51  ;;  %v763_v57 = vsel %vm668_vm1, %v747_v50, %v762_v49  ;;  %v964_v58 = vpop.permute.xlu0 %963  ;;  %v1085_v49 = vperm.slane %v1069_v53, 0 }
  0xbc   : > { %v771_v59 = vperm.slane %v763_v57, %v5064_v36  ;;  %v1109_v11 = vadd.f32 %v1077_v56, %v964_v58  ;;  %v1074_v50 = vrot.slane %v4592_v38, 7  ;;  %v1084_v18 = vperm.slane %v1068_v63, 0 }
  0xbd   : > { %v761_v3 = vsel %vm668_vm1, %v760_v54, %v741_v35  ;;  %v1129_v10 = vrot.slane %v1110_v55, 4  ;;  %v1136_v35 = vsel %vm668_vm1, %v1135_v19, %v1111_v31 }
  0xbe   : > { %v779_v4 = vsel %vm668_vm1, %v771_v59, %v778_v61  ;;  %v767_v5 = vperm.slane %v761_v3, %v5064_v36  ;;  %v776_v48 = vrot.slane %v771_v59, 4  ;;  %v1123_v24 = vrot.slane %v1109_v11, 4 }
  0xbf   : > { %800 = vrot.lane.b32.xlu0 %v779_v4, %s4931_s14  ;;  %v1130_v23 = vsel %vm668_vm1, %v1129_v10, %v1108_v44  ;;  %v1140_v7 = vperm.slane %v1136_v35, %v5049_v9  ;;  %v1070_v59 = vrot.slane %v4592_v38, 3  ;;  %v1117_v61 = vadd.f32 %v1085_v49, %v1020_v20  ;;  %v5174_v20 = vld [vmem:[%s5006_s25 + $0x20] sm:$0xff] }
  0xc0   : > { %v775_v13 = vsel %vm668_vm1, %v767_v5, %v774_v6  ;;  %v772_v15 = vrot.slane %v767_v5, 4  ;;  %v777_v16 = vsel %vm668_vm1, %v776_v48, %v759_v45  ;;  %v1134_v29 = vperm.slane %v1130_v23, %v5049_v9 }
  0xc1   : > { %784 = vrot.lane.b32.xlu2 %v775_v13, %s4929_s12  ;;  %792 = vrot.lane.b32.xlu1 %v777_v16, %s4930_s13  ;;  %v1124_v32 = vsel %vm668_vm1, %v1123_v24, %v1107_v21  ;;  %v1161_v47 = vrot.slane %v1140_v7, 4  ;;  %v1090_v62 = vperm.slane %v1074_v50, 0  ;;  %v1083_v48 = vperm.slane %v4592_v38, 0 }
  0xc2   : > { %v985_v22 = vpop.permute.xlu1 %984  ;;  %v5137_v26 = vsel %vm668_vm1, %v772_v15, %v755_v52  ;;  %v1147_v30 = vrot.slane %v1134_v29, 4  ;;  %v1128_v28 = vperm.slane %v1124_v32, %v5049_v9  ;;  %v5151_v41 = vpop.permute.xlu2 %1033  ;;  %v1072_v10 = vrot.slane %v4592_v38, 5 }
  0xc3   : > { %v1112_v39 = vadd.f32 %v1080_v17, %v985_v22  ;;  %v1086_v14 = vperm.slane %v1070_v59, 0  ;;  %v1179_v15 = vrot.slane %v1117_v61, 4  ;;  %v1115_v24 = vadd.f32 %v1083_v48, %v5113_v42 }
  0xc4   : > { %v1149_v45 = vrot.slane %v1128_v28, 4  ;;  %v1148_v0 = vsel %vm668_vm1, %v1147_v30, %v1128_v28  ;;  %v1088_v25 = vperm.slane %v1072_v10, 0  ;;  %v1073_v21 = vrot.slane %v4592_v38, 6 }
  0xc5   : > { %v1154_v52 = vperm.slane %v1148_v0, %v5064_v36  ;;  %v1403_v60 = vperm.slane %v5174_v20, 0  ;;  %v1180_v31 = vsel %vm668_vm1, %v1179_v15, %v1115_v24  ;;  %v1424_v24 = vperm.slane %v5174_v20, 3 }
  0xc6   : > { %v1150_v56 = vsel %vm668_vm1, %v1134_v29, %v1149_v45  ;;  %v1041_v29 = vpop.permute.xlu0 %1040  ;;  %v1089_v30 = vperm.slane %v1073_v21, 0  ;;  %v1184_v28 = vperm.slane %v1180_v31, %v5049_v9  ;;  %v1410_v45 = vperm.slane %v5174_v20, 1 }
  0xc7   : > { %v5164_v3 = vperm.slane %v1150_v56, %v5064_v36  ;;  %v1173_v6 = vrot.slane %v1154_v52, 4  ;;  %v1120_v35 = vadd.f32 %v1088_v25, %v1041_v29  ;;  %v1438_v21 = vperm.slane %v5174_v20, 5 }
  0xc9   : > { %798 = vrot.lane.b32.xlu2 %v723_v34, %s4931_s14 }
  0xca   : > { %v999_v37 = vpop.permute.xlu1 %998  ;;  %v1055_v11 = vpop.permute.xlu2 %1054 }
  0xcb   : > { %v1114_v40 = vadd.f32 %v1082_v33, %v999_v37  ;;  %v1122_v16 = vadd.f32 %v1090_v62, %v1055_v11  ;;  %v1087_v37 = vperm.slane %v1071_v27, 0 }
  0xcd   : > { %v1141_v43 = vrot.slane %v1114_v40, 4  ;;  %v1197_v32 = vrot.slane %v1122_v16, 4  ;;  %v1417_v16 = vperm.slane %v5174_v20, 2 }
  0xcf   : > { %v1142_v46 = vsel %vm668_vm1, %v1141_v43, %v1112_v39  ;;  %v1198_v38 = vsel %vm668_vm1, %v1197_v32, %v1120_v35  ;;  %v1205_v39 = vrot.slane %v1184_v28, 4 }
  0xd0   : > { %v1146_v51 = vperm.slane %v1142_v46, %v5049_v9  ;;  %v1202_v43 = vperm.slane %v1198_v38, %v5049_v9  ;;  %v1119_v46 = vadd.f32 %v1087_v37, %v5151_v41 }
  0xd2   : > { %v1159_v54 = vrot.slane %v1146_v51, 4  ;;  %v1013_v55 = vpop.permute.xlu1 %1012  ;;  %v1162_v57 = vsel %vm668_vm1, %v1146_v51, %v1161_v47 }
  0xd3   : > { %v5160_v58 = vperm.slane %v1162_v57, %v5064_v36  ;;  %v1116_v33 = vadd.f32 %v1084_v18, %v1013_v55  ;;  %v4728_v18 = vld [vmem:[%s5220_s17] sm:$0xff] }
  0xd4   : > { %v1160_v2 = vsel %vm668_vm1, %v1159_v54, %v1140_v7 }
  0xd5   : > { %v1175_v4 = vrot.slane %v5160_v58, 4  ;;  %v1166_v5 = vperm.slane %v1160_v2, %v5064_v36 }
  0xd7   : > { %v1176_v12 = vsel %vm668_vm1, %v1175_v4, %v5164_v3  ;;  %v1171_v13 = vrot.slane %v1166_v5, 4  ;;  %v1174_v44 = vsel %vm668_vm1, %v1166_v5, %v1173_v6 }
  0xd8   : > { %1245 = vrot.lane.b32.xlu2 %v1176_v12, %s4930_s13  ;;  %1237 = vrot.lane.b32.xlu0 %v1174_v44, %s4929_s12  ;;  %v1271_v12 = vpop.permute.xlu0 %1270  ;;  %v1177_v44 = vrot.slane %v5164_v3, 4  ;;  %v1445_v3 = vperm.slane %v5174_v20, 6 }
  0xd9   : > { %v5177_v22 = vsel %vm668_vm1, %v1171_v13, %v1154_v52  ;;  %v1215_v52 = vrot.slane %v1202_v43, 4 }
  0xda   : > { %v1027_v23 = vpop.permute.xlu1 %1026  ;;  %v1178_v15 = vsel %vm668_vm1, %v5160_v58, %v1177_v44  ;;  %v4608_v58 = vld [vmem:[%s5006_s25 + $0x28] sm:$0xff] }
  0xdb   : > { %v1118_v19 = vadd.f32 %v1086_v14, %v1027_v23  ;;  %v1431_v14 = vperm.slane %v5174_v20, 4  ;;  %v1452_v23 = vperm.slane %v5174_v20, 7  ;;  %v1466_v25 = vperm.slane %v4608_v58, 1 }
  0xdc   : > { %v1487_v27 = vperm.slane %v4608_v58, 4  ;;  %v1494_v29 = vperm.slane %v4608_v58, 5  ;;  %v1508_v31 = vperm.slane %v4608_v58, 7  ;;  %v1480_v32 = vperm.slane %v4608_v58, 3 }
  0xdd   : > { %v1185_v34 = vrot.slane %v1118_v19, 4  ;;  %v1473_v19 = vperm.slane %v4608_v58, 2 }
  0xdf   : > { %v1186_v17 = vsel %vm668_vm1, %v1185_v34, %v1116_v33  ;;  %v1501_v33 = vperm.slane %v4608_v58, 6 }
  0xe0   : > { %v1190_v42 = vperm.slane %v1186_v17, %v5049_v9  ;;  %1408 = vperm.xlu2 %4792, %v1403_v60   ;;  %v1459_v60 = vperm.slane %v4608_v58, 0 }
  0xe2   : > { %v1203_v40 = vrot.slane %v1190_v42, 4  ;;  %v1048_v7 = vpop.permute.xlu1 %1047  ;;  %v1206_v49 = vsel %vm668_vm1, %v1190_v42, %v1205_v39 }
  0xe3   : > { %v1121_v53 = vadd.f32 %v1089_v30, %v1048_v7  ;;  %v1214_v55 = vperm.slane %v1206_v49, %v5064_v36 }
  0xe4   : > { %v1204_v0 = vsel %vm668_vm1, %v1203_v40, %v1184_v28 }
  0xe5   : > { %v1191_v47 = vrot.slane %v1121_v53, 4  ;;  %v1210_v51 = vperm.slane %v1204_v0, %v5064_v36  ;;  %v1233_v6 = vrot.slane %v1214_v55, 4  ;;  %v4609_v0 = vld [vmem:[%s5040_s11 + $0x20] sm:$0xff] }
  0xe7   : > { %v1192_v50 = vsel %vm668_vm1, %v1191_v47, %v1119_v46  ;;  %v1229_v62 = vrot.slane %v1210_v51, 4  ;;  %v1525_v46 = vrot.slane %v4609_v0, 6  ;;  %v1521_v47 = vrot.slane %v4609_v0, 2 }
  0xe8   : > { %v1196_v54 = vperm.slane %v1192_v50, %v5049_v9  ;;  %1415 = vperm.xlu2 %4792, %v1410_v45  }
  0xe9   : > { %v1540_v50 = vperm.slane %v1525_v46, 0 }
  0xea   : > { %v1217_v56 = vrot.slane %v1196_v54, 4  ;;  %v1278_v57 = vpop.permute.xlu1 %1277  ;;  %v1216_v59 = vsel %vm668_vm1, %v1215_v52, %v1196_v54  ;;  %v1536_v54 = vperm.slane %v1521_v47, 0 }
  0xeb   : > { %v1283_v61 = vsel %vm464_vm0, %v1278_v57, 0  ;;  %v1222_v41 = vperm.slane %v1216_v59, %v5064_v36  ;;  %v1520_v57 = vrot.slane %v4609_v0, 1 }
  0xec   : > { %1292 = vmatpush.bf16.xpose.msra.mxu2 %v1283_v61  ;;  %v1218_v63 = vsel %vm668_vm1, %v1202_v43, %v1217_v56  ;;  %v1523_v56 = vrot.slane %v4609_v0, 4 }
  0xed   : > { %v1227_v2 = vrot.slane %v1222_v41, 4  ;;  %v1230_v4 = vsel %vm668_vm1, %v1222_v41, %v1229_v62  ;;  %v1226_v5 = vperm.slane %v1218_v63, %v5064_v36  ;;  %v1526_v41 = vrot.slane %v4609_v0, 7 }
  0xee   : > { %1239 = vrot.lane.b32.xlu1 %v1230_v4, %s4929_s12  ;;  %v1538_v63 = vperm.slane %v1523_v56, 0  ;;  %v1535_v4 = vperm.slane %v1520_v57, 0 }
  0xef   : > { %v1234_v48 = vsel %vm668_vm1, %v1226_v5, %v1233_v6  ;;  %v1231_v10 = vrot.slane %v1226_v5, 4  ;;  %v5204_v11 = vsel %vm668_vm1, %v1227_v2, %v1210_v51  ;;  %v1534_v2 = vperm.slane %v4609_v0, 0 }
  0xf0   : > { %1255 = vrot.lane.b32.xlu2 %v1234_v48, %s4931_s14 }
  0xf1   : > { %v1232_v13 = vsel %vm668_vm1, %v1231_v10, %v1214_v55  ;;  %v1522_v55 = vrot.slane %v4609_v0, 3  ;;  %v1541_v10 = vperm.slane %v1526_v41, 0 }
  0xf2   : > { %1247 = vrot.lane.b32.xlu0 %v1232_v13, %s4930_s13  ;;  %v1524_v13 = vrot.slane %v4609_v0, 5 }
  0xf3   : > { %4601 = vmatmul.msk.bf16.vlgmr.msra.gmra.mxu2 %vm464_vm0, %v1271_v12  ;;  %v1537_v62 = vperm.slane %v1522_v55, 0 }
  0xf6   : > { %1253 = vrot.lane.b32.xlu1 %v1178_v15, %s4931_s14 }
  0xf8   : > { %1436 = vperm.xlu2 %4792, %v1431_v14  }
  0xfa   : > { %1422 = vperm.xlu0 %4790, %v1417_v16  }
  0xfe   : > { %1368 = vrot.lane.b32.xlu1 %v4728_v18, %s4926_s30  ;;  %s4943_s30 = smov 24  }
 0x100   : > { %1450 = vperm.xlu2 %4792, %v1445_v3  }
 0x102   : > { %1457 = vperm.xlu0 %4790, %v1452_v23  }
 0x106   : > { %1429 = vperm.xlu1 %4791, %v1424_v24  }
 0x108   : > { %1471 = vperm.xlu2 %4792, %v1466_v25  }
 0x10a   : > { %1478 = vperm.xlu0 %4790, %v1473_v19   ;;  %v1539_v19 = vperm.slane %v1524_v13, 0 }
 0x10e   : > { %1443 = vperm.xlu1 %4791, %v1438_v21  }
 0x110   : > { %1492 = vperm.xlu2 %4792, %v1487_v27  }
 0x112   : > { %1499 = vperm.xlu0 %4790, %v1494_v29  }
 0x116   : > { %1464 = vperm.xlu1 %4791, %v1459_v60  }
 0x118   : > { %1513 = vperm.xlu2 %4792, %v1508_v31  }
 0x11a   : > { %v5237_v28 = vpop.permute.xlu1 %782 }
 0x11b   : > { %v5229_v34 = vpop.permute.xlu2 %784 }
 0x11d   : > { %v5235_v30 = vpop.permute.xlu0 %790 }
 0x11e   : > { %1485 = vperm.xlu1 %4791, %v1480_v32  }
 0x123   : > { %v5231_v35 = vpop.permute.xlu2 %798 }
 0x126   : > { %1506 = vperm.xlu1 %4791, %v1501_v33  }
 0x131   : > { %v5239_v37 = vpop.permute.xlu0 %800 }
 0x132   : > { %v5233_v17 = vpop.permute.xlu2 %1245 }
 0x133   : > { %v5241_v38 = vpop.permute.xlu1 %792 }
 0x13a   : > { %v1409_v20 = vpop.permute.xlu2 %1408 }
 0x13b   : > { %v1566_v16 = vadd.f32 %v1534_v2, %v1409_v20 }
 0x142   : > { %v1416_v42 = vpop.permute.xlu2 %1415 }
 0x143   : > { %v1567_v18 = vadd.f32 %v1535_v4, %v1416_v42 }
 0x14a   : > { %v5243_v40 = vpop.permute.xlu2 %1255  ;;  %v5245_v7 = vpop.permute.xlu0 %1237 }
 0x152   : > { %v1437_v39 = vpop.permute.xlu2 %1436 }
 0x153   : > { %v1570_v44 = vadd.f32 %v1538_v63, %v1437_v39 }
 0x15a   : > { %v1451_v49 = vpop.permute.xlu2 %1450 }
 0x15b   : > { %v1572_v59 = vadd.f32 %v1540_v50, %v1451_v49  ;;  %v4610_v49 = vld [vmem:[%s5040_s11 + $0x28] sm:$0xff] }
 0x15d   : > { %v1594_v5 = vrot.slane %v1572_v59, 4  ;;  %v1533_v59 = vrot.slane %v4610_v49, 7 }
 0x15f   : > { %v1595_v23 = vsel %vm668_vm1, %v1594_v5, %v1570_v44 }
 0x160   : > { %v5247_v53 = vpop.permute.xlu1 %1239  ;;  %v1599_v27 = vperm.slane %v1595_v23, %v5049_v9 }
 0x162   : > { %v1472_v14 = vpop.permute.xlu2 %1471  ;;  %v1620_v39 = vrot.slane %v1599_v27, 4 }
 0x164   : > { %v5249_v43 = vpop.permute.xlu0 %1247 }
 0x168   : > { %v5251_v45 = vpop.permute.xlu1 %1253 }
 0x16a   : > { %v1493_v0 = vpop.permute.xlu2 %1492 }
 0x16c   : > { %v1423_v51 = vpop.permute.xlu0 %1422 }
 0x16d   : > { %v1568_v61 = vadd.f32 %v1536_v54, %v1423_v51  ;;  %v1528_v51 = vrot.slane %v4610_v49, 2 }
 0x16f   : > { %v1582_v48 = vrot.slane %v1568_v61, 4 }
 0x170   : > { %v1369_v52 = vpop.permute.xlu1 %1368 }
 0x171   : > { %1381 = vmatpush.bf16.msra.mxu3 %v1369_v52  ;;  %v1583_v58 = vsel %vm668_vm1, %v1582_v48, %v1566_v16  ;;  %v1544_v48 = vperm.slane %v1528_v51, 0  ;;  %v1542_v16 = vperm.slane %v4610_v49, 0 }
 0x172   : > { %v1587_v29 = vperm.slane %v1583_v58, %v5049_v9  ;;  %v1514_v23 = vpop.permute.xlu2 %1513 }
 0x174   : > { %v1458_v15 = vpop.permute.xlu0 %1457  ;;  %v1608_v46 = vrot.slane %v1587_v29, 4 }
 0x175   : > { %v1573_v24 = vadd.f32 %v1541_v10, %v1458_v15  ;;  %v1531_v10 = vrot.slane %v4610_v49, 5  ;;  %v1549_v15 = vperm.slane %v1533_v59, 0 }
 0x177   : > { %v1600_v32 = vrot.slane %v1573_v24, 4 }
 0x178   : > { %v1430_v6 = vpop.permute.xlu1 %1429 }
 0x179   : > { %v1569_v12 = vadd.f32 %v1537_v62, %v1430_v6  ;;  %v1529_v62 = vrot.slane %v4610_v49, 3  ;;  %v1527_v6 = vrot.slane %v4610_v49, 1 }
 0x17b   : > { %v1588_v3 = vrot.slane %v1569_v12, 4  ;;  %v1543_v58 = vperm.slane %v1527_v6, 0 }
 0x17c   : > { %v1479_v52 = vpop.permute.xlu0 %1478 }
 0x17d   : > { %v1589_v25 = vsel %vm668_vm1, %v1588_v3, %v1567_v18  ;;  %v1545_v18 = vperm.slane %v1529_v62, 0  ;;  %v1576_v24 = vadd.f32 %v1544_v48, %v1479_v52 }
 0x17e   : > { %v1593_v21 = vperm.slane %v1589_v25, %v5049_v9  ;;  %v1547_v25 = vperm.slane %v1531_v10, 0 }
 0x180   : > { %v1606_v60 = vrot.slane %v1593_v21, 4  ;;  %v1444_v31 = vpop.permute.xlu1 %1443  ;;  %v1609_v55 = vsel %vm668_vm1, %v1593_v21, %v1608_v46 }
 0x181   : > { %v1571_v33 = vadd.f32 %v1539_v19, %v1444_v31  ;;  %v5272_v63 = vperm.slane %v1609_v55, %v5064_v36  ;;  %v1532_v31 = vrot.slane %v4610_v49, 6 }
 0x182   : > { %v1607_v20 = vsel %vm668_vm1, %v1606_v60, %v1587_v29 }
 0x183   : > { %v1601_v42 = vsel %vm668_vm1, %v1600_v32, %v1571_v33  ;;  %v1613_v50 = vperm.slane %v1607_v20, %v5064_v36  ;;  %v1530_v32 = vrot.slane %v4610_v49, 4  ;;  %v1575_v33 = vadd.f32 %v1543_v58, %v1472_v14 }
 0x184   : > { %v1605_v47 = vperm.slane %v1601_v42, %v5049_v9  ;;  %v1500_v19 = vpop.permute.xlu0 %1499  ;;  %v1638_v20 = vrot.slane %v1576_v24, 4  ;;  %v1548_v51 = vperm.slane %v1532_v31, 0  ;;  %v838_v24 = vpop.f32.mrf.mxu0 }
 0x185   : > { %v1632_v5 = vrot.slane %v1613_v50, 4  ;;  %v1579_v42 = vadd.f32 %v1547_v25, %v1500_v19 }
 0x186   : > { %v1618_v54 = vrot.slane %v1605_v47, 4  ;;  %v1621_v56 = vsel %vm668_vm1, %v1605_v47, %v1620_v39 }
 0x187   : > { %v5268_v57 = vperm.slane %v1621_v56, %v5064_v36 }
 0x188   : > { %v1465_v61 = vpop.permute.xlu1 %1464  ;;  %v1619_v41 = vsel %vm668_vm1, %v1618_v54, %v1599_v27  ;;  %v1581_v27 = vadd.f32 %v1549_v15, %v1514_v23  ;;  %v1546_v54 = vperm.slane %v1530_v32, 0 }
 0x189   : > { %v1634_v2 = vrot.slane %v5268_v57, 4  ;;  %v1625_v4 = vperm.slane %v1619_v41, %v5064_v36  ;;  %v1574_v29 = vadd.f32 %v1542_v16, %v1465_v61 }
 0x18a   : > { %v1656_v46 = vrot.slane %v1581_v27, 4  ;;  %v1578_v62 = vadd.f32 %v1546_v54, %v1493_v0 }
 0x18b   : > { %v1635_v12 = vsel %vm668_vm1, %v1634_v2, %v5272_v63  ;;  %v1633_v13 = vsel %vm668_vm1, %v1625_v4, %v1632_v5  ;;  %v1630_v44 = vrot.slane %v1625_v4, 4  ;;  %v1639_v47 = vsel %vm668_vm1, %v1638_v20, %v1574_v29 }
 0x18c   : > { %1704 = vrot.lane.b32.xlu2 %v1635_v12, %s4930_s13  ;;  %1696 = vrot.lane.b32.xlu0 %v1633_v13, %s4929_s12  ;;  %v1657_v55 = vsel %vm668_vm1, %v1656_v46, %v1579_v42  ;;  %v1643_v56 = vperm.slane %v1639_v47, %v5049_v9  ;;  %v806_v29 = vsel %vm464_vm0, %v5137_v26, %v5229_v34  ;;  %v840_v42 = vpop.f32.mrf.mxu0  ;;  %v4625_v26 = vld [vmem:[%s5006_s25 + $0x30] sm:$0xff] }
 0x18d   : > { %v5282_v3 = vsel %vm668_vm1, %v1630_v44, %v1613_v50  ;;  %v1661_v14 = vperm.slane %v1657_v55, %v5049_v9  ;;  %v809_v31 = vsel %vm807_vm2, %v806_v29, %v5241_v38  ;;  %v1259_v34 = vsel %vm464_vm0, %v5177_v22, %v5245_v7  ;;  %v5337_v7 = vld [vmem:[%s5006_s25 + $0x38] sm:$0xff] }
 0x18e   : > { %v1664_v10 = vrot.slane %v1643_v56, 4  ;;  %v812_v20 = vsel %vm810_vm3, %v809_v31, %v5239_v37  ;;  %v1261_v37 = vsel %vm807_vm2, %v1259_v34, %v5233_v17  ;;  %v1911_v22 = vperm.slane %v4625_v26, 7 }
 0x18f   : > { %v1674_v6 = vrot.slane %v1661_v14, 4  ;;  %v1263_v46 = vsel %vm810_vm3, %v1261_v37, %v5251_v45  ;;  %v805_v17 = vsel %vm464_vm0, %v5092_v8, %v5237_v28  ;;  %v1953_v45 = vperm.slane %v5337_v7, 5 }
 0x190   : > { %v1486_v21 = vpop.permute.xlu1 %1485  ;;  %v1862_v28 = vperm.slane %v4625_v26, 0 }
 0x191   : > { %v1577_v60 = vadd.f32 %v1545_v18, %v1486_v21 }
 0x193   : > { %v1644_v39 = vrot.slane %v1577_v60, 4  ;;  %v1636_v60 = vrot.slane %v5272_v63, 4  ;;  %v1294_v63 = vpop.f32.mrf.mxu2 }
 0x194   : > { %v5332_v47 = vadd.f32 %v1294_v63, %v1263_v46 }
 0x195   : > { %v1645_v50 = vsel %vm668_vm1, %v1644_v39, %v1575_v33  ;;  %v1637_v32 = vsel %vm668_vm1, %v5268_v57, %v1636_v60  ;;  %v4729_v33 = vld [vmem:[%s5019_s29] sm:$0xff]  ;;  %v5319_v39 = vadd.f32 %v840_v42, %v812_v20  ;;  %v1876_v57 = vperm.slane %v4625_v26, 2 }
 0x196   : > { %v1649_v52 = vperm.slane %v1645_v50, %v5049_v9  ;;  %v1302_v50 = vsel %vm845_vm4, %v5332_v47, -inf }
 0x197   : > { %v849_v38 = vsel %vm845_vm4, %v5319_v39, -inf }
 0x198   : > { %v1662_v59 = vrot.slane %v1649_v52, 4  ;;  %v1507_v61 = vpop.permute.xlu1 %1506  ;;  %v1665_v16 = vsel %vm668_vm1, %v1649_v52, %v1664_v10  ;;  %v808_v52 = vsel %vm807_vm2, %v805_v17, %v5235_v30  ;;  %v1890_v30 = vperm.slane %v4625_v26, 4 }
 0x199   : > { %v1580_v49 = vadd.f32 %v1548_v51, %v1507_v61  ;;  %v1673_v25 = vperm.slane %v1665_v16, %v5064_v36  ;;  %v1932_v51 = vperm.slane %v5337_v7, 2  ;;  %v811_v54 = vsel %vm810_vm3, %v808_v52, %v5231_v35 }
 0x19a   : > { %v1663_v41 = vsel %vm668_vm1, %v1662_v59, %v1643_v56  ;;  %v5348_v55 = vadd.f32 %v838_v24, %v811_v54  ;;  %v1869_v61 = vperm.slane %v4625_v26, 1  ;;  %v1260_v35 = vsel %vm464_vm0, %v5204_v11, %v5247_v53 }
 0x19b   : > { %v1650_v2 = vrot.slane %v1580_v49, 4  ;;  %v1669_v5 = vperm.slane %v1663_v41, %v5064_v36  ;;  %v1692_v56 = vrot.slane %v1673_v25, 4  ;;  %v4730_v49 = vld [vmem:[%s5027_s8] sm:$0xff]  ;;  %v1904_v41 = vperm.slane %v4625_v26, 6 }
 0x19c   : > { %v846_v8 = vsel %vm845_vm4, %v5348_v55, -inf  ;;  %v1883_v11 = vperm.slane %v4625_v26, 3  ;;  %v1946_v53 = vperm.slane %v5337_v7, 4  ;;  %v4933_v10 = vmov -inf  }
 0x19d   : > { %v1651_v4 = vsel %vm668_vm1, %v1650_v2, %v1578_v62  ;;  %v1688_v15 = vrot.slane %v1669_v5, 4  ;;  %v1296_v62 = vpop.f32.mrf.mxu2  ;;  %v4731_v2 = vld [vmem:[%s5220_s17] sm:$0xff]  ;;  %433 = vst.msk [vmem:[#allocation2 + $0x8] sm:$0xff] %vm431_vm5, %v4933_v10 }
 0x19e   : > { %v1655_v48 = vperm.slane %v1651_v4, %v5049_v9  ;;  %432 = vst.msk [vmem:[#allocation2] sm:$0xff] %vm431_vm5, %v4933_v10 }
 0x19f   : > { %434 = vst.msk [vmem:[#allocation2 + $0x10] sm:$0xff] %vm431_vm5, %v4933_v10 }
 0x1a0   : > { %v1676_v12 = vrot.slane %v1655_v48, 4  ;;  %v1675_v13 = vsel %vm668_vm1, %v1674_v6, %v1655_v48  ;;  %v1925_v48 = vperm.slane %v5337_v7, 1  ;;  %435 = vst.msk [vmem:[#allocation2 + $0x18] sm:$0xff] %vm431_vm5, %v4933_v10 }
 0x1a1   : > { %v1681_v44 = vperm.slane %v1675_v13, %v5064_v36  ;;  %436 = vst.msk [vmem:[#allocation2 + $0x20] sm:$0xff] %vm431_vm5, %v4933_v10  ;;  %v1939_v13 = vperm.slane %v5337_v7, 3 }
 0x1a2   : > { %v1677_v18 = vsel %vm668_vm1, %v1661_v14, %v1676_v12  ;;  %v1262_v14 = vsel %vm807_vm2, %v1260_v35, %v5249_v43  ;;  %v1897_v43 = vperm.slane %v4625_v26, 5  ;;  %437 = vst.msk [vmem:[#allocation2 + $0x28] sm:$0xff] %vm431_vm5, %v4933_v10  ;;  %v1918_v12 = vperm.slane %v5337_v7, 0 }
 0x1a3   : > { %v1689_v0 = vsel %vm668_vm1, %v1681_v44, %v1688_v15  ;;  %v1686_v23 = vrot.slane %v1681_v44, 4  ;;  %v1685_v58 = vperm.slane %v1677_v18, %v5064_v36  ;;  %v1264_v4 = vsel %vm810_vm3, %v1262_v14, %v5243_v40  ;;  %438 = vst.msk [vmem:[#allocation2 + $0x30] sm:$0xff] %vm431_vm5, %v4933_v10 }
 0x1a4   : > { %1698 = vrot.lane.b32.xlu1 %v1689_v0, %s4929_s12  ;;  %v1967_v40 = vperm.slane %v5337_v7, 7  ;;  %439 = vst.msk [vmem:[#allocation2 + $0x38] sm:$0xff] %vm431_vm5, %v4933_v10  ;;  %v4934_v44 = vmov 0.0   ;;  %v1960_v15 = vperm.slane %v5337_v7, 6  ;;  %v5412_v18 = vld [vmem:[#allocation2 + $0x8] sm:$0xff]  ;;  %v4627_v7 = vld [vmem:[%s5040_s11 + $0x30] sm:$0xff] }
 0x1a5   : > { %v1690_v19 = vrot.slane %v1685_v58, 4  ;;  %v5303_v21 = vsel %vm668_vm1, %v1686_v23, %v1669_v5  ;;  %v1693_v59 = vsel %vm668_vm1, %v1685_v58, %v1692_v56  ;;  %v5364_v5 = vadd.f32 %v1296_v62, %v1264_v4  ;;  %440 = vst.msk [vmem:[#allocation2 + $0x40] sm:$0xff] %vm431_vm5, %v4933_v10  ;;  %v5452_v42 = vld [vmem:[#allocation2] sm:$0xff] }
 0x1a6   : > { %441 = vst.msk [vmem:[#allocation2 + $0x48] sm:$0xff] %vm431_vm5, %v4933_v10  ;;  %v5428_v24 = vld [vmem:[#allocation2 + $0x10] sm:$0xff]  ;;  %v1984_v17 = vrot.slane %v4627_v7, 6  ;;  %v1980_v52 = vrot.slane %v4627_v7, 2  ;;  %v1993_v14 = vperm.slane %v4627_v7, 0 }
 0x1a7   : > { %v1691_v27 = vsel %vm668_vm1, %v1690_v19, %v1673_v25  ;;  %v1305_v6 = vsel %vm845_vm4, %v5364_v5, -inf  ;;  %442 = vst.msk [vmem:[#allocation2 + $0x50] sm:$0xff] %vm431_vm5, %v4933_v10 }
 0x1a8   : > { %1706 = vrot.lane.b32.xlu0 %v1691_v27, %s4930_s13  ;;  %443 = vst.msk [vmem:[#allocation2 + $0x58] sm:$0xff] %vm431_vm5, %v4933_v10  ;;  %v1999_v56 = vperm.slane %v1984_v17, 0 }
 0x1a9   : > { %444 = vst.msk [vmem:[#allocation2 + $0x60] sm:$0xff] %vm431_vm5, %v4933_v10 }
 0x1aa   : > { %445 = vst.msk [vmem:[#allocation2 + $0x68] sm:$0xff] %vm431_vm5, %v4933_v10 }
 0x1ab   : > { %446 = vst.msk [vmem:[#allocation2 + $0x70] sm:$0xff] %vm431_vm5, %v4933_v10 }
 0x1ac   : > { %1712 = vrot.lane.b32.xlu1 %v1637_v32, %s4931_s14  ;;  %447 = vst.msk [vmem:[#allocation2 + $0x78] sm:$0xff] %vm431_vm5, %v4933_v10 }
 0x1ad   : > { %465 = vst.msk [vmem:[#allocation4] sm:$0xff] %vm464_vm0, %v4934_v44 }
 0x1ae   : > { %448 = vst.msk [vmem:[#allocation3] sm:$0xff] %vm431_vm5, %v4934_v44 }
 0x1af   : > { %449 = vst.msk [vmem:[#allocation3 + $0x8] sm:$0xff] %vm431_vm5, %v4934_v44 }
 0x1b0   : > { %1729 = vrot.lane.b32.xlu0 %v4729_v33, %s4932_s18  ;;  %450 = vst.msk [vmem:[#allocation3 + $0x10] sm:$0xff] %vm431_vm5, %v4934_v44  ;;  %v4725_v33 = vld [vmem:[%s5220_s17] sm:$0xff] }
 0x1b1   : > { %451 = vst.msk [vmem:[#allocation3 + $0x18] sm:$0xff] %vm431_vm5, %v4934_v44  ;;  %922 = vmatpush.bf16.msra.mxu1 %v4725_v33 }
 0x1b2   : > { %452 = vst.msk [vmem:[#allocation3 + $0x20] sm:$0xff] %vm431_vm5, %v4934_v44 }
 0x1b3   : > { %453 = vst.msk [vmem:[#allocation3 + $0x28] sm:$0xff] %vm431_vm5, %v4934_v44 }
 0x1b4   : > { %454 = vst.msk [vmem:[#allocation3 + $0x30] sm:$0xff] %vm431_vm5, %v4934_v44 }
 0x1b5   : > { %850 = vmax.xlane.f32.xlu2 %v849_v38  ;;  %455 = vst.msk [vmem:[#allocation3 + $0x38] sm:$0xff] %vm431_vm5, %v4934_v44 }
 0x1b6   : > { %456 = vst.msk [vmem:[#allocation3 + $0x40] sm:$0xff] %vm431_vm5, %v4934_v44 }
 0x1b7   : > { %457 = vst.msk [vmem:[#allocation3 + $0x48] sm:$0xff] %vm431_vm5, %v4934_v44 }
 0x1b8   : > { %1881 = vperm.xlu0 %4790, %v1876_v57   ;;  %458 = vst.msk [vmem:[#allocation3 + $0x50] sm:$0xff] %vm431_vm5, %v4934_v44 }
 0x1b9   : > { %459 = vst.msk [vmem:[#allocation3 + $0x58] sm:$0xff] %vm431_vm5, %v4934_v44 }
 0x1ba   : > { %460 = vst.msk [vmem:[#allocation3 + $0x60] sm:$0xff] %vm431_vm5, %v4934_v44 }
 0x1bb   : > { %461 = vst.msk [vmem:[#allocation3 + $0x68] sm:$0xff] %vm431_vm5, %v4934_v44 }
 0x1bc   : > { %462 = vst.msk [vmem:[#allocation3 + $0x70] sm:$0xff] %vm431_vm5, %v4934_v44 }
 0x1bd   : > { %1303 = vmax.xlane.f32.xlu2 %v1302_v50  ;;  %463 = vst.msk [vmem:[#allocation3 + $0x78] sm:$0xff] %vm431_vm5, %v4934_v44 }
 0x1be   : > { %466 = vst.msk [vmem:[#allocation4 + $0x8] sm:$0xff] %vm464_vm0, %v4934_v44 }
 0x1bf   : > { %467 = vst.msk [vmem:[#allocation4 + $0x10] sm:$0xff] %vm464_vm0, %v4934_v44 }
 0x1c0   : > { %1916 = vperm.xlu0 %4790, %v1911_v22   ;;  %468 = vst.msk [vmem:[#allocation4 + $0x18] sm:$0xff] %vm464_vm0, %v4934_v44 }
 0x1c1   : > { %469 = vst.msk [vmem:[#allocation4 + $0x20] sm:$0xff] %vm464_vm0, %v4934_v44 }
 0x1c2   : > { %470 = vst.msk [vmem:[#allocation4 + $0x28] sm:$0xff] %vm464_vm0, %v4934_v44 }
 0x1c3   : > { %471 = vst.msk [vmem:[#allocation4 + $0x30] sm:$0xff] %vm464_vm0, %v4934_v44 }
 0x1c4   : > { %472 = vst.msk [vmem:[#allocation4 + $0x38] sm:$0xff] %vm464_vm0, %v4934_v44 }
 0x1c5   : > { %473 = vst.msk [vmem:[#allocation4 + $0x40] sm:$0xff] %vm464_vm0, %v4934_v44 }
 0x1c6   : > { %474 = vst.msk [vmem:[#allocation4 + $0x48] sm:$0xff] %vm464_vm0, %v4934_v44 }
 0x1c7   : > { %475 = vst.msk [vmem:[#allocation4 + $0x50] sm:$0xff] %vm464_vm0, %v4934_v44 }
 0x1c8   : > { %1937 = vperm.xlu0 %4790, %v1932_v51   ;;  %476 = vst.msk [vmem:[#allocation4 + $0x58] sm:$0xff] %vm464_vm0, %v4934_v44 }
 0x1c9   : > { %477 = vst.msk [vmem:[#allocation4 + $0x60] sm:$0xff] %vm464_vm0, %v4934_v44 }
 0x1ca   : > { %478 = vst.msk [vmem:[#allocation4 + $0x68] sm:$0xff] %vm464_vm0, %v4934_v44 }
 0x1cb   : > { %479 = vst.msk [vmem:[#allocation4 + $0x70] sm:$0xff] %vm464_vm0, %v4934_v44 }
 0x1cc   : > { %480 = vst.msk [vmem:[#allocation4 + $0x78] sm:$0xff] %vm464_vm0, %v4934_v44 }
 0x1d0   : > { %1958 = vperm.xlu0 %4790, %v1953_v45  }
 0x1d5   : > { %1714 = vrot.lane.b32.xlu2 %v1693_v59, %s4931_s14  ;;  %v1981_v59 = vrot.slane %v4627_v7, 3 }
 0x1d6   : > { %847 = vmax.xlane.f32.xlu1 %v846_v8  ;;  %v5465_v8 = vld [vmem:[#allocation2 + $0x18] sm:$0xff] }
 0x1dd   : > { %1867 = vperm.xlu2 %4792, %v1862_v28   ;;  %v1995_v28 = vperm.slane %v1980_v52, 0 }
 0x1e5   : > { %1874 = vperm.xlu2 %4792, %v1869_v61   ;;  %v1979_v61 = vrot.slane %v4627_v7, 1 }
 0x1e6   : > { %v5404_v16 = vpop.permute.xlu2 %1704 }
 0x1ed   : > { %1895 = vperm.xlu2 %4792, %v1890_v30   ;;  %v1982_v30 = vrot.slane %v4627_v7, 4 }
 0x1ef   : > { %1736 = vrot.lane.b32.xlu1 %v4730_v49, %s4932_s18  ;;  %v1985_v49 = vrot.slane %v4627_v7, 7 }
 0x1f5   : > { %1909 = vperm.xlu2 %4792, %v1904_v41  }
 0x1f7   : > { %1827 = vrot.lane.b32.xlu1 %v4731_v2, %s4932_s18  ;;  %v1996_v2 = vperm.slane %v1981_v59, 0 }
 0x1fa   : > { %1306 = vmax.xlane.f32.xlu0 %v1305_v6  ;;  %v1994_v6 = vperm.slane %v1979_v61, 0 }
 0x1fd   : > { %1930 = vperm.xlu2 %4792, %v1925_v48   ;;  %v1997_v48 = vperm.slane %v1982_v30, 0 }
 0x1fe   : > { %v5422_v58 = vpop.permute.xlu0 %1696 }
 0x1ff   : > { %1888 = vperm.xlu1 %4791, %v1883_v11   ;;  %v2000_v11 = vperm.slane %v1985_v49, 0 }
 0x205   : > { %1951 = vperm.xlu2 %4792, %v1946_v53  }
 0x207   : > { %1902 = vperm.xlu1 %4791, %v1897_v43  }
 0x20d   : > { %1972 = vperm.xlu2 %4792, %v1967_v40  }
 0x20f   : > { %1923 = vperm.xlu1 %4791, %v1918_v12  }
 0x216   : > { %v5443_v29 = vpop.permute.xlu1 %1698 }
 0x217   : > { %1944 = vperm.xlu1 %4791, %v1939_v13   ;;  %v1983_v13 = vrot.slane %v4627_v7, 5 }
 0x21a   : > { %v5438_v27 = vpop.permute.xlu0 %1706 }
 0x21e   : > { %v5449_v32 = vpop.permute.xlu1 %1712 }
 0x21f   : > { %1965 = vperm.xlu1 %4791, %v1960_v15  }
 0x222   : > { %v5445_v60 = vpop.permute.xlu0 %1729 }
 0x228   : > { %v851_v0 = vpop.xlane.xlu2 %850 }
 0x229   : > { %v5418_v23 = vmax.f32 %v5412_v18, %v851_v0 }
 0x22a   : > { %v1882_v20 = vpop.permute.xlu0 %1881 }
 0x22b   : > { %934 = vst.msk [vmem:[#allocation2 + $0x8] sm:$0xff] %vm431_vm5, %v5418_v23  ;;  %v2027_v4 = vadd.f32 %v1995_v28, %v1882_v20 }
 0x22d   : > { %v2041_v44 = vrot.slane %v2027_v4, 4 }
 0x230   : > { %v1304_v25 = vpop.xlane.xlu2 %1303 }
 0x231   : > { %v5434_v19 = vmax.f32 %v5428_v24, %v1304_v25 }
 0x232   : > { %v1917_v57 = vpop.permute.xlu0 %1916 }
 0x233   : > { %1392 = vst.msk [vmem:[#allocation2 + $0x10] sm:$0xff] %vm431_vm5, %v5434_v19  ;;  %v2032_v33 = vadd.f32 %v2000_v11, %v1917_v57 }
 0x238   : > { %v5447_v31 = vpop.permute.xlu2 %1714 }
 0x23a   : > { %v5459_v37 = vpop.permute.xlu0 %1937 }
 0x240   : > { %v1868_v26 = vpop.permute.xlu2 %1867 }
 0x241   : > { %v2025_v10 = vadd.f32 %v1993_v14, %v1868_v26 }
 0x242   : > { %v5463_v51 = vpop.permute.xlu0 %1958 }
 0x243   : > { %v2042_v20 = vsel %vm668_vm1, %v2041_v44, %v2025_v10 }
 0x244   : > { %v2046_v26 = vperm.slane %v2042_v20, %v5049_v9 }
 0x246   : > { %v2067_v61 = vrot.slane %v2046_v26, 4 }
 0x248   : > { %v1875_v63 = vpop.permute.xlu2 %1874 }
 0x249   : > { %v848_v34 = vpop.xlane.xlu1 %847  ;;  %v2026_v15 = vadd.f32 %v1994_v6, %v1875_v63  ;;  %v4628_v63 = vld [vmem:[%s5040_s11 + $0x38] sm:$0xff] }
 0x24a   : > { %v5455_v38 = vmax.f32 %v5452_v42, %v848_v34  ;;  %v1987_v28 = vrot.slane %v4628_v63, 2  ;;  %v1992_v14 = vrot.slane %v4628_v63, 7  ;;  %v1988_v10 = vrot.slane %v4628_v63, 3 }
 0x24c   : > { %933 = vst.msk [vmem:[#allocation2] sm:$0xff] %vm431_vm5, %v5455_v38 }
 0x250   : > { %v1896_v46 = vpop.permute.xlu2 %1895 }
 0x251   : > { %v2029_v0 = vadd.f32 %v1997_v48, %v1896_v46  ;;  %v2003_v48 = vperm.slane %v1987_v28, 0 }
 0x258   : > { %v1910_v45 = vpop.permute.xlu2 %1909 }
 0x259   : > { %v2031_v41 = vadd.f32 %v1999_v56, %v1910_v45 }
 0x25b   : > { %v2053_v40 = vrot.slane %v2031_v41, 4 }
 0x25d   : > { %v2054_v34 = vsel %vm668_vm1, %v2053_v40, %v2029_v0  ;;  %v2008_v0 = vperm.slane %v1992_v14, 0 }
 0x25e   : > { %v2058_v45 = vperm.slane %v2054_v34, %v5049_v9 }
 0x260   : > { %v5472_v53 = vpop.permute.xlu2 %1930  ;;  %v2079_v30 = vrot.slane %v2058_v45, 4 }
 0x261   : > { %v1737_v50 = vpop.permute.xlu1 %1736 }
 0x262   : > { %v1742_v22 = vsel %vm464_vm0, %v1737_v50, 0 }
 0x263   : > { %1751 = vmatpush.bf16.xpose.msrb.mxu1 %v1742_v22  ;;  %v1998_v22 = vperm.slane %v1983_v13, 0 }
 0x268   : > { %v5481_v56 = vpop.permute.xlu2 %1951 }
 0x269   : > { %v1828_v54 = vpop.permute.xlu1 %1827 }
 0x26a   : > { %1840 = vmatpush.bf16.msrb.mxu3 %v1828_v54  ;;  %v2059_v54 = vrot.slane %v2032_v33, 4 }
 0x26d   : > { %v1307_v35 = vpop.xlane.xlu0 %1306 }
 0x26e   : > { %v5468_v62 = vmax.f32 %v5465_v8, %v1307_v35 }
 0x270   : > { %1393 = vst.msk [vmem:[#allocation2 + $0x18] sm:$0xff] %vm431_vm5, %v5468_v62 }
 0x271   : > { %v1889_v43 = vpop.permute.xlu1 %1888 }
 0x272   : > { %v2028_v12 = vadd.f32 %v1996_v2, %v1889_v43 }
 0x274   : > { %v2047_v25 = vrot.slane %v2028_v12, 4 }
 0x276   : > { %v2048_v50 = vsel %vm668_vm1, %v2047_v25, %v2026_v15  ;;  %v1986_v15 = vrot.slane %v4628_v63, 1  ;;  %v2001_v25 = vperm.slane %v4628_v63, 0 }
 0x277   : > { %v2052_v17 = vperm.slane %v2048_v50, %v5049_v9  ;;  %v1973_v50 = vpop.permute.xlu2 %1972 }
 0x279   : > { %v2065_v7 = vrot.slane %v2052_v17, 4  ;;  %v1903_v52 = vpop.permute.xlu1 %1902  ;;  %v2068_v2 = vsel %vm668_vm1, %v2052_v17, %v2067_v61  ;;  %v1990_v17 = vrot.slane %v4628_v63, 5  ;;  %v1991_v61 = vrot.slane %v4628_v63, 6 }
 0x27a   : > { %v2030_v46 = vadd.f32 %v1998_v22, %v1903_v52  ;;  %v5494_v40 = vperm.slane %v2068_v2, %v5064_v36  ;;  %v2035_v22 = vadd.f32 %v2003_v48, %v5459_v37  ;;  %v2040_v52 = vadd.f32 %v2008_v0, %v1973_v50 }
 0x27b   : > { %v2066_v57 = vsel %vm668_vm1, %v2065_v7, %v2046_v26  ;;  %v2004_v26 = vperm.slane %v1988_v10, 0  ;;  %v2002_v7 = vperm.slane %v1986_v15, 0  ;;  %v4935_v48 = vmov 0  }
 0x27c   : > { %v2060_v59 = vsel %vm668_vm1, %v2059_v54, %v2030_v46  ;;  %v2072_v35 = vperm.slane %v2066_v57, %v5064_v36  ;;  %v2097_v57 = vrot.slane %v2035_v22, 4  ;;  %v2115_v14 = vrot.slane %v2040_v52, 4  ;;  %4793 = vset.pattern.permute.xlu0 %v4935_v48  ;;  %4794 = vset.pattern.permute.xlu1 %v4935_v48 }
 0x27d   : > { %v2064_v49 = vperm.slane %v2060_v59, %v5049_v9  ;;  %v2006_v59 = vperm.slane %v1990_v17, 0  ;;  %4795 = vset.pattern.permute.xlu2 %v4935_v48 }
 0x27e   : > { %v2091_v44 = vrot.slane %v2072_v35, 4 }
 0x27f   : > { %v2077_v41 = vrot.slane %v2064_v49, 4  ;;  %v2080_v4 = vsel %vm668_vm1, %v2064_v49, %v2079_v30  ;;  %v1989_v30 = vrot.slane %v4628_v63, 4  ;;  %v2034_v49 = vadd.f32 %v2002_v7, %v5472_v53 }
 0x280   : > { %v5490_v6 = vperm.slane %v2080_v4, %v5064_v36  ;;  %v2038_v2 = vadd.f32 %v2006_v59, %v5463_v51  ;;  %v2007_v4 = vperm.slane %v1991_v61, 0 }
 0x281   : > { %v1924_v11 = vpop.permute.xlu1 %1923  ;;  %v2078_v43 = vsel %vm668_vm1, %v2077_v41, %v2058_v45  ;;  %v2005_v53 = vperm.slane %v1989_v30, 0 }
 0x282   : > { %v2093_v12 = vrot.slane %v5490_v6, 4  ;;  %v2084_v13 = vperm.slane %v2078_v43, %v5064_v36  ;;  %v2033_v54 = vadd.f32 %v2001_v25, %v1924_v11  ;;  %v2116_v43 = vsel %vm668_vm1, %v2115_v14, %v2038_v2  ;;  %v4732_v2 = vld [vmem:[%s5019_s29] sm:$0xff] }
 0x283   : > { %v2037_v0 = vadd.f32 %v2005_v53, %v5481_v56 }
 0x284   : > { %v2094_v33 = vsel %vm668_vm1, %v2093_v12, %v5494_v40  ;;  %v2092_v20 = vsel %vm668_vm1, %v2084_v13, %v2091_v44  ;;  %v2089_v34 = vrot.slane %v2084_v13, 4  ;;  %v2098_v41 = vsel %vm668_vm1, %v2097_v57, %v2033_v54 }
 0x285   : > { %2163 = vrot.lane.b32.xlu2 %v2094_v33, %s4930_s13  ;;  %2155 = vrot.lane.b32.xlu0 %v2092_v20, %s4929_s12  ;;  %v2102_v11 = vperm.slane %v2098_v41, %v5049_v9  ;;  %v2120_v13 = vperm.slane %v2116_v43, %v5049_v9  ;;  %v2095_v41 = vrot.slane %v5494_v40, 4 }
 0x286   : > { %v5505_v45 = vsel %vm668_vm1, %v2089_v34, %v2072_v35 }
 0x287   : > { %v2123_v44 = vrot.slane %v2102_v11, 4  ;;  %v2133_v50 = vrot.slane %v2120_v13, 4 }
 0x289   : > { %v1945_v46 = vpop.permute.xlu1 %1944 }
 0x28a   : > { %v2036_v28 = vadd.f32 %v2004_v26, %v1945_v46 }
 0x28c   : > { %v2103_v37 = vrot.slane %v2036_v28, 4 }
 0x28e   : > { %v2104_v35 = vsel %vm668_vm1, %v2103_v37, %v2034_v49  ;;  %v2096_v37 = vsel %vm668_vm1, %v5490_v6, %v2095_v41 }
 0x28f   : > { %v2108_v63 = vperm.slane %v2104_v35, %v5049_v9  ;;  %v4733_v35 = vld [vmem:[%s5027_s8] sm:$0xff] }
 0x291   : > { %v2121_v10 = vrot.slane %v2108_v63, 4  ;;  %v1966_v12 = vpop.permute.xlu1 %1965  ;;  %v2124_v33 = vsel %vm668_vm1, %v2108_v63, %v2123_v44 }
 0x292   : > { %v2039_v51 = vadd.f32 %v2007_v4, %v1966_v12  ;;  %v2132_v17 = vperm.slane %v2124_v33, %v5064_v36  ;;  %v854_v4 = vsub.f32 %v5452_v42, %v5455_v38 }
 0x293   : > { %v2122_v15 = vsel %vm668_vm1, %v2121_v10, %v2102_v11 }
 0x294   : > { %v2109_v25 = vrot.slane %v2039_v51, 4  ;;  %v2128_v34 = vperm.slane %v2122_v15, %v5064_v36  ;;  %v2151_v28 = vrot.slane %v2132_v17, 4  ;;  %v856_v11 = vmul.f32 1.442695, %v854_v4 }
 0x296   : > { %v2110_v20 = vsel %vm668_vm1, %v2109_v25, %v2037_v0  ;;  %v2147_v54 = vrot.slane %v2128_v34, 4  ;;  %4806 = vpow2.f32 %v856_v11 }
 0x297   : > { %v2114_v22 = vperm.slane %v2110_v20, %v5049_v9 }
 0x299   : > { %v2135_v26 = vrot.slane %v2114_v22, 4  ;;  %v2134_v7 = vsel %vm668_vm1, %v2133_v50, %v2114_v22 }
 0x29a   : > { %v2140_v52 = vperm.slane %v2134_v7, %v5064_v36 }
 0x29b   : > { %v2136_v56 = vsel %vm668_vm1, %v2120_v13, %v2135_v26 }
 0x29c   : > { %v2148_v46 = vsel %vm668_vm1, %v2140_v52, %v2147_v54  ;;  %v2145_v57 = vrot.slane %v2140_v52, 4  ;;  %v2144_v59 = vperm.slane %v2136_v56, %v5064_v36  ;;  %v5551_v6 = vpop.eup %4806 }
 0x29d   : > { %2157 = vrot.lane.b32.xlu1 %v2148_v46, %s4929_s12 }
 0x29e   : > { %v2152_v61 = vsel %vm668_vm1, %v2144_v59, %v2151_v28  ;;  %v2149_v30 = vrot.slane %v2144_v59, 4  ;;  %v5533_v49 = vsel %vm668_vm1, %v2145_v57, %v2128_v34 }
 0x29f   : > { %2173 = vrot.lane.b32.xlu2 %v2152_v61, %s4931_s14 }
 0x2a0   : > { %v2150_v14 = vsel %vm668_vm1, %v2149_v30, %v2132_v17 }
 0x2a1   : > { %2165 = vrot.lane.b32.xlu0 %v2150_v14, %s4930_s13 }
 0x2a5   : > { %2171 = vrot.lane.b32.xlu1 %v2096_v37, %s4931_s14 }
 0x2a9   : > { %2188 = vrot.lane.b32.xlu0 %v4732_v2, %s4936_s22  ;;  %v855_v2 = vsub.f32 %v5412_v18, %v5418_v23 }
 0x2ab   : > { %v858_v11 = vmul.f32 1.442695, %v855_v2 }
 0x2ad   : > { %2195 = vrot.lane.b32.xlu1 %v4733_v35, %s4936_s22  ;;  %v891_v35 = vld [vmem:[#allocation4] sm:$0xff] }
 0x2b1   : > { %862 = vperm.xlu0 %4793, %v5455_v38  }
 0x2b5   : > { %1318 = vperm.xlu1 %4794, %v5434_v19  }
 0x2b9   : > { %867 = vperm.xlu0 %4793, %v5418_v23   ;;  %v5603_v23 = vld [vmem:[#allocation2 + $0x30] sm:$0xff] }
 0x2bd   : > { %895 = vperm.xlu1 %4794, %v5551_v6  }
 0x2c1   : > { %4797 = vset.pattern.permute.xlu0 %v4993_v1 }
 0x2c5   : > { %1323 = vperm.xlu1 %4794, %v5468_v62  }
 0x2df   : > { %v2164_v54 = vpop.permute.xlu2 %2163 }
 0x2f7   : > { %v2156_v40 = vpop.permute.xlu0 %2155 }
 0x2f9   : > { %v2174_v30 = vpop.permute.xlu2 %2173 }
 0x30f   : > { %v2158_v63 = vpop.permute.xlu1 %2157 }
 0x310   : > { %v2178_v61 = vsel %vm464_vm0, %v5533_v49, %v2158_v63 }
 0x313   : > { %v2166_v53 = vpop.permute.xlu0 %2165 }
 0x317   : > { %v2172_v42 = vpop.permute.xlu1 %2171 }
 0x31b   : > { %v2189_v43 = vpop.permute.xlu0 %2188 }
 0x31f   : > { %v2196_v38 = vpop.permute.xlu1 %2195 }
 0x320   : > { %v2201_v10 = vsel %vm464_vm0, %v2196_v38, 0 }
 0x321   : > { %2210 = vmatpush.bf16.xpose.msrb.mxu0 %v2201_v10 }
 0x323   : > { %v863_v12 = vpop.permute.xlu0 %862 }
 0x324   : > { %v870_v51 = vsub.f32 %v5348_v55, %v863_v12 }
 0x326   : > { %v872_v44 = vmul.f32 1.442695, %v870_v51 }
 0x327   : > { %v1319_v13 = vpop.permute.xlu1 %1318 }
 0x328   : > { %4637 = vmatmul.msk.bf16.vlgmr.msrb.gmra.mxu0 %vm464_vm0, %v2189_v43  ;;  %4808 = vpow2.f32 %v872_v44  ;;  %v1326_v20 = vsub.f32 %v5332_v47, %v1319_v13 }
 0x32a   : > { %v1328_v22 = vmul.f32 1.442695, %v1326_v20 }
 0x32b   : > { %v868_v15 = vpop.permute.xlu0 %867 }
 0x32c   : > { %v871_v0 = vsub.f32 %v5319_v39, %v868_v15 }
 0x32e   : > { %v874_v25 = vmul.f32 1.442695, %v871_v0  ;;  %v4809_v34 = vpop.eup %4808 }
 0x32f   : > { %v896_v33 = vpop.permute.xlu1 %895  ;;  %v880_v63 = vsel %vm845_vm4, %v4809_v34, 0.0 }
 0x330   : > { %4810 = vpow2.f32 %v874_v25  ;;  %v903_v4 = vmul.f32 %v896_v33, %v891_v35 }
 0x331   : > { %4812 = vpow2.f32 %v1328_v22 }
 0x336   : > { %v5561_v50 = vpop.eup %4810 }
 0x337   : > { %v1324_v17 = vpop.permute.xlu1 %1323  ;;  %v905_v55 = vpack.c.bf16 %v5561_v50, %v4809_v34  ;;  %v5566_v39 = vpop.eup %4812  ;;  %v876_v34 = vld [vmem:[#allocation3] sm:$0xff] }
 0x338   : > { %v1327_v26 = vsub.f32 %v5364_v5, %v1324_v17  ;;  %v2177_v5 = vsel %vm464_vm0, %v5505_v45, %v2156_v40  ;;  %v1349_v17 = vld [vmem:[#allocation4 + $0x18] sm:$0xff] }
 0x339   : > { %4588 = vmatmul.msk.bf16.vlgmr.msra.gmra.mxu1 %vm845_vm4, %v905_v55  ;;  %v2179_v56 = vsel %vm807_vm2, %v2177_v5, %v2164_v54  ;;  %v878_v55 = vmul.f32 %v5551_v6, %v876_v34 }
 0x33a   : > { %v1330_v7 = vmul.f32 1.442695, %v1327_v26  ;;  %v2181_v46 = vsel %vm810_vm3, %v2179_v56, %v2172_v42 }
 0x33c   : > { %4814 = vpow2.f32 %v1330_v7 }
 0x33d   : > { %4816 = vpow2.f32 %v858_v11 }
 0x342   : > { %v5568_v52 = vpop.eup %4814 }
 0x343   : > { %v1362_v47 = vpack.c.bf16 %v5568_v52, %v5566_v39  ;;  %v5597_v43 = vpop.eup %4816 }
 0x345   : > { %4606 = vmatmul.msk.bf16.vlgmr.msra.gmra.mxu3 %vm845_vm4, %v1362_v47 }
 0x349   : > { %4619 = vmatmul.msk.bf16.vlgmr.msrb.gmra.mxu1 %vm464_vm0, %v5445_v60  ;;  %v2180_v60 = vsel %vm807_vm2, %v2178_v61, %v2166_v53  ;;  %v1311_v53 = vsub.f32 %v5465_v8, %v5468_v62  ;;  %v892_v8 = vld [vmem:[#allocation4 + $0x8] sm:$0xff]  ;;  %v2219_v62 = vld [vmem:[#allocation2 + $0x38] sm:$0xff] }
 0x34a   : > { %v2182_v45 = vsel %vm810_vm3, %v2180_v60, %v2174_v30 }
 0x34b   : > { %v1314_v42 = vmul.f32 1.442695, %v1311_v53 }
 0x34d   : > { %4818 = vpow2.f32 %v1314_v42 }
 0x353   : > { %v5600_v18 = vpop.eup %4818 }
 0x3a5   : > { %v2212_v57 = vpop.f32.mrf.mxu0 }
 0x3a6   : > { %v5579_v59 = vadd.f32 %v2212_v57, %v2181_v46  ;;  %v4643_v57 = vld [vmem:[%s5006_s25 + $0x40] sm:$0xff] }
 0x3a7   : > { %v2335_v6 = vperm.slane %v4643_v57, 2  ;;  %v2321_v61 = vperm.slane %v4643_v57, 0  ;;  %v2328_v60 = vperm.slane %v4643_v57, 1  ;;  %v2349_v30 = vperm.slane %v4643_v57, 4 }
 0x3a8   : > { %v2220_v28 = vsel %vm845_vm4, %v5579_v59, -inf }
 0x3a9   : > { %2221 = vmax.xlane.f32.xlu2 %v2220_v28  ;;  %v883_v28 = vsel %vm845_vm4, %v5561_v50, 0.0 }
 0x3ad   : > { %v2214_v14 = vpop.f32.mrf.mxu0 }
 0x3ae   : > { %v5587_v41 = vadd.f32 %v2214_v14, %v2182_v45  ;;  %v2363_v45 = vperm.slane %v4643_v57, 6 }
 0x3b0   : > { %v2223_v37 = vsel %vm845_vm4, %v5587_v41, -inf }
 0x3b1   : > { %2224 = vmax.xlane.f32.xlu0 %v2223_v37 }
 0x3b6   : > { %v924_v49 = vpop.f32.mrf.mxu1 }
 0x3b7   : > { %v929_v40 = vadd.f32 %v924_v49, %v903_v4  ;;  %v2370_v49 = vperm.slane %v4643_v57, 7 }
 0x3b9   : > { %931 = vst.msk [vmem:[#allocation4] sm:$0xff] %vm464_vm0, %v929_v40  ;;  %881 = vadd.xlane.f32.xlu0 %v880_v63  ;;  %v4644_v63 = vld [vmem:[%s5006_s25 + $0x48] sm:$0xff] }
 0x3ba   : > { %v2391_v53 = vperm.slane %v4644_v63, 2  ;;  %v2384_v34 = vperm.slane %v4644_v63, 1 }
 0x3be   : > { %v926_v25 = vpop.f32.mrf.mxu1 }
 0x3c1   : > { %900 = vperm.xlu2 %4795, %v5597_v43  }
 0x3c8   : > { %v5613_v51 = vpop.f32.mrf.mxu3 }
 0x3c9   : > { %1357 = vperm.xlu2 %4795, %v5600_v18  }
 0x3cd   : > { %2340 = vperm.xlu0 %4797, %v2335_v6  }
 0x3d0   : > { %v1385_v54 = vpop.f32.mrf.mxu3 }
 0x3d5   : > { %2375 = vperm.xlu0 %4797, %v2370_v49  }
 0x3dd   : > { %2396 = vperm.xlu0 %4797, %v2391_v53  }
 0x41c   : > { %v2222_v38 = vpop.xlane.xlu2 %2221 }
 0x41d   : > { %v5606_v10 = vmax.f32 %v5603_v23, %v2222_v38  ;;  %v2412_v38 = vperm.slane %v4644_v63, 5 }
 0x41f   : > { %v2228_v12 = vsub.f32 %v5603_v23, %v5606_v10  ;;  %2310 = vst.msk [vmem:[#allocation2 + $0x30] sm:$0xff] %vm431_vm5, %v5606_v10  ;;  %2236 = vperm.xlu1 %4794, %v5606_v10   ;;  %2417 = vperm.xlu0 %4797, %v2412_v38   ;;  %v1333_v10 = vld [vmem:[#allocation3 + $0x10] sm:$0xff] }
 0x424   : > { %v901_v13 = vpop.permute.xlu2 %900  ;;  %v2225_v44 = vpop.xlane.xlu0 %2224 }
 0x425   : > { %v904_v15 = vmul.f32 %v901_v13, %v892_v8  ;;  %v2227_v0 = vmax.f32 %v2219_v62, %v2225_v44  ;;  %v4734_v13 = vld [vmem:[%s5220_s17] sm:$0xff]  ;;  %v2342_v44 = vperm.slane %v4643_v57, 3 }
 0x427   : > { %v930_v33 = vadd.f32 %v926_v25, %v904_v15  ;;  %v2229_v20 = vsub.f32 %v2219_v62, %v2227_v0  ;;  %2311 = vst.msk [vmem:[#allocation2 + $0x38] sm:$0xff] %vm431_vm5, %v2227_v0  ;;  %2241 = vperm.xlu1 %4794, %v2227_v0   ;;  %v1340_v62 = vsel %vm845_vm4, %v5568_v52, 0.0  ;;  %v877_v15 = vld [vmem:[#allocation3 + $0x8] sm:$0xff]  ;;  %v2356_v0 = vperm.slane %v4643_v57, 5  ;;  %v2251_v57 = vld [vmem:[#allocation3 + $0x30] sm:$0xff] }
 0x428   : > { %v879_v25 = vmul.f32 %v5597_v43, %v877_v15  ;;  %v2405_v52 = vperm.slane %v4644_v63, 4  ;;  %v2230_v43 = vmul.f32 1.442695, %v2228_v12 }
 0x429   : > { %932 = vst.msk [vmem:[#allocation4 + $0x8] sm:$0xff] %vm464_vm0, %v930_v33  ;;  %v2232_v22 = vmul.f32 1.442695, %v2229_v20 }
 0x42b   : > { %4820 = vpow2.f32 %v2232_v22  ;;  %v2377_v22 = vperm.slane %v4644_v63, 0 }
 0x42c   : > { %v1358_v26 = vpop.permute.xlu2 %1357  ;;  %v882_v7 = vpop.xlane.xlu0 %881 }
 0x42d   : > { %v1361_v47 = vmul.f32 %v1358_v26, %v1349_v17  ;;  %v886_v5 = vadd.f32 %v882_v7, %v878_v55  ;;  %v2398_v17 = vperm.slane %v4644_v63, 3  ;;  %v2426_v55 = vperm.slane %v4644_v63, 7 }
 0x42e   : > { %v2419_v26 = vperm.slane %v4644_v63, 6 }
 0x42f   : > { %v1389_v56 = vadd.f32 %v1385_v54, %v1361_v47  ;;  %889 = vst.msk [vmem:[#allocation3] sm:$0xff] %vm431_vm5, %v886_v5  ;;  %4798 = vset.pattern.permute.xlu1 %v4993_v1  ;;  %v1310_v47 = vsub.f32 %v5428_v24, %v5434_v19 }
 0x431   : > { %v5620_v46 = vpop.eup %4820  ;;  %1391 = vst.msk [vmem:[#allocation4 + $0x18] sm:$0xff] %vm464_vm0, %v1389_v56  ;;  %v1312_v5 = vmul.f32 1.442695, %v1310_v47 }
 0x432   : > { %2275 = vperm.xlu2 %4795, %v5620_v46  }
 0x43a   : > { %4796 = vset.pattern.permute.xlu2 %v4993_v1 }
 0x45b   : > { %884 = vadd.xlane.f32.xlu2 %v883_v28 }
 0x473   : > { %2326 = vperm.xlu2 %4796, %v2321_v61  }
 0x47b   : > { %2333 = vperm.xlu2 %4796, %v2328_v60  }
 0x483   : > { %2354 = vperm.xlu2 %4796, %v2349_v30  }
 0x48b   : > { %2368 = vperm.xlu2 %4796, %v2363_v45   ;;  %v2252_v45 = vld [vmem:[#allocation3 + $0x38] sm:$0xff] }
 0x491   : > { %v2237_v14 = vpop.permute.xlu1 %2236 }
 0x492   : > { %v2244_v37 = vsub.f32 %v5579_v59, %v2237_v14  ;;  %v1337_v59 = vsel %vm845_vm4, %v5566_v39, 0.0  ;;  %v5647_v39 = vpop.permute.xlu2 %2275  ;;  %v2254_v14 = vmul.f32 %v5620_v46, %v2252_v45 }
 0x494   : > { %v2246_v2 = vmul.f32 1.442695, %v2244_v37 }
 0x496   : > { %4822 = vpow2.f32 %v2246_v2 }
 0x499   : > { %v2242_v35 = vpop.permute.xlu1 %2241 }
 0x49a   : > { %v2245_v4 = vsub.f32 %v5587_v41, %v2242_v35  ;;  %v4645_v35 = vld [vmem:[%s5040_s11 + $0x40] sm:$0xff] }
 0x49b   : > { %v2443_v49 = vrot.slane %v4645_v35, 6  ;;  %v2440_v46 = vrot.slane %v4645_v35, 3  ;;  %v2444_v15 = vrot.slane %v4645_v35, 7 }
 0x49c   : > { %v5630_v11 = vpop.eup %4822  ;;  %v2248_v50 = vmul.f32 1.442695, %v2245_v4  ;;  %v1334_v4 = vld [vmem:[#allocation3 + $0x18] sm:$0xff] }
 0x49d   : > { %v2255_v40 = vsel %vm845_vm4, %v5630_v11, 0.0 }
 0x49e   : > { %4824 = vpow2.f32 %v2248_v50  ;;  %2256 = vadd.xlane.f32.xlu1 %v2255_v40  ;;  %v2439_v50 = vrot.slane %v4645_v35, 2  ;;  %v1336_v40 = vmul.f32 %v5600_v18, %v1334_v4  ;;  %v2452_v18 = vperm.slane %v4645_v35, 0 }
 0x49f   : > { %4826 = vpow2.f32 %v2230_v43 }
 0x4a0   : > { %4828 = vpow2.f32 %v1312_v5  ;;  %v2442_v5 = vrot.slane %v4645_v35, 5 }
 0x4a4   : > { %v5635_v42 = vpop.eup %4824 }
 0x4a5   : > { %v2280_v41 = vpack.c.bf16 %v5635_v42, %v5630_v11  ;;  %v2258_v8 = vsel %vm845_vm4, %v5635_v42, 0.0  ;;  %v5656_v56 = vpop.eup %4826 }
 0x4a6   : > { %1338 = vadd.xlane.f32.xlu1 %v1337_v59  ;;  %v2253_v6 = vmul.f32 %v5656_v56, %v2251_v57  ;;  %v5660_v60 = vpop.eup %4828  ;;  %v2454_v59 = vperm.slane %v2439_v50, 0 }
 0x4a7   : > { %v1335_v24 = vmul.f32 %v5660_v60, %v1333_v10 }
 0x4b4   : > { %2259 = vadd.xlane.f32.xlu2 %v2258_v8  ;;  %v2341_v8 = vpop.permute.xlu0 %2340 }
 0x4bc   : > { %1341 = vadd.xlane.f32.xlu2 %v1340_v62  ;;  %v2458_v62 = vperm.slane %v2443_v49, 0  ;;  %v2376_v57 = vpop.permute.xlu0 %2375 }
 0x4bf   : > { %2286 = vrot.lane.b32.xlu1 %v4734_v13, %s4936_s22  ;;  %v2438_v13 = vrot.slane %v4645_v35, 1 }
 0x4c7   : > { %2347 = vperm.xlu1 %4798, %v2342_v44   ;;  %v2441_v44 = vrot.slane %v4645_v35, 4 }
 0x4ce   : > { %v885_v33 = vpop.xlane.xlu2 %884 }
 0x4cf   : > { %v887_v20 = vadd.f32 %v885_v33, %v879_v25  ;;  %2361 = vperm.xlu1 %4798, %v2356_v0   ;;  %v2486_v0 = vadd.f32 %v2454_v59, %v2341_v8  ;;  %v2455_v33 = vperm.slane %v2440_v46, 0 }
 0x4d1   : > { %890 = vst.msk [vmem:[#allocation3 + $0x8] sm:$0xff] %vm431_vm5, %v887_v20  ;;  %v2453_v20 = vperm.slane %v2438_v13, 0  ;;  %v2397_v13 = vpop.permute.xlu0 %2396 }
 0x4d4   : > { %2389 = vperm.xlu2 %4796, %v2384_v34   ;;  %v2456_v34 = vperm.slane %v2441_v44, 0 }
 0x4d6   : > { %v2327_v7 = vpop.permute.xlu2 %2326 }
 0x4d7   : > { %2382 = vperm.xlu1 %4798, %v2377_v22   ;;  %v2459_v22 = vperm.slane %v2444_v15, 0 }
 0x4d9   : > { %v2491_v11 = vadd.f32 %v2459_v22, %v2376_v57 }
 0x4dc   : > { %2410 = vperm.xlu2 %4796, %v2405_v52   ;;  %v2500_v52 = vrot.slane %v2486_v0, 4 }
 0x4de   : > { %v2334_v54 = vpop.permute.xlu2 %2333 }
 0x4df   : > { %2403 = vperm.xlu1 %4798, %v2398_v17  }
 0x4e4   : > { %2431 = vperm.xlu2 %4796, %v2426_v55  }
 0x4e6   : > { %v2355_v23 = vpop.permute.xlu2 %2354 }
 0x4e7   : > { %2424 = vperm.xlu1 %4798, %v2419_v26   ;;  %v2484_v26 = vadd.f32 %v2452_v18, %v2327_v7 }
 0x4ee   : > { %v2369_v30 = vpop.permute.xlu2 %2368 }
 0x4ef   : > { %v2490_v25 = vadd.f32 %v2458_v62, %v2369_v30 }
 0x4f1   : > { %v2512_v43 = vrot.slane %v2490_v25, 4 }
 0x511   : > { %v2257_v28 = vpop.xlane.xlu1 %2256 }
 0x512   : > { %v2261_v61 = vadd.f32 %v2257_v28, %v2253_v6  ;;  %v2485_v6 = vadd.f32 %v2453_v20, %v2334_v54  ;;  %v2488_v28 = vadd.f32 %v2456_v34, %v2355_v23 }
 0x514   : > { %2263 = vst.msk [vmem:[#allocation3 + $0x30] sm:$0xff] %vm431_vm5, %v2261_v61  ;;  %v2513_v61 = vsel %vm668_vm1, %v2512_v43, %v2488_v28 }
 0x515   : > { %v2517_v30 = vperm.slane %v2513_v61, %v5049_v9 }
 0x517   : > { %v2538_v50 = vrot.slane %v2517_v30, 4 }
 0x519   : > { %v1339_v19 = vpop.xlane.xlu1 %1338 }
 0x51a   : > { %v1343_v12 = vadd.f32 %v1339_v19, %v1335_v24  ;;  %v2457_v24 = vperm.slane %v2442_v5, 0 }
 0x51c   : > { %1345 = vst.msk [vmem:[#allocation3 + $0x10] sm:$0xff] %vm431_vm5, %v1343_v12  ;;  %v2518_v12 = vrot.slane %v2491_v11, 4 }
 0x527   : > { %v2260_v37 = vpop.xlane.xlu2 %2259 }
 0x528   : > { %v2262_v2 = vadd.f32 %v2260_v37, %v2254_v14 }
 0x52a   : > { %2264 = vst.msk [vmem:[#allocation3 + $0x38] sm:$0xff] %vm431_vm5, %v2262_v2  ;;  %v4646_v2 = vld [vmem:[%s5040_s11 + $0x48] sm:$0xff] }
 0x52b   : > { %v2446_v49 = vrot.slane %v4646_v2, 2  ;;  %v2451_v8 = vrot.slane %v4646_v2, 7  ;;  %v2447_v0 = vrot.slane %v4646_v2, 3  ;;  %v2445_v34 = vrot.slane %v4646_v2, 1 }
 0x52c   : > { %v2449_v57 = vrot.slane %v4646_v2, 5 }
 0x52d   : > { %v2462_v46 = vperm.slane %v2446_v49, 0  ;;  %v2467_v22 = vperm.slane %v2451_v8, 0  ;;  %v2461_v11 = vperm.slane %v2445_v34, 0 }
 0x52f   : > { %v1342_v63 = vpop.xlane.xlu2 %1341  ;;  %v2494_v5 = vadd.f32 %v2462_v46, %v2397_v13 }
 0x530   : > { %v1344_v53 = vadd.f32 %v1342_v63, %v1336_v40 }
 0x531   : > { %v2287_v38 = vpop.permute.xlu1 %2286 }
 0x532   : > { %1346 = vst.msk [vmem:[#allocation3 + $0x18] sm:$0xff] %vm431_vm5, %v1344_v53  ;;  %2299 = vmatpush.bf16.msrb.mxu2 %v2287_v38 }
 0x535   : > { %4642 = vmatmul.msk.bf16.vlgmr.msrb.gmra.mxu2 %vm845_vm4, %v2280_v41  ;;  %v2501_v41 = vsel %vm668_vm1, %v2500_v52, %v2484_v26  ;;  %v2460_v52 = vperm.slane %v4646_v2, 0 }
 0x536   : > { %v2505_v7 = vperm.slane %v2501_v41, %v5049_v9 }
 0x537   : > { %v5673_v17 = vpop.permute.xlu2 %2389 }
 0x538   : > { %v2526_v4 = vrot.slane %v2505_v7, 4 }
 0x539   : > { %v2348_v55 = vpop.permute.xlu1 %2347 }
 0x53a   : > { %v2487_v47 = vadd.f32 %v2455_v33, %v2348_v55 }
 0x53c   : > { %v2506_v42 = vrot.slane %v2487_v47, 4 }
 0x53e   : > { %v2507_v10 = vsel %vm668_vm1, %v2506_v42, %v2485_v6  ;;  %v2463_v6 = vperm.slane %v2447_v0, 0 }
 0x53f   : > { %v2511_v19 = vperm.slane %v2507_v10, %v5049_v9  ;;  %v5681_v14 = vpop.permute.xlu2 %2410  ;;  %v2556_v10 = vrot.slane %v2494_v5, 4 }
 0x541   : > { %v2524_v45 = vrot.slane %v2511_v19, 4  ;;  %v2362_v54 = vpop.permute.xlu1 %2361  ;;  %v2527_v59 = vsel %vm668_vm1, %v2511_v19, %v2526_v4 }
 0x542   : > { %v2489_v23 = vadd.f32 %v2457_v24, %v2362_v54  ;;  %v5695_v18 = vperm.slane %v2527_v59, %v5064_v36  ;;  %v2465_v24 = vperm.slane %v2449_v57, 0 }
 0x543   : > { %v2525_v37 = vsel %vm668_vm1, %v2524_v45, %v2505_v7  ;;  %v2448_v7 = vrot.slane %v4646_v2, 4  ;;  %v2493_v45 = vadd.f32 %v2461_v11, %v5673_v17 }
 0x544   : > { %v2519_v35 = vsel %vm668_vm1, %v2518_v12, %v2489_v23  ;;  %v2531_v63 = vperm.slane %v2525_v37, %v5064_v36  ;;  %v2450_v12 = vrot.slane %v4646_v2, 6 }
 0x545   : > { %v2523_v40 = vperm.slane %v2519_v35, %v5049_v9 }
 0x546   : > { %v2550_v20 = vrot.slane %v2531_v63, 4 }
 0x547   : > { %v2536_v53 = vrot.slane %v2523_v40, 4  ;;  %v2539_v38 = vsel %vm668_vm1, %v2523_v40, %v2538_v50  ;;  %v2432_v43 = vpop.permute.xlu2 %2431  ;;  %v2466_v50 = vperm.slane %v2450_v12, 0  ;;  %v4735_v12 = vld [vmem:[%s5019_s29] sm:$0xff] }
 0x548   : > { %v5691_v62 = vperm.slane %v2539_v38, %v5064_v36  ;;  %v2499_v42 = vadd.f32 %v2467_v22, %v2432_v43 }
 0x549   : > { %v2383_v44 = vpop.permute.xlu1 %2382  ;;  %v2537_v15 = vsel %vm668_vm1, %v2536_v53, %v2517_v30  ;;  %v2418_v30 = vpop.permute.xlu0 %2417 }
 0x54a   : > { %v2552_v25 = vrot.slane %v5691_v62, 4  ;;  %v2543_v33 = vperm.slane %v2537_v15, %v5064_v36  ;;  %v2492_v41 = vadd.f32 %v2460_v52, %v2383_v44  ;;  %v2574_v54 = vrot.slane %v2499_v42, 4 }
 0x54b   : > { %v2497_v35 = vadd.f32 %v2465_v24, %v2418_v30 }
 0x54c   : > { %v2553_v55 = vsel %vm668_vm1, %v2552_v25, %v5695_v18  ;;  %v2551_v26 = vsel %vm668_vm1, %v2543_v33, %v2550_v20  ;;  %v2548_v47 = vrot.slane %v2543_v33, 4  ;;  %v2557_v23 = vsel %vm668_vm1, %v2556_v10, %v2492_v41 }
 0x54d   : > { %2622 = vrot.lane.b32.xlu2 %v2553_v55, %s4930_s13  ;;  %2614 = vrot.lane.b32.xlu0 %v2551_v26, %s4929_s12  ;;  %v2561_v49 = vperm.slane %v2557_v23, %v5049_v9  ;;  %v2575_v53 = vsel %vm668_vm1, %v2574_v54, %v2497_v35  ;;  %v2554_v10 = vrot.slane %v5695_v18, 4  ;;  %v4737_v54 = vld [vmem:[%s5220_s17] sm:$0xff] }
 0x54e   : > { %v5705_v28 = vsel %vm668_vm1, %v2548_v47, %v2531_v63  ;;  %v2464_v63 = vperm.slane %v2448_v7, 0  ;;  %v2579_v17 = vperm.slane %v2575_v53, %v5049_v9  ;;  %v4736_v7 = vld [vmem:[%s5027_s8] sm:$0xff]  ;;  %v1719_v53 = vsel %vm464_vm0, %v5303_v21, %v5443_v29 }
 0x54f   : > { %v2582_v8 = vrot.slane %v2561_v49, 4 }
 0x550   : > { %v2496_v13 = vadd.f32 %v2464_v63, %v5681_v14  ;;  %v2592_v33 = vrot.slane %v2579_v17, 4 }
 0x551   : > { %v2404_v61 = vpop.permute.xlu1 %2403 }
 0x552   : > { %v2495_v19 = vadd.f32 %v2463_v6, %v2404_v61  ;;  %v4661_v61 = vld [vmem:[%s5006_s25 + $0x50] sm:$0xff] }
 0x553   : > { %v2780_v24 = vperm.slane %v4661_v61, 0  ;;  %v2787_v30 = vperm.slane %v4661_v61, 1  ;;  %v2801_v23 = vperm.slane %v4661_v61, 3  ;;  %v2829_v18 = vperm.slane %v4661_v61, 7 }
 0x554   : > { %v2562_v37 = vrot.slane %v2495_v19, 4  ;;  %v2555_v19 = vsel %vm668_vm1, %v5691_v62, %v2554_v10  ;;  %v2808_v62 = vperm.slane %v4661_v61, 4  ;;  %v2822_v35 = vperm.slane %v4661_v61, 6 }
 0x556   : > { %v2563_v4 = vsel %vm668_vm1, %v2562_v37, %v2493_v45  ;;  %v2794_v45 = vperm.slane %v4661_v61, 2  ;;  %v2815_v37 = vperm.slane %v4661_v61, 5 }
 0x557   : > { %v2567_v40 = vperm.slane %v2563_v4, %v5049_v9  ;;  %v5743_v4 = vld [vmem:[%s5006_s25 + $0x58] sm:$0xff] }
 0x558   : > { %v2885_v63 = vperm.slane %v5743_v4, 7 }
 0x559   : > { %v2580_v59 = vrot.slane %v2567_v40, 4  ;;  %v2425_v2 = vpop.permute.xlu1 %2424  ;;  %v2583_v15 = vsel %vm668_vm1, %v2567_v40, %v2582_v8  ;;  %v2864_v40 = vperm.slane %v5743_v4, 4 }
 0x55a   : > { %v2498_v38 = vadd.f32 %v2466_v50, %v2425_v2  ;;  %v2591_v34 = vperm.slane %v2583_v15, %v5064_v36  ;;  %v2843_v50 = vperm.slane %v5743_v4, 1  ;;  %v1721_v2 = vsel %vm807_vm2, %v1719_v53, %v5438_v27 }
 0x55b   : > { %v2581_v46 = vsel %vm668_vm1, %v2580_v59, %v2561_v49  ;;  %v1753_v49 = vpop.f32.mrf.mxu1 }
 0x55c   : > { %v2568_v44 = vrot.slane %v2498_v38, 4  ;;  %v2587_v25 = vperm.slane %v2581_v46, %v5064_v36  ;;  %v2610_v5 = vrot.slane %v2591_v34, 4  ;;  %v1723_v38 = vsel %vm810_vm3, %v1721_v2, %v5447_v31 }
 0x55e   : > { %v2569_v0 = vsel %vm668_vm1, %v2568_v44, %v2496_v13  ;;  %v2606_v26 = vrot.slane %v2587_v25, 4 }
 0x55f   : > { %v2573_v20 = vperm.slane %v2569_v0, %v5049_v9 }
 0x561   : > { %v2594_v22 = vrot.slane %v2573_v20, 4  ;;  %v2593_v52 = vsel %vm668_vm1, %v2592_v33, %v2573_v20 }
 0x562   : > { %v2599_v55 = vperm.slane %v2593_v52, %v5064_v36 }
 0x563   : > { %v2595_v14 = vsel %vm668_vm1, %v2579_v17, %v2594_v22  ;;  %v1755_v59 = vpop.f32.mrf.mxu1  ;;  %v1718_v17 = vsel %vm464_vm0, %v5282_v3, %v5422_v58  ;;  %v2850_v58 = vperm.slane %v5743_v4, 2 }
 0x564   : > { %v2607_v43 = vsel %vm668_vm1, %v2599_v55, %v2606_v26  ;;  %v2603_v47 = vperm.slane %v2595_v14, %v5064_v36  ;;  %v2604_v57 = vrot.slane %v2599_v55, 4  ;;  %v5758_v8 = vadd.f32 %v1755_v59, %v1723_v38 }
 0x565   : > { %2616 = vrot.lane.b32.xlu1 %v2607_v43, %s4929_s12  ;;  %v1720_v46 = vsel %vm807_vm2, %v1718_v17, %v5404_v16  ;;  %v2267_v16 = vld [vmem:[#allocation4 + $0x38] sm:$0xff]  ;;  %v4663_v43 = vld [vmem:[%s5040_s11 + $0x50] sm:$0xff] }
 0x566   : > { %v2611_v6 = vsel %vm668_vm1, %v2603_v47, %v2610_v5  ;;  %v2608_v11 = vrot.slane %v2603_v47, 4  ;;  %v5729_v42 = vsel %vm668_vm1, %v2604_v57, %v2587_v25  ;;  %v1722_v21 = vsel %vm810_vm3, %v1720_v46, %v5449_v32 }
 0x567   : > { %2632 = vrot.lane.b32.xlu2 %v2611_v6, %s4931_s14  ;;  %v1764_v29 = vsel %vm845_vm4, %v5758_v8, -inf  ;;  %v5766_v27 = vadd.f32 %v1753_v49, %v1722_v21  ;;  %v2279_v13 = vmul.f32 %v5647_v39, %v2267_v16  ;;  %v2871_v25 = vperm.slane %v5743_v4, 5 }
 0x568   : > { %v2609_v41 = vsel %vm668_vm1, %v2608_v11, %v2591_v34  ;;  %v2899_v5 = vrot.slane %v4663_v43, 3  ;;  %v2898_v6 = vrot.slane %v4663_v43, 2  ;;  %v2902_v2 = vrot.slane %v4663_v43, 6 }
 0x569   : > { %2624 = vrot.lane.b32.xlu0 %v2609_v41, %s4930_s13  ;;  %v1761_v31 = vsel %vm845_vm4, %v5766_v27, -inf  ;;  %v2900_v46 = vrot.slane %v4663_v43, 4 }
 0x56a   : > { %v2914_v41 = vperm.slane %v2899_v5, 0  ;;  %v2913_v61 = vperm.slane %v2898_v6, 0 }
 0x56d   : > { %2630 = vrot.lane.b32.xlu1 %v2555_v19, %s4931_s14 }
 0x56f   : > { %2785 = vperm.xlu2 %4796, %v2780_v24   ;;  %v2903_v24 = vrot.slane %v4663_v43, 7 }
 0x571   : > { %2647 = vrot.lane.b32.xlu0 %v4735_v12, %s4937_s23 }
 0x575   : > { %2654 = vrot.lane.b32.xlu1 %v4736_v7, %s4937_s23 }
 0x577   : > { %2792 = vperm.xlu2 %4796, %v2787_v30   ;;  %v2911_v30 = vperm.slane %v4663_v43, 0 }
 0x579   : > { %2799 = vperm.xlu0 %4797, %v2794_v45  }
 0x57d   : > { %2745 = vrot.lane.b32.xlu1 %v4737_v54, %s4937_s23  ;;  %v2918_v54 = vperm.slane %v2903_v24, 0 }
 0x57f   : > { %2806 = vperm.xlu2 %4796, %v2801_v23  }
 0x581   : > { %2834 = vperm.xlu0 %4797, %v2829_v18  }
 0x585   : > { %2813 = vperm.xlu1 %4798, %v2808_v62   ;;  %v2901_v62 = vrot.slane %v4663_v43, 5 }
 0x587   : > { %2820 = vperm.xlu2 %4796, %v2815_v37   ;;  %v2916_v53 = vperm.slane %v2901_v62, 0 }
 0x58d   : > { %2827 = vperm.xlu1 %4798, %v2822_v35  }
 0x595   : > { %2848 = vperm.xlu1 %4798, %v2843_v50  }
 0x59d   : > { %2869 = vperm.xlu1 %4798, %v2864_v40  }
 0x5a5   : > { %2890 = vperm.xlu1 %4798, %v2885_v63  }
 0x5a7   : > { %v5781_v33 = vpop.permute.xlu2 %2622 }
 0x5ab   : > { %1765 = vmax.xlane.f32.xlu0 %v1764_v29 }
 0x5ad   : > { %4800 = vset.pattern.permute.xlu1 %v4935_v48 }
 0x5b0   : > { %1762 = vmax.xlane.f32.xlu2 %v1761_v31 }
 0x5b8   : > { %v5771_v3 = vpop.f32.mrf.mxu2 }
 0x5bf   : > { %2855 = vperm.xlu0 %4797, %v2850_v58   ;;  %v2615_v32 = vpop.permute.xlu0 %2614  ;;  %v2917_v58 = vperm.slane %v2902_v2, 0  ;;  %v2836_v2 = vperm.slane %v5743_v4, 0 }
 0x5c0   : > { %v5777_v44 = vsel %vm464_vm0, %v5705_v28, %v2615_v32  ;;  %v2303_v15 = vpop.f32.mrf.mxu2 }
 0x5c1   : > { %v2307_v0 = vadd.f32 %v2303_v15, %v2279_v13  ;;  %v5783_v20 = vpop.permute.xlu2 %2632  ;;  %v2915_v13 = vperm.slane %v2900_v46, 0 }
 0x5c3   : > { %2309 = vst.msk [vmem:[#allocation4 + $0x38] sm:$0xff] %vm464_vm0, %v2307_v0 }
 0x5c7   : > { %2876 = vperm.xlu0 %4797, %v2871_v25  }
 0x5c9   : > { %v2786_v39 = vpop.permute.xlu2 %2785 }
 0x5ca   : > { %v2943_v35 = vadd.f32 %v2911_v30, %v2786_v39 }
 0x5d1   : > { %v2793_v26 = vpop.permute.xlu2 %2792 }
 0x5d7   : > { %v2617_v34 = vpop.permute.xlu1 %2616 }
 0x5d8   : > { %v2637_v22 = vsel %vm464_vm0, %v5729_v42, %v2617_v34  ;;  %v2897_v42 = vrot.slane %v4663_v43, 1 }
 0x5d9   : > { %v2807_v10 = vpop.permute.xlu2 %2806 }
 0x5da   : > { %v2946_v12 = vadd.f32 %v2914_v41, %v2807_v10  ;;  %v2912_v45 = vperm.slane %v2897_v42, 0 }
 0x5db   : > { %v2625_v52 = vpop.permute.xlu0 %2624 }
 0x5dc   : > { %v5788_v28 = vsel %vm807_vm2, %v2637_v22, %v2625_v52  ;;  %v2965_v18 = vrot.slane %v2946_v12, 4  ;;  %v2944_v50 = vadd.f32 %v2912_v45, %v2793_v26 }
 0x5de   : > { %v2966_v63 = vsel %vm668_vm1, %v2965_v18, %v2944_v50 }
 0x5df   : > { %v5790_v55 = vpop.permute.xlu1 %2630  ;;  %v2970_v21 = vperm.slane %v2966_v63, %v5049_v9 }
 0x5e1   : > { %v2821_v38 = vpop.permute.xlu2 %2820  ;;  %v2983_v32 = vrot.slane %v2970_v21, 4 }
 0x5e2   : > { %v2948_v31 = vadd.f32 %v2916_v53, %v2821_v38  ;;  %v2857_v38 = vperm.slane %v5743_v4, 3 }
 0x5e3   : > { %v2648_v14 = vpop.permute.xlu0 %2647 }
 0x5e7   : > { %v2655_v47 = vpop.permute.xlu1 %2654 }
 0x5e8   : > { %v2660_v57 = vsel %vm464_vm0, %v2655_v47, 0 }
 0x5e9   : > { %2669 = vmatpush.bf16.xpose.msra.mxu1 %v2660_v57 }
 0x5eb   : > { %v2800_v11 = vpop.permute.xlu0 %2799 }
 0x5ec   : > { %v2945_v7 = vadd.f32 %v2913_v61, %v2800_v11 }
 0x5ee   : > { %v2959_v37 = vrot.slane %v2945_v7, 4 }
 0x5ef   : > { %v2746_v19 = vpop.permute.xlu1 %2745 }
 0x5f0   : > { %4655 = vmatmul.msk.bf16.vlgmr.msra.gmra.mxu1 %vm464_vm0, %v2648_v14  ;;  %2758 = vmatpush.bf16.msra.mxu3 %v2746_v19  ;;  %v2960_v59 = vsel %vm668_vm1, %v2959_v37, %v2943_v35  ;;  %v5828_v37 = vld [vmem:[#allocation2 + $0x20] sm:$0xff] }
 0x5f1   : > { %v2964_v29 = vperm.slane %v2960_v59, %v5049_v9 }
 0x5f3   : > { %v2835_v23 = vpop.permute.xlu0 %2834  ;;  %v2985_v15 = vrot.slane %v2964_v29, 4  ;;  %v2984_v39 = vsel %vm668_vm1, %v2983_v32, %v2964_v29 }
 0x5f4   : > { %v2950_v49 = vadd.f32 %v2918_v54, %v2835_v23  ;;  %v2990_v43 = vperm.slane %v2984_v39, %v5064_v36  ;;  %v5821_v23 = vld [vmem:[#allocation2 + $0x28] sm:$0xff] }
 0x5f5   : > { %v2986_v26 = vsel %vm668_vm1, %v2970_v21, %v2985_v15  ;;  %v4664_v21 = vld [vmem:[%s5040_s11 + $0x58] sm:$0xff] }
 0x5f6   : > { %v2977_v17 = vrot.slane %v2950_v49, 4  ;;  %v2994_v57 = vperm.slane %v2986_v26, %v5064_v36  ;;  %v3009_v61 = vrot.slane %v2990_v43, 4  ;;  %v2638_v49 = vsel %vm807_vm2, %v5777_v44, %v5781_v33  ;;  %v5848_v33 = vld [vmem:[#allocation2 + $0x40] sm:$0xff] }
 0x5f7   : > { %v2814_v40 = vpop.permute.xlu1 %2813  ;;  %v2906_v32 = vrot.slane %v4664_v21, 3  ;;  %v2904_v15 = vrot.slane %v4664_v21, 1 }
 0x5f8   : > { %v2978_v16 = vsel %vm668_vm1, %v2977_v17, %v2948_v31  ;;  %v2947_v22 = vadd.f32 %v2915_v13, %v2814_v40  ;;  %v3013_v12 = vrot.slane %v2994_v57, 4  ;;  %v2640_v40 = vsel %vm810_vm3, %v2638_v49, %v5790_v55 }
 0x5f9   : > { %v2982_v34 = vperm.slane %v2978_v16, %v5049_v9  ;;  %v2878_v17 = vperm.slane %v5743_v4, 6  ;;  %v2905_v31 = vrot.slane %v4664_v21, 2  ;;  %v2910_v13 = vrot.slane %v4664_v21, 7 }
 0x5fa   : > { %v2920_v26 = vperm.slane %v2904_v15, 0 }
 0x5fb   : > { %v2995_v47 = vrot.slane %v2982_v34, 4  ;;  %v2921_v4 = vperm.slane %v2905_v31, 0 }
 0x5ff   : > { %v2828_v0 = vpop.permute.xlu1 %2827 }
 0x600   : > { %v2949_v25 = vadd.f32 %v2917_v58, %v2828_v0  ;;  %v2908_v0 = vrot.slane %v4664_v21, 5 }
 0x602   : > { %v2971_v52 = vrot.slane %v2949_v25, 4  ;;  %v2919_v25 = vperm.slane %v4664_v21, 0 }
 0x604   : > { %v2972_v14 = vsel %vm668_vm1, %v2971_v52, %v2947_v22  ;;  %v2922_v22 = vperm.slane %v2906_v32, 0 }
 0x605   : > { %v2976_v5 = vperm.slane %v2972_v14, %v5049_v9  ;;  %v2924_v14 = vperm.slane %v2908_v0, 0 }
 0x607   : > { %v2997_v6 = vrot.slane %v2976_v5, 4  ;;  %v2996_v11 = vsel %vm668_vm1, %v2995_v47, %v2976_v5  ;;  %v2849_v44 = vpop.permute.xlu1 %2848 }
 0x608   : > { %v3002_v41 = vperm.slane %v2996_v11, %v5064_v36 }
 0x609   : > { %v2998_v10 = vsel %vm668_vm1, %v2982_v34, %v2997_v6  ;;  %v2926_v34 = vperm.slane %v2910_v13, 0 }
 0x60a   : > { %v3010_v42 = vsel %vm668_vm1, %v3002_v41, %v3009_v61  ;;  %v3007_v24 = vrot.slane %v3002_v41, 4  ;;  %v3006_v19 = vperm.slane %v2998_v10, %v5064_v36  ;;  %v2909_v41 = vrot.slane %v4664_v21, 6 }
 0x60b   : > { %3073 = vrot.lane.b32.xlu0 %v3010_v42, %s4929_s12  ;;  %v2907_v61 = vrot.slane %v4664_v21, 4  ;;  %v2952_v10 = vadd.f32 %v2920_v26, %v2849_v44 }
 0x60c   : > { %v3011_v7 = vrot.slane %v3006_v19, 4  ;;  %v5814_v30 = vsel %vm668_vm1, %v3007_v24, %v2990_v43  ;;  %v5817_v45 = vsel %vm668_vm1, %v3006_v19, %v3013_v12 }
 0x60d   : > { %v2923_v49 = vperm.slane %v2907_v61, 0 }
 0x60e   : > { %v3012_v54 = vsel %vm668_vm1, %v3011_v7, %v2994_v57 }
 0x60f   : > { %3081 = vrot.lane.b32.xlu1 %v3012_v54, %s4930_s13  ;;  %v2870_v29 = vpop.permute.xlu1 %2869  ;;  %v2925_v54 = vperm.slane %v2909_v41, 0 }
 0x617   : > { %v2891_v52 = vpop.permute.xlu1 %2890 }
 0x618   : > { %v2958_v57 = vadd.f32 %v2926_v34, %v2891_v52 }
 0x61a   : > { %v3033_v12 = vrot.slane %v2958_v57, 4  ;;  %v4738_v57 = vld [vmem:[%s5019_s29] sm:$0xff] }
 0x61e   : > { %v1766_v18 = vpop.xlane.xlu0 %1765 }
 0x61f   : > { %v5824_v62 = vmax.f32 %v5821_v23, %v1766_v18 }
 0x621   : > { %1852 = vst.msk [vmem:[#allocation2 + $0x28] sm:$0xff] %vm431_vm5, %v5824_v62 }
 0x623   : > { %v1763_v35 = vpop.xlane.xlu2 %1762 }
 0x624   : > { %v5831_v50 = vmax.f32 %v5828_v37, %v1763_v35 }
 0x626   : > { %1851 = vst.msk [vmem:[#allocation2 + $0x20] sm:$0xff] %vm431_vm5, %v5831_v50 }
 0x631   : > { %v2856_v58 = vpop.permute.xlu0 %2855 }
 0x632   : > { %v2953_v39 = vadd.f32 %v2921_v4, %v2856_v58 }
 0x634   : > { %v3015_v6 = vrot.slane %v2953_v39, 4 }
 0x639   : > { %v2877_v47 = vpop.permute.xlu0 %2876 }
 0x63a   : > { %v2956_v42 = vadd.f32 %v2924_v14, %v2877_v47 }
 0x66d   : > { %v2671_v63 = vpop.f32.mrf.mxu1 }
 0x66e   : > { %v5840_v53 = vadd.f32 %v2671_v63, %v2640_v40  ;;  %v3034_v40 = vsel %vm668_vm1, %v3033_v12, %v2956_v42 }
 0x670   : > { %v2679_v59 = vsel %vm845_vm4, %v5840_v53, -inf }
 0x671   : > { %2680 = vmax.xlane.f32.xlu2 %v2679_v59 }
 0x67d   : > { %v3074_v61 = vpop.permute.xlu0 %3073 }
 0x67e   : > { %v3095_v42 = vsel %vm464_vm0, %v5814_v30, %v3074_v61 }
 0x689   : > { %2841 = vperm.xlu2 %4796, %v2836_v2  }
 0x691   : > { %2862 = vperm.xlu2 %4796, %v2857_v38   ;;  %v3038_v38 = vperm.slane %v3034_v40, %v5049_v9 }
 0x693   : > { %v3051_v13 = vrot.slane %v3038_v38, 4 }
 0x699   : > { %2883 = vperm.xlu2 %4796, %v2878_v17  }
 0x6a1   : > { %4799 = vset.pattern.permute.xlu2 %v4935_v48 }
 0x6e4   : > { %v2681_v55 = vpop.xlane.xlu2 %2680 }
 0x6e5   : > { %v5851_v46 = vmax.f32 %v5848_v33, %v2681_v55  ;;  %v2955_v55 = vadd.f32 %v2923_v49, %v2870_v29 }
 0x6e7   : > { %2769 = vst.msk [vmem:[#allocation2 + $0x40] sm:$0xff] %vm431_vm5, %v5851_v46 }
 0x6ec   : > { %v2842_v16 = vpop.permute.xlu2 %2841 }
 0x6ed   : > { %v2951_v43 = vadd.f32 %v2919_v25, %v2842_v16 }
 0x6ef   : > { %v3016_v24 = vsel %vm668_vm1, %v3015_v6, %v2951_v43  ;;  %v4739_v6 = vld [vmem:[%s5027_s8] sm:$0xff] }
 0x6f0   : > { %v3020_v18 = vperm.slane %v3016_v24, %v5049_v9 }
 0x6f2   : > { %v3041_v17 = vrot.slane %v3020_v18, 4 }
 0x6f4   : > { %v2863_v5 = vpop.permute.xlu2 %2862 }
 0x6f5   : > { %v2954_v11 = vadd.f32 %v2922_v22, %v2863_v5 }
 0x6f7   : > { %v3021_v19 = vrot.slane %v2954_v11, 4 }
 0x6f9   : > { %v3022_v7 = vsel %vm668_vm1, %v3021_v19, %v2952_v10  ;;  %v3082_v10 = vpop.permute.xlu1 %3081 }
 0x6fa   : > { %v3026_v35 = vperm.slane %v3022_v7, %v5049_v9  ;;  %v3097_v24 = vsel %vm807_vm2, %v3095_v42, %v3082_v10 }
 0x6fc   : > { %v3039_v63 = vrot.slane %v3026_v35, 4  ;;  %v2884_v59 = vpop.permute.xlu2 %2883  ;;  %v3042_v31 = vsel %vm668_vm1, %v3026_v35, %v3041_v17 }
 0x6fd   : > { %v2957_v2 = vadd.f32 %v2925_v54, %v2884_v59  ;;  %v3050_v32 = vperm.slane %v3042_v31, %v5064_v36 }
 0x6fe   : > { %v3040_v44 = vsel %vm668_vm1, %v3039_v63, %v3020_v18 }
 0x6ff   : > { %v3027_v21 = vrot.slane %v2957_v2, 4  ;;  %v3046_v16 = vperm.slane %v3040_v44, %v5064_v36  ;;  %v3069_v52 = vrot.slane %v3050_v32, 4  ;;  %v2673_v44 = vpop.f32.mrf.mxu1 }
 0x701   : > { %v3028_v58 = vsel %vm668_vm1, %v3027_v21, %v2955_v55  ;;  %v3065_v34 = vrot.slane %v3046_v16, 4  ;;  %v2641_v55 = vsel %vm810_vm3, %v5788_v28, %v5783_v20  ;;  %v5919_v28 = vld [vmem:[%s5006_s25 + $0x68] sm:$0xff] }
 0x702   : > { %v3032_v4 = vperm.slane %v3028_v58, %v5049_v9  ;;  %v5905_v21 = vadd.f32 %v2673_v44, %v2641_v55  ;;  %v5911_v58 = vld [vmem:[%s5006_s25 + $0x60] sm:$0xff] }
 0x703   : > { %v3281_v20 = vperm.slane %v5911_v58, 6 }
 0x704   : > { %v3053_v15 = vrot.slane %v3032_v4, 4  ;;  %v3052_v0 = vsel %vm668_vm1, %v3051_v13, %v3032_v4  ;;  %v2682_v31 = vsel %vm845_vm4, %v5905_v21, -inf  ;;  %v3274_v13 = vperm.slane %v5911_v58, 5 }
 0x705   : > { %v3058_v25 = vperm.slane %v3052_v0, %v5064_v36  ;;  %v3302_v4 = vperm.slane %v5919_v28, 1  ;;  %v5924_v0 = vld [vmem:[#allocation2 + $0x50] sm:$0xff] }
 0x706   : > { %v3054_v29 = vsel %vm668_vm1, %v3038_v38, %v3053_v15  ;;  %v3344_v15 = vperm.slane %v5919_v28, 7 }
 0x707   : > { %v3066_v39 = vsel %vm668_vm1, %v3058_v25, %v3065_v34  ;;  %v3062_v22 = vperm.slane %v3054_v29, %v5064_v36  ;;  %v3063_v26 = vrot.slane %v3058_v25, 4 }
 0x708   : > { %3075 = vrot.lane.b32.xlu2 %v3066_v39, %s4929_s12  ;;  %v1770_v39 = vsub.f32 %v5821_v23, %v5824_v62 }
 0x709   : > { %v3070_v14 = vsel %vm668_vm1, %v3062_v22, %v3069_v52  ;;  %v3067_v43 = vrot.slane %v3062_v22, 4  ;;  %v3064_v47 = vsel %vm668_vm1, %v3063_v26, %v3046_v16  ;;  %v3253_v16 = vperm.slane %v5911_v58, 2  ;;  %v5936_v22 = vld [vmem:[#allocation2 + $0x58] sm:$0xff] }
 0x70a   : > { %3091 = vrot.lane.b32.xlu1 %v3070_v14, %s4931_s14  ;;  %v1773_v52 = vmul.f32 1.442695, %v1770_v39  ;;  %v3267_v39 = vperm.slane %v5911_v58, 4 }
 0x70b   : > { %v3068_v5 = vsel %vm668_vm1, %v3067_v43, %v3050_v32  ;;  %v3323_v32 = vperm.slane %v5919_v28, 4 }
 0x70c   : > { %3083 = vrot.lane.b32.xlu0 %v3068_v5, %s4930_s13  ;;  %4830 = vpow2.f32 %v1773_v52  ;;  %v3288_v52 = vperm.slane %v5911_v58, 7 }
 0x710   : > { %3089 = vrot.lane.b32.xlu2 %v5817_v45, %s4931_s14 }
 0x712   : > { %v5946_v23 = vpop.eup %4830 }
 0x714   : > { %3106 = vrot.lane.b32.xlu0 %v4738_v57, %s4938_s24 }
 0x718   : > { %3113 = vrot.lane.b32.xlu2 %v4739_v6, %s4938_s24 }
 0x762   : > { %v3076_v11 = vpop.permute.xlu2 %3075 }
 0x763   : > { %v3096_v41 = vsel %vm464_vm0, %v3064_v47, %v3076_v11  ;;  %v2678_v47 = vld [vmem:[#allocation2 + $0x48] sm:$0xff] }
 0x76a   : > { %v3090_v19 = vpop.permute.xlu2 %3089 }
 0x76b   : > { %v3099_v45 = vsel %vm810_vm3, %v3097_v24, %v3090_v19 }
 0x772   : > { %v3114_v12 = vpop.permute.xlu2 %3113 }
 0x773   : > { %v3119_v7 = vsel %vm464_vm0, %v3114_v12, 0 }
 0x774   : > { %3128 = vmatpush.bf16.xpose.msra.mxu0 %v3119_v7 }
 0x77c   : > { %v3092_v63 = vpop.permute.xlu1 %3091 }
 0x77e   : > { %v3084_v54 = vpop.permute.xlu0 %3083 }
 0x77f   : > { %v3098_v18 = vsel %vm807_vm2, %v3096_v41, %v3084_v54 }
 0x780   : > { %v3100_v59 = vsel %vm810_vm3, %v3098_v18, %v3092_v63 }
 0x786   : > { %v3107_v35 = vpop.permute.xlu0 %3106 }
 0x787   : > { %4673 = vmatmul.msk.bf16.vlgmr.msra.gmra.mxu0 %vm464_vm0, %v3107_v35 }
 0x804   : > { %v3130_v49 = vpop.f32.mrf.mxu0 }
 0x805   : > { %v5893_v40 = vadd.f32 %v3130_v49, %v3099_v45 }
 0x807   : > { %v3138_v30 = vsel %vm845_vm4, %v5893_v40, -inf }
 0x808   : > { %3139 = vmax.xlane.f32.xlu1 %v3138_v30 }
 0x80c   : > { %v3132_v2 = vpop.f32.mrf.mxu0 }
 0x80d   : > { %v5898_v38 = vadd.f32 %v3132_v2, %v3100_v59 }
 0x80f   : > { %v3141_v17 = vsel %vm845_vm4, %v5898_v38, -inf }
 0x810   : > { %3142 = vmax.xlane.f32.xlu0 %v3141_v17 }
 0x818   : > { %2683 = vmax.xlane.f32.xlu0 %v2682_v31 }
 0x821   : > { %1777 = vperm.xlu1 %4800, %v5831_v50  }
 0x829   : > { %1782 = vperm.xlu1 %4800, %v5824_v62  }
 0x82c   : > { %3258 = vperm.xlu0 %4797, %v3253_v16   ;;  %v3260_v16 = vperm.slane %v5911_v58, 3 }
 0x831   : > { %2695 = vperm.xlu1 %4800, %v5851_v46  }
 0x834   : > { %3279 = vperm.xlu0 %4797, %v3274_v13   ;;  %v3239_v13 = vperm.slane %v5911_v58, 0 }
 0x83c   : > { %3286 = vperm.xlu0 %4797, %v3281_v20  }
 0x844   : > { %3307 = vperm.xlu0 %4797, %v3302_v4   ;;  %v4742_v4 = vld [vmem:[%s5027_s8] sm:$0xff] }
 0x84c   : > { %3328 = vperm.xlu0 %4797, %v3323_v32  }
 0x854   : > { %3349 = vperm.xlu0 %4797, %v3344_v15  }
 0x87b   : > { %v3140_v25 = vpop.xlane.xlu1 %3139 }
 0x87c   : > { %v5927_v34 = vmax.f32 %v5924_v0, %v3140_v25  ;;  %v4741_v25 = vld [vmem:[%s5019_s29] sm:$0xff] }
 0x87e   : > { %v3146_v29 = vsub.f32 %v5924_v0, %v5927_v34  ;;  %3228 = vst.msk [vmem:[#allocation2 + $0x50] sm:$0xff] %vm431_vm5, %v5927_v34  ;;  %3154 = vperm.xlu2 %4799, %v5927_v34  }
 0x883   : > { %v3143_v26 = vpop.xlane.xlu0 %3142 }
 0x884   : > { %v5939_v14 = vmax.f32 %v5936_v22, %v3143_v26  ;;  %v4745_v26 = vld [vmem:[%s5027_s8] sm:$0xff] }
 0x886   : > { %v3147_v43 = vsub.f32 %v5936_v22, %v5939_v14  ;;  %3229 = vst.msk [vmem:[#allocation2 + $0x58] sm:$0xff] %vm431_vm5, %v5939_v14  ;;  %3159 = vperm.xlu2 %4799, %v5939_v14  }
 0x88b   : > { %v2684_v5 = vpop.xlane.xlu0 %2683 }
 0x88c   : > { %v2686_v57 = vmax.f32 %v2678_v47, %v2684_v5  ;;  %v4744_v5 = vld [vmem:[%s5019_s29] sm:$0xff]  ;;  %s4942_s29 = smov 16  }
 0x88e   : > { %v2688_v62 = vsub.f32 %v2678_v47, %v2686_v57  ;;  %2770 = vst.msk [vmem:[#allocation2 + $0x48] sm:$0xff] %vm431_vm5, %v2686_v57  ;;  %2700 = vperm.xlu1 %4800, %v2686_v57   ;;  %1816 = vperm.xlu2 %4799, %v5946_v23   ;;  %v3309_v47 = vperm.slane %v5919_v28, 2  ;;  %v3330_v57 = vperm.slane %v5919_v28, 5 }
 0x890   : > { %v2691_v6 = vmul.f32 1.442695, %v2688_v62  ;;  %v3295_v62 = vperm.slane %v5919_v28, 0 }
 0x892   : > { %4832 = vpow2.f32 %v2691_v6 }
 0x893   : > { %v1778_v11 = vpop.permute.xlu1 %1777 }
 0x894   : > { %v1785_v41 = vsub.f32 %v5766_v27, %v1778_v11 }
 0x896   : > { %4801 = vset.pattern.permute.xlu1 %v4993_v1  ;;  %v1787_v10 = vmul.f32 1.442695, %v1785_v41  ;;  %v3316_v41 = vperm.slane %v5919_v28, 3 }
 0x898   : > { %v5952_v61 = vpop.eup %4832  ;;  %4834 = vpow2.f32 %v1787_v10 }
 0x899   : > { %2734 = vperm.xlu2 %4799, %v5952_v61  }
 0x89b   : > { %v1783_v42 = vpop.permute.xlu1 %1782 }
 0x89c   : > { %v1786_v24 = vsub.f32 %v5758_v8, %v1783_v42 }
 0x89e   : > { %v1789_v19 = vmul.f32 1.442695, %v1786_v24  ;;  %v5957_v45 = vpop.eup %4834 }
 0x8a0   : > { %4836 = vpow2.f32 %v1789_v19  ;;  %v3337_v19 = vperm.slane %v5919_v28, 6 }
 0x8a1   : > { %4802 = vset.pattern.permute.xlu2 %v4993_v1 }
 0x8a3   : > { %v2696_v2 = vpop.permute.xlu1 %2695 }
 0x8a4   : > { %v2703_v17 = vsub.f32 %v5840_v53, %v2696_v2  ;;  %v3246_v53 = vperm.slane %v5911_v58, 1  ;;  %v1808_v58 = vld [vmem:[#allocation4 + $0x28] sm:$0xff]  ;;  %v3259_v2 = vpop.permute.xlu0 %3258 }
 0x8a6   : > { %v5959_v12 = vpop.eup %4836  ;;  %v2705_v44 = vmul.f32 1.442695, %v2703_v17 }
 0x8a7   : > { %v1821_v27 = vpack.c.bf16 %v5959_v12, %v5957_v45 }
 0x8a9   : > { %4624 = vmatmul.msk.bf16.vlgmr.msrb.gmra.mxu3 %vm845_vm4, %v1821_v27  ;;  %v3148_v27 = vmul.f32 1.442695, %v3146_v29  ;;  %v3170_v29 = vld [vmem:[#allocation3 + $0x58] sm:$0xff] }
 0x8d8   : > { %v3155_v7 = vpop.permute.xlu2 %3154 }
 0x8d9   : > { %v3162_v54 = vsub.f32 %v5893_v40, %v3155_v7 }
 0x8db   : > { %v3164_v18 = vmul.f32 1.442695, %v3162_v54  ;;  %v3150_v54 = vmul.f32 1.442695, %v3147_v43 }
 0x8dd   : > { %4838 = vpow2.f32 %v3164_v18 }
 0x8e0   : > { %v3160_v8 = vpop.permute.xlu2 %3159 }
 0x8e1   : > { %v3163_v35 = vsub.f32 %v5898_v38, %v3160_v8  ;;  %v4740_v38 = vld [vmem:[%s5220_s17] sm:$0xff]  ;;  %v3169_v8 = vld [vmem:[#allocation3 + $0x50] sm:$0xff] }
 0x8e3   : > { %v5966_v49 = vpop.eup %4838  ;;  %v3166_v1 = vmul.f32 1.442695, %v3163_v35  ;;  %v1799_v35 = vsel %vm845_vm4, %v5959_v12, 0.0  ;;  %v1796_v12 = vsel %vm845_vm4, %v5957_v45, 0.0 }
 0x8e4   : > { %v3173_v30 = vsel %vm845_vm4, %v5966_v49, 0.0 }
 0x8e5   : > { %4840 = vpow2.f32 %v3166_v1  ;;  %3174 = vadd.xlane.f32.xlu2 %v3173_v30 }
 0x8e6   : > { %4842 = vpow2.f32 %v2705_v44 }
 0x8e8   : > { %v1817_v11 = vpop.permute.xlu2 %1816 }
 0x8e9   : > { %v1820_v10 = vmul.f32 %v1817_v11, %v1808_v58 }
 0x8eb   : > { %v5970_v63 = vpop.eup %4840 }
 0x8ec   : > { %v3198_v59 = vpack.c.bf16 %v5970_v63, %v5966_v49  ;;  %v3176_v40 = vsel %vm845_vm4, %v5970_v63, 0.0  ;;  %v5983_v32 = vpop.eup %4842 }
 0x8ed   : > { %3177 = vadd.xlane.f32.xlu1 %v3176_v40 }
 0x8f3   : > { %v6011_v7 = vpop.permute.xlu2 %2734 }
 0x8fd   : > { %3204 = vrot.lane.b32.xlu2 %v4740_v38, %s4938_s24  ;;  %v4681_v38 = vld [vmem:[%s5040_s11 + $0x60] sm:$0xff] }
 0x8fe   : > { %v3370_v63 = vperm.slane %v4681_v38, 0 }
 0x900   : > { %v2701_v55 = vpop.permute.xlu1 %2700 }
 0x901   : > { %v2704_v31 = vsub.f32 %v5905_v21, %v2701_v55  ;;  %v3357_v55 = vrot.slane %v4681_v38, 2 }
 0x903   : > { %v2707_v20 = vmul.f32 1.442695, %v2704_v31  ;;  %v3358_v31 = vrot.slane %v4681_v38, 3 }
 0x905   : > { %4844 = vpow2.f32 %v2707_v20  ;;  %3265 = vperm.xlu2 %4802, %v3260_v16   ;;  %v3372_v16 = vperm.slane %v3357_v55, 0  ;;  %v3373_v20 = vperm.slane %v3358_v31, 0 }
 0x906   : > { %3244 = vperm.xlu1 %4801, %v3239_v13   ;;  %4846 = vpow2.f32 %v3148_v27  ;;  %v3280_v13 = vpop.permute.xlu0 %3279 }
 0x907   : > { %4848 = vpow2.f32 %v3150_v54  ;;  %v3404_v45 = vadd.f32 %v3372_v16, %v3259_v2 }
 0x90b   : > { %v5986_v15 = vpop.eup %4844 }
 0x90c   : > { %v2739_v21 = vpack.c.bf16 %v5986_v15, %v5983_v32  ;;  %v6016_v18 = vpop.eup %4846 }
 0x90d   : > { %3572 = vrot.lane.b32.xlu2 %v4742_v4, %s4939_s27  ;;  %v3171_v28 = vmul.f32 %v6016_v18, %v3169_v8  ;;  %v6022_v34 = vpop.eup %4848 }
 0x90e   : > { %3251 = vperm.xlu1 %4801, %v3246_v53   ;;  %4660 = vmatmul.msk.bf16.vlgmr.msra.gmra.mxu3 %vm845_vm4, %v2739_v21  ;;  %v3172_v22 = vmul.f32 %v6022_v34, %v3170_v29  ;;  %v3356_v53 = vrot.slane %v4681_v38, 1  ;;  %v3360_v21 = vrot.slane %v4681_v38, 5  ;;  %v3287_v27 = vpop.permute.xlu0 %3286 }
 0x915   : > { %3565 = vrot.lane.b32.xlu2 %v4741_v25, %s4939_s27 }
 0x916   : > { %3272 = vperm.xlu1 %4801, %v3267_v39   ;;  %v3361_v39 = vrot.slane %v4681_v38, 6 }
 0x918   : > { %v3376_v58 = vperm.slane %v3361_v39, 0 }
 0x91d   : > { %3293 = vperm.xlu2 %4802, %v3288_v52  }
 0x91e   : > { %4031 = vrot.lane.b32.xlu1 %v4745_v26, %s4940_s28 }
 0x925   : > { %3314 = vperm.xlu2 %4802, %v3309_v47   ;;  %v3371_v47 = vperm.slane %v3356_v53, 0 }
 0x926   : > { %4024 = vrot.lane.b32.xlu1 %v4744_v5, %s4940_s28  ;;  %v3418_v5 = vrot.slane %v3404_v45, 4 }
 0x92c   : > { %v6003_v6 = vpop.f32.mrf.mxu3 }
 0x92d   : > { %3335 = vperm.xlu2 %4802, %v3330_v57   ;;  %v3375_v57 = vperm.slane %v3360_v21, 0 }
 0x92e   : > { %3300 = vperm.xlu1 %4801, %v3295_v62  }
 0x92f   : > { %v3407_v54 = vadd.f32 %v3375_v57, %v3280_v13 }
 0x934   : > { %v1844_v42 = vpop.f32.mrf.mxu3 }
 0x935   : > { %v1848_v24 = vadd.f32 %v1844_v42, %v1820_v10 }
 0x936   : > { %3321 = vperm.xlu1 %4801, %v3316_v41  }
 0x937   : > { %1850 = vst.msk [vmem:[#allocation4 + $0x28] sm:$0xff] %vm464_vm0, %v1848_v24 }
 0x93e   : > { %3342 = vperm.xlu1 %4801, %v3337_v19   ;;  %v3359_v19 = vrot.slane %v4681_v38, 4 }
 0x956   : > { %1800 = vadd.xlane.f32.xlu2 %v1799_v35 }
 0x958   : > { %v3175_v1 = vpop.xlane.xlu2 %3174 }
 0x959   : > { %v3179_v0 = vadd.f32 %v3175_v1, %v3171_v28 }
 0x95b   : > { %3181 = vst.msk [vmem:[#allocation3 + $0x50] sm:$0xff] %vm431_vm5, %v3179_v0  ;;  %v3408_v0 = vadd.f32 %v3376_v58, %v3287_v27  ;;  %v2726_v58 = vld [vmem:[#allocation4 + $0x48] sm:$0xff] }
 0x95d   : > { %v3430_v2 = vrot.slane %v3408_v0, 4 }
 0x960   : > { %v3205_v14 = vpop.permute.xlu2 %3204  ;;  %v3178_v43 = vpop.xlane.xlu1 %3177 }
 0x961   : > { %v3180_v30 = vadd.f32 %v3178_v43, %v3172_v22  ;;  %3217 = vmatpush.bf16.msra.mxu2 %v3205_v14  ;;  %v3374_v22 = vperm.slane %v3359_v19, 0 }
 0x963   : > { %3182 = vst.msk [vmem:[#allocation3 + $0x58] sm:$0xff] %vm431_vm5, %v3180_v30 }
 0x964   : > { %4678 = vmatmul.msk.bf16.vlgmr.msra.gmra.mxu2 %vm845_vm4, %v3198_v59  ;;  %v3362_v59 = vrot.slane %v4681_v38, 7 }
 0x966   : > { %v3377_v26 = vperm.slane %v3362_v59, 0 }
 0x968   : > { %v3266_v40 = vpop.permute.xlu2 %3265  ;;  %1797 = vadd.xlane.f32.xlu1 %v1796_v12 }
 0x969   : > { %v3405_v25 = vadd.f32 %v3373_v20, %v3266_v40 }
 0x96b   : > { %v3424_v62 = vrot.slane %v3405_v25, 4 }
 0x970   : > { %v3573_v17 = vpop.permute.xlu2 %3572 }
 0x971   : > { %v3578_v44 = vsel %vm464_vm0, %v3573_v17, 0 }
 0x972   : > { %3587 = vmatpush.bf16.xpose.msrb.mxu1 %v3578_v44 }
 0x978   : > { %v3566_v4 = vpop.permute.xlu2 %3565  ;;  %v3245_v49 = vpop.permute.xlu1 %3244 }
 0x979   : > { %4691 = vmatmul.msk.bf16.vlgmr.msrb.gmra.mxu1 %vm464_vm0, %v3566_v4  ;;  %v3402_v52 = vadd.f32 %v3370_v63, %v3245_v49 }
 0x97b   : > { %v3419_v10 = vsel %vm668_vm1, %v3418_v5, %v3402_v52 }
 0x97c   : > { %v3423_v28 = vperm.slane %v3419_v10, %v5049_v9  ;;  %v4682_v10 = vld [vmem:[%s5040_s11 + $0x68] sm:$0xff] }
 0x97d   : > { %v3364_v19 = vrot.slane %v4682_v10, 2  ;;  %v3378_v0 = vperm.slane %v4682_v10, 0 }
 0x97e   : > { %v3444_v43 = vrot.slane %v3423_v28, 4 }
 0x980   : > { %v3294_v11 = vpop.permute.xlu2 %3293  ;;  %v3252_v41 = vpop.permute.xlu1 %3251 }
 0x981   : > { %v3409_v42 = vadd.f32 %v3377_v26, %v3294_v11  ;;  %v3403_v24 = vadd.f32 %v3371_v47, %v3252_v41  ;;  %v3308_v26 = vpop.permute.xlu0 %3307  ;;  %v6065_v41 = vld [vmem:[%s5006_s25 + $0x70] sm:$0xff] }
 0x983   : > { %v3436_v8 = vrot.slane %v3409_v42, 4  ;;  %v3425_v35 = vsel %vm668_vm1, %v3424_v62, %v3403_v24  ;;  %v2738_v42 = vmul.f32 %v6011_v7, %v2726_v58  ;;  %v3365_v7 = vrot.slane %v4682_v10, 3 }
 0x984   : > { %v3429_v1 = vperm.slane %v3425_v35, %v5049_v9 }
 0x985   : > { %v3437_v29 = vsel %vm668_vm1, %v3436_v8, %v3407_v54  ;;  %v3740_v8 = vperm.slane %v6065_v41, 6 }
 0x986   : > { %v3442_v14 = vrot.slane %v3429_v1, 4  ;;  %v3441_v30 = vperm.slane %v3437_v29, %v5049_v9  ;;  %v3445_v17 = vsel %vm668_vm1, %v3429_v1, %v3444_v43  ;;  %v3712_v43 = vperm.slane %v6065_v41, 2 }
 0x987   : > { %v3453_v13 = vperm.slane %v3445_v17, %v5064_v36  ;;  %v3381_v17 = vperm.slane %v3365_v7, 0 }
 0x988   : > { %v3273_v12 = vpop.permute.xlu1 %3272  ;;  %v3443_v40 = vsel %vm668_vm1, %v3442_v14, %v3423_v28  ;;  %v3454_v31 = vrot.slane %v3441_v30, 4  ;;  %v3380_v28 = vperm.slane %v3364_v19, 0  ;;  %v3315_v1 = vpop.permute.xlu2 %3314 }
 0x989   : > { %v3406_v38 = vadd.f32 %v3374_v22, %v3273_v12  ;;  %v3449_v55 = vperm.slane %v3443_v40, %v5064_v36  ;;  %v3472_v52 = vrot.slane %v3453_v13, 4  ;;  %v3329_v35 = vpop.permute.xlu0 %3328  ;;  %v3369_v22 = vrot.slane %v4682_v10, 7 }
 0x98a   : > { %v3412_v14 = vadd.f32 %v3380_v28, %v3315_v1  ;;  %v3367_v12 = vrot.slane %v4682_v10, 5 }
 0x98b   : > { %v3431_v44 = vsel %vm668_vm1, %v3430_v2, %v3406_v38  ;;  %v3468_v63 = vrot.slane %v3449_v55, 4  ;;  %v3385_v2 = vperm.slane %v3369_v22, 0 }
 0x98c   : > { %v3435_v16 = vperm.slane %v3431_v44, %v5049_v9  ;;  %v3474_v38 = vrot.slane %v3412_v14, 4 }
 0x98e   : > { %v3456_v20 = vrot.slane %v3435_v16, 4  ;;  %v3455_v4 = vsel %vm668_vm1, %v3454_v31, %v3435_v16  ;;  %v3383_v31 = vperm.slane %v3367_v12, 0 }
 0x98f   : > { %v3461_v49 = vperm.slane %v3455_v4, %v5064_v36 }
 0x990   : > { %v4032_v59 = vpop.permute.xlu1 %4031  ;;  %v3457_v53 = vsel %vm668_vm1, %v3441_v30, %v3456_v20  ;;  %v3363_v30 = vrot.slane %v4682_v10, 1  ;;  %v3336_v20 = vpop.permute.xlu2 %3335 }
 0x991   : > { %v4037_v45 = vsel %vm464_vm0, %v4032_v59, 0  ;;  %v6051_v21 = vpop.f32.mrf.mxu3  ;;  %v3469_v25 = vsel %vm668_vm1, %v3461_v49, %v3468_v63  ;;  %v3465_v39 = vperm.slane %v3457_v53, %v5064_v36  ;;  %v3466_v47 = vrot.slane %v3461_v49, 4  ;;  %v3350_v44 = vpop.permute.xlu0 %3349 }
 0x992   : > { %3532 = vrot.lane.b32.xlu2 %v3469_v25, %s4929_s12  ;;  %4046 = vmatpush.bf16.xpose.msrb.mxu0 %v4037_v45  ;;  %v3417_v49 = vadd.f32 %v3385_v2, %v3350_v44  ;;  %v3368_v59 = vrot.slane %v4682_v10, 6 }
 0x993   : > { %v3470_v5 = vrot.slane %v3465_v39, 4  ;;  %v6057_v57 = vsel %vm668_vm1, %v3465_v39, %v3472_v52  ;;  %v6060_v62 = vsel %vm668_vm1, %v3466_v47, %v3449_v55  ;;  %v3379_v55 = vperm.slane %v3363_v30, 0 }
 0x994   : > { %v3366_v39 = vrot.slane %v4682_v10, 4  ;;  %v3415_v52 = vadd.f32 %v3383_v31, %v3336_v20 }
 0x995   : > { %v3471_v11 = vsel %vm668_vm1, %v3470_v5, %v3453_v13  ;;  %v6075_v13 = vld [vmem:[%s5006_s25 + $0x78] sm:$0xff]  ;;  %v3411_v25 = vadd.f32 %v3379_v55, %v3308_v26  ;;  %v3492_v5 = vrot.slane %v3417_v49, 4  ;;  %s4941_s25 = smov 20  }
 0x996   : > { %3540 = vrot.lane.b32.xlu0 %v3471_v11, %s4930_s13  ;;  %v3768_v45 = vperm.slane %v6075_v13, 2  ;;  %v3384_v11 = vperm.slane %v3368_v59, 0  ;;  %v3382_v19 = vperm.slane %v3366_v39, 0  ;;  %v3782_v10 = vperm.slane %v6075_v13, 4 }
 0x997   : > { %v3754_v44 = vperm.slane %v6075_v13, 0 }
 0x998   : > { %v4025_v24 = vpop.permute.xlu1 %4024 }
 0x999   : > { %v2762_v27 = vpop.f32.mrf.mxu3  ;;  %4709 = vmatmul.msk.bf16.vlgmr.msrb.gmra.mxu0 %vm464_vm0, %v4025_v24 }
 0x99a   : > { %v2766_v54 = vadd.f32 %v2762_v27, %v2738_v42  ;;  %v3493_v27 = vsel %vm668_vm1, %v3492_v5, %v3415_v52  ;;  %v3719_v5 = vperm.slane %v6065_v41, 3 }
 0x99b   : > { %v3497_v26 = vperm.slane %v3493_v27, %v5049_v9  ;;  %v3803_v27 = vperm.slane %v6075_v13, 7 }
 0x99c   : > { %2768 = vst.msk [vmem:[#allocation4 + $0x48] sm:$0xff] %vm464_vm0, %v2766_v54 }
 0x99e   : > { %3745 = vperm.xlu0 %4797, %v3740_v8  }
 0x9a0   : > { %v3301_v29 = vpop.permute.xlu1 %3300 }
 0x9a1   : > { %v3410_v40 = vadd.f32 %v3378_v0, %v3301_v29  ;;  %v3414_v29 = vadd.f32 %v3382_v19, %v3329_v35  ;;  %v2717_v35 = vsel %vm845_vm4, %v5986_v15, 0.0 }
 0x9a3   : > { %v3475_v16 = vsel %vm668_vm1, %v3474_v38, %v3410_v40 }
 0x9a4   : > { %v3479_v53 = vperm.slane %v3475_v16, %v5049_v9 }
 0x9a6   : > { %3717 = vperm.xlu0 %4797, %v3712_v43   ;;  %v3500_v42 = vrot.slane %v3479_v53, 4  ;;  %v3510_v43 = vrot.slane %v3497_v26, 4 }
 0x9a8   : > { %v3322_v4 = vpop.permute.xlu1 %3321 }
 0x9a9   : > { %v3413_v63 = vadd.f32 %v3381_v17, %v3322_v4 }
 0x9ab   : > { %v3480_v47 = vrot.slane %v3413_v63, 4 }
 0x9ad   : > { %v3481_v58 = vsel %vm668_vm1, %v3480_v47, %v3411_v25  ;;  %v1769_v25 = vsub.f32 %v5828_v37, %v5831_v50  ;;  %v3747_v37 = vperm.slane %v6065_v41, 7  ;;  %v2714_v50 = vsel %vm845_vm4, %v5983_v32, 0.0 }
 0x9ae   : > { %v3485_v24 = vperm.slane %v3481_v58, %v5049_v9  ;;  %3773 = vperm.xlu0 %4797, %v3768_v45  }
 0x9af   : > { %v1771_v47 = vmul.f32 1.442695, %v1769_v25 }
 0x9b0   : > { %v3498_v54 = vrot.slane %v3485_v24, 4  ;;  %v3343_v8 = vpop.permute.xlu1 %3342  ;;  %v3501_v28 = vsel %vm668_vm1, %v3485_v24, %v3500_v42  ;;  %v1792_v42 = vld [vmem:[#allocation3 + $0x20] sm:$0xff] }
 0x9b1   : > { %v3416_v1 = vadd.f32 %v3384_v11, %v3343_v8  ;;  %v3509_v12 = vperm.slane %v3501_v28, %v5064_v36  ;;  %4850 = vpow2.f32 %v1771_v47  ;;  %v3796_v11 = vperm.slane %v6075_v13, 6 }
 0x9b2   : > { %v3499_v0 = vsel %vm668_vm1, %v3498_v54, %v3479_v53  ;;  %v1793_v53 = vld [vmem:[#allocation3 + $0x28] sm:$0xff]  ;;  %v3698_v54 = vperm.slane %v6065_v41, 0  ;;  %v3789_v8 = vperm.slane %v6075_v13, 5  ;;  %v3775_v28 = vperm.slane %v6075_v13, 3 }
 0x9b3   : > { %v3486_v22 = vrot.slane %v3416_v1, 4  ;;  %v3505_v7 = vperm.slane %v3499_v0, %v5064_v36  ;;  %v3528_v4 = vrot.slane %v3509_v12, 4  ;;  %v1795_v45 = vmul.f32 %v5946_v23, %v1793_v53 }
 0x9b4   : > { %v3705_v1 = vperm.slane %v6065_v41, 1 }
 0x9b5   : > { %v3487_v14 = vsel %vm668_vm1, %v3486_v22, %v3414_v29  ;;  %v3524_v17 = vrot.slane %v3505_v7, 4  ;;  %v3761_v29 = vperm.slane %v6075_v13, 1  ;;  %v3726_v22 = vperm.slane %v6065_v41, 4 }
 0x9b6   : > { %v3491_v30 = vperm.slane %v3487_v14, %v5049_v9  ;;  %3787 = vperm.xlu0 %4797, %v3782_v10   ;;  %v3733_v14 = vperm.slane %v6065_v41, 5  ;;  %v2687_v13 = vsub.f32 %v5848_v33, %v5851_v46 }
 0x9b7   : > { %v6110_v58 = vpop.eup %4850 }
 0x9b8   : > { %v3512_v40 = vrot.slane %v3491_v30, 4  ;;  %v3511_v2 = vsel %vm668_vm1, %v3510_v43, %v3491_v30  ;;  %v1794_v24 = vmul.f32 %v6110_v58, %v1792_v42 }
 0x9b9   : > { %v3517_v38 = vperm.slane %v3511_v2, %v5064_v36  ;;  %v2689_v2 = vmul.f32 1.442695, %v2687_v13 }
 0x9ba   : > { %v3513_v55 = vsel %vm668_vm1, %v3497_v26, %v3512_v40 }
 0x9bb   : > { %2718 = vadd.xlane.f32.xlu2 %v2717_v35  ;;  %v3525_v31 = vsel %vm668_vm1, %v3517_v38, %v3524_v17  ;;  %v3521_v16 = vperm.slane %v3513_v55, %v5064_v36  ;;  %v3522_v20 = vrot.slane %v3517_v38, 4  ;;  %4852 = vpow2.f32 %v2689_v2  ;;  %v2710_v35 = vld [vmem:[#allocation3 + $0x40] sm:$0xff] }
 0x9bc   : > { %3534 = vrot.lane.b32.xlu1 %v3525_v31, %s4929_s12 }
 0x9bd   : > { %v3526_v49 = vrot.slane %v3521_v16, 4  ;;  %v3523_v63 = vsel %vm668_vm1, %v3522_v20, %v3505_v7  ;;  %v6101_v59 = vsel %vm668_vm1, %v3521_v16, %v3528_v4  ;;  %v2711_v7 = vld [vmem:[#allocation3 + $0x48] sm:$0xff]  ;;  %v4700_v20 = vld [vmem:[%s5040_s11 + $0x78] sm:$0xff] }
 0x9be   : > { %3759 = vperm.xlu0 %4797, %v3754_v44   ;;  %v3827_v4 = vrot.slane %v4700_v20, 6  ;;  %v3825_v25 = vrot.slane %v4700_v20, 4 }
 0x9bf   : > { %v3527_v15 = vsel %vm668_vm1, %v3526_v49, %v3509_v12  ;;  %v3828_v49 = vrot.slane %v4700_v20, 7 }
 0x9c1   : > { %v6149_v17 = vpop.eup %4852 }
 0x9c6   : > { %4803 = vset.pattern.permute.xlu0 %v4935_v48 }
 0x9c9   : > { %v1801_v39 = vpop.xlane.xlu2 %1800 }
 0x9ca   : > { %v1803_v52 = vadd.f32 %v1801_v39, %v1795_v45  ;;  %v3844_v45 = vperm.slane %v3828_v49, 0 }
 0x9cc   : > { %1805 = vst.msk [vmem:[#allocation3 + $0x28] sm:$0xff] %vm431_vm5, %v1803_v52  ;;  %v3823_v52 = vrot.slane %v4700_v20, 2 }
 0x9d3   : > { %3724 = vperm.xlu2 %4802, %v3719_v5  }
 0x9db   : > { %3801 = vperm.xlu2 %4802, %v3796_v11   ;;  %v1798_v23 = vpop.xlane.xlu1 %1797 }
 0x9dc   : > { %v1802_v19 = vadd.f32 %v1798_v23, %v1794_v24  ;;  %v3841_v24 = vperm.slane %v3825_v25, 0 }
 0x9de   : > { %1804 = vst.msk [vmem:[#allocation3 + $0x20] sm:$0xff] %vm431_vm5, %v1802_v19  ;;  %v3839_v19 = vperm.slane %v3823_v52, 0 }
 0x9e3   : > { %3752 = vperm.xlu2 %4802, %v3747_v37  }
 0x9e6   : > { %2715 = vadd.xlane.f32.xlu1 %v2714_v50 }
 0x9eb   : > { %3808 = vperm.xlu2 %4802, %v3803_v27  }
 0x9ec   : > { %v3533_v26 = vpop.permute.xlu2 %3532 }
 0x9ed   : > { %v3554_v32 = vsel %vm464_vm0, %v6060_v62, %v3533_v26  ;;  %v2713_v62 = vmul.f32 %v5952_v61, %v2711_v7  ;;  %v6160_v26 = vld [vmem:[%s5040_s11 + $0x70] sm:$0xff] }
 0x9ee   : > { %v3815_v13 = vrot.slane %v6160_v26, 1  ;;  %v3818_v25 = vrot.slane %v6160_v26, 4 }
 0x9f3   : > { %3703 = vperm.xlu2 %4802, %v3698_v54   ;;  %v3837_v54 = vperm.slane %v4700_v20, 0 }
 0x9fb   : > { %3794 = vperm.xlu2 %4802, %v3789_v8   ;;  %v3824_v8 = vrot.slane %v4700_v20, 3 }
 0x9ff   : > { %3780 = vperm.xlu1 %4801, %v3775_v28  }
 0xa03   : > { %4805 = vset.pattern.permute.xlu2 %v4935_v48 }
 0xa07   : > { %3710 = vperm.xlu1 %4801, %v3705_v1  }
 0xa08   : > { %v3541_v10 = vpop.permute.xlu0 %3540 }
 0xa09   : > { %v6127_v0 = vsel %vm807_vm2, %v3554_v32, %v3541_v10 }
 0xa0f   : > { %3766 = vperm.xlu1 %4801, %v3761_v29   ;;  %v3817_v29 = vrot.slane %v6160_v26, 3 }
 0xa10   : > { %v6145_v61 = vpop.permute.xlu0 %3745 }
 0xa17   : > { %3731 = vperm.xlu1 %4801, %v3726_v22  }
 0xa18   : > { %v6152_v44 = vpop.permute.xlu0 %3717 }
 0xa1f   : > { %3738 = vperm.xlu1 %4801, %v3733_v14  }
 0xa20   : > { %v3774_v33 = vpop.permute.xlu0 %3773 }
 0xa21   : > { %v3871_v32 = vadd.f32 %v3839_v19, %v3774_v33 }
 0xa27   : > { %3542 = vrot.lane.b32.xlu1 %v3527_v15, %s4930_s13  ;;  %v3843_v15 = vperm.slane %v3827_v4, 0  ;;  %v3830_v4 = vperm.slane %v3815_v13, 0 }
 0xa28   : > { %4804 = vset.pattern.permute.xlu1 %v4935_v48  ;;  %v3788_v53 = vpop.permute.xlu0 %3787 }
 0xa29   : > { %v3873_v27 = vadd.f32 %v3841_v24, %v3788_v53 }
 0xa2e   : > { %v2719_v43 = vpop.xlane.xlu2 %2718  ;;  %v3535_v30 = vpop.permute.xlu1 %3534 }
 0xa2f   : > { %v2721_v12 = vadd.f32 %v2719_v43, %v2713_v62  ;;  %v6136_v40 = vsel %vm464_vm0, %v3523_v63, %v3535_v30  ;;  %3548 = vrot.lane.b32.xlu1 %v6057_v57, %s4931_s14  ;;  %v2712_v57 = vmul.f32 %v6149_v17, %v2710_v35  ;;  %v3826_v63 = vrot.slane %v4700_v20, 5 }
 0xa30   : > { %v3760_v28 = vpop.permute.xlu0 %3759  ;;  %v3840_v62 = vperm.slane %v3824_v8, 0  ;;  %v3822_v43 = vrot.slane %v4700_v20, 1 }
 0xa31   : > { %2723 = vst.msk [vmem:[#allocation3 + $0x48] sm:$0xff] %vm431_vm5, %v2721_v12  ;;  %v3842_v39 = vperm.slane %v3826_v63, 0  ;;  %v3869_v14 = vadd.f32 %v3837_v54, %v3760_v28  ;;  %v3933_v12 = vrot.slane %v3871_v32, 4 }
 0xa33   : > { %v3934_v2 = vsel %vm668_vm1, %v3933_v12, %v3869_v14 }
 0xa34   : > { %v3938_v49 = vperm.slane %v3934_v2, %v5049_v9 }
 0xa36   : > { %v6141_v41 = vpop.permute.xlu2 %3724 }
 0xa3e   : > { %v3802_v48 = vpop.permute.xlu2 %3801 }
 0xa3f   : > { %v3875_v47 = vadd.f32 %v3843_v15, %v3802_v48  ;;  %v3832_v48 = vperm.slane %v3817_v29, 0 }
 0xa41   : > { %v3945_v37 = vrot.slane %v3875_v47, 4  ;;  %v3864_v20 = vadd.f32 %v3832_v48, %v6141_v41  ;;  %v3959_v41 = vrot.slane %v3938_v49, 4 }
 0xa43   : > { %v3946_v10 = vsel %vm668_vm1, %v3945_v37, %v3873_v27  ;;  %v3833_v27 = vperm.slane %v3818_v25, 0 }
 0xa44   : > { %v3950_v30 = vperm.slane %v3946_v10, %v5049_v9 }
 0xa46   : > { %v6147_v38 = vpop.permute.xlu2 %3752  ;;  %v3971_v33 = vrot.slane %v3950_v30, 4 }
 0xa4e   : > { %v3809_v16 = vpop.permute.xlu2 %3808 }
 0xa4f   : > { %v3876_v11 = vadd.f32 %v3844_v45, %v3809_v16  ;;  %v3816_v16 = vrot.slane %v6160_v26, 2 }
 0xa51   : > { %v3951_v50 = vrot.slane %v3876_v11, 4  ;;  %v3831_v47 = vperm.slane %v3816_v16, 0 }
 0xa53   : > { %v3863_v54 = vadd.f32 %v3831_v47, %v6152_v44 }
 0xa55   : > { %v3877_v13 = vrot.slane %v3863_v54, 4 }
 0xa56   : > { %v6155_v46 = vpop.permute.xlu2 %3703 }
 0xa59   : > { %v2716_v55 = vpop.xlane.xlu1 %2715 }
 0xa5a   : > { %v2720_v31 = vadd.f32 %v2716_v55, %v2712_v57  ;;  %v3838_v55 = vperm.slane %v3822_v43, 0 }
 0xa5c   : > { %2722 = vst.msk [vmem:[#allocation3 + $0x40] sm:$0xff] %vm431_vm5, %v2720_v31  ;;  %v3820_v31 = vrot.slane %v6160_v26, 6 }
 0xa5e   : > { %v3795_v5 = vpop.permute.xlu2 %3794  ;;  %v3835_v52 = vperm.slane %v3820_v31, 0 }
 0xa5f   : > { %v3874_v23 = vadd.f32 %v3842_v39, %v3795_v5  ;;  %v3821_v5 = vrot.slane %v6160_v26, 7 }
 0xa61   : > { %v3952_v1 = vsel %vm668_vm1, %v3951_v50, %v3874_v23  ;;  %v3829_v23 = vperm.slane %v6160_v26, 0  ;;  %v3883_v50 = vrot.slane %v3864_v20, 4 }
 0xa62   : > { %v3956_v7 = vperm.slane %v3952_v1, %v5049_v9  ;;  %v3867_v1 = vadd.f32 %v3835_v52, %v6145_v61  ;;  %v3819_v61 = vrot.slane %v6160_v26, 5 }
 0xa63   : > { %v3861_v14 = vadd.f32 %v3829_v23, %v6155_v46 }
 0xa64   : > { %v3969_v35 = vrot.slane %v3956_v7, 4  ;;  %v3972_v63 = vsel %vm668_vm1, %v3956_v7, %v3971_v33  ;;  %v3889_v2 = vrot.slane %v3867_v1, 4  ;;  %v3834_v33 = vperm.slane %v3819_v61, 0 }
 0xa65   : > { %v6178_v24 = vperm.slane %v3972_v63, %v5064_v36 }
 0xa66   : > { %v3970_v39 = vsel %vm668_vm1, %v3969_v35, %v3950_v30 }
 0xa67   : > { %v3976_v37 = vperm.slane %v3970_v39, %v5064_v36  ;;  %v3985_v29 = vrot.slane %v6178_v24, 4 }
 0xa69   : > { %v3981_v43 = vrot.slane %v3976_v37, 4 }
 0xa71   : > { %v3781_v42 = vpop.permute.xlu1 %3780 }
 0xa72   : > { %v3872_v57 = vadd.f32 %v3840_v62, %v3781_v42 }
 0xa74   : > { %v3939_v53 = vrot.slane %v3872_v57, 4  ;;  %v3878_v57 = vsel %vm668_vm1, %v3877_v13, %v3861_v14 }
 0xa75   : > { %v3882_v26 = vperm.slane %v3878_v57, %v5049_v9 }
 0xa79   : > { %v3711_v22 = vpop.permute.xlu1 %3710 }
 0xa7a   : > { %v3862_v11 = vadd.f32 %v3830_v4, %v3711_v22  ;;  %v3836_v22 = vperm.slane %v3821_v5, 0 }
 0xa7c   : > { %v3884_v32 = vsel %vm668_vm1, %v3883_v50, %v3862_v11 }
 0xa7d   : > { %v3888_v48 = vperm.slane %v3884_v32, %v5049_v9 }
 0xa7f   : > { %v3901_v4 = vrot.slane %v3888_v48, 4 }
 0xa81   : > { %v3767_v15 = vpop.permute.xlu1 %3766 }
 0xa82   : > { %v3870_v45 = vadd.f32 %v3838_v55, %v3767_v15  ;;  %v3868_v55 = vadd.f32 %v3836_v22, %v6147_v38 }
 0xa84   : > { %v3940_v42 = vsel %vm668_vm1, %v3939_v53, %v3870_v45  ;;  %v3895_v63 = vrot.slane %v3868_v55, 4  ;;  %v3902_v53 = vsel %vm668_vm1, %v3901_v4, %v3882_v26  ;;  %v3903_v45 = vrot.slane %v3882_v26, 4 }
 0xa85   : > { %v3944_v19 = vperm.slane %v3940_v42, %v5049_v9  ;;  %v3908_v47 = vperm.slane %v3902_v53, %v5064_v36 }
 0xa86   : > { %v3904_v52 = vsel %vm668_vm1, %v3888_v48, %v3903_v45 }
 0xa87   : > { %v3957_v8 = vrot.slane %v3944_v19, 4  ;;  %v3960_v28 = vsel %vm668_vm1, %v3944_v19, %v3959_v41  ;;  %v3912_v23 = vperm.slane %v3904_v52, %v5064_v36 }
 0xa88   : > { %v3968_v10 = vperm.slane %v3960_v28, %v5064_v36 }
 0xa89   : > { %v3732_v7 = vpop.permute.xlu1 %3731  ;;  %v3958_v62 = vsel %vm668_vm1, %v3957_v8, %v3938_v49 }
 0xa8a   : > { %v3865_v30 = vadd.f32 %v3833_v27, %v3732_v7  ;;  %v3986_v44 = vsel %vm668_vm1, %v3985_v29, %v3968_v10  ;;  %v3964_v12 = vperm.slane %v3958_v62, %v5064_v36  ;;  %v3927_v27 = vrot.slane %v3908_v47, 4  ;;  %v3589_v7 = vpop.f32.mrf.mxu1 }
 0xa8b   : > { %4001 = vrot.lane.b32.xlu1 %v3986_v44, %s4930_s13  ;;  %v3987_v32 = vrot.slane %v3968_v10, 4 }
 0xa8c   : > { %v3983_v35 = vrot.slane %v3964_v12, 4  ;;  %v3982_v46 = vsel %vm668_vm1, %v3981_v43, %v3964_v12  ;;  %v3890_v31 = vsel %vm668_vm1, %v3889_v2, %v3865_v30  ;;  %v4048_v43 = vpop.f32.mrf.mxu0 }
 0xa8d   : > { %v3894_v49 = vperm.slane %v3890_v31, %v5049_v9  ;;  %v3988_v29 = vsel %vm668_vm1, %v6178_v24, %v3987_v32  ;;  %v1807_v32 = vld [vmem:[#allocation4 + $0x20] sm:$0xff] }
 0xa8e   : > { %v3984_v16 = vsel %vm668_vm1, %v3976_v37, %v3983_v35 }
 0xa8f   : > { %3993 = vrot.lane.b32.xlu2 %v3984_v16, %s4929_s12  ;;  %v3915_v25 = vrot.slane %v3894_v49, 4 }
 0xa91   : > { %v3739_v20 = vpop.permute.xlu1 %3738 }
 0xa92   : > { %v3866_v15 = vadd.f32 %v3834_v33, %v3739_v20  ;;  %v3591_v55 = vpop.f32.mrf.mxu1 }
 0xa94   : > { %v3896_v38 = vsel %vm668_vm1, %v3895_v63, %v3866_v15  ;;  %v4050_v13 = vpop.f32.mrf.mxu0  ;;  %v6254_v15 = vld [vmem:[#allocation2 + $0x60] sm:$0xff] }
 0xa95   : > { %v3900_v39 = vperm.slane %v3896_v38, %v5049_v9  ;;  %v6269_v38 = vld [vmem:[#allocation2 + $0x78] sm:$0xff] }
 0xa97   : > { %v3913_v5 = vrot.slane %v3900_v39, 4  ;;  %v3916_v11 = vsel %vm668_vm1, %v3900_v39, %v3915_v25 }
 0xa98   : > { %v3924_v42 = vperm.slane %v3916_v11, %v5064_v36 }
 0xa99   : > { %v3543_v41 = vpop.permute.xlu1 %3542  ;;  %v3914_v19 = vsel %vm668_vm1, %v3913_v5, %v3894_v49 }
 0xa9a   : > { %v3557_v37 = vsel %vm807_vm2, %v6136_v40, %v3543_v41  ;;  %v3929_v50 = vrot.slane %v3924_v42, 4  ;;  %v3920_v9 = vperm.slane %v3914_v19, %v5064_v36  ;;  %v3931_v40 = vrot.slane %v3912_v23, 4 }
 0xa9c   : > { %v3930_v54 = vsel %vm668_vm1, %v3929_v50, %v3912_v23  ;;  %v3928_v8 = vsel %vm668_vm1, %v3920_v9, %v3927_v27  ;;  %v3925_v28 = vrot.slane %v3920_v9, 4  ;;  %v3932_v22 = vsel %vm668_vm1, %v3924_v42, %v3931_v40  ;;  %v4054_v23 = vld [vmem:[#allocation2 + $0x70] sm:$0xff]  ;;  %v4743_v9 = vld [vmem:[%s5220_s17] sm:$0xff] }
 0xa9d   : > { %3999 = vrot.lane.b32.xlu2 %v3930_v54, %s4930_s13  ;;  %3991 = vrot.lane.b32.xlu0 %v3928_v8, %s4929_s12  ;;  %v4746_v27 = vld [vmem:[%s5220_s17] sm:$0xff]  ;;  %v1348_v54 = vld [vmem:[#allocation4 + $0x10] sm:$0xff] }
 0xa9e   : > { %v3926_v1 = vsel %vm668_vm1, %v3925_v28, %v3908_v47 }
 0xaa1   : > { %v3549_v36 = vpop.permute.xlu1 %3548 }
 0xaa2   : > { %v3558_v14 = vsel %vm810_vm3, %v6127_v0, %v3549_v36 }
 0xaa3   : > { %v6230_v62 = vadd.f32 %v3589_v7, %v3558_v14 }
 0xaa5   : > { %4009 = vrot.lane.b32.xlu2 %v3988_v29, %s4931_s14  ;;  %3550 = vrot.lane.b32.xlu0 %v6101_v59, %s4931_s14  ;;  %v3597_v24 = vsel %vm845_vm4, %v6230_v62, -inf }
 0xaad   : > { %4007 = vrot.lane.b32.xlu0 %v3932_v22, %s4931_s14  ;;  %v2266_v22 = vld [vmem:[#allocation4 + $0x30] sm:$0xff] }
 0xab5   : > { %3598 = vmax.xlane.f32.xlu1 %v3597_v24 }
 0xae9   : > { %v3994_v10 = vpop.permute.xlu2 %3993 }
 0xaea   : > { %v4014_v59 = vsel %vm464_vm0, %v3982_v46, %v3994_v10  ;;  %v2725_v10 = vld [vmem:[#allocation4 + $0x40] sm:$0xff] }
 0xaf7   : > { %v4000_v30 = vpop.permute.xlu2 %3999 }
 0xafd   : > { %v4002_v44 = vpop.permute.xlu1 %4001 }
 0xafe   : > { %v4016_v12 = vsel %vm807_vm2, %v4014_v59, %v4002_v44  ;;  %v3184_v59 = vld [vmem:[#allocation4 + $0x50] sm:$0xff] }
 0xaff   : > { %v4010_v61 = vpop.permute.xlu2 %4009 }
 0xb00   : > { %v4018_v0 = vsel %vm810_vm3, %v4016_v12, %v4010_v61 }
 0xb01   : > { %v6237_v48 = vadd.f32 %v4050_v13, %v4018_v0 }
 0xb03   : > { %v4059_v2 = vsel %vm845_vm4, %v6237_v48, -inf }
 0xb04   : > { %4060 = vmax.xlane.f32.xlu1 %v4059_v2 }
 0xb0f   : > { %v3992_v35 = vpop.permute.xlu0 %3991 }
 0xb10   : > { %v4013_v33 = vsel %vm464_vm0, %v3926_v1, %v3992_v35 }
 0xb11   : > { %v4015_v26 = vsel %vm807_vm2, %v4013_v33, %v4000_v30 }
 0xb17   : > { %v3551_v57 = vpop.permute.xlu0 %3550 }
 0xb18   : > { %v3559_v31 = vsel %vm810_vm3, %v3557_v37, %v3551_v57 }
 0xb19   : > { %v6242_v16 = vadd.f32 %v3591_v55, %v3559_v31 }
 0xb1b   : > { %v3600_v46 = vsel %vm845_vm4, %v6242_v16, -inf }
 0xb1c   : > { %3601 = vmax.xlane.f32.xlu0 %v3600_v46 }
 0xb1d   : > { %3193 = vperm.xlu1 %4804, %v6022_v34  }
 0xb1f   : > { %v4008_v4 = vpop.permute.xlu0 %4007 }
 0xb20   : > { %v4017_v49 = vsel %vm810_vm3, %v4015_v26, %v4008_v4 }
 0xb21   : > { %v6250_v20 = vadd.f32 %v4048_v43, %v4017_v49 }
 0xb23   : > { %v4056_v63 = vsel %vm845_vm4, %v6250_v20, -inf }
 0xb24   : > { %4057 = vmax.xlane.f32.xlu2 %v4056_v63 }
 0xb28   : > { %v3599_v53 = vpop.xlane.xlu1 %3598 }
 0xb29   : > { %v6257_v45 = vmax.f32 %v6254_v15, %v3599_v53 }
 0xb2b   : > { %v3605_v34 = vsub.f32 %v6254_v15, %v6257_v45  ;;  %3687 = vst.msk [vmem:[#allocation2 + $0x60] sm:$0xff] %vm431_vm5, %v6257_v45 }
 0xb30   : > { %1352 = vperm.xlu0 %4803, %v5660_v60   ;;  %v3219_v60 = vpop.f32.mrf.mxu2 }
 0xb38   : > { %1811 = vperm.xlu0 %4803, %v6110_v58   ;;  %v3185_v58 = vld [vmem:[#allocation4 + $0x58] sm:$0xff]  ;;  %v3221_v11 = vpop.f32.mrf.mxu2 }
 0xb40   : > { %2270 = vperm.xlu0 %4803, %v5656_v56   ;;  %v6278_v56 = vld [vmem:[#allocation2 + $0x68] sm:$0xff] }
 0xb48   : > { %2729 = vperm.xlu0 %4803, %v6149_v17  }
 0xb50   : > { %3188 = vperm.xlu0 %4803, %v6016_v18  }
 0xb58   : > { %3613 = vperm.xlu0 %4803, %v6257_v45   ;;  %v4151_v45 = vld [vmem:[#allocation3] sm:$0xff] }
 0xb77   : > { %v4061_v25 = vpop.xlane.xlu1 %4060 }
 0xb78   : > { %v6272_v39 = vmax.f32 %v6269_v38, %v4061_v25 }
 0xb7a   : > { %v4065_v52 = vsub.f32 %v6269_v38, %v6272_v39  ;;  %4147 = vst.msk [vmem:[#allocation2 + $0x78] sm:$0xff] %vm431_vm5, %v6272_v39  ;;  %v4155_v38 = vld [vmem:[#allocation3 + $0x20] sm:$0xff] }
 0xb8f   : > { %v3602_v17 = vpop.xlane.xlu0 %3601  ;;  %v3194_v18 = vpop.permute.xlu1 %3193 }
 0xb90   : > { %v6281_v47 = vmax.f32 %v6278_v56, %v3602_v17  ;;  %v3197_v5 = vmul.f32 %v3194_v18, %v3185_v58  ;;  %v4153_v17 = vld [vmem:[#allocation3 + $0x10] sm:$0xff] }
 0xb92   : > { %v3606_v42 = vsub.f32 %v6278_v56, %v6281_v47  ;;  %3688 = vst.msk [vmem:[#allocation2 + $0x68] sm:$0xff] %vm431_vm5, %v6281_v47  ;;  %v3225_v41 = vadd.f32 %v3221_v11, %v3197_v5  ;;  %3618 = vperm.xlu2 %4805, %v6281_v47   ;;  %v3628_v56 = vld [vmem:[#allocation3 + $0x60] sm:$0xff]  ;;  %v4160_v47 = vld [vmem:[#allocation3 + $0x48] sm:$0xff] }
 0xb94   : > { %3227 = vst.msk [vmem:[#allocation4 + $0x58] sm:$0xff] %vm464_vm0, %v3225_v41 }
 0xb97   : > { %v4058_v19 = vpop.xlane.xlu2 %4057 }
 0xb98   : > { %v4062_v37 = vmax.f32 %v4054_v23, %v4058_v19  ;;  %v4154_v19 = vld [vmem:[#allocation3 + $0x18] sm:$0xff] }
 0xb9a   : > { %v4064_v50 = vsub.f32 %v4054_v23, %v4062_v37  ;;  %4146 = vst.msk [vmem:[#allocation2 + $0x70] sm:$0xff] %vm431_vm5, %v4062_v37  ;;  %4072 = vperm.xlu1 %4804, %v4062_v37   ;;  %4077 = vperm.xlu2 %4805, %v6272_v39  }
 0xb9c   : > { %v4066_v63 = vmul.f32 1.442695, %v4064_v50 }
 0xba2   : > { %v1353_v8 = vpop.permute.xlu0 %1352  ;;  %3663 = vrot.lane.b32.xlu1 %v4743_v9, %s4939_s27  ;;  %4122 = vrot.lane.b32.xlu2 %v4746_v27, %s4940_s28  ;;  %v4158_v9 = vld [vmem:[#allocation3 + $0x38] sm:$0xff] }
 0xba3   : > { %v1360_v28 = vmul.f32 %v1353_v8, %v1348_v54  ;;  %v3607_v54 = vmul.f32 1.442695, %v3605_v34  ;;  %v4159_v8 = vld [vmem:[#allocation3 + $0x40] sm:$0xff] }
 0xba5   : > { %v1388_v1 = vadd.f32 %v5613_v51, %v1360_v28 }
 0xba7   : > { %1390 = vst.msk [vmem:[#allocation4 + $0x10] sm:$0xff] %vm464_vm0, %v1388_v1  ;;  %v4161_v1 = vld [vmem:[#allocation3 + $0x50] sm:$0xff] }
 0xbaa   : > { %v1812_v29 = vpop.permute.xlu0 %1811 }
 0xbab   : > { %v1819_v36 = vmul.f32 %v1812_v29, %v1807_v32  ;;  %v3609_v29 = vmul.f32 1.442695, %v3606_v42 }
 0xbad   : > { %v1847_v40 = vadd.f32 %v6003_v6, %v1819_v36 }
 0xbaf   : > { %1849 = vst.msk [vmem:[#allocation4 + $0x20] sm:$0xff] %vm464_vm0, %v1847_v40  ;;  %v4162_v40 = vld [vmem:[#allocation3 + $0x58] sm:$0xff] }
 0xbb2   : > { %v2271_v14 = vpop.permute.xlu0 %2270 }
 0xbb3   : > { %v2278_v7 = vmul.f32 %v2271_v14, %v2266_v22 }
 0xbb5   : > { %v2306_v24 = vadd.f32 %v5771_v3, %v2278_v7  ;;  %v4157_v7 = vld [vmem:[#allocation3 + $0x30] sm:$0xff] }
 0xbb7   : > { %2308 = vst.msk [vmem:[#allocation4 + $0x30] sm:$0xff] %vm464_vm0, %v2306_v24 }
 0xbba   : > { %v2730_v43 = vpop.permute.xlu0 %2729 }
 0xbbb   : > { %v2737_v30 = vmul.f32 %v2730_v43, %v2725_v10 }
 0xbbd   : > { %v2765_v51 = vadd.f32 %v6051_v21, %v2737_v30 }
 0xbbf   : > { %2767 = vst.msk [vmem:[#allocation4 + $0x40] sm:$0xff] %vm464_vm0, %v2765_v51 }
 0xbc2   : > { %v3189_v44 = vpop.permute.xlu0 %3188 }
 0xbc3   : > { %v3196_v12 = vmul.f32 %v3189_v44, %v3184_v59 }
 0xbc5   : > { %v3224_v6 = vadd.f32 %v3219_v60, %v3196_v12  ;;  %v4068_v60 = vmul.f32 1.442695, %v4065_v52  ;;  %v4156_v52 = vld [vmem:[#allocation3 + $0x28] sm:$0xff] }
 0xbc6   : > { %v3629_v12 = vld [vmem:[#allocation3 + $0x68] sm:$0xff] }
 0xbc7   : > { %3226 = vst.msk [vmem:[#allocation4 + $0x50] sm:$0xff] %vm464_vm0, %v3224_v6 }
 0xbca   : > { %v3614_v61 = vpop.permute.xlu0 %3613 }
 0xbcb   : > { %v3621_v13 = vsub.f32 %v6230_v62, %v3614_v61 }
 0xbcd   : > { %v3623_v0 = vmul.f32 1.442695, %v3621_v13 }
 0xbcf   : > { %4854 = vpow2.f32 %v3623_v0  ;;  %v4088_v0 = vld [vmem:[#allocation3 + $0x78] sm:$0xff] }
 0xbd5   : > { %v4855_v3 = vpop.eup %4854 }
 0xbd6   : > { %v3632_v2 = vsel %vm845_vm4, %v4855_v3, 0.0 }
 0xbd7   : > { %3633 = vadd.xlane.f32.xlu1 %v3632_v2 }
 0xbec   : > { %v3619_v35 = vpop.permute.xlu2 %3618 }
 0xbed   : > { %v3622_v21 = vsub.f32 %v6242_v16, %v3619_v35  ;;  %v4152_v16 = vld [vmem:[#allocation3 + $0x8] sm:$0xff] }
 0xbef   : > { %v3625_v57 = vmul.f32 1.442695, %v3622_v21 }
 0xbf1   : > { %4856 = vpow2.f32 %v3625_v57 }
 0xbf4   : > { %v4078_v55 = vpop.permute.xlu2 %4077 }
 0xbf5   : > { %v4081_v31 = vsub.f32 %v6237_v48, %v4078_v55 }
 0xbf7   : > { %v4857_v46 = vpop.eup %4856  ;;  %v4084_v33 = vmul.f32 1.442695, %v4081_v31 }
 0xbf8   : > { %v3635_v4 = vsel %vm845_vm4, %v4857_v46, 0.0  ;;  %v3657_v11 = vpack.c.bf16 %v4857_v46, %v4855_v3 }
 0xbf9   : > { %4858 = vpow2.f32 %v4084_v33  ;;  %3636 = vadd.xlane.f32.xlu0 %v3635_v4  ;;  %v4087_v4 = vld [vmem:[#allocation3 + $0x70] sm:$0xff] }
 0xbfa   : > { %4860 = vpow2.f32 %v4066_v63 }
 0xbfb   : > { %4862 = vrcp.f32 %v4152_v16 }
 0xbfc   : > { %v4123_v62 = vpop.permute.xlu2 %4122 }
 0xbfd   : > { %4135 = vmatpush.bf16.msrb.mxu2 %v4123_v62 }
 0xbff   : > { %v4859_v26 = vpop.eup %4858 }
 0xc00   : > { %v4094_v49 = vsel %vm845_vm4, %v4859_v26, 0.0  ;;  %v6310_v53 = vpop.eup %4860 }
 0xc01   : > { %4095 = vadd.xlane.f32.xlu1 %v4094_v49  ;;  %v4863_v18 = vpop.eup %4862  ;;  %v4089_v62 = vmul.f32 %v6310_v53, %v4087_v4 }
 0xc0c   : > { %v4073_v25 = vpop.permute.xlu1 %4072 }
 0xc0d   : > { %v4080_v48 = vsub.f32 %v6250_v20, %v4073_v25  ;;  %4106 = vperm.xlu0 %4803, %v6310_v53   ;;  %v4199_v25 = vld [vmem:[#allocation4 + $0x10] sm:$0xff] }
 0xc0e   : > { %v4102_v53 = vld [vmem:[#allocation4 + $0x70] sm:$0xff] }
 0xc0f   : > { %v4082_v58 = vmul.f32 1.442695, %v4080_v48 }
 0xc11   : > { %4864 = vpow2.f32 %v4082_v58  ;;  %v4200_v58 = vld [vmem:[#allocation4 + $0x18] sm:$0xff] }
 0xc12   : > { %4866 = vpow2.f32 %v4068_v60 }
 0xc13   : > { %4868 = vrcp.f32 %v4153_v17 }
 0xc14   : > { %v3664_v5 = vpop.permute.xlu1 %3663  ;;  %4870 = vrcp.f32 %v4154_v19  ;;  %v4215_v19 = vld [vmem:[#allocation4 + $0x20] sm:$0xff] }
 0xc15   : > { %4192 = vperm.xlu0 %4803, %v4863_v18   ;;  %3676 = vmatpush.bf16.msrb.mxu3 %v3664_v5  ;;  %4872 = vrcp.f32 %v4155_v38 }
 0xc16   : > { %4874 = vrcp.f32 %v4156_v52 }
 0xc17   : > { %v4865_v41 = vpop.eup %4864  ;;  %4876 = vrcp.f32 %v4158_v9 }
 0xc18   : > { %v4116_v23 = vpack.c.bf16 %v4859_v26, %v4865_v41  ;;  %4696 = vmatmul.msk.bf16.vlgmr.msrb.gmra.mxu3 %vm845_vm4, %v3657_v11  ;;  %v4091_v20 = vsel %vm845_vm4, %v4865_v41, 0.0  ;;  %v6319_v37 = vpop.eup %4866  ;;  %4878 = vpow2.f32 %v3607_v54  ;;  %v3643_v41 = vld [vmem:[#allocation4 + $0x60] sm:$0xff] }
 0xc19   : > { %4092 = vadd.xlane.f32.xlu2 %v4091_v20  ;;  %v4869_v39 = vpop.eup %4868  ;;  %4880 = vrcp.f32 %v4159_v8  ;;  %v4090_v3 = vmul.f32 %v6319_v37, %v4088_v0 }
 0xc1a   : > { %4111 = vperm.xlu1 %4804, %v6319_v37   ;;  %4714 = vmatmul.msk.bf16.vlgmr.msrb.gmra.mxu2 %vm845_vm4, %v4116_v23  ;;  %v4871_v50 = vpop.eup %4870  ;;  %4882 = vrcp.f32 %v4161_v1 }
 0xc1b   : > { %v4873_v27 = vpop.eup %4872  ;;  %4884 = vpow2.f32 %v3609_v29 }
 0xc1c   : > { %v4875_v28 = vpop.eup %4874  ;;  %4886 = vrcp.f32 %v4162_v40 }
 0xc1d   : > { %4203 = vperm.xlu0 %4803, %v4869_v39   ;;  %v4877_v32 = vpop.eup %4876  ;;  %4888 = vrcp.f32 %v4151_v45 }
 0xc1e   : > { %v4879_v36 = vpop.eup %4878  ;;  %4890 = vrcp.f32 %v4157_v7 }
 0xc1f   : > { %v4881_v22 = vpop.eup %4880  ;;  %v3630_v10 = vmul.f32 %v4879_v36, %v3628_v56  ;;  %4892 = vrcp.f32 %v4160_v47 }
 0xc20   : > { %v4883_v15 = vpop.eup %4882 }
 0xc21   : > { %v4885_v34 = vpop.eup %4884 }
 0xc22   : > { %4208 = vperm.xlu1 %4804, %v4871_v50   ;;  %v4887_v14 = vpop.eup %4886  ;;  %v3631_v6 = vmul.f32 %v4885_v34, %v3629_v12 }
 0xc23   : > { %v4889_v24 = vpop.eup %4888 }
 0xc24   : > { %v4891_v42 = vpop.eup %4890 }
 0xc25   : > { %4219 = vperm.xlu0 %4803, %v4873_v27   ;;  %v4893_v51 = vpop.eup %4892 }
 0xc2a   : > { %4224 = vperm.xlu1 %4804, %v4875_v28   ;;  %v4216_v28 = vld [vmem:[#allocation4 + $0x28] sm:$0xff] }
 0xc2d   : > { %4240 = vperm.xlu0 %4803, %v4877_v32  }
 0xc31   : > { %3647 = vperm.xlu2 %4805, %v4879_v36  }
 0xc32   : > { %4251 = vperm.xlu1 %4804, %v4881_v22  }
 0xc35   : > { %4267 = vperm.xlu0 %4803, %v4883_v15   ;;  %v3644_v15 = vld [vmem:[#allocation4 + $0x68] sm:$0xff] }
 0xc39   : > { %3652 = vperm.xlu2 %4805, %v4885_v34  }
 0xc3a   : > { %4272 = vperm.xlu1 %4804, %v4887_v14   ;;  %v4184_v14 = vld [vmem:[#allocation4 + $0x8] sm:$0xff] }
 0xc41   : > { %4187 = vperm.xlu2 %4805, %v4889_v24   ;;  %v4103_v24 = vld [vmem:[#allocation4 + $0x78] sm:$0xff] }
 0xc49   : > { %4235 = vperm.xlu2 %4805, %v4891_v42  }
 0xc4a   : > { %v3634_v43 = vpop.xlane.xlu1 %3633 }
 0xc4b   : > { %v3638_v30 = vadd.f32 %v3634_v43, %v3630_v10 }
 0xc4d   : > { %3640 = vst.msk [vmem:[#allocation3 + $0x60] sm:$0xff] %vm431_vm5, %v3638_v30 }
 0xc51   : > { %4256 = vperm.xlu2 %4805, %v4893_v51  }
 0xc54   : > { %v4163_v59 = vld [vmem:[#allocation3 + $0x60] sm:$0xff] }
 0xc55   : > { %4894 = vrcp.f32 %v4163_v59  ;;  %v4183_v59 = vld [vmem:[#allocation4] sm:$0xff] }
 0xc5b   : > { %v4895_v44 = vpop.eup %4894 }
 0xc5c   : > { %4283 = vperm.xlu2 %4805, %v4895_v44  }
 0xc6c   : > { %v3637_v61 = vpop.xlane.xlu0 %3636 }
 0xc6d   : > { %v3639_v13 = vadd.f32 %v3637_v61, %v3631_v6 }
 0xc6f   : > { %3641 = vst.msk [vmem:[#allocation3 + $0x68] sm:$0xff] %vm431_vm5, %v3639_v13 }
 0xc74   : > { %v4096_v2 = vpop.xlane.xlu1 %4095 }
 0xc75   : > { %v4098_v35 = vadd.f32 %v4096_v2, %v4090_v3  ;;  %v4232_v3 = vld [vmem:[#allocation4 + $0x38] sm:$0xff] }
 0xc76   : > { %v4164_v21 = vld [vmem:[#allocation3 + $0x68] sm:$0xff] }
 0xc77   : > { %4100 = vst.msk [vmem:[#allocation3 + $0x78] sm:$0xff] %vm431_vm5, %v4098_v35  ;;  %4896 = vrcp.f32 %v4164_v21 }
 0xc7d   : > { %v4897_v57 = vpop.eup %4896 }
 0xc7e   : > { %4288 = vperm.xlu0 %4803, %v4897_v57   ;;  %v4166_v55 = vld [vmem:[#allocation3 + $0x78] sm:$0xff]  ;;  %v4263_v57 = vld [vmem:[#allocation4 + $0x50] sm:$0xff] }
 0xc7f   : > { %v4107_v31 = vpop.permute.xlu0 %4106  ;;  %4898 = vrcp.f32 %v4166_v55 }
 0xc80   : > { %v4114_v27 = vmul.f32 %v4107_v31, %v4102_v53  ;;  %v4248_v53 = vld [vmem:[#allocation4 + $0x48] sm:$0xff] }
 0xc85   : > { %v4899_v46 = vpop.eup %4898 }
 0xc86   : > { %4304 = vperm.xlu2 %4805, %v4899_v46  }
 0xc87   : > { %v4193_v33 = vpop.permute.xlu0 %4192 }
 0xc88   : > { %v4196_v7 = vmul.f32 %v4193_v33, %v4184_v14 }
 0xc8a   : > { %v4198_v6 = vpack.c.bf16 %v4196_v7, %v4196_v7 }
 0xc8c   : > { %v4093_v26 = vpop.xlane.xlu2 %4092  ;;  %v4112_v49 = vpop.permute.xlu1 %4111  ;;  %v6341_v55 = vunpack.c.l.b16 %v4198_v6 }
 0xc8d   : > { %v4097_v63 = vadd.f32 %v4093_v26, %v4089_v62  ;;  %v4115_v30 = vmul.f32 %v4112_v49, %v4103_v24  ;;  %v4231_v62 = vld [vmem:[#allocation4 + $0x30] sm:$0xff]  ;;  %v4264_v49 = vld [vmem:[#allocation4 + $0x58] sm:$0xff] }
 0xc8f   : > { %4099 = vst.msk [vmem:[#allocation3 + $0x70] sm:$0xff] %vm431_vm5, %v4097_v63  ;;  %v4204_v16 = vpop.permute.xlu0 %4203 }
 0xc90   : > { %v4211_v48 = vmul.f32 %v4204_v16, %v4199_v25 }
 0xc92   : > { %v4213_v18 = vpack.c.bf16 %v4211_v48, %v4211_v48 }
 0xc94   : > { %v3648_v60 = vpop.permute.xlu2 %3647  ;;  %v4209_v17 = vpop.permute.xlu1 %4208  ;;  %v4318_v37 = vunpack.c.l.b16 %v4213_v18  ;;  %v4247_v18 = vld [vmem:[#allocation4 + $0x40] sm:$0xff] }
 0xc95   : > { %v4212_v5 = vmul.f32 %v4209_v17, %v4200_v58  ;;  %v3655_v52 = vmul.f32 %v3648_v60, %v3643_v41 }
 0xc96   : > { %v4165_v11 = vld [vmem:[#allocation3 + $0x70] sm:$0xff] }
 0xc97   : > { %v4214_v23 = vpack.c.bf16 %v4212_v5, %v4212_v5  ;;  %v4220_v20 = vpop.permute.xlu0 %4219  ;;  %4900 = vrcp.f32 %v4165_v11 }
 0xc98   : > { %v4227_v39 = vmul.f32 %v4220_v20, %v4215_v19 }
 0xc99   : > { %v4319_v38 = vunpack.c.l.b16 %v4214_v23 }
 0xc9a   : > { %v4229_v29 = vpack.c.bf16 %v4227_v39, %v4227_v39 }
 0xc9b   : > { %v4320_v50 = vpack.c.b16 %v4319_v38, %v4318_v37  ;;  %v3678_v9 = vpop.f32.mrf.mxu3 }
 0xc9c   : > { %v3683_v54 = vadd.f32 %v3678_v9, %v3655_v52  ;;  %v3653_v8 = vpop.permute.xlu2 %3652  ;;  %v4225_v1 = vpop.permute.xlu1 %4224  ;;  %v4325_v56 = vunpack.c.l.b16 %v4229_v29 }
 0xc9d   : > { %v4901_v32 = vpop.eup %4900  ;;  %v4228_v36 = vmul.f32 %v4225_v1, %v4216_v28  ;;  %v4137_v40 = vpop.f32.mrf.mxu2  ;;  %4321 = vrot.lane.b32.xlu0 %v4320_v50, %s4929_s12  ;;  %v3656_v42 = vmul.f32 %v3653_v8, %v3644_v15 }
 0xc9e   : > { %3685 = vst.msk [vmem:[#allocation4 + $0x60] sm:$0xff] %vm464_vm0, %v3683_v54  ;;  %v4142_v22 = vadd.f32 %v4137_v40, %v4114_v27  ;;  %4299 = vperm.xlu1 %4804, %v4901_v32  }
 0xc9f   : > { %v4230_v45 = vpack.c.bf16 %v4228_v36, %v4228_v36  ;;  %v4241_v34 = vpop.permute.xlu0 %4240 }
 0xca0   : > { %4144 = vst.msk [vmem:[#allocation4 + $0x70] sm:$0xff] %vm464_vm0, %v4142_v22  ;;  %v4244_v21 = vmul.f32 %v4241_v34, %v4232_v3 }
 0xca1   : > { %v4326_v47 = vunpack.c.l.b16 %v4230_v45 }
 0xca2   : > { %v4246_v4 = vpack.c.bf16 %v4244_v21, %v4244_v21 }
 0xca3   : > { %v4327_v10 = vpack.c.b16 %v4326_v47, %v4325_v56  ;;  %v3680_v43 = vpop.f32.mrf.mxu3 }
 0xca4   : > { %v3684_v51 = vadd.f32 %v3680_v43, %v3656_v42  ;;  %v4188_v44 = vpop.permute.xlu2 %4187  ;;  %v4252_v12 = vpop.permute.xlu1 %4251  ;;  %v4333_v17 = vunpack.c.l.b16 %v4246_v4 }
 0xca5   : > { %v4195_v61 = vmul.f32 %v4188_v44, %v4183_v59  ;;  %v4139_v13 = vpop.f32.mrf.mxu2  ;;  %v4259_v5 = vmul.f32 %v4252_v12, %v4247_v18  ;;  %v4279_v8 = vld [vmem:[#allocation4 + $0x60] sm:$0xff] }
 0xca6   : > { %3686 = vst.msk [vmem:[#allocation4 + $0x68] sm:$0xff] %vm464_vm0, %v3684_v51  ;;  %v4143_v0 = vadd.f32 %v4139_v13, %v4115_v30  ;;  %4328 = vrot.lane.b32.xlu1 %v4327_v10, %s4930_s13 }
 0xca7   : > { %v4197_v2 = vpack.c.bf16 %v4195_v61, %v4195_v61  ;;  %v4268_v35 = vpop.permute.xlu0 %4267  ;;  %v4261_v38 = vpack.c.bf16 %v4259_v5, %v4259_v5  ;;  %v4295_v24 = vld [vmem:[#allocation4 + $0x70] sm:$0xff] }
 0xca8   : > { %4145 = vst.msk [vmem:[#allocation4 + $0x78] sm:$0xff] %vm464_vm0, %v4143_v0  ;;  %v4275_v46 = vmul.f32 %v4268_v35, %v4263_v57 }
 0xca9   : > { %v6343_v31 = vunpack.c.l.b16 %v4197_v2  ;;  %v4339_v50 = vunpack.c.l.b16 %v4261_v38 }
 0xcaa   : > { %v4277_v16 = vpack.c.bf16 %v4275_v46, %v4275_v46 }
 0xcab   : > { %v4315_v33 = vpack.c.b16 %v6341_v55, %v6343_v31 }
 0xcac   : > { %v4236_v26 = vpop.permute.xlu2 %4235  ;;  %v4273_v63 = vpop.permute.xlu1 %4272  ;;  %v4346_v11 = vunpack.c.l.b16 %v4277_v16 }
 0xcad   : > { %v4243_v25 = vmul.f32 %v4236_v26, %v4231_v62  ;;  %v4276_v48 = vmul.f32 %v4273_v63, %v4264_v49  ;;  %v4280_v32 = vld [vmem:[#allocation4 + $0x68] sm:$0xff] }
 0xcaf   : > { %v4245_v60 = vpack.c.bf16 %v4243_v25, %v4243_v25  ;;  %v4278_v58 = vpack.c.bf16 %v4276_v48, %v4276_v48  ;;  %v4296_v14 = vld [vmem:[#allocation4 + $0x78] sm:$0xff] }
 0xcb1   : > { %v4332_v41 = vunpack.c.l.b16 %v4245_v60  ;;  %v4347_v23 = vunpack.c.l.b16 %v4278_v58 }
 0xcb3   : > { %v4334_v20 = vpack.c.b16 %v4333_v17, %v4332_v41  ;;  %v4348_v19 = vpack.c.b16 %v4347_v23, %v4346_v11 }
 0xcb4   : > { %v4257_v37 = vpop.permute.xlu2 %4256 }
 0xcb5   : > { %v4260_v39 = vmul.f32 %v4257_v37, %v4248_v53  ;;  %4335 = vrot.lane.b32.xlu2 %v4334_v20, %s4931_s14  ;;  %4349 = vrot.lane.b32.xlu1 %v4348_v19, %s4941_s25 }
 0xcb7   : > { %v4262_v52 = vpack.c.bf16 %v4260_v39, %v4260_v39 }
 0xcb9   : > { %v4340_v9 = vunpack.c.l.b16 %v4262_v52 }
 0xcbb   : > { %v4341_v27 = vpack.c.b16 %v4340_v9, %v4339_v50 }
 0xcbc   : > { %v4284_v54 = vpop.permute.xlu2 %4283 }
 0xcbd   : > { %4342 = vrot.lane.b32.xlu0 %v4341_v27, %s4942_s29  ;;  %v4291_v28 = vmul.f32 %v4284_v54, %v4279_v8 }
 0xcbf   : > { %v4293_v29 = vpack.c.bf16 %v4291_v28, %v4291_v28 }
 0xcc1   : > { %v4353_v22 = vunpack.c.l.b16 %v4293_v29 }
 0xce0   : > { %v4305_v34 = vpop.permute.xlu2 %4304 }
 0xce1   : > { %v4308_v7 = vmul.f32 %v4305_v34, %v4296_v14 }
 0xce3   : > { %v4310_v47 = vpack.c.bf16 %v4308_v7, %v4308_v7 }
 0xce5   : > { %v4361_v43 = vunpack.c.l.b16 %v4310_v47 }
 0xcf0   : > { %v4289_v1 = vpop.permute.xlu0 %4288 }
 0xcf1   : > { %v4292_v36 = vmul.f32 %v4289_v1, %v4280_v32 }
 0xcf3   : > { %v4294_v40 = vpack.c.bf16 %v4292_v36, %v4292_v36 }
 0xcf5   : > { %v4354_v15 = vunpack.c.l.b16 %v4294_v40 }
 0xcf7   : > { %v4355_v45 = vpack.c.b16 %v4354_v15, %v4353_v22 }
 0xcf9   : > { %4356 = vrot.lane.b32.xlu2 %v4355_v45, %s4943_s30 }
 0xd0f   : > { %v4322_v59 = vpop.permute.xlu0 %4321  ;;  %v4336_v44 = vpop.permute.xlu2 %4335 }
 0xd10   : > { %v4300_v56 = vpop.permute.xlu1 %4299  ;;  %v4367_v6 = vsel %vm464_vm0, %v4315_v33, %v4322_v59 }
 0xd11   : > { %v4307_v42 = vmul.f32 %v4300_v56, %v4295_v24 }
 0xd13   : > { %v4309_v10 = vpack.c.bf16 %v4307_v42, %v4307_v42 }
 0xd15   : > { %v4360_v30 = vunpack.c.l.b16 %v4309_v10 }
 0xd17   : > { %v4362_v51 = vpack.c.b16 %v4361_v43, %v4360_v30 }
 0xd18   : > { %v4329_v12 = vpop.permute.xlu1 %4328 }
 0xd19   : > { %4363 = vrot.lane.b32.xlu0 %v4362_v51, %s4944_s6  ;;  %v4369_v61 = vsel %vm807_vm2, %v4367_v6, %v4329_v12 }
 0xd1a   : > { %v4371_v0 = vsel %vm810_vm3, %v4369_v61, %v4336_v44 }
 0xd27   : > { %v4350_v35 = vpop.permute.xlu1 %4349 }
 0xd2f   : > { %v4343_v13 = vpop.permute.xlu0 %4342 }
 0xd30   : > { %v4373_v3 = vsel %vm845_vm4, %v4371_v0, %v4343_v13 }
 0xd31   : > { %v4376_v21 = vsel %vm4374_vm6, %v4373_v3, %v4350_v35 }
 0xd53   : > { %v4357_v2 = vpop.permute.xlu2 %4356 }
 0xd54   : > { %v4379_v57 = vsel %vm4377_vm7, %v4376_v21, %v4357_v2 }
 0xd8b   : > { %v4364_v55 = vpop.permute.xlu0 %4363 }
 0xd8c   : > { %v4382_v31 = vsel %vm4380_vm8, %v4379_v57, %v4364_v55 }
 0xd8d   : > { %v4384_v46 = vunpack.c.l.b16 %v4382_v31  ;;  %v4385_v4 = vunpack.c.h.b16 %v4382_v31 }
 0xd8f   : > { %v4386_v33 = vpack.c.b16 %v4384_v46, %v4384_v46  ;;  %v4387_v62 = vpack.c.b16 %v4385_v4, %v4385_v4 }
 0xd91   : > { %4391 = vst.msk [vmem:[%s424_s9] sm:$0xf] %vm4390_vm9, %v4386_v33 }
 0xd92   : > { %4392 = vst.msk [vmem:[%s424_s9 + $0x4] sm:$0xf] %vm4390_vm9, %v4387_v62 }
 0xd93 PF: > { %s15_s20 = sadd.s32 1, %s4924_s20   ;;  %s6371_s18 = smov %s4920_s19 }
 0xd94   : > { %p12_p5 = scmp.ge.s32.totalorder %s15_s20, 4   ;;  %s6372_s19 = smov %s6374_s21 }
 0xd96   :  { %14 = sbr.rel (!%p12_p5) target bundleno = 2 (0x2), region = 125 }

// kernel: medsam_ibot_forward.44
= control target key start
LH: loop header
LB: loop body
LE: loop exit
PB: predicated region body
PF: predicated region fallthrough
CT: control target
= control target key end

     0   :  { %vm19_vm0 = vcmask 523264   ;;  %v422_v1 = vmov 0.0   ;;  %vm24_vm1 = vcmask 517120   ;;  %s614_s1 = inlined_call_operand.vmem [shape: bf16[64,64], index: 1, kind: input, shape index: {}]   ;;  %s615_s2 = inlined_call_operand.vmem [shape: f32[1,64], index: 2, kind: input, shape index: {}]   ;;  %s616_s0 = inlined_call_operand.vmem [shape: bf16[34,64], index: 0, kind: input, shape index: {}]   ;;  %s617_s3 = inlined_call_operand.vmem [shape: bf16[34,64], index: 3, kind: output, shape index: {}]  }
   0x1   :  { %v390_v0 = vld [vmem:[%s614_s1 + $0x18] sm:$0xff]  ;;  %20 = vst.msk [vmem:[#allocation2] sm:$0xff] %vm19_vm0, %v422_v1  ;;  %v389_v2 = vld [vmem:[%s614_s1 + $0x10] sm:$0xff]  ;;  %v388_v3 = vld [vmem:[%s614_s1 + $0x8] sm:$0xff] }
   0x2   :  { %21 = vst.msk [vmem:[#allocation2 + $0x8] sm:$0xff] %vm19_vm0, %v422_v1  ;;  %95 = vmatpush.bf16.msra.mxu0 %v390_v0  ;;  %391 = vmatpush.bf16.msra.mxu1 %v390_v0  ;;  %v30_v4 = vld [vmem:[%s616_s0 + $0x10] sm:$0x1]  ;;  %v387_v5 = vld [vmem:[%s614_s1] sm:$0xff]  ;;  %v386_v8 = vld [vmem:[%s616_s0 + $0x8] sm:$0xff] }
   0x3   :  { %22 = vst.msk [vmem:[#allocation2 + $0x10] sm:$0xff] %vm19_vm0, %v422_v1  ;;  %392 = vmatpush.bf16.msra.mxu2 %v390_v0  ;;  %v53_v6 = vunpack.c.l.b16 %v30_v4  ;;  %v385_v7 = vld [vmem:[%s616_s0] sm:$0xff] }
   0x4   :  { %23 = vst.msk [vmem:[#allocation2 + $0x18] sm:$0xff] %vm19_vm0, %v422_v1  ;;  %v401_v19 = vld [vmem:[%s615_s2] ss:$0 sm:$0xff] }
   0x5   :  { %v56_v9 = vpack.c.b16 %v53_v6, %v53_v6  ;;  %25 = vst.msk [vmem:[#allocation2 + $0x20] sm:$0x3] %vm24_vm1, %v422_v1 }
   0x6   :  { %96 = vmatpush.bf16.msra.mxu0 %v389_v2  ;;  %393 = vmatpush.bf16.msra.mxu1 %v389_v2 }
   0x7   :  { %394 = vmatpush.bf16.msra.mxu2 %v389_v2 }
   0x8   :  { %v31_v10 = vld [vmem:[#allocation2] sm:$0xff] }
   0x9   :  { %v32_v17 = vld [vmem:[#allocation2 + $0x8] sm:$0xff] }
   0xa   :  { %97 = vmatpush.bf16.msra.mxu0 %v388_v3  ;;  %395 = vmatpush.bf16.msra.mxu1 %v388_v3  ;;  %v33_v11 = vld [vmem:[#allocation2 + $0x10] sm:$0xff] }
   0xb   :  { %396 = vmatpush.bf16.msra.mxu2 %v388_v3  ;;  %v34_v18 = vld [vmem:[#allocation2 + $0x18] sm:$0xff] }
   0xc   :  { %v35_v16 = vld [vmem:[#allocation2 + $0x20] sm:$0x3] }
   0xe   :  { %98 = vmatpush.bf16.msra.mxu0 %v387_v5  ;;  %397 = vmatpush.bf16.msra.mxu1 %v387_v5 }
   0xf   :  { %398 = vmatpush.bf16.msra.mxu2 %v387_v5 }
  0x11   :  { %382 = vmatmul.msk.bf16.vlgmr.msra.gmra.mxu0 %vm19_vm0, %v385_v7  ;;  %383 = vmatmul.msk.bf16.vlgmr.msra.gmra.mxu1 %vm19_vm0, %v386_v8 }
  0x12   :  { %384 = vmatmul.msk.bf16.vlgmr.msra.gmra.mxu2 %vm19_vm0, %v56_v9 }
  0x8e   :  { %v100_v12 = vpop.f32.mrf.mxu0  ;;  %v105_v13 = vpop.f32.mrf.mxu1 }
  0x8f   :  { %v114_v14 = vadd.f32 %v100_v12, %v31_v10  ;;  %v116_v15 = vadd.f32 %v105_v13, %v33_v11 }
  0x91   :  { %119 = vst.msk [vmem:[#allocation2] sm:$0xff] %vm19_vm0, %v114_v14 }
  0x92   :  { %121 = vst.msk [vmem:[#allocation2 + $0x10] sm:$0xff] %vm19_vm0, %v116_v15 }
  0x95   :  { %v110_v20 = vpop.f32.mrf.mxu2 }
  0x96   :  { %v118_v21 = vadd.f32 %v110_v20, %v35_v16  ;;  %v102_v22 = vpop.f32.mrf.mxu0  ;;  %v107_v23 = vpop.f32.mrf.mxu1 }
  0x97   :  { %v115_v24 = vadd.f32 %v102_v22, %v32_v17  ;;  %v117_v25 = vadd.f32 %v107_v23, %v34_v18 }
  0x98   :  { %v128_v26 = vld [vmem:[#allocation2] sm:$0xff]  ;;  %124 = vst.msk [vmem:[#allocation2 + $0x20] sm:$0x3] %vm24_vm1, %v118_v21 }
  0x99   :  { %v479_v27 = vadd.f32 %v401_v19, %v128_v26  ;;  %v130_v28 = vld [vmem:[#allocation2 + $0x10] sm:$0xff]  ;;  %120 = vst.msk [vmem:[#allocation2 + $0x8] sm:$0xff] %vm19_vm0, %v115_v24 }
  0x9a   :  { %v482_v29 = vadd.f32 %v401_v19, %v130_v28  ;;  %122 = vst.msk [vmem:[#allocation2 + $0x18] sm:$0xff] %vm19_vm0, %v117_v25 }
  0x9b   :  { %v486_v30 = vmul.f32 0.70710677, %v479_v27 }
  0x9c   :  { %v489_v31 = vmul.f32 0.70710677, %v482_v29 }
  0x9d   :  { %v162_v32 = vand.u32 2147483647, %v486_v30  ;;  %v112_v33 = vpop.f32.mrf.mxu2  ;;  %vm152_vm15 = vcmp.lt.f32.partialorder %v486_v30, 0.0 }
  0x9e   :  { %v164_v34 = vand.u32 2147483647, %v489_v31 }
  0x9f   :  { %v167_v35 = vmul.f32 0.3275911, %v162_v32  ;;  %v132_v36 = vld [vmem:[#allocation2 + $0x20] sm:$0x3]  ;;  %v297_v51 = vsub.f32 0.0, %v162_v32 }
  0xa0   :  { %v169_v37 = vmul.f32 0.3275911, %v164_v34  ;;  %v493_v38 = vadd.f32 %v401_v19, %v132_v36  ;;  %v129_v40 = vld [vmem:[#allocation2 + $0x8] sm:$0xff]  ;;  %v299_v56 = vsub.f32 0.0, %v164_v34 }
  0xa1   :  { %v172_v39 = vadd.f32 1.0, %v167_v35  ;;  %v498_v43 = vadd.f32 %v401_v19, %v129_v40  ;;  %v131_v54 = vld [vmem:[#allocation2 + $0x18] sm:$0xff]  ;;  %v302_v0 = vmul.f32 %v297_v51, %v162_v32 }
  0xa2   :  { %v174_v41 = vadd.f32 1.0, %v169_v37  ;;  %v496_v42 = vmul.f32 0.70710677, %v493_v38  ;;  %v514_v63 = vadd.f32 %v401_v19, %v131_v54  ;;  %v304_v4 = vmul.f32 %v299_v56, %v164_v34 }
  0xa3   :  { %402 = vrcp.f32 %v172_v39  ;;  %v505_v46 = vmul.f32 0.70710677, %v498_v43  ;;  %v186_v57 = vand.u32 2147483647, %v172_v39  ;;  %v188_v58 = vand.u32 2147483648, %v172_v39 }
  0xa4   :  { %404 = vrcp.f32 %v174_v41  ;;  %v501_v44 = vand.u32 2147483647, %v496_v42  ;;  %v218_v60 = vand.u32 2147483648, %v174_v41  ;;  %v216_v2 = vand.u32 2147483647, %v174_v41 }
  0xa5   :  { %v510_v53 = vand.u32 2147483647, %v505_v46  ;;  %vm182_vm4 = vweird.f32 %v172_v39  ;;  %vm187_vm6 = vcmp.eq.f32.partialorder %v186_v57, 8.507059e+37  ;;  %v189_v6 = vor.u32 1.1754944e-38, %v188_v58 }
  0xa6   :  { %v171_v45 = vmul.f32 0.3275911, %v501_v44  ;;  %vm212_vm7 = vweird.f32 %v174_v41  ;;  %v219_v10 = vor.u32 1.1754944e-38, %v218_v60  ;;  %v520_v11 = vmul.f32 0.70710677, %v514_v63 }
  0xa7   :  { %v168_v62 = vmul.f32 0.3275911, %v510_v53  ;;  %vm217_vm9 = vcmp.eq.f32.partialorder %v216_v2, 8.507059e+37  ;;  %v307_v16 = vmul.f32 1.442695, %v302_v0  ;;  %v301_v33 = vsub.f32 0.0, %v501_v44 }
  0xa8   :  { %v507_v50 = vadd.f32 1.0, %v171_v45  ;;  %v532_v23 = vand.u32 2147483647, %v520_v11  ;;  %v311_v25 = vmul.f32 1.442695, %v304_v4  ;;  %v298_v2 = vsub.f32 0.0, %v510_v53 }
  0xa9   :  { %v403_v47 = vpop.eup %402  ;;  %v516_v5 = vadd.f32 1.0, %v168_v62  ;;  %v306_v0 = vmul.f32 %v301_v33, %v501_v44 }
  0xaa   :  { %v405_v48 = vpop.eup %404  ;;  %v178_v49 = vmul.f32 %v403_v47, %v172_v39  ;;  %406 = vrcp.f32 %v507_v50  ;;  %vm183_vm2 = vweird.f32 %v403_v47  ;;  %v246_v20 = vand.u32 2147483647, %v507_v50 }
  0xab   :  { %v208_v52 = vmul.f32 %v405_v48, %v174_v41  ;;  %vm213_vm3 = vweird.f32 %v405_v48  ;;  %vm184_vm5 = vmor %vm182_vm4, %vm183_vm2  ;;  %408 = vrcp.f32 %v516_v5  ;;  %v248_v22 = vand.u32 2147483648, %v507_v50 }
  0xac   :  { %v179_v55 = vsub.f32 1.0, %v178_v49  ;;  %vm214_vm8 = vmor %vm212_vm7, %vm213_vm3  ;;  %410 = vpow2.f32 %v307_v16  ;;  %v170_v34 = vmul.f32 0.3275911, %v532_v23  ;;  %vm242_vm11 = vweird.f32 %v507_v50 }
  0xad   :  { %v209_v59 = vsub.f32 1.0, %v208_v52  ;;  %vm247_vm13 = vcmp.eq.f32.partialorder %v246_v20, 8.507059e+37  ;;  %v249_v40 = vor.u32 1.1754944e-38, %v248_v22  ;;  %v201_v49 = vand.u32 2147483647, %v516_v5 }
  0xae   :  { %v180_v61 = vmul.f32 %v403_v47, %v179_v55  ;;  %v540_v41 = vadd.f32 1.0, %v170_v34  ;;  %v203_v54 = vand.u32 2147483648, %v516_v5  ;;  %vm197_vm0 = vweird.f32 %v516_v5 }
  0xaf   :  { %v210_v1 = vmul.f32 %v405_v48, %v209_v59  ;;  %vm202_vm2 = vcmp.eq.f32.partialorder %v201_v49, 8.507059e+37  ;;  %vm154_vm3 = vcmp.lt.f32.partialorder %v489_v31, 0.0  ;;  %v303_v20 = vmul.f32 %v298_v2, %v510_v53 }
  0xb0   :  { %v181_v3 = vadd.f32 %v403_v47, %v180_v61  ;;  %v407_v8 = vpop.eup %406  ;;  %412 = vrcp.f32 %v540_v41 }
  0xb1   :  { %v211_v7 = vadd.f32 %v405_v48, %v210_v1  ;;  %v238_v14 = vmul.f32 %v407_v8, %v507_v50  ;;  %vm243_vm10 = vweird.f32 %v407_v8  ;;  %v409_v28 = vpop.eup %408  ;;  %414 = vpow2.f32 %v311_v25 }
  0xb2   :  { %v185_v9 = vsel %vm184_vm5, %v403_v47, %v181_v3  ;;  %v193_v37 = vmul.f32 %v409_v28, %v516_v5  ;;  %vm244_vm12 = vmor %vm242_vm11, %vm243_vm10  ;;  %vm198_vm14 = vweird.f32 %v409_v28  ;;  %v411_v57 = vpop.eup %410  ;;  %v204_v1 = vor.u32 1.1754944e-38, %v203_v54 }
  0xb3   :  { %v522_v12 = vsel %vm187_vm6, %v189_v6, %v185_v9  ;;  %v215_v13 = vsel %vm214_vm8, %v405_v48, %v211_v7  ;;  %v239_v19 = vsub.f32 1.0, %v238_v14  ;;  %vm199_vm1 = vmor %vm197_vm0, %vm198_vm14  ;;  %v423_v9 = vmov 1.0  }
  0xb4   :  { %v252_v15 = vmul.f32 1.0614054, %v522_v12  ;;  %v526_v17 = vsel %vm217_vm9, %v219_v10, %v215_v13  ;;  %v194_v48 = vsub.f32 1.0, %v193_v37  ;;  %v157_v5 = vsel %vm152_vm15, -1.0, %v423_v9 }
  0xb5   :  { %v254_v18 = vmul.f32 1.0614054, %v526_v17  ;;  %v240_v26 = vmul.f32 %v407_v8, %v239_v19  ;;  %v159_v53 = vsel %vm154_vm3, -1.0, %v423_v9  ;;  %vm227_vm5 = vweird.f32 %v540_v41 }
  0xb6   :  { %v257_v21 = vadd.f32 -1.4531521, %v252_v15  ;;  %v195_v56 = vmul.f32 %v409_v28, %v194_v48  ;;  %v413_v7 = vpop.eup %412  ;;  %vm347_vm8 = vcmask 519168   ;;  %vm156_vm9 = vcmp.lt.f32.partialorder %v496_v42, 0.0 }
  0xb7   :  { %v259_v24 = vadd.f32 -1.4531521, %v254_v18  ;;  %v241_v36 = vadd.f32 %v407_v8, %v240_v26  ;;  %v223_v16 = vmul.f32 %v413_v7, %v540_v41  ;;  %v415_v18 = vpop.eup %414  ;;  %vm228_vm4 = vweird.f32 %v413_v7 }
  0xb8   :  { %v262_v32 = vmul.f32 %v257_v21, %v522_v12  ;;  %v196_v61 = vadd.f32 %v409_v28, %v195_v56  ;;  %v231_v26 = vand.u32 2147483647, %v540_v41  ;;  %vm229_vm6 = vmor %vm227_vm5, %vm228_vm4  ;;  %v161_v42 = vsel %vm156_vm9, -1.0, %v423_v9 }
  0xb9   :  { %v264_v35 = vmul.f32 %v259_v24, %v526_v17  ;;  %v245_v47 = vsel %vm244_vm12, %v407_v8, %v241_v36  ;;  %v142_v8 = vmul.f32 0.5, %v479_v27  ;;  %v315_v27 = vmul.f32 1.442695, %v306_v0 }
  0xba   :  { %v267_v39 = vadd.f32 1.4214138, %v262_v32  ;;  %v544_v52 = vsel %vm247_vm13, %v249_v40, %v245_v47  ;;  %v200_v6 = vsel %vm199_vm1, %v409_v28, %v196_v61  ;;  %v224_v24 = vsub.f32 1.0, %v223_v16 }
  0xbb   :  { %v269_v45 = vadd.f32 1.4214138, %v264_v35  ;;  %v256_v55 = vmul.f32 1.0614054, %v544_v52  ;;  %v561_v44 = vsel %vm202_vm2, %v204_v1, %v200_v6  ;;  %v233_v28 = vand.u32 2147483648, %v540_v41 }
  0xbc   :  { %v272_v51 = vmul.f32 %v267_v39, %v522_v12  ;;  %v253_v15 = vmul.f32 1.0614054, %v561_v44  ;;  %v225_v34 = vmul.f32 %v413_v7, %v224_v24  ;;  %416 = vpow2.f32 %v315_v27 }
  0xbd   :  { %v274_v50 = vmul.f32 %v269_v45, %v526_v17  ;;  %v261_v60 = vadd.f32 -1.4531521, %v256_v55  ;;  %v309_v45 = vmul.f32 1.442695, %v303_v20  ;;  %vm232_vm7 = vcmp.eq.f32.partialorder %v231_v26, 8.507059e+37 }
  0xbe   :  { %v277_v58 = vadd.f32 -0.28449672, %v272_v51  ;;  %v258_v22 = vadd.f32 -1.4531521, %v253_v15  ;;  %v226_v39 = vadd.f32 %v413_v7, %v225_v34  ;;  %v234_v47 = vor.u32 1.1754944e-38, %v233_v28 }
  0xbf   :  { %v279_v59 = vadd.f32 -0.28449672, %v274_v50  ;;  %v266_v4 = vmul.f32 %v261_v60, %v544_v52  ;;  %v144_v50 = vmul.f32 0.5, %v482_v29  ;;  %v300_v55 = vsub.f32 0.0, %v532_v23 }
  0xc0   :  { %v282_v62 = vmul.f32 %v277_v58, %v522_v12  ;;  %v230_v31 = vsel %vm229_vm6, %v413_v7, %v226_v39  ;;  %418 = vpow2.f32 %v309_v45  ;;  %vm153_vm10 = vcmp.lt.f32.partialorder %v505_v46, 0.0 }
  0xc1   :  { %v284_v3 = vmul.f32 %v279_v59, %v526_v17  ;;  %v271_v14 = vadd.f32 1.4214138, %v266_v4  ;;  %v235_v41 = vsel %vm232_vm7, %v234_v47, %v230_v31  ;;  %vm352_vm11 = vcmask 516096  }
  0xc2   :  { %v287_v10 = vadd.f32 0.2548296, %v282_v62  ;;  %v255_v59 = vmul.f32 1.0614054, %v235_v41  ;;  %v417_v60 = vpop.eup %416  ;;  %vm155_vm12 = vcmp.lt.f32.partialorder %v520_v11, 0.0 }
  0xc3   :  { %v289_v13 = vadd.f32 0.2548296, %v284_v3  ;;  %v276_v21 = vmul.f32 %v271_v14, %v544_v52  ;;  %v305_v3 = vmul.f32 %v300_v55, %v532_v23  ;;  %v160_v34 = vsel %vm155_vm12, -1.0, %v423_v9 }
  0xc4   :  { %v292_v19 = vmul.f32 %v287_v10, %v522_v12  ;;  %v263_v12 = vmul.f32 %v258_v22, %v561_v44  ;;  %v260_v2 = vadd.f32 -1.4531521, %v255_v59 }
  0xc5   :  { %v294_v30 = vmul.f32 %v289_v13, %v526_v17  ;;  %v281_v33 = vadd.f32 -0.28449672, %v276_v21  ;;  %v146_v13 = vmul.f32 0.5, %v493_v38  ;;  %v313_v14 = vmul.f32 1.442695, %v305_v3 }
  0xc6   :  { %v317_v25 = vmul.f32 %v411_v57, %v292_v19  ;;  %v268_v37 = vadd.f32 1.4214138, %v263_v12  ;;  %v419_v10 = vpop.eup %418  ;;  %v143_v38 = vmul.f32 0.5, %v498_v43  ;;  %v145_v43 = vmul.f32 0.5, %v514_v63 }
  0xc7   :  { %v319_v32 = vmul.f32 %v415_v18, %v294_v30  ;;  %v286_v36 = vmul.f32 %v281_v33, %v544_v52  ;;  %v158_v30 = vsel %vm153_vm10, -1.0, %v423_v9  ;;  %420 = vpow2.f32 %v313_v14 }
  0xc8   :  { %v322_v35 = vsub.f32 1.0, %v317_v25  ;;  %v273_v51 = vmul.f32 %v268_v37, %v561_v44 }
  0xc9   :  { %v324_v17 = vsub.f32 1.0, %v319_v32  ;;  %v291_v49 = vadd.f32 0.2548296, %v286_v36 }
  0xca   :  { %v327_v40 = vmul.f32 %v322_v35, %v157_v5  ;;  %v278_v58 = vadd.f32 -0.28449672, %v273_v51 }
  0xcb   :  { %v329_v48 = vmul.f32 %v324_v17, %v159_v53  ;;  %v296_v57 = vmul.f32 %v291_v49, %v544_v52  ;;  %v265_v52 = vmul.f32 %v260_v2, %v235_v41 }
  0xcc   :  { %v332_v54 = vadd.f32 1.0, %v327_v40  ;;  %v283_v1 = vmul.f32 %v278_v58, %v561_v44 }
  0xcd   :  { %v334_v56 = vadd.f32 1.0, %v329_v48  ;;  %v321_v0 = vmul.f32 %v417_v60, %v296_v57  ;;  %v270_v23 = vadd.f32 1.4214138, %v265_v52  ;;  %v421_v28 = vpop.eup %420 }
  0xce   :  { %v337_v61 = vmul.f32 %v332_v54, %v142_v8  ;;  %v288_v7 = vadd.f32 0.2548296, %v283_v1 }
  0xcf   :  { %v339_v62 = vmul.f32 %v334_v56, %v144_v50  ;;  %v326_v6 = vsub.f32 1.0, %v321_v0  ;;  %v275_v18 = vmul.f32 %v270_v23, %v235_v41 }
  0xd0   :  { %v342_v29 = vpack.c.bf16 %v337_v61, %v337_v61  ;;  %v293_v5 = vmul.f32 %v288_v7, %v561_v44 }
  0xd1   :  { %v344_v4 = vpack.c.bf16 %v339_v62, %v339_v62  ;;  %v331_v8 = vmul.f32 %v326_v6, %v161_v42  ;;  %v280_v20 = vadd.f32 -0.28449672, %v275_v18 }
  0xd2   :  { %348 = vst.msk [vmem:[%s617_s3] sm:$0xf] %vm347_vm8, %v342_v29  ;;  %v318_v16 = vmul.f32 %v419_v10, %v293_v5 }
  0xd3   :  { %350 = vst.msk [vmem:[%s617_s3 + $0x8] sm:$0xf] %vm347_vm8, %v344_v4  ;;  %v336_v15 = vadd.f32 1.0, %v331_v8  ;;  %v285_v44 = vmul.f32 %v280_v20, %v235_v41 }
  0xd4   :  { %v323_v27 = vsub.f32 1.0, %v318_v16 }
  0xd5   :  { %v341_v19 = vmul.f32 %v336_v15, %v146_v13  ;;  %v290_v46 = vadd.f32 0.2548296, %v285_v44 }
  0xd6   :  { %v328_v22 = vmul.f32 %v323_v27, %v158_v30 }
  0xd7   :  { %v346_v21 = vpack.c.bf16 %v341_v19, %v341_v19  ;;  %v295_v26 = vmul.f32 %v290_v46, %v235_v41 }
  0xd8   :  { %v333_v24 = vadd.f32 1.0, %v328_v22 }
  0xd9   :  { %353 = vst.msk [vmem:[%s617_s3 + $0x10] sm:$0x1] %vm352_vm11, %v346_v21  ;;  %v320_v33 = vmul.f32 %v421_v28, %v295_v26 }
  0xda   :  { %v338_v25 = vmul.f32 %v333_v24, %v143_v38 }
  0xdb   :  { %v325_v12 = vsub.f32 1.0, %v320_v33 }
  0xdc   :  { %v343_v32 = vpack.c.bf16 %v338_v25, %v338_v25 }
  0xdd   :  { %v330_v35 = vmul.f32 %v325_v12, %v160_v34 }
  0xde   :  { %349 = vst.msk [vmem:[%s617_s3 + $0x4] sm:$0xf] %vm347_vm8, %v343_v32 }
  0xdf   :  { %v335_v53 = vadd.f32 1.0, %v330_v35 }
  0xe1   :  { %v340_v17 = vmul.f32 %v335_v53, %v145_v43 }
  0xe3   :  { %v345_v36 = vpack.c.bf16 %v340_v17, %v340_v17 }
  0xe5   :  { %351 = vst.msk [vmem:[%s617_s3 + $0xc] sm:$0xf] %vm347_vm8, %v345_v36 }

// kernel: medsam_ibot_forward.43
= control target key start
LH: loop header
LB: loop body
LE: loop exit
PB: predicated region body
PF: predicated region fallthrough
CT: control target
= control target key end

     0   :  { %vm19_vm0 = vcmask 523264   ;;  %v393_v1 = vmov 0.0   ;;  %vm65_vm1 = vcmask 261120   ;;  %vm24_vm2 = vcmask 517120   ;;  %s576_s1 = inlined_call_operand.vmem [shape: bf16[32,64], index: 1, kind: input, shape index: {}]   ;;  %s577_s0 = inlined_call_operand.vmem [shape: bf16[34,32], index: 0, kind: input, shape index: {}]   ;;  %s578_s2 = inlined_call_operand.vmem [shape: f32[1,64], index: 2, kind: input, shape index: {}]   ;;  %s579_s3 = inlined_call_operand.vmem [shape: bf16[34,64], index: 3, kind: output, shape index: {}]  }
   0x1   :  { %v365_v0 = vld [vmem:[%s576_s1 + $0x8] sm:$0xff]  ;;  %20 = vst.msk [vmem:[#allocation2] sm:$0xff] %vm19_vm0, %v393_v1  ;;  %v30_v2 = vld [vmem:[%s577_s0 + $0x10] sm:$0x1]  ;;  %v364_v3 = vld [vmem:[%s576_s1] sm:$0xff] }
   0x2   :  { %21 = vst.msk [vmem:[#allocation2 + $0x8] sm:$0xff] %vm19_vm0, %v393_v1  ;;  %81 = vmatpush.bf16.msra.mxu0 %v365_v0  ;;  %366 = vmatpush.bf16.msra.mxu1 %v365_v0  ;;  %v49_v4 = vunpack.c.l.b16 %v30_v2  ;;  %v362_v5 = vld [vmem:[%s577_s0] sm:$0xff]  ;;  %v363_v6 = vld [vmem:[%s577_s0 + $0x8] sm:$0xff] }
   0x3   :  { %22 = vst.msk [vmem:[#allocation2 + $0x10] sm:$0xff] %vm19_vm0, %v393_v1  ;;  %367 = vmatpush.bf16.msra.mxu2 %v365_v0  ;;  %v372_v17 = vld [vmem:[%s578_s2] ss:$0 sm:$0xff] }
   0x4   :  { %23 = vst.msk [vmem:[#allocation2 + $0x18] sm:$0xff] %vm19_vm0, %v393_v1  ;;  %v52_v7 = vpack.c.b16 %v49_v4, %v49_v4 }
   0x5   :  { %25 = vst.msk [vmem:[#allocation2 + $0x20] sm:$0x3] %vm24_vm2, %v393_v1 }
   0x6   :  { %82 = vmatpush.bf16.msra.mxu0 %v364_v3  ;;  %368 = vmatpush.bf16.msra.mxu1 %v364_v3 }
   0x7   :  { %369 = vmatpush.bf16.msra.mxu2 %v364_v3 }
   0x8   :  { %v31_v8 = vld [vmem:[#allocation2] sm:$0xff] }
   0x9   :  { %359 = vmatmul.msk.bf16.vlgmr.msra.gmra.mxu0 %vm65_vm1, %v362_v5  ;;  %360 = vmatmul.msk.bf16.vlgmr.msra.gmra.mxu1 %vm65_vm1, %v363_v6  ;;  %v32_v15 = vld [vmem:[#allocation2 + $0x8] sm:$0xff] }
   0xa   :  { %361 = vmatmul.msk.bf16.vlgmr.msra.gmra.mxu2 %vm65_vm1, %v52_v7  ;;  %v33_v9 = vld [vmem:[#allocation2 + $0x10] sm:$0xff] }
   0xb   :  { %v34_v16 = vld [vmem:[#allocation2 + $0x18] sm:$0xff] }
   0xc   :  { %v35_v14 = vld [vmem:[#allocation2 + $0x20] sm:$0x3] }
  0x86   :  { %v84_v10 = vpop.f32.mrf.mxu0  ;;  %v89_v11 = vpop.f32.mrf.mxu1 }
  0x87   :  { %v98_v12 = vadd.f32 %v84_v10, %v31_v8  ;;  %v100_v13 = vadd.f32 %v89_v11, %v33_v9 }
  0x89   :  { %104 = vst.msk [vmem:[#allocation2] sm:$0xff] %vm19_vm0, %v98_v12 }
  0x8a   :  { %106 = vst.msk [vmem:[#allocation2 + $0x10] sm:$0xff] %vm19_vm0, %v100_v13 }
  0x8d   :  { %v94_v18 = vpop.f32.mrf.mxu2 }
  0x8e   :  { %v102_v19 = vadd.f32 %v94_v18, %v35_v14  ;;  %v86_v20 = vpop.f32.mrf.mxu0  ;;  %v91_v21 = vpop.f32.mrf.mxu1 }
  0x8f   :  { %v99_v22 = vadd.f32 %v86_v20, %v32_v15  ;;  %v101_v23 = vadd.f32 %v91_v21, %v34_v16 }
  0x90   :  { %v113_v24 = vld [vmem:[#allocation2] sm:$0xff]  ;;  %109 = vst.msk [vmem:[#allocation2 + $0x20] sm:$0x3] %vm24_vm2, %v102_v19 }
  0x91   :  { %v441_v25 = vadd.f32 %v372_v17, %v113_v24  ;;  %v115_v26 = vld [vmem:[#allocation2 + $0x10] sm:$0xff]  ;;  %105 = vst.msk [vmem:[#allocation2 + $0x8] sm:$0xff] %vm19_vm0, %v99_v22 }
  0x92   :  { %v444_v27 = vadd.f32 %v372_v17, %v115_v26  ;;  %107 = vst.msk [vmem:[#allocation2 + $0x18] sm:$0xff] %vm19_vm0, %v101_v23 }
  0x93   :  { %v448_v28 = vmul.f32 0.70710677, %v441_v25 }
  0x94   :  { %v451_v29 = vmul.f32 0.70710677, %v444_v27 }
  0x95   :  { %v147_v30 = vand.u32 2147483647, %v448_v28  ;;  %v96_v31 = vpop.f32.mrf.mxu2  ;;  %vm137_vm0 = vcmp.lt.f32.partialorder %v448_v28, 0.0 }
  0x96   :  { %v149_v32 = vand.u32 2147483647, %v451_v29 }
  0x97   :  { %v152_v33 = vmul.f32 0.3275911, %v147_v30  ;;  %v117_v34 = vld [vmem:[#allocation2 + $0x20] sm:$0x3]  ;;  %v282_v49 = vsub.f32 0.0, %v147_v30 }
  0x98   :  { %v154_v35 = vmul.f32 0.3275911, %v149_v32  ;;  %v455_v36 = vadd.f32 %v372_v17, %v117_v34  ;;  %v114_v38 = vld [vmem:[#allocation2 + $0x8] sm:$0xff]  ;;  %v284_v54 = vsub.f32 0.0, %v149_v32 }
  0x99   :  { %v157_v37 = vadd.f32 1.0, %v152_v33  ;;  %v460_v41 = vadd.f32 %v372_v17, %v114_v38  ;;  %v116_v52 = vld [vmem:[#allocation2 + $0x18] sm:$0xff]  ;;  %v287_v62 = vmul.f32 %v282_v49, %v147_v30 }
  0x9a   :  { %v159_v39 = vadd.f32 1.0, %v154_v35  ;;  %v458_v40 = vmul.f32 0.70710677, %v455_v36  ;;  %v476_v61 = vadd.f32 %v372_v17, %v116_v52  ;;  %v289_v2 = vmul.f32 %v284_v54, %v149_v32 }
  0x9b   :  { %373 = vrcp.f32 %v157_v37  ;;  %v467_v44 = vmul.f32 0.70710677, %v460_v41  ;;  %v171_v55 = vand.u32 2147483647, %v157_v37  ;;  %v173_v56 = vand.u32 2147483648, %v157_v37 }
  0x9c   :  { %375 = vrcp.f32 %v159_v39  ;;  %v463_v42 = vand.u32 2147483647, %v458_v40  ;;  %v203_v58 = vand.u32 2147483648, %v159_v39  ;;  %v201_v0 = vand.u32 2147483647, %v159_v39 }
  0x9d   :  { %v472_v51 = vand.u32 2147483647, %v467_v44  ;;  %vm167_vm5 = vweird.f32 %v157_v37  ;;  %vm172_vm7 = vcmp.eq.f32.partialorder %v171_v55, 8.507059e+37  ;;  %v174_v4 = vor.u32 1.1754944e-38, %v173_v56 }
  0x9e   :  { %v156_v43 = vmul.f32 0.3275911, %v463_v42  ;;  %vm197_vm8 = vweird.f32 %v159_v39  ;;  %v204_v8 = vor.u32 1.1754944e-38, %v203_v58  ;;  %v482_v9 = vmul.f32 0.70710677, %v476_v61 }
  0x9f   :  { %v153_v60 = vmul.f32 0.3275911, %v472_v51  ;;  %vm202_vm10 = vcmp.eq.f32.partialorder %v201_v0, 8.507059e+37  ;;  %v292_v14 = vmul.f32 1.442695, %v287_v62  ;;  %v286_v31 = vsub.f32 0.0, %v463_v42 }
  0xa0   :  { %v469_v48 = vadd.f32 1.0, %v156_v43  ;;  %v494_v21 = vand.u32 2147483647, %v482_v9  ;;  %v296_v23 = vmul.f32 1.442695, %v289_v2  ;;  %v283_v0 = vsub.f32 0.0, %v472_v51 }
  0xa1   :  { %v374_v45 = vpop.eup %373  ;;  %v478_v3 = vadd.f32 1.0, %v153_v60  ;;  %v291_v62 = vmul.f32 %v286_v31, %v463_v42 }
  0xa2   :  { %v376_v46 = vpop.eup %375  ;;  %v163_v47 = vmul.f32 %v374_v45, %v157_v37  ;;  %377 = vrcp.f32 %v469_v48  ;;  %vm168_vm3 = vweird.f32 %v374_v45  ;;  %v231_v18 = vand.u32 2147483647, %v469_v48 }
  0xa3   :  { %v193_v50 = vmul.f32 %v376_v46, %v159_v39  ;;  %vm198_vm4 = vweird.f32 %v376_v46  ;;  %vm169_vm6 = vmor %vm167_vm5, %vm168_vm3  ;;  %379 = vrcp.f32 %v478_v3  ;;  %v233_v20 = vand.u32 2147483648, %v469_v48 }
  0xa4   :  { %v164_v53 = vsub.f32 1.0, %v163_v47  ;;  %vm199_vm9 = vmor %vm197_vm8, %vm198_vm4  ;;  %381 = vpow2.f32 %v292_v14  ;;  %v155_v32 = vmul.f32 0.3275911, %v494_v21  ;;  %vm227_vm12 = vweird.f32 %v469_v48 }
  0xa5   :  { %v194_v57 = vsub.f32 1.0, %v193_v50  ;;  %vm232_vm14 = vcmp.eq.f32.partialorder %v231_v18, 8.507059e+37  ;;  %v234_v38 = vor.u32 1.1754944e-38, %v233_v20  ;;  %v186_v47 = vand.u32 2147483647, %v478_v3 }
  0xa6   :  { %v165_v59 = vmul.f32 %v374_v45, %v164_v53  ;;  %v502_v39 = vadd.f32 1.0, %v155_v32  ;;  %v188_v52 = vand.u32 2147483648, %v478_v3  ;;  %vm182_vm1 = vweird.f32 %v478_v3 }
  0xa7   :  { %v195_v63 = vmul.f32 %v376_v46, %v194_v57  ;;  %vm187_vm3 = vcmp.eq.f32.partialorder %v186_v47, 8.507059e+37  ;;  %vm139_vm4 = vcmp.lt.f32.partialorder %v451_v29, 0.0  ;;  %v288_v18 = vmul.f32 %v283_v0, %v472_v51 }
  0xa8   :  { %v166_v1 = vadd.f32 %v374_v45, %v165_v59  ;;  %v378_v6 = vpop.eup %377  ;;  %383 = vrcp.f32 %v502_v39 }
  0xa9   :  { %v196_v5 = vadd.f32 %v376_v46, %v195_v63  ;;  %v223_v12 = vmul.f32 %v378_v6, %v469_v48  ;;  %vm228_vm11 = vweird.f32 %v378_v6  ;;  %v380_v26 = vpop.eup %379  ;;  %385 = vpow2.f32 %v296_v23 }
  0xaa   :  { %v170_v7 = vsel %vm169_vm6, %v374_v45, %v166_v1  ;;  %v178_v35 = vmul.f32 %v380_v26, %v478_v3  ;;  %vm229_vm13 = vmor %vm227_vm12, %vm228_vm11  ;;  %vm183_vm15 = vweird.f32 %v380_v26  ;;  %v382_v55 = vpop.eup %381  ;;  %v189_v63 = vor.u32 1.1754944e-38, %v188_v52 }
  0xab   :  { %v484_v10 = vsel %vm172_vm7, %v174_v4, %v170_v7  ;;  %v200_v11 = vsel %vm199_vm9, %v376_v46, %v196_v5  ;;  %v224_v17 = vsub.f32 1.0, %v223_v12  ;;  %vm184_vm2 = vmor %vm182_vm1, %vm183_vm15  ;;  %v394_v7 = vmov 1.0  }
  0xac   :  { %v237_v13 = vmul.f32 1.0614054, %v484_v10  ;;  %v488_v15 = vsel %vm202_vm10, %v204_v8, %v200_v11  ;;  %v179_v46 = vsub.f32 1.0, %v178_v35  ;;  %v142_v3 = vsel %vm137_vm0, -1.0, %v394_v7 }
  0xad   :  { %v239_v16 = vmul.f32 1.0614054, %v488_v15  ;;  %v225_v24 = vmul.f32 %v378_v6, %v224_v17  ;;  %v144_v51 = vsel %vm139_vm4, -1.0, %v394_v7  ;;  %vm212_vm6 = vweird.f32 %v502_v39 }
  0xae   :  { %v242_v19 = vadd.f32 -1.4531521, %v237_v13  ;;  %v180_v54 = vmul.f32 %v380_v26, %v179_v46  ;;  %v384_v5 = vpop.eup %383  ;;  %vm332_vm9 = vcmask 519168   ;;  %vm141_vm10 = vcmp.lt.f32.partialorder %v458_v40, 0.0 }
  0xaf   :  { %v244_v22 = vadd.f32 -1.4531521, %v239_v16  ;;  %v226_v34 = vadd.f32 %v378_v6, %v225_v24  ;;  %v208_v14 = vmul.f32 %v384_v5, %v502_v39  ;;  %v386_v16 = vpop.eup %385  ;;  %vm213_vm5 = vweird.f32 %v384_v5 }
  0xb0   :  { %v247_v30 = vmul.f32 %v242_v19, %v484_v10  ;;  %v181_v59 = vadd.f32 %v380_v26, %v180_v54  ;;  %v216_v24 = vand.u32 2147483647, %v502_v39  ;;  %vm214_vm7 = vmor %vm212_vm6, %vm213_vm5  ;;  %v146_v40 = vsel %vm141_vm10, -1.0, %v394_v7 }
  0xb1   :  { %v249_v33 = vmul.f32 %v244_v22, %v488_v15  ;;  %v230_v45 = vsel %vm229_vm13, %v378_v6, %v226_v34  ;;  %v127_v6 = vmul.f32 0.5, %v441_v25  ;;  %v300_v25 = vmul.f32 1.442695, %v291_v62 }
  0xb2   :  { %v252_v37 = vadd.f32 1.4214138, %v247_v30  ;;  %v506_v50 = vsel %vm232_vm14, %v234_v38, %v230_v45  ;;  %v185_v4 = vsel %vm184_vm2, %v380_v26, %v181_v59  ;;  %v209_v22 = vsub.f32 1.0, %v208_v14 }
  0xb3   :  { %v254_v43 = vadd.f32 1.4214138, %v249_v33  ;;  %v241_v53 = vmul.f32 1.0614054, %v506_v50  ;;  %v523_v42 = vsel %vm187_vm3, %v189_v63, %v185_v4  ;;  %v218_v26 = vand.u32 2147483648, %v502_v39 }
  0xb4   :  { %v257_v49 = vmul.f32 %v252_v37, %v484_v10  ;;  %v238_v13 = vmul.f32 1.0614054, %v523_v42  ;;  %v210_v32 = vmul.f32 %v384_v5, %v209_v22  ;;  %387 = vpow2.f32 %v300_v25 }
  0xb5   :  { %v259_v48 = vmul.f32 %v254_v43, %v488_v15  ;;  %v246_v58 = vadd.f32 -1.4531521, %v241_v53  ;;  %v294_v43 = vmul.f32 1.442695, %v288_v18  ;;  %vm217_vm8 = vcmp.eq.f32.partialorder %v216_v24, 8.507059e+37 }
  0xb6   :  { %v262_v56 = vadd.f32 -0.28449672, %v257_v49  ;;  %v243_v20 = vadd.f32 -1.4531521, %v238_v13  ;;  %v211_v37 = vadd.f32 %v384_v5, %v210_v32  ;;  %v219_v45 = vor.u32 1.1754944e-38, %v218_v26 }
  0xb7   :  { %v264_v57 = vadd.f32 -0.28449672, %v259_v48  ;;  %v251_v2 = vmul.f32 %v246_v58, %v506_v50  ;;  %v129_v48 = vmul.f32 0.5, %v444_v27  ;;  %v285_v53 = vsub.f32 0.0, %v494_v21 }
  0xb8   :  { %v267_v60 = vmul.f32 %v262_v56, %v484_v10  ;;  %v215_v29 = vsel %vm214_vm7, %v384_v5, %v211_v37  ;;  %389 = vpow2.f32 %v294_v43  ;;  %vm138_vm11 = vcmp.lt.f32.partialorder %v467_v44, 0.0 }
  0xb9   :  { %v269_v1 = vmul.f32 %v264_v57, %v488_v15  ;;  %v256_v12 = vadd.f32 1.4214138, %v251_v2  ;;  %v220_v39 = vsel %vm217_vm8, %v219_v45, %v215_v29  ;;  %vm337_vm12 = vcmask 516096  }
  0xba   :  { %v272_v8 = vadd.f32 0.2548296, %v267_v60  ;;  %v240_v57 = vmul.f32 1.0614054, %v220_v39  ;;  %v388_v58 = vpop.eup %387  ;;  %vm140_vm13 = vcmp.lt.f32.partialorder %v482_v9, 0.0 }
  0xbb   :  { %v274_v11 = vadd.f32 0.2548296, %v269_v1  ;;  %v261_v19 = vmul.f32 %v256_v12, %v506_v50  ;;  %v290_v1 = vmul.f32 %v285_v53, %v494_v21  ;;  %v145_v32 = vsel %vm140_vm13, -1.0, %v394_v7 }
  0xbc   :  { %v277_v17 = vmul.f32 %v272_v8, %v484_v10  ;;  %v248_v10 = vmul.f32 %v243_v20, %v523_v42  ;;  %v245_v0 = vadd.f32 -1.4531521, %v240_v57 }
  0xbd   :  { %v279_v28 = vmul.f32 %v274_v11, %v488_v15  ;;  %v266_v31 = vadd.f32 -0.28449672, %v261_v19  ;;  %v131_v11 = vmul.f32 0.5, %v455_v36  ;;  %v298_v12 = vmul.f32 1.442695, %v290_v1 }
  0xbe   :  { %v302_v23 = vmul.f32 %v382_v55, %v277_v17  ;;  %v253_v35 = vadd.f32 1.4214138, %v248_v10  ;;  %v390_v8 = vpop.eup %389  ;;  %v128_v36 = vmul.f32 0.5, %v460_v41  ;;  %v130_v41 = vmul.f32 0.5, %v476_v61 }
  0xbf   :  { %v304_v30 = vmul.f32 %v386_v16, %v279_v28  ;;  %v271_v34 = vmul.f32 %v266_v31, %v506_v50  ;;  %v143_v28 = vsel %vm138_vm11, -1.0, %v394_v7  ;;  %391 = vpow2.f32 %v298_v12 }
  0xc0   :  { %v307_v33 = vsub.f32 1.0, %v302_v23  ;;  %v258_v49 = vmul.f32 %v253_v35, %v523_v42 }
  0xc1   :  { %v309_v15 = vsub.f32 1.0, %v304_v30  ;;  %v276_v47 = vadd.f32 0.2548296, %v271_v34 }
  0xc2   :  { %v312_v38 = vmul.f32 %v307_v33, %v142_v3  ;;  %v263_v56 = vadd.f32 -0.28449672, %v258_v49 }
  0xc3   :  { %v314_v46 = vmul.f32 %v309_v15, %v144_v51  ;;  %v281_v55 = vmul.f32 %v276_v47, %v506_v50  ;;  %v250_v50 = vmul.f32 %v245_v0, %v220_v39 }
  0xc4   :  { %v317_v52 = vadd.f32 1.0, %v312_v38  ;;  %v268_v63 = vmul.f32 %v263_v56, %v523_v42 }
  0xc5   :  { %v319_v54 = vadd.f32 1.0, %v314_v46  ;;  %v306_v62 = vmul.f32 %v388_v58, %v281_v55  ;;  %v255_v21 = vadd.f32 1.4214138, %v250_v50  ;;  %v392_v26 = vpop.eup %391 }
  0xc6   :  { %v322_v59 = vmul.f32 %v317_v52, %v127_v6  ;;  %v273_v5 = vadd.f32 0.2548296, %v268_v63 }
  0xc7   :  { %v324_v60 = vmul.f32 %v319_v54, %v129_v48  ;;  %v311_v4 = vsub.f32 1.0, %v306_v62  ;;  %v260_v16 = vmul.f32 %v255_v21, %v220_v39 }
  0xc8   :  { %v327_v27 = vpack.c.bf16 %v322_v59, %v322_v59  ;;  %v278_v3 = vmul.f32 %v273_v5, %v523_v42 }
  0xc9   :  { %v329_v2 = vpack.c.bf16 %v324_v60, %v324_v60  ;;  %v316_v6 = vmul.f32 %v311_v4, %v146_v40  ;;  %v265_v18 = vadd.f32 -0.28449672, %v260_v16 }
  0xca   :  { %333 = vst.msk [vmem:[%s579_s3] sm:$0xf] %vm332_vm9, %v327_v27  ;;  %v303_v14 = vmul.f32 %v390_v8, %v278_v3 }
  0xcb   :  { %335 = vst.msk [vmem:[%s579_s3 + $0x8] sm:$0xf] %vm332_vm9, %v329_v2  ;;  %v321_v13 = vadd.f32 1.0, %v316_v6  ;;  %v270_v42 = vmul.f32 %v265_v18, %v220_v39 }
  0xcc   :  { %v308_v25 = vsub.f32 1.0, %v303_v14 }
  0xcd   :  { %v326_v17 = vmul.f32 %v321_v13, %v131_v11  ;;  %v275_v44 = vadd.f32 0.2548296, %v270_v42 }
  0xce   :  { %v313_v20 = vmul.f32 %v308_v25, %v143_v28 }
  0xcf   :  { %v331_v19 = vpack.c.bf16 %v326_v17, %v326_v17  ;;  %v280_v24 = vmul.f32 %v275_v44, %v220_v39 }
  0xd0   :  { %v318_v22 = vadd.f32 1.0, %v313_v20 }
  0xd1   :  { %338 = vst.msk [vmem:[%s579_s3 + $0x10] sm:$0x1] %vm337_vm12, %v331_v19  ;;  %v305_v31 = vmul.f32 %v392_v26, %v280_v24 }
  0xd2   :  { %v323_v23 = vmul.f32 %v318_v22, %v128_v36 }
  0xd3   :  { %v310_v10 = vsub.f32 1.0, %v305_v31 }
  0xd4   :  { %v328_v30 = vpack.c.bf16 %v323_v23, %v323_v23 }
  0xd5   :  { %v315_v33 = vmul.f32 %v310_v10, %v145_v32 }
  0xd6   :  { %334 = vst.msk [vmem:[%s579_s3 + $0x4] sm:$0xf] %vm332_vm9, %v328_v30 }
  0xd7   :  { %v320_v51 = vadd.f32 1.0, %v315_v33 }
  0xd9   :  { %v325_v15 = vmul.f32 %v320_v51, %v130_v41 }
  0xdb   :  { %v330_v34 = vpack.c.bf16 %v325_v15, %v325_v15 }
  0xdd   :  { %336 = vst.msk [vmem:[%s579_s3 + $0xc] sm:$0xf] %vm332_vm9, %v330_v34 }

// kernel: medsam_ibot_forward.45
= control target key start
LH: loop header
LB: loop body
LE: loop exit
PB: predicated region body
PF: predicated region fallthrough
CT: control target
= control target key end

     0   :  { %vm19_vm0 = vcmask 261120   ;;  %v382_v1 = vmov 0.0   ;;  %vm81_vm1 = vcmask 523264   ;;  %vm24_vm2 = vcmask 254976   ;;  %s526_s1 = inlined_call_operand.vmem [shape: bf16[64,32], index: 1, kind: input, shape index: {}]   ;;  %s527_s0 = inlined_call_operand.vmem [shape: bf16[34,64], index: 0, kind: input, shape index: {}]   ;;  %s528_s2 = inlined_call_operand.vmem [shape: f32[1,32], index: 2, kind: input, shape index: {}]   ;;  %s529_s3 = inlined_call_operand.vmem [shape: bf16[34,32], index: 3, kind: output, shape index: {}]  }
   0x1   :  { %v351_v0 = vld [vmem:[%s526_s1 + $0x18] sm:$0xff]  ;;  %20 = vst.msk [vmem:[#allocation2] sm:$0xff] %vm19_vm0, %v382_v1  ;;  %v350_v2 = vld [vmem:[%s526_s1 + $0x10] sm:$0xff]  ;;  %v349_v3 = vld [vmem:[%s526_s1 + $0x8] sm:$0xff] }
   0x2   :  { %21 = vst.msk [vmem:[#allocation2 + $0x8] sm:$0xff] %vm19_vm0, %v382_v1  ;;  %95 = vmatpush.bf16.msra.mxu0 %v351_v0  ;;  %352 = vmatpush.bf16.msra.mxu1 %v351_v0  ;;  %v30_v4 = vld [vmem:[%s527_s0 + $0x10] sm:$0x1]  ;;  %v348_v5 = vld [vmem:[%s526_s1] sm:$0xff]  ;;  %v347_v8 = vld [vmem:[%s527_s0 + $0x8] sm:$0xff] }
   0x3   :  { %22 = vst.msk [vmem:[#allocation2 + $0x10] sm:$0xff] %vm19_vm0, %v382_v1  ;;  %353 = vmatpush.bf16.msra.mxu2 %v351_v0  ;;  %v53_v6 = vunpack.c.l.b16 %v30_v4  ;;  %v346_v7 = vld [vmem:[%s527_s0] sm:$0xff] }
   0x4   :  { %23 = vst.msk [vmem:[#allocation2 + $0x18] sm:$0xff] %vm19_vm0, %v382_v1  ;;  %v361_v20 = vld [vmem:[%s528_s2] ss:$0 sm:$0xff] }
   0x5   :  { %v56_v9 = vpack.c.b16 %v53_v6, %v53_v6  ;;  %25 = vst.msk [vmem:[#allocation2 + $0x20] sm:$0x3] %vm24_vm2, %v382_v1 }
   0x6   :  { %96 = vmatpush.bf16.msra.mxu0 %v350_v2  ;;  %354 = vmatpush.bf16.msra.mxu1 %v350_v2 }
   0x7   :  { %355 = vmatpush.bf16.msra.mxu2 %v350_v2 }
   0x8   :  { %v31_v10 = vld [vmem:[#allocation2] sm:$0xff] }
   0x9   :  { %v32_v17 = vld [vmem:[#allocation2 + $0x8] sm:$0xff] }
   0xa   :  { %97 = vmatpush.bf16.msra.mxu0 %v349_v3  ;;  %356 = vmatpush.bf16.msra.mxu1 %v349_v3  ;;  %v33_v11 = vld [vmem:[#allocation2 + $0x10] sm:$0xff] }
   0xb   :  { %357 = vmatpush.bf16.msra.mxu2 %v349_v3  ;;  %v34_v18 = vld [vmem:[#allocation2 + $0x18] sm:$0xff] }
   0xc   :  { %v35_v16 = vld [vmem:[#allocation2 + $0x20] sm:$0x3] }
   0xe   :  { %98 = vmatpush.bf16.msra.mxu0 %v348_v5  ;;  %358 = vmatpush.bf16.msra.mxu1 %v348_v5 }
   0xf   :  { %359 = vmatpush.bf16.msra.mxu2 %v348_v5 }
  0x11   :  { %343 = vmatmul.msk.bf16.vlgmr.msra.gmra.mxu0 %vm81_vm1, %v346_v7  ;;  %344 = vmatmul.msk.bf16.vlgmr.msra.gmra.mxu1 %vm81_vm1, %v347_v8 }
  0x12   :  { %345 = vmatmul.msk.bf16.vlgmr.msra.gmra.mxu2 %vm81_vm1, %v56_v9 }
  0x8e   :  { %v100_v12 = vpop.f32.mrf.mxu0  ;;  %v105_v13 = vpop.f32.mrf.mxu1 }
  0x8f   :  { %v114_v14 = vadd.f32 %v100_v12, %v31_v10  ;;  %v116_v15 = vadd.f32 %v105_v13, %v33_v11 }
  0x91   :  { %120 = vst.msk [vmem:[#allocation2] sm:$0xff] %vm19_vm0, %v114_v14 }
  0x92   :  { %122 = vst.msk [vmem:[#allocation2 + $0x10] sm:$0xff] %vm19_vm0, %v116_v15 }
  0x95   :  { %v110_v19 = vpop.f32.mrf.mxu2 }
  0x96   :  { %v118_v21 = vadd.f32 %v110_v19, %v35_v16  ;;  %v102_v22 = vpop.f32.mrf.mxu0  ;;  %v107_v23 = vpop.f32.mrf.mxu1 }
  0x97   :  { %v115_v24 = vadd.f32 %v102_v22, %v32_v17  ;;  %v117_v25 = vadd.f32 %v107_v23, %v34_v18 }
  0x98   :  { %125 = vst.msk [vmem:[#allocation2 + $0x20] sm:$0x3] %vm24_vm2, %v118_v21  ;;  %v129_v26 = vld [vmem:[#allocation2] sm:$0xff] }
  0x99   :  { %121 = vst.msk [vmem:[#allocation2 + $0x8] sm:$0xff] %vm19_vm0, %v115_v24  ;;  %v131_v27 = vld [vmem:[#allocation2 + $0x10] sm:$0xff]  ;;  %v436_v28 = vadd.f32 %v361_v20, %v129_v26 }
  0x9a   :  { %123 = vst.msk [vmem:[#allocation2 + $0x18] sm:$0xff] %vm19_vm0, %v117_v25  ;;  %v439_v29 = vadd.f32 %v361_v20, %v131_v27 }
  0x9b   :  { %v143_v30 = vmul.f32 %v436_v28, %v436_v28 }
  0x9c   :  { %v145_v31 = vmul.f32 %v439_v29, %v439_v29 }
  0x9d   :  { %v112_v32 = vpop.f32.mrf.mxu2  ;;  %v148_v33 = vsel %vm19_vm0, %v143_v30, 0.0 }
  0x9e   :  { %v154_v34 = vsel %vm19_vm0, %v145_v31, 0.0  ;;  %149 = vadd.xlane.f32.xlu0 %v148_v33 }
  0x9f   :  { %155 = vadd.xlane.f32.xlu1 %v154_v34  ;;  %v133_v35 = vld [vmem:[#allocation2 + $0x20] sm:$0x3] }
  0xa0   :  { %v447_v36 = vadd.f32 %v361_v20, %v133_v35  ;;  %v130_v37 = vld [vmem:[#allocation2 + $0x8] sm:$0xff] }
  0xa1   :  { %v132_v38 = vld [vmem:[#allocation2 + $0x18] sm:$0xff]  ;;  %v449_v39 = vadd.f32 %v361_v20, %v130_v37 }
  0xa2   :  { %v147_v40 = vmul.f32 %v447_v36, %v447_v36  ;;  %v453_v41 = vadd.f32 %v361_v20, %v132_v38 }
  0xa3   :  { %v144_v42 = vmul.f32 %v449_v39, %v449_v39 }
  0xa4   :  { %v160_v43 = vsel %vm24_vm2, %v147_v40, 0.0  ;;  %v146_v44 = vmul.f32 %v453_v41, %v453_v41 }
  0xa5   :  { %161 = vadd.xlane.f32.xlu2 %v160_v43  ;;  %v151_v45 = vsel %vm19_vm0, %v144_v42, 0.0 }
  0xa6   :  { %v157_v46 = vsel %vm19_vm0, %v146_v44, 0.0  ;;  %152 = vadd.xlane.f32.xlu0 %v151_v45 }
  0xa7   :  { %158 = vadd.xlane.f32.xlu1 %v157_v46 }
 0x111   :  { %v150_v47 = vpop.xlane.xlu0 %149 }
 0x112   :  { %v156_v48 = vpop.xlane.xlu1 %155  ;;  %362 = vrsqrt.f32 %v150_v47  ;;  %vm170_vm3 = vcmp.eq.f32.partialorder %v150_v47, inf  ;;  %vm172_vm4 = vcmp.eq.f32.partialorder %v150_v47, 0.0  ;;  %v173_v8 = vand.u32 2147483648, %v150_v47 }
 0x113   :  { %364 = vrsqrt.f32 %v156_v48  ;;  %vm194_vm5 = vcmp.eq.f32.partialorder %v156_v48, inf  ;;  %vm196_vm6 = vcmp.eq.f32.partialorder %v156_v48, 0.0  ;;  %v197_v13 = vand.u32 2147483648, %v156_v48 }
 0x118   :  { %v363_v49 = vpop.eup %362  ;;  %v162_v50 = vpop.xlane.xlu2 %161 }
 0x119   :  { %v365_v51 = vpop.eup %364  ;;  %v164_v52 = vmul.f32 %v363_v49, %v150_v47  ;;  %366 = vrsqrt.f32 %v162_v50  ;;  %v462_v53 = vpop.xlane.xlu0 %152  ;;  %vm218_vm7 = vcmp.eq.f32.partialorder %v162_v50, inf  ;;  %v221_v30 = vand.u32 2147483648, %v162_v50 }
 0x11a   :  { %v188_v54 = vmul.f32 %v365_v51, %v156_v48  ;;  %v464_v55 = vpop.xlane.xlu1 %158  ;;  %368 = vrsqrt.f32 %v462_v53  ;;  %vm220_vm8 = vcmp.eq.f32.partialorder %v162_v50, 0.0  ;;  %vm182_vm11 = vcmp.eq.f32.partialorder %v462_v53, inf }
 0x11b   :  { %v165_v56 = vmul.f32 %v363_v49, %v164_v52  ;;  %370 = vrsqrt.f32 %v464_v55  ;;  %vm206_vm9 = vcmp.eq.f32.partialorder %v464_v55, inf  ;;  %v209_v35 = vand.u32 2147483648, %v464_v55 }
 0x11c   :  { %v189_v57 = vmul.f32 %v365_v51, %v188_v54  ;;  %vm208_vm10 = vcmp.eq.f32.partialorder %v464_v55, 0.0  ;;  %vm184_vm12 = vcmp.eq.f32.partialorder %v462_v53, 0.0 }
 0x11d   :  { %v166_v58 = vmul.f32 0.5, %v165_v56 }
 0x11e   :  { %v190_v59 = vmul.f32 0.5, %v189_v57 }
 0x11f   :  { %v367_v60 = vpop.eup %366  ;;  %v167_v61 = vsub.f32 1.5, %v166_v58 }
 0x120   :  { %v369_v62 = vpop.eup %368  ;;  %v191_v63 = vsub.f32 1.5, %v190_v59  ;;  %v212_v0 = vmul.f32 %v367_v60, %v162_v50 }
 0x121   :  { %v371_v1 = vpop.eup %370  ;;  %v168_v2 = vmul.f32 %v363_v49, %v167_v61  ;;  %v176_v3 = vmul.f32 %v369_v62, %v462_v53 }
 0x122   :  { %v192_v4 = vmul.f32 %v365_v51, %v191_v63  ;;  %v213_v5 = vmul.f32 %v367_v60, %v212_v0  ;;  %v200_v6 = vmul.f32 %v371_v1, %v464_v55 }
 0x123   :  { %v169_v7 = vmul.f32 %v168_v2, %v150_v47  ;;  %v177_v9 = vmul.f32 %v369_v62, %v176_v3 }
 0x124   :  { %v193_v10 = vmul.f32 %v192_v4, %v156_v48  ;;  %v214_v11 = vmul.f32 0.5, %v213_v5  ;;  %v201_v12 = vmul.f32 %v371_v1, %v200_v6 }
 0x125   :  { %v171_v14 = vsel %vm170_vm3, %v150_v47, %v169_v7  ;;  %v178_v15 = vmul.f32 0.5, %v177_v9 }
 0x126   :  { %v195_v16 = vsel %vm194_vm5, %v156_v48, %v193_v10  ;;  %v174_v17 = vsel %vm172_vm4, %v173_v8, %v171_v14  ;;  %v215_v18 = vsub.f32 1.5, %v214_v11  ;;  %v202_v19 = vmul.f32 0.5, %v201_v12 }
 0x127   :  { %v198_v20 = vsel %vm196_vm6, %v197_v13, %v195_v16  ;;  %v223_v21 = vmax.f32 %v174_v17, 1e-12  ;;  %v179_v25 = vsub.f32 1.5, %v178_v15  ;;  %v185_v48 = vand.u32 2147483648, %v462_v53 }
 0x128   :  { %v225_v22 = vmax.f32 %v198_v20, 1e-12  ;;  %v216_v23 = vmul.f32 %v367_v60, %v215_v18  ;;  %v203_v24 = vsub.f32 1.5, %v202_v19  ;;  %vm308_vm5 = vcmask 257024  }
 0x129   :  { %372 = vrcp.f32 %v223_v21  ;;  %v180_v31 = vmul.f32 %v369_v62, %v179_v25  ;;  %v237_v52 = vand.u32 2147483647, %v223_v21  ;;  %v239_v54 = vand.u32 2147483648, %v223_v21 }
 0x12a   :  { %374 = vrcp.f32 %v225_v22  ;;  %v217_v26 = vmul.f32 %v216_v23, %v162_v50  ;;  %v204_v27 = vmul.f32 %v371_v1, %v203_v24  ;;  %v269_v56 = vand.u32 2147483648, %v225_v22 }
 0x12b   :  { %v181_v37 = vmul.f32 %v180_v31, %v462_v53  ;;  %v267_v59 = vand.u32 2147483647, %v225_v22  ;;  %vm233_vm15 = vweird.f32 %v223_v21  ;;  %vm263_vm0 = vweird.f32 %v225_v22 }
 0x12c   :  { %v219_v32 = vsel %vm218_vm7, %v162_v50, %v217_v26  ;;  %v205_v33 = vmul.f32 %v204_v27, %v464_v55  ;;  %vm238_vm2 = vcmp.eq.f32.partialorder %v237_v52, 8.507059e+37  ;;  %v270_v0 = vor.u32 1.1754944e-38, %v269_v56 }
 0x12d   :  { %v222_v34 = vsel %vm220_vm8, %v221_v30, %v219_v32  ;;  %v183_v46 = vsel %vm182_vm11, %v462_v53, %v181_v37  ;;  %v240_v53 = vor.u32 1.1754944e-38, %v239_v54  ;;  %vm268_vm4 = vcmp.eq.f32.partialorder %v267_v59, 8.507059e+37 }
 0x12e   :  { %v474_v40 = vmax.f32 %v222_v34, 1e-12  ;;  %v207_v42 = vsel %vm206_vm9, %v464_v55, %v205_v33  ;;  %v186_v55 = vsel %vm184_vm12, %v185_v48, %v183_v46 }
 0x12f   :  { %v373_v38 = vpop.eup %372  ;;  %v210_v45 = vsel %vm208_vm10, %v209_v35, %v207_v42  ;;  %v486_v61 = vmax.f32 %v186_v55, 1e-12  ;;  %vm313_vm10 = vcmask 253952  }
 0x130   :  { %v375_v43 = vpop.eup %374  ;;  %v229_v44 = vmul.f32 %v373_v38, %v223_v21  ;;  %376 = vrcp.f32 %v474_v40  ;;  %v482_v50 = vmax.f32 %v210_v45, 1e-12  ;;  %vm234_vm13 = vweird.f32 %v373_v38 }
 0x131   :  { %v259_v47 = vmul.f32 %v375_v43, %v225_v22  ;;  %vm264_vm14 = vweird.f32 %v375_v43  ;;  %vm235_vm1 = vmor %vm233_vm15, %vm234_vm13  ;;  %v299_v10 = vand.u32 2147483648, %v474_v40  ;;  %v297_v14 = vand.u32 2147483647, %v474_v40 }
 0x132   :  { %v230_v49 = vsub.f32 1.0, %v229_v44  ;;  %378 = vrcp.f32 %v482_v50  ;;  %vm265_vm3 = vmor %vm263_vm0, %vm264_vm14  ;;  %vm293_vm7 = vweird.f32 %v474_v40  ;;  %v284_v18 = vand.u32 2147483648, %v482_v50 }
 0x133   :  { %v260_v51 = vsub.f32 1.0, %v259_v47  ;;  %380 = vrcp.f32 %v486_v61  ;;  %v300_v19 = vor.u32 1.1754944e-38, %v299_v10  ;;  %vm298_vm11 = vcmp.eq.f32.partialorder %v297_v14, 8.507059e+37 }
 0x134   :  { %v231_v57 = vmul.f32 %v373_v38, %v230_v49  ;;  %vm278_vm12 = vweird.f32 %v482_v50  ;;  %v285_v27 = vor.u32 1.1754944e-38, %v284_v18  ;;  %v254_v30 = vand.u32 2147483648, %v486_v61 }
 0x135   :  { %v261_v58 = vmul.f32 %v375_v43, %v260_v51  ;;  %v252_v33 = vand.u32 2147483647, %v486_v61  ;;  %vm248_vm0 = vweird.f32 %v486_v61 }
 0x136   :  { %v232_v60 = vadd.f32 %v373_v38, %v231_v57  ;;  %v377_v62 = vpop.eup %376 }
 0x137   :  { %v262_v63 = vadd.f32 %v375_v43, %v261_v58  ;;  %v289_v2 = vmul.f32 %v377_v62, %v474_v40  ;;  %vm294_vm6 = vweird.f32 %v377_v62 }
 0x138   :  { %v236_v1 = vsel %vm235_vm1, %v373_v38, %v232_v60  ;;  %v379_v5 = vpop.eup %378  ;;  %vm295_vm8 = vmor %vm293_vm7, %vm294_vm6 }
 0x139   :  { %v266_v3 = vsel %vm265_vm3, %v375_v43, %v262_v63  ;;  %v241_v4 = vsel %vm238_vm2, %v240_v53, %v236_v1  ;;  %v290_v8 = vsub.f32 1.0, %v289_v2  ;;  %v274_v11 = vmul.f32 %v379_v5, %v482_v50  ;;  %v381_v17 = vpop.eup %380 }
 0x13a   :  { %v271_v6 = vsel %vm268_vm4, %v270_v0, %v266_v3  ;;  %v242_v7 = vmul.f32 %v241_v4, %v436_v28  ;;  %vm279_vm9 = vweird.f32 %v379_v5  ;;  %v244_v21 = vmul.f32 %v381_v17, %v486_v61 }
 0x13b   :  { %v272_v9 = vmul.f32 %v271_v6, %v439_v29  ;;  %v291_v13 = vmul.f32 %v377_v62, %v290_v8  ;;  %v275_v16 = vsub.f32 1.0, %v274_v11  ;;  %v282_v29 = vand.u32 2147483647, %v482_v50  ;;  %vm280_vm13 = vmor %vm278_vm12, %vm279_vm9 }
 0x13c   :  { %v303_v12 = vpack.c.bf16 %v242_v7, %v242_v7  ;;  %v245_v25 = vsub.f32 1.0, %v244_v21  ;;  %vm249_vm15 = vweird.f32 %v381_v17  ;;  %vm253_vm2 = vcmp.eq.f32.partialorder %v252_v33, 8.507059e+37 }
 0x13d   :  { %v305_v15 = vpack.c.bf16 %v272_v9, %v272_v9  ;;  %v292_v28 = vadd.f32 %v377_v62, %v291_v13  ;;  %v276_v20 = vmul.f32 %v379_v5, %v275_v16  ;;  %vm283_vm14 = vcmp.eq.f32.partialorder %v282_v29, 8.507059e+37  ;;  %vm250_vm1 = vmor %vm248_vm0, %vm249_vm15 }
 0x13e   :  { %309 = vst.msk [vmem:[%s529_s3] sm:$0xf] %vm308_vm5, %v303_v12  ;;  %v246_v32 = vmul.f32 %v381_v17, %v245_v25 }
 0x13f   :  { %311 = vst.msk [vmem:[%s529_s3 + $0x8] sm:$0xf] %vm308_vm5, %v305_v15  ;;  %v296_v22 = vsel %vm295_vm8, %v377_v62, %v292_v28  ;;  %v277_v24 = vadd.f32 %v379_v5, %v276_v20 }
 0x140   :  { %v301_v23 = vsel %vm298_vm11, %v300_v19, %v296_v22  ;;  %v247_v38 = vadd.f32 %v381_v17, %v246_v32 }
 0x141   :  { %v302_v26 = vmul.f32 %v301_v23, %v447_v36  ;;  %v281_v31 = vsel %vm280_vm13, %v379_v5, %v277_v24  ;;  %v255_v36 = vor.u32 1.1754944e-38, %v254_v30 }
 0x142   :  { %v286_v35 = vsel %vm283_vm14, %v285_v27, %v281_v31  ;;  %v251_v42 = vsel %vm250_vm1, %v381_v17, %v247_v38 }
 0x143   :  { %v307_v34 = vpack.c.bf16 %v302_v26, %v302_v26  ;;  %v287_v37 = vmul.f32 %v286_v35, %v453_v41  ;;  %v256_v43 = vsel %vm253_vm2, %v255_v36, %v251_v42 }
 0x144   :  { %v257_v41 = vmul.f32 %v256_v43, %v449_v39 }
 0x145   :  { %314 = vst.msk [vmem:[%s529_s3 + $0x10] sm:$0x1] %vm313_vm10, %v307_v34  ;;  %v306_v40 = vpack.c.bf16 %v287_v37, %v287_v37 }
 0x146   :  { %v304_v44 = vpack.c.bf16 %v257_v41, %v257_v41 }
 0x147   :  { %312 = vst.msk [vmem:[%s529_s3 + $0xc] sm:$0xf] %vm308_vm5, %v306_v40 }
 0x148   :  { %310 = vst.msk [vmem:[%s529_s3 + $0x4] sm:$0xf] %vm308_vm5, %v304_v44 }

// kernel: medsam_ibot_forward.47
= control target key start
LH: loop header
LB: loop body
LE: loop exit
PB: predicated region body
PF: predicated region fallthrough
CT: control target
= control target key end

     0   :  { %vm17_vm0 = vcmask 326656   ;;  %v174_v1 = vmov 0.0   ;;  %s220_s0 = inlined_call_operand.vmem [shape: bf16[32,32], index: 0, kind: input, shape index: {}]   ;;  %s221_s1 = inlined_call_operand.vmem [shape: bf16[32,40], index: 1, kind: input, shape index: {}]   ;;  %s222_s2 = inlined_call_operand.hbm [shape: f32[32,40], index: 2, kind: output, shape index: {}]  }
   0x1   :  { %v141_v0 = vld [vmem:[%s221_s1 + $0x8] sm:$0xff]  ;;  %18 = vst.msk [vmem:[#allocation2] sm:$0xff] %vm17_vm0, %v174_v1 }
   0x2   :  { %7 = vsyncpa [#allocation4], 0  ;;  %69 = vmatpush.bf16.msra.mxu0 %v141_v0  ;;  %142 = vmatpush.bf16.msra.mxu1 %v141_v0  ;;  %v140_v2 = vld [vmem:[%s221_s1] sm:$0xff]  ;;  %19 = vst.msk [vmem:[#allocation2 + $0x8] sm:$0xff] %vm17_vm0, %v174_v1  ;;  %v139_v4 = vld [vmem:[%s220_s0 + $0x8] sm:$0xff]  ;;  %vm56_vm1 = vcmask 261120  }
   0x3   :  { %20 = vst.msk [vmem:[#allocation2 + $0x10] sm:$0xff] %vm17_vm0, %v174_v1  ;;  %v138_v3 = vld [vmem:[%s220_s0] sm:$0xff]  ;;  %s175_s0 = smov [#allocation3]   ;;  %s108_s19 = sshll.u32 %s222_s2, 4  ;;  %s109_s19 = int_to_ptr.hbm [resolvable:$true] %s108_s19 }
   0x4   :  { %21 = vst.msk [vmem:[#allocation2 + $0x18] sm:$0xff] %vm17_vm0, %v174_v1  ;;  %s106_s1 = sshll.u32 %s175_s0, 4  ;;  %s176_s20 = smov 128   ;;  %s107_s1 = int_to_ptr.vmem [resolvable:$true] %s106_s1 }
   0x5   :  { %s177_s21 = smov 8  }
   0x6   :  { %70 = vmatpush.bf16.msra.mxu0 %v140_v2  ;;  %143 = vmatpush.bf16.msra.mxu1 %v140_v2 }
   0x8   :  { %v26_v5 = vld [vmem:[#allocation2] sm:$0xff] }
   0x9   :  { %136 = vmatmul.msk.bf16.vlgmr.msra.gmra.mxu0 %vm56_vm1, %v138_v3  ;;  %137 = vmatmul.msk.bf16.vlgmr.msra.gmra.mxu1 %vm56_vm1, %v139_v4  ;;  %v27_v11 = vld [vmem:[#allocation2 + $0x8] sm:$0xff] }
   0xa   :  { %v28_v6 = vld [vmem:[#allocation2 + $0x10] sm:$0xff] }
   0xb   :  { %v29_v12 = vld [vmem:[#allocation2 + $0x18] sm:$0xff] }
  0x86   :  { %v72_v7 = vpop.f32.mrf.mxu0  ;;  %v77_v8 = vpop.f32.mrf.mxu1 }
  0x87   :  { %v82_v9 = vadd.f32 %v72_v7, %v26_v5  ;;  %v84_v10 = vadd.f32 %v77_v8, %v28_v6 }
  0x89   :  { %87 = vst.msk [vmem:[#allocation2] sm:$0xff] %vm17_vm0, %v82_v9 }
  0x8a   :  { %89 = vst.msk [vmem:[#allocation2 + $0x10] sm:$0xff] %vm17_vm0, %v84_v10 }
  0x8e   :  { %v74_v13 = vpop.f32.mrf.mxu0  ;;  %v79_v14 = vpop.f32.mrf.mxu1 }
  0x8f   :  { %v83_v15 = vadd.f32 %v74_v13, %v27_v11  ;;  %v85_v16 = vadd.f32 %v79_v14, %v29_v12 }
  0x90   :  { %v94_v17 = vld [vmem:[#allocation2] sm:$0xff] }
  0x91   :  { %88 = vst.msk [vmem:[#allocation2 + $0x8] sm:$0xff] %vm17_vm0, %v83_v15  ;;  %v96_v18 = vld [vmem:[#allocation2 + $0x10] sm:$0xff] }
  0x92   :  { %90 = vst.msk [vmem:[#allocation2 + $0x18] sm:$0xff] %vm17_vm0, %v85_v16 }
  0x93   :  { %98 = vst.msk [vmem:[#allocation3] sm:$0xff] %vm17_vm0, %v94_v17 }
  0x94   :  { %100 = vst.msk [vmem:[#allocation3 + $0x10] sm:$0xff] %vm17_vm0, %v96_v18 }
  0x98   :  { %v95_v19 = vld [vmem:[#allocation2 + $0x8] sm:$0xff] }
  0x99   :  { %v97_v20 = vld [vmem:[#allocation2 + $0x18] sm:$0xff]  ;;  %99 = vst.msk [vmem:[#allocation3 + $0x8] sm:$0xff] %vm17_vm0, %v95_v19 }
  0x9a   :  { %101 = vst.msk [vmem:[#allocation3 + $0x18] sm:$0xff] %vm17_vm0, %v97_v20 }
  0x9b   :  { %114 = dma.vmem_to_hbm [thread:$0]  %s107_s1, 512, %s109_s19, [#allocation4], %s176_s20, %s176_s20, %s177_s21  }
  0x9c   :  { %172 = dma.done.wait [#allocation4], 512  }
  0x9d   :  { %173 = vsyncadd [#allocation4], 4294966784 }
  0x9e   :  { %119 = vsyncpa [#allocation4], 1 }

// kernel: medsam_ibot_forward.46
= control target key start
LH: loop header
LB: loop body
LE: loop exit
PB: predicated region body
PF: predicated region fallthrough
CT: control target
= control target key end

     0   :  { %vm17_vm0 = vcmask 386048   ;;  %s149_s0 = inlined_call_operand.vmem [shape: bf16[2,32], index: 0, kind: input, shape index: {}]   ;;  %s150_s1 = inlined_call_operand.vmem [shape: bf16[32,48], index: 1, kind: input, shape index: {}]   ;;  %s151_s2 = inlined_call_operand.hbm [shape: f32[2,48], index: 2, kind: output, shape index: {}]  }
   0x1   :  { %v88_v0 = vld [vmem:[%s150_s1 + $0x8] sm:$0xff] }
   0x2   :  { %7 = vsyncpa [#allocation4], 0  ;;  %47 = vmatpush.bf16.msra.mxu0 %v88_v0  ;;  %v87_v1 = vld [vmem:[%s150_s1] sm:$0xff]  ;;  %v117_v2 = vmov 0.0   ;;  %vm37_vm1 = vcmask 261120   ;;  %s118_s15 = smov [#allocation3]  }
   0x3   :  { %18 = vst.msk [vmem:[#allocation2] sm:$0x3] %vm17_vm0, %v117_v2  ;;  %v19_v3 = vld [vmem:[%s149_s0] sm:$0x1]  ;;  %s67_s16 = sshll.u32 %s118_s15, 4  ;;  %s69_s1 = sshll.u32 %s151_s2, 4  ;;  %s68_s16 = int_to_ptr.vmem [resolvable:$true] %s67_s16  ;;  %s70_s1 = int_to_ptr.hbm [resolvable:$true] %s69_s1 }
   0x6   :  { %48 = vmatpush.bf16.msra.mxu0 %v87_v1 }
   0x9   :  { %86 = vmatmul.msk.bf16.vlgmr.msra.gmra.mxu0 %vm37_vm1, %v19_v3 }
   0xa   :  { %v20_v4 = vld [vmem:[#allocation2] sm:$0x3] }
  0x86   :  { %v50_v5 = vpop.f32.mrf.mxu0 }
  0x87   :  { %v54_v6 = vadd.f32 %v50_v5, %v20_v4 }
  0x89   :  { %56 = vst.msk [vmem:[#allocation2] sm:$0x3] %vm17_vm0, %v54_v6 }
  0x8e   :  { %v52_v7 = vpop.f32.mrf.mxu0 }
  0x90   :  { %v60_v8 = vld [vmem:[#allocation2] sm:$0x3] }
  0x91   :  { %61 = vst.msk [vmem:[#allocation3] sm:$0x3] %vm17_vm0, %v60_v8 }
  0x92   :  { %72 = dma.vmem_to_hbm [thread:$0]  %s68_s16, 32, %s70_s1, [#allocation4]  }
  0x93   :  { %115 = dma.done.wait [#allocation4], 32  }
  0x94   :  { %116 = vsyncadd [#allocation4], 4294967264 }
  0x95   :  { %77 = vsyncpa [#allocation4], 1 }

</bundles_post_ra>
